<compile_context>
chip_gen: v5e
topology: v5e:2x2
jax: 0.10.0
libtpu: 0.0.40
codegen_flags: <defaults>
</compile_context>

<pallas_src>
import functools

import numpy as np
import jax
import jax.numpy as jnp
from jax import lax
from jax.experimental import pallas as pl
from jax.experimental.pallas import tpu as pltpu

F32 = jnp.float32
VMEM = pltpu.MemorySpace.VMEM


# ----------------------------------------------------------------------------
# Fused mega-kernel: input_feat MLP + 3 GTrXL layers + actor/critic heads
# ----------------------------------------------------------------------------
def _mlp_base_kernel(
    x_ref, wif_ref, sincos_ref, csblk_ref, mask_ref, ones_ref, pmat_ref,
    wbig_ref, wofold_ref, wbot_ref, wug_ref, bmisc_ref, wff1_ref, wff2_ref,
    hw1_ref, hw2_ref, cl_ref,
    value_ref, actor_ref,
    *, S, B, D, H, dh, dff, L):
  N = B * S
  Hdh = H * dh
  W4 = H * D              # width of the position-coefficient block
  HK = W4 // 2
  D3 = 3 * D

  def dot(a, b):
    return jnp.dot(a, b, preferred_element_type=F32)

  def dot_nt(a, b):       # a @ b.T
    return lax.dot_general(a, b, (((1,), (1,)), ((), ())),
                           preferred_element_type=F32)

  def sigmoid(t):         # exact sigmoid on the EUP (no divide)
    return 0.5 * (jnp.tanh(0.5 * t) + 1.0)

  def layer_norm(x, eps=1e-5):
    mu = jnp.mean(x, axis=-1, keepdims=True)
    xc = x - mu
    var = jnp.mean(xc * xc, axis=-1, keepdims=True)
    return xc * lax.rsqrt(var + eps)

  obs = x_ref.shape[1]

  # ---- input_feat MLP (Linear+Tanh, Linear+Tanh); tokens b-major: row = b*S + s ----
  h0 = jnp.tanh(dot(x_ref[...], wif_ref[0:obs, :])
                + wif_ref[obs + D:obs + D + 1, :])
  cur = jnp.tanh(dot(h0, wif_ref[obs:obs + D, :])
                 + wif_ref[obs + D + 1:obs + D + 2, :])          # (N, D)

  for l in range(L):
    # fused q/k/v + position-coefficient projection (LN1 affine, u/v biases and the
    # 1/sqrt(dh) scale already folded into the packed weight/bias).
    wb = wbig_ref[l]                                             # (D+1, 3*Hdh + W4)
    big = dot(layer_norm(cur), wb[0:D, :]) + wb[D:D + 1, :]      # (N, 3*Hdh + W4)
    qu = big[:, 0:Hdh]                                           # q + u  (content path)
    k2 = big[:, Hdh:2 * Hdh]
    v2 = big[:, 2 * Hdh:3 * Hdh]
    wpos = big[:, 3 * Hdh:3 * Hdh + W4]                          # (q + v) @ Wp^T (reordered)

    # exact Transformer-XL rel_shift via angle-addition identity (constants precomputed)
    w_sin = wpos[:, 0:HK]
    w_cos = wpos[:, HK:W4]
    sin_s = sincos_ref[0]
    cos_s = sincos_ref[1]
    alpha = w_sin * sin_s + w_cos * cos_s
    beta = w_cos * sin_s - w_sin * cos_s
    scores = dot(alpha, csblk_ref[0]) + dot(beta, csblk_ref[1]) + mask_ref[...]

    # per-head content scores over ALL tokens; cross-batch / causal entries are masked
    cont = []
    for h in range(H):
      cont.append(dot_nt(qu[:, h * dh:(h + 1) * dh], k2[:, h * dh:(h + 1) * dh]))
    scores = scores + jnp.concatenate(cont, axis=1)              # (N, H*N)

    # one shared softmax (global row max; per-head denominators via block-diag ones)
    m = jnp.max(scores, axis=-1, keepdims=True)
    e = jnp.exp(scores - m)
    den = dot(e, ones_ref[...]) + 1e-37
    probs = e * pl.reciprocal(den, approx=True)

    ctx = []
    for h in range(H):
      ctx.append(dot(probs[:, h * N:(h + 1) * N], v2[:, h * dh:(h + 1) * dh]))
    ctx = jnp.concatenate(ctx, axis=1)                           # (N, Hdh)

    # GRU gate 1 (attention output projection w_o folded into wofold at pack time)
    bm = bmisc_ref[l]                                            # (5, 3D)
    t = dot(ctx, wofold_ref[l]) + dot(cur, wbot_ref[l, 0]) + bm[0:1, :]
    r = sigmoid(t[:, 0:D])
    z = sigmoid(t[:, D:2 * D])
    hcand = jnp.tanh(t[:, 2 * D:D3] + dot(r * cur, wug_ref[l, 0]) + bm[2:3, 0:D])
    src = cur + z * (hcand - cur)

    # position-wise FF (LN2 affine folded into ff_w1; ff_w2/ff_b2 folded into gate 2)
    f = jnp.maximum(dot(layer_norm(src), wff1_ref[l]) + bm[4:5, 0:dff], 0.0)
    t = dot(f, wff2_ref[l]) + dot(src, wbot_ref[l, 1]) + bm[1:2, :]
    r = sigmoid(t[:, 0:D])
    z = sigmoid(t[:, D:2 * D])
    hcand = jnp.tanh(t[:, 2 * D:D3] + dot(r * src, wug_ref[l, 1]) + bm[3:4, 0:D])
    cur = src + z * (hcand - src)

  # torch raw .view((B, -1)) of the (S, B, D) logits: one constant row permutation,
  # then fused critic|actor heads (column-concat / block-diagonal weights).
  y = dot(pmat_ref[...], cur)                                    # rows ordered (r, i)
  acc = None
  for r in range(S):
    term = dot(y[r * B:(r + 1) * B, :], hw1_ref[r])              # (B, 2D)
    acc = term if acc is None else acc + term
  h1 = jnp.tanh(acc + hw2_ref[2 * D:2 * D + 1, :])
  h2 = jnp.tanh(dot(h1, hw2_ref[0:2 * D, :]) + hw2_ref[2 * D + 1:2 * D + 2, :])
  value_ref[...] = dot(h2[:, 0:D], cl_ref[0:D, :]) + cl_ref[D:D + 1, :]
  actor_ref[...] = h2[:, D:2 * D]


# ----------------------------------------------------------------------------
# Pack-time weight fusion (done once, outside jit)
# ----------------------------------------------------------------------------
def pack_params(params, n_heads, d_head, bg=0.1):
  H, dh = n_heads, d_head
  Hdh = H * dh
  npf = lambda a: np.asarray(a, dtype=np.float32)

  if_w1 = npf(params["if_w1"]); if_b1 = npf(params["if_b1"])
  if_w2 = npf(params["if_w2"]); if_b2 = npf(params["if_b2"])
  D = if_w2.shape[0]
  K = D // 2
  layers = params["layers"]
  scale = 1.0 / float(dh) ** 0.5

  u_row = npf(params["u"]).reshape(1, Hdh) * scale
  v_row = npf(params["v"]).reshape(1, Hdh) * scale

  wbig_l, wofold_l, wbot_l, wug_l, bmisc_l, wff1_l, wff2_l = [], [], [], [], [], [], []

  def gate_parts(w, b):
    wtop = np.concatenate([w[0], w[2], w[4]], axis=1)                     # [Wr|Wz|Wg]
    wbot = np.concatenate([w[1], w[3], np.zeros_like(w[5])], axis=1)      # [Ur|Uz|0]
    bc = np.concatenate([b[0] + b[1], b[2] + b[3] - bg, b[4]], axis=1)
    return wtop, wbot, w[5], b[5], bc

  def pad_row(row, width):
    out = np.zeros((1, width), np.float32)
    out[:, :row.shape[1]] = row
    return out

  for lp in layers:
    w_q = npf(lp["w_q"]) * scale
    w_kv = npf(lp["w_kv"])
    w_p = npf(lp["w_p"])
    w_o = npf(lp["w_o"])
    ln1_g = npf(lp["ln1_g"]); ln1_b = npf(lp["ln1_b"])
    ln2_g = npf(lp["ln2_g"]); ln2_b = npf(lp["ln2_b"])

    # per-head transpose of w_p, columns reordered to [all-head sin | all-head cos]
    wpT = np.zeros((Hdh, H * D), np.float32)
    for h in range(H):
      blk = w_p[:, h * dh:(h + 1) * dh]                 # (D, dh)
      wpT[h * dh:(h + 1) * dh, h * K:(h + 1) * K] = blk[:K, :].T
      wpT[h * dh:(h + 1) * dh, H * K + h * K:H * K + (h + 1) * K] = blk[K:, :].T
    w_qp = w_q @ wpT                                    # (D, H*D)
    b_qp = v_row @ wpT                                  # (1, H*D)

    wbig_raw = np.concatenate([w_q, w_kv, w_qp], axis=1)       # (D, 3*Hdh + H*D)
    extra = np.concatenate([u_row, np.zeros((1, 2 * Hdh), np.float32), b_qp], axis=1)
    bbig = ln1_b @ wbig_raw + extra
    wbig = wbig_raw * ln1_g.reshape(D, 1)
    wbig_l.append(np.concatenate([wbig, bbig], axis=0))        # (D+1, ...)

    wtop1, wbot1, ug1, bug1, bc1 = gate_parts(npf(lp["g1_w"]), npf(lp["g1_b"]))
    wtop2, wbot2, ug2, bug2, bc2 = gate_parts(npf(lp["g2_w"]), npf(lp["g2_b"]))

    ff_w1 = npf(lp["ff_w1"]); ff_b1 = npf(lp["ff_b1"])
    ff_w2 = npf(lp["ff_w2"]); ff_b2 = npf(lp["ff_b2"])

    wofold_l.append(w_o @ wtop1)                               # (Hdh, 3D)
    wff2_l.append(ff_w2 @ wtop2)                               # (dff, 3D)
    bc2 = bc2 + ff_b2 @ wtop2
    wff1_l.append(ff_w1 * ln2_g.reshape(D, 1))
    bff1 = ff_b1 + ln2_b @ ff_w1

    wbot_l.append(np.stack([wbot1, wbot2]))                    # (2, D, 3D)
    wug_l.append(np.stack([ug1, ug2]))                         # (2, D, D)
    bmisc_l.append(np.concatenate(
        [pad_row(bc1, 3 * D), pad_row(bc2, 3 * D), pad_row(bug1, 3 * D),
         pad_row(bug2, 3 * D), pad_row(bff1, 3 * D)], axis=0))  # (5, 3D)

  # fused actor/critic heads
  c_w1 = npf(params["c_w1"]); c_b1 = npf(params["c_b1"])
  c_w2 = npf(params["c_w2"]); c_b2 = npf(params["c_b2"])
  a_w1 = npf(params["a_w1"]); a_b1 = npf(params["a_b1"])
  a_w2 = npf(params["a_w2"]); a_b2 = npf(params["a_b2"])
  cl_w = npf(params["cl_w"]); cl_b = npf(params["cl_b"])
  S = c_w1.shape[0] // D
  w1cat = np.concatenate([c_w1, a_w1], axis=1)                 # (S*D, 2D)
  hw1 = w1cat.reshape(S, D, 2 * D)
  w2blk = np.zeros((2 * D, 2 * D), np.float32)
  w2blk[:D, :D] = c_w2
  w2blk[D:, D:] = a_w2
  hw2 = np.concatenate([w2blk,
                        np.concatenate([c_b1, a_b1], axis=1),
                        np.concatenate([c_b2, a_b2], axis=1)], axis=0)   # (2D+2, 2D)
  cl = np.concatenate([cl_w, cl_b], axis=0)                    # (D+1, 1)
  wif = np.concatenate([if_w1, if_w2, if_b1, if_b2], axis=0)   # (obs+D+2, D)

  return dict(
      wif=jnp.asarray(wif),
      wbig=jnp.asarray(np.stack(wbig_l)),
      wofold=jnp.asarray(np.stack(wofold_l)),
      wbot=jnp.asarray(np.stack(wbot_l)),
      wug=jnp.asarray(np.stack(wug_l)),
      bmisc=jnp.asarray(np.stack(bmisc_l)),
      wff1=jnp.asarray(np.stack(wff1_l)),
      wff2fold=jnp.asarray(np.stack(wff2_l)),
      hw1=jnp.asarray(hw1),
      hw2=jnp.asarray(hw2),
      cl=jnp.asarray(cl),
  )


# ----------------------------------------------------------------------------
# Wrapper: compile-time constants + single pallas_call
# ----------------------------------------------------------------------------
def mlp_base_forward(packed, inputs, *, n_heads, d_head, n_layers, hidden):
  S, B, obs_dim = inputs.shape
  H, dh, D, L = n_heads, d_head, hidden, n_layers
  N = B * S
  K = D // 2
  dff = packed["wff1"].shape[-1]

  # sinusoidal phase constants (first call: empty TXL memory, T == S)
  inv_freq = 1.0 / (10000.0 ** (np.arange(0.0, D, 2.0, dtype=np.float32) / D))
  s_idx = (np.arange(N) % S).astype(np.float32)                  # query position s(n)
  sin_s = np.sin(np.outer(s_idx, inv_freq))
  cos_s = np.cos(np.outer(s_idx, inv_freq))
  sincos = np.stack([np.tile(sin_s, (1, H)),
                     np.tile(cos_s, (1, H))]).astype(np.float32)  # (2, N, H*K)

  t_idx = (np.arange(N) % S).astype(np.float32)                  # key position t(m)
  cos_t = np.cos(np.outer(inv_freq, t_idx))
  sin_t = np.sin(np.outer(inv_freq, t_idx))
  cblk = np.zeros((H * K, H * N), np.float32)
  sblk = np.zeros((H * K, H * N), np.float32)
  for h in range(H):
    cblk[h * K:(h + 1) * K, h * N:(h + 1) * N] = cos_t
    sblk[h * K:(h + 1) * K, h * N:(h + 1) * N] = sin_t
  csblk = np.stack([cblk, sblk])

  # causal + same-batch mask over the (N, H*N) token-token score slab
  row = np.arange(N)[:, None]
  col = np.arange(H * N)[None, :]
  m_tok = col % N
  bad = ((m_tok // S) != (row // S)) | ((m_tok % S) > (row % S))
  maskc = np.where(bad, -1e30, 0.0).astype(np.float32)

  # per-head softmax denominator (block-diagonal ones)
  onesblk = (((np.arange(H * N)[:, None] // N) ==
              (np.arange(H * N)[None, :] // N)).astype(np.float32))

  # row permutation reproducing torch's raw .view((B, -1)) on the (S, B, D) logits
  pmat = np.zeros((N, N), np.float32)
  for i in range(B):
    for r in range(S):
      q = i * S + r
      pmat[r * B + i, (q % B) * S + (q // B)] = 1.0

  x_bmaj = jnp.transpose(inputs, (1, 0, 2)).reshape(N, obs_dim)

  args = (x_bmaj, packed["wif"], jnp.asarray(sincos), jnp.asarray(csblk),
          jnp.asarray(maskc), jnp.asarray(onesblk), jnp.asarray(pmat),
          packed["wbig"], packed["wofold"], packed["wbot"], packed["wug"],
          packed["bmisc"], packed["wff1"], packed["wff2fold"],
          packed["hw1"], packed["hw2"], packed["cl"])

  kernel = functools.partial(_mlp_base_kernel, S=S, B=B, D=D, H=H, dh=dh,
                             dff=int(dff), L=L)
  value, hidden_actor = pl.pallas_call(
      kernel,
      out_shape=(jax.ShapeDtypeStruct((B, 1), F32),
                 jax.ShapeDtypeStruct((B, D), F32)),
      in_specs=[pl.BlockSpec(memory_space=VMEM)] * len(args),
      out_specs=(pl.BlockSpec(memory_space=VMEM),
                 pl.BlockSpec(memory_space=VMEM)),
  )(*args)
  return value, hidden_actor


# ----------------------------------------------------------------------------
# Deterministic synthetic parameter init (torch-like layouts)
# ----------------------------------------------------------------------------
def init_params(key, obs_dim, num_inputs, hidden, n_layers, n_heads, d_head, d_ff):
  keys = iter(jax.random.split(key, 256))

  def w(shape, scale=0.1):
    return (scale * jax.random.normal(next(keys), shape)).astype(F32)

  def zeros(*shape):
    return jnp.zeros(shape, F32)

  params = {
      "if_w1": w((obs_dim, hidden)), "if_b1": zeros(1, hidden),
      "if_w2": w((hidden, hidden)), "if_b2": zeros(1, hidden),
      "a_w1": w((num_inputs, hidden)), "a_b1": zeros(1, hidden),
      "a_w2": w((hidden, hidden)), "a_b2": zeros(1, hidden),
      "c_w1": w((num_inputs, hidden)), "c_b1": zeros(1, hidden),
      "c_w2": w((hidden, hidden)), "c_b2": zeros(1, hidden),
      "cl_w": w((hidden, 1)), "cl_b": zeros(1, 1),
      "u": w((n_heads, d_head)), "v": w((n_heads, d_head)),
      "layers": [],
  }
  for _ in range(n_layers):
    params["layers"].append({
        "ln1_g": jnp.ones((1, hidden), F32), "ln1_b": zeros(1, hidden),
        "ln2_g": jnp.ones((1, hidden), F32), "ln2_b": zeros(1, hidden),
        "w_kv": w((hidden, 2 * n_heads * d_head)),
        "w_q": w((hidden, n_heads * d_head)),
        "w_p": w((hidden, n_heads * d_head)),
        "w_o": w((n_heads * d_head, hidden)),
        "g1_w": w((6, hidden, hidden)), "g1_b": zeros(6, 1, hidden),
        "g2_w": w((6, hidden, hidden)), "g2_b": zeros(6, 1, hidden),
        "ff_w1": w((hidden, d_ff)), "ff_b1": zeros(1, d_ff),
        "ff_w2": w((d_ff, hidden)), "ff_b2": zeros(1, hidden),
    })
  return params


if __name__ == "__main__":
  S, B = 8, 4                    # sequence length (len(inputs)), batch size
  obs_dim = 16                   # obs_shape[0]
  hidden = 32                    # hidden_size
  n_layers, n_heads, d_head, d_ff = 3, 4, 32, 64
  num_inputs = S * hidden        # actor/critic consume the (B, S*hidden) flattened output

  key = jax.random.PRNGKey(0)
  pkey, xkey = jax.random.split(key)
  params = init_params(pkey, obs_dim, num_inputs, hidden, n_layers, n_heads, d_head, d_ff)
  packed = pack_params(params, n_heads, d_head)          # pack-time weight fusion
  inputs = jax.random.normal(xkey, (S, B, obs_dim), dtype=F32)

  fwd = jax.jit(functools.partial(mlp_base_forward, n_heads=n_heads, d_head=d_head,
                                  n_layers=n_layers, hidden=hidden))
  value, hidden_actor = fwd(packed, inputs)
  jax.block_until_ready((value, hidden_actor))

  assert value.shape == (B, 1), value.shape
  assert hidden_actor.shape == (B, hidden), hidden_actor.shape
  assert bool(jnp.all(jnp.isfinite(value))) and bool(jnp.all(jnp.isfinite(hidden_actor)))
  print("KERNEL_OK")
</pallas_src>

<mosaic_0001>
module attributes {stable_mosaic.version = 11 : i64} {
  func.func @_mlp_base_kernel(%arg0: memref<32x16xf32, #tpu.memory_space<vmem>>, %arg1: memref<50x32xf32, #tpu.memory_space<vmem>>, %arg2: memref<2x32x64xf32, #tpu.memory_space<vmem>>, %arg3: memref<2x64x128xf32, #tpu.memory_space<vmem>>, %arg4: memref<32x128xf32, #tpu.memory_space<vmem>>, %arg5: memref<128x128xf32, #tpu.memory_space<vmem>>, %arg6: memref<32x32xf32, #tpu.memory_space<vmem>>, %arg7: memref<3x33x512xf32, #tpu.memory_space<vmem>>, %arg8: memref<3x128x96xf32, #tpu.memory_space<vmem>>, %arg9: memref<3x2x32x96xf32, #tpu.memory_space<vmem>>, %arg10: memref<3x2x32x32xf32, #tpu.memory_space<vmem>>, %arg11: memref<3x5x96xf32, #tpu.memory_space<vmem>>, %arg12: memref<3x32x64xf32, #tpu.memory_space<vmem>>, %arg13: memref<3x64x96xf32, #tpu.memory_space<vmem>>, %arg14: memref<8x32x64xf32, #tpu.memory_space<vmem>>, %arg15: memref<66x64xf32, #tpu.memory_space<vmem>>, %arg16: memref<33x1xf32, #tpu.memory_space<vmem>>, %arg17: memref<4x1xf32, #tpu.memory_space<vmem>>, %arg18: memref<4x32xf32, #tpu.memory_space<vmem>>) attributes {dimension_semantics = [], scalar_prefetch = 0 : i64, scratch_operands = 0 : i64, tpu.core_type = #tpu.core_type<tc>} {
    %c0 = arith.constant 0 : index
    %c0_0 = arith.constant 0 : index
    %0 = vector.load %arg0[%c0, %c0_0] : memref<32x16xf32, #tpu.memory_space<vmem>>, vector<32x16xf32>
    %c0_1 = arith.constant 0 : index
    %c0_2 = arith.constant 0 : index
    %1 = vector.load %arg1[%c0_1, %c0_2] : memref<50x32xf32, #tpu.memory_space<vmem>>, vector<16x32xf32>
    %cst = arith.constant dense<0.000000e+00> : vector<32x32xf32>
    %2 = tpu.matmul %0, %1, %cst {dimension_numbers = #tpu.dot_dimension_numbers<[1], [0], [0], [1], [0, 0, 1, 1], [], []>} : vector<32x16xf32>, vector<16x32xf32>, vector<32x32xf32> -> vector<32x32xf32>
    %c48 = arith.constant 48 : index
    %c0_3 = arith.constant 0 : index
    %3 = vector.load %arg1[%c48, %c0_3] : memref<50x32xf32, #tpu.memory_space<vmem>>, vector<1x32xf32>
    %4 = vector.broadcast %3 : vector<1x32xf32> to vector<32x32xf32>
    %5 = arith.addf %2, %4 : vector<32x32xf32>
    %6 = math.tanh %5 : vector<32x32xf32>
    %c16 = arith.constant 16 : index
    %c0_4 = arith.constant 0 : index
    %7 = vector.load %arg1[%c16, %c0_4] : memref<50x32xf32, #tpu.memory_space<vmem>>, vector<32x32xf32>
    %cst_5 = arith.constant dense<0.000000e+00> : vector<32x32xf32>
    %8 = tpu.matmul %6, %7, %cst_5 {dimension_numbers = #tpu.dot_dimension_numbers<[1], [0], [0], [1], [0, 0, 1, 1], [], []>} : vector<32x32xf32>, vector<32x32xf32>, vector<32x32xf32> -> vector<32x32xf32>
    %c49 = arith.constant 49 : index
    %c0_6 = arith.constant 0 : index
    %9 = vector.load %arg1[%c49, %c0_6] : memref<50x32xf32, #tpu.memory_space<vmem>>, vector<1x32xf32>
    %10 = vector.broadcast %9 : vector<1x32xf32> to vector<32x32xf32>
    %11 = arith.addf %8, %10 : vector<32x32xf32>
    %12 = math.tanh %11 : vector<32x32xf32>
    %c0_7 = arith.constant 0 : index
    %c0_8 = arith.constant 0 : index
    %c0_9 = arith.constant 0 : index
    %13 = vector.load %arg7[%c0_7, %c0_8, %c0_9] : memref<3x33x512xf32, #tpu.memory_space<vmem>>, vector<1x33x512xf32>
    %14 = vector.shape_cast %13 : vector<1x33x512xf32> to vector<33x512xf32>
    %cst_10 = arith.constant dense<0.000000e+00> : vector<32xf32>
    %15 = vector.multi_reduction <add>, %12, %cst_10 [1] : vector<32x32xf32> to vector<32xf32>
    %16 = vector.shape_cast %15 : vector<32xf32> to vector<32x1xf32>
    %cst_11 = arith.constant 3.200000e+01 : f32
    %17 = vector.broadcast %cst_11 : f32 to vector<32x1xf32>
    %18 = arith.divf %16, %17 : vector<32x1xf32>
    %19 = vector.broadcast %18 : vector<32x1xf32> to vector<32x32xf32>
    %20 = arith.subf %12, %19 : vector<32x32xf32>
    %21 = arith.mulf %20, %20 : vector<32x32xf32>
    %cst_12 = arith.constant dense<0.000000e+00> : vector<32xf32>
    %22 = vector.multi_reduction <add>, %21, %cst_12 [1] : vector<32x32xf32> to vector<32xf32>
    %23 = vector.shape_cast %22 : vector<32xf32> to vector<32x1xf32>
    %cst_13 = arith.constant 3.200000e+01 : f32
    %24 = vector.broadcast %cst_13 : f32 to vector<32x1xf32>
    %25 = arith.divf %23, %24 : vector<32x1xf32>
    %cst_14 = arith.constant 9.99999974E-6 : f32
    %26 = vector.broadcast %cst_14 : f32 to vector<32x1xf32>
    %27 = arith.addf %25, %26 : vector<32x1xf32>
    %28 = math.rsqrt %27 : vector<32x1xf32>
    %29 = vector.broadcast %28 : vector<32x1xf32> to vector<32x32xf32>
    %30 = arith.mulf %20, %29 : vector<32x32xf32>
    %31 = vector.extract_strided_slice %14 {offsets = [0, 0], sizes = [32, 512], strides = [1, 1]} : vector<33x512xf32> to vector<32x512xf32>
    %cst_15 = arith.constant dense<0.000000e+00> : vector<32x512xf32>
    %32 = tpu.matmul %30, %31, %cst_15 {dimension_numbers = #tpu.dot_dimension_numbers<[1], [0], [0], [1], [0, 0, 1, 1], [], []>} : vector<32x32xf32>, vector<32x512xf32>, vector<32x512xf32> -> vector<32x512xf32>
    %33 = vector.extract_strided_slice %14 {offsets = [32, 0], sizes = [1, 512], strides = [1, 1]} : vector<33x512xf32> to vector<1x512xf32>
    %34 = vector.broadcast %33 : vector<1x512xf32> to vector<32x512xf32>
    %35 = arith.addf %32, %34 : vector<32x512xf32>
    %36 = vector.extract_strided_slice %35 {offsets = [0, 0], sizes = [32, 128], strides = [1, 1]} : vector<32x512xf32> to vector<32x128xf32>
    %37 = vector.extract_strided_slice %35 {offsets = [0, 128], sizes = [32, 128], strides = [1, 1]} : vector<32x512xf32> to vector<32x128xf32>
    %38 = vector.extract_strided_slice %35 {offsets = [0, 256], sizes = [32, 128], strides = [1, 1]} : vector<32x512xf32> to vector<32x128xf32>
    %39 = vector.extract_strided_slice %35 {offsets = [0, 384], sizes = [32, 128], strides = [1, 1]} : vector<32x512xf32> to vector<32x128xf32>
    %40 = vector.extract_strided_slice %39 {offsets = [0, 0], sizes = [32, 64], strides = [1, 1]} : vector<32x128xf32> to vector<32x64xf32>
    %41 = vector.extract_strided_slice %39 {offsets = [0, 64], sizes = [32, 64], strides = [1, 1]} : vector<32x128xf32> to vector<32x64xf32>
    %c0_16 = arith.constant 0 : index
    %c0_17 = arith.constant 0 : index
    %c0_18 = arith.constant 0 : index
    %42 = vector.load %arg2[%c0_16, %c0_17, %c0_18] : memref<2x32x64xf32, #tpu.memory_space<vmem>>, vector<1x32x64xf32>
    %43 = vector.shape_cast %42 : vector<1x32x64xf32> to vector<32x64xf32>
    %c1 = arith.constant 1 : index
    %c0_19 = arith.constant 0 : index
    %c0_20 = arith.constant 0 : index
    %44 = vector.load %arg2[%c1, %c0_19, %c0_20] : memref<2x32x64xf32, #tpu.memory_space<vmem>>, vector<1x32x64xf32>
    %45 = vector.shape_cast %44 : vector<1x32x64xf32> to vector<32x64xf32>
    %46 = arith.mulf %40, %43 : vector<32x64xf32>
    %47 = arith.mulf %41, %45 : vector<32x64xf32>
    %48 = arith.addf %46, %47 : vector<32x64xf32>
    %49 = arith.mulf %41, %43 : vector<32x64xf32>
    %50 = arith.mulf %40, %45 : vector<32x64xf32>
    %51 = arith.subf %49, %50 : vector<32x64xf32>
    %c0_21 = arith.constant 0 : index
    %c0_22 = arith.constant 0 : index
    %c0_23 = arith.constant 0 : index
    %52 = vector.load %arg3[%c0_21, %c0_22, %c0_23] : memref<2x64x128xf32, #tpu.memory_space<vmem>>, vector<1x64x128xf32>
    %53 = vector.shape_cast %52 : vector<1x64x128xf32> to vector<64x128xf32>
    %cst_24 = arith.constant dense<0.000000e+00> : vector<32x128xf32>
    %54 = tpu.matmul %48, %53, %cst_24 {dimension_numbers = #tpu.dot_dimension_numbers<[1], [0], [0], [1], [0, 0, 1, 1], [], []>} : vector<32x64xf32>, vector<64x128xf32>, vector<32x128xf32> -> vector<32x128xf32>
    %c1_25 = arith.constant 1 : index
    %c0_26 = arith.constant 0 : index
    %c0_27 = arith.constant 0 : index
    %55 = vector.load %arg3[%c1_25, %c0_26, %c0_27] : memref<2x64x128xf32, #tpu.memory_space<vmem>>, vector<1x64x128xf32>
    %56 = vector.shape_cast %55 : vector<1x64x128xf32> to vector<64x128xf32>
    %cst_28 = arith.constant dense<0.000000e+00> : vector<32x128xf32>
    %57 = tpu.matmul %51, %56, %cst_28 {dimension_numbers = #tpu.dot_dimension_numbers<[1], [0], [0], [1], [0, 0, 1, 1], [], []>} : vector<32x64xf32>, vector<64x128xf32>, vector<32x128xf32> -> vector<32x128xf32>
    %58 = arith.addf %54, %57 : vector<32x128xf32>
    %c0_29 = arith.constant 0 : index
    %c0_30 = arith.constant 0 : index
    %59 = vector.load %arg4[%c0_29, %c0_30] : memref<32x128xf32, #tpu.memory_space<vmem>>, vector<32x128xf32>
    %60 = arith.addf %58, %59 : vector<32x128xf32>
    %61 = vector.extract_strided_slice %36 {offsets = [0, 0], sizes = [32, 32], strides = [1, 1]} : vector<32x128xf32> to vector<32x32xf32>
    %62 = vector.extract_strided_slice %37 {offsets = [0, 0], sizes = [32, 32], strides = [1, 1]} : vector<32x128xf32> to vector<32x32xf32>
    %cst_31 = arith.constant dense<0.000000e+00> : vector<32x32xf32>
    %63 = tpu.matmul %61, %62, %cst_31 {dimension_numbers = #tpu.dot_dimension_numbers<[1], [1], [0], [0], [0, 0, 1, 0], [], []>} : vector<32x32xf32>, vector<32x32xf32>, vector<32x32xf32> -> vector<32x32xf32>
    %64 = vector.extract_strided_slice %36 {offsets = [0, 32], sizes = [32, 32], strides = [1, 1]} : vector<32x128xf32> to vector<32x32xf32>
    %65 = vector.extract_strided_slice %37 {offsets = [0, 32], sizes = [32, 32], strides = [1, 1]} : vector<32x128xf32> to vector<32x32xf32>
    %cst_32 = arith.constant dense<0.000000e+00> : vector<32x32xf32>
    %66 = tpu.matmul %64, %65, %cst_32 {dimension_numbers = #tpu.dot_dimension_numbers<[1], [1], [0], [0], [0, 0, 1, 0], [], []>} : vector<32x32xf32>, vector<32x32xf32>, vector<32x32xf32> -> vector<32x32xf32>
    %67 = vector.extract_strided_slice %36 {offsets = [0, 64], sizes = [32, 32], strides = [1, 1]} : vector<32x128xf32> to vector<32x32xf32>
    %68 = vector.extract_strided_slice %37 {offsets = [0, 64], sizes = [32, 32], strides = [1, 1]} : vector<32x128xf32> to vector<32x32xf32>
    %cst_33 = arith.constant dense<0.000000e+00> : vector<32x32xf32>
    %69 = tpu.matmul %67, %68, %cst_33 {dimension_numbers = #tpu.dot_dimension_numbers<[1], [1], [0], [0], [0, 0, 1, 0], [], []>} : vector<32x32xf32>, vector<32x32xf32>, vector<32x32xf32> -> vector<32x32xf32>
    %70 = vector.extract_strided_slice %36 {offsets = [0, 96], sizes = [32, 32], strides = [1, 1]} : vector<32x128xf32> to vector<32x32xf32>
    %71 = vector.extract_strided_slice %37 {offsets = [0, 96], sizes = [32, 32], strides = [1, 1]} : vector<32x128xf32> to vector<32x32xf32>
    %cst_34 = arith.constant dense<0.000000e+00> : vector<32x32xf32>
    %72 = tpu.matmul %70, %71, %cst_34 {dimension_numbers = #tpu.dot_dimension_numbers<[1], [1], [0], [0], [0, 0, 1, 0], [], []>} : vector<32x32xf32>, vector<32x32xf32>, vector<32x32xf32> -> vector<32x32xf32>
    %73 = tpu.concatenate %63, %66, %69, %72 in 1 : vector<32x32xf32>, vector<32x32xf32>, vector<32x32xf32>, vector<32x32xf32> -> vector<32x128xf32>
    %74 = arith.addf %60, %73 : vector<32x128xf32>
    %cst_35 = arith.constant dense<0xFF800000> : vector<32xf32>
    %75 = vector.multi_reduction <maximumf>, %74, %cst_35 [1] : vector<32x128xf32> to vector<32xf32>
    %76 = vector.shape_cast %75 : vector<32xf32> to vector<32x1xf32>
    %77 = vector.broadcast %76 : vector<32x1xf32> to vector<32x128xf32>
    %78 = arith.subf %74, %77 : vector<32x128xf32>
    %79 = math.exp %78 : vector<32x128xf32>
    %c0_36 = arith.constant 0 : index
    %c0_37 = arith.constant 0 : index
    %80 = vector.load %arg5[%c0_36, %c0_37] : memref<128x128xf32, #tpu.memory_space<vmem>>, vector<128x128xf32>
    %cst_38 = arith.constant dense<0.000000e+00> : vector<32x128xf32>
    %81 = tpu.matmul %79, %80, %cst_38 {dimension_numbers = #tpu.dot_dimension_numbers<[1], [0], [0], [1], [0, 0, 1, 1], [], []>} : vector<32x128xf32>, vector<128x128xf32>, vector<32x128xf32> -> vector<32x128xf32>
    %cst_39 = arith.constant 9.99999991E-38 : f32
    %82 = vector.broadcast %cst_39 : f32 to vector<32x128xf32>
    %83 = arith.addf %81, %82 : vector<32x128xf32>
    %84 = tpu.reciprocal %83 {approx = true} : vector<32x128xf32> -> vector<32x128xf32>
    %85 = arith.mulf %79, %84 : vector<32x128xf32>
    %86 = vector.extract_strided_slice %85 {offsets = [0, 0], sizes = [32, 32], strides = [1, 1]} : vector<32x128xf32> to vector<32x32xf32>
    %87 = vector.extract_strided_slice %38 {offsets = [0, 0], sizes = [32, 32], strides = [1, 1]} : vector<32x128xf32> to vector<32x32xf32>
    %cst_40 = arith.constant dense<0.000000e+00> : vector<32x32xf32>
    %88 = tpu.matmul %86, %87, %cst_40 {dimension_numbers = #tpu.dot_dimension_numbers<[1], [0], [0], [1], [0, 0, 1, 1], [], []>} : vector<32x32xf32>, vector<32x32xf32>, vector<32x32xf32> -> vector<32x32xf32>
    %89 = vector.extract_strided_slice %85 {offsets = [0, 32], sizes = [32, 32], strides = [1, 1]} : vector<32x128xf32> to vector<32x32xf32>
    %90 = vector.extract_strided_slice %38 {offsets = [0, 32], sizes = [32, 32], strides = [1, 1]} : vector<32x128xf32> to vector<32x32xf32>
    %cst_41 = arith.constant dense<0.000000e+00> : vector<32x32xf32>
    %91 = tpu.matmul %89, %90, %cst_41 {dimension_numbers = #tpu.dot_dimension_numbers<[1], [0], [0], [1], [0, 0, 1, 1], [], []>} : vector<32x32xf32>, vector<32x32xf32>, vector<32x32xf32> -> vector<32x32xf32>
    %92 = vector.extract_strided_slice %85 {offsets = [0, 64], sizes = [32, 32], strides = [1, 1]} : vector<32x128xf32> to vector<32x32xf32>
    %93 = vector.extract_strided_slice %38 {offsets = [0, 64], sizes = [32, 32], strides = [1, 1]} : vector<32x128xf32> to vector<32x32xf32>
    %cst_42 = arith.constant dense<0.000000e+00> : vector<32x32xf32>
    %94 = tpu.matmul %92, %93, %cst_42 {dimension_numbers = #tpu.dot_dimension_numbers<[1], [0], [0], [1], [0, 0, 1, 1], [], []>} : vector<32x32xf32>, vector<32x32xf32>, vector<32x32xf32> -> vector<32x32xf32>
    %95 = vector.extract_strided_slice %85 {offsets = [0, 96], sizes = [32, 32], strides = [1, 1]} : vector<32x128xf32> to vector<32x32xf32>
    %96 = vector.extract_strided_slice %38 {offsets = [0, 96], sizes = [32, 32], strides = [1, 1]} : vector<32x128xf32> to vector<32x32xf32>
    %cst_43 = arith.constant dense<0.000000e+00> : vector<32x32xf32>
    %97 = tpu.matmul %95, %96, %cst_43 {dimension_numbers = #tpu.dot_dimension_numbers<[1], [0], [0], [1], [0, 0, 1, 1], [], []>} : vector<32x32xf32>, vector<32x32xf32>, vector<32x32xf32> -> vector<32x32xf32>
    %98 = tpu.concatenate %88, %91, %94, %97 in 1 : vector<32x32xf32>, vector<32x32xf32>, vector<32x32xf32>, vector<32x32xf32> -> vector<32x128xf32>
    %c0_44 = arith.constant 0 : index
    %c0_45 = arith.constant 0 : index
    %c0_46 = arith.constant 0 : index
    %99 = vector.load %arg11[%c0_44, %c0_45, %c0_46] : memref<3x5x96xf32, #tpu.memory_space<vmem>>, vector<1x5x96xf32>
    %100 = vector.shape_cast %99 : vector<1x5x96xf32> to vector<5x96xf32>
    %c0_47 = arith.constant 0 : index
    %c0_48 = arith.constant 0 : index
    %c0_49 = arith.constant 0 : index
    %101 = vector.load %arg8[%c0_47, %c0_48, %c0_49] : memref<3x128x96xf32, #tpu.memory_space<vmem>>, vector<1x128x96xf32>
    %102 = vector.shape_cast %101 : vector<1x128x96xf32> to vector<128x96xf32>
    %cst_50 = arith.constant dense<0.000000e+00> : vector<32x96xf32>
    %103 = tpu.matmul %98, %102, %cst_50 {dimension_numbers = #tpu.dot_dimension_numbers<[1], [0], [0], [1], [0, 0, 1, 1], [], []>} : vector<32x128xf32>, vector<128x96xf32>, vector<32x96xf32> -> vector<32x96xf32>
    %c0_51 = arith.constant 0 : index
    %c0_52 = arith.constant 0 : index
    %c0_53 = arith.constant 0 : index
    %c0_54 = arith.constant 0 : index
    %104 = vector.load %arg9[%c0_51, %c0_52, %c0_53, %c0_54] : memref<3x2x32x96xf32, #tpu.memory_space<vmem>>, vector<1x1x32x96xf32>
    %105 = vector.shape_cast %104 : vector<1x1x32x96xf32> to vector<32x96xf32>
    %cst_55 = arith.constant dense<0.000000e+00> : vector<32x96xf32>
    %106 = tpu.matmul %12, %105, %cst_55 {dimension_numbers = #tpu.dot_dimension_numbers<[1], [0], [0], [1], [0, 0, 1, 1], [], []>} : vector<32x32xf32>, vector<32x96xf32>, vector<32x96xf32> -> vector<32x96xf32>
    %107 = arith.addf %103, %106 : vector<32x96xf32>
    %108 = vector.extract_strided_slice %100 {offsets = [0, 0], sizes = [1, 96], strides = [1, 1]} : vector<5x96xf32> to vector<1x96xf32>
    %109 = vector.broadcast %108 : vector<1x96xf32> to vector<32x96xf32>
    %110 = arith.addf %107, %109 : vector<32x96xf32>
    %111 = vector.extract_strided_slice %110 {offsets = [0, 0], sizes = [32, 32], strides = [1, 1]} : vector<32x96xf32> to vector<32x32xf32>
    %cst_56 = arith.constant 5.000000e-01 : f32
    %112 = vector.broadcast %cst_56 : f32 to vector<32x32xf32>
    %113 = arith.mulf %112, %111 : vector<32x32xf32>
    %114 = math.tanh %113 : vector<32x32xf32>
    %cst_57 = arith.constant 1.000000e+00 : f32
    %115 = vector.broadcast %cst_57 : f32 to vector<32x32xf32>
    %116 = arith.addf %114, %115 : vector<32x32xf32>
    %cst_58 = arith.constant 5.000000e-01 : f32
    %117 = vector.broadcast %cst_58 : f32 to vector<32x32xf32>
    %118 = arith.mulf %117, %116 : vector<32x32xf32>
    %119 = vector.extract_strided_slice %110 {offsets = [0, 32], sizes = [32, 32], strides = [1, 1]} : vector<32x96xf32> to vector<32x32xf32>
    %cst_59 = arith.constant 5.000000e-01 : f32
    %120 = vector.broadcast %cst_59 : f32 to vector<32x32xf32>
    %121 = arith.mulf %120, %119 : vector<32x32xf32>
    %122 = math.tanh %121 : vector<32x32xf32>
    %cst_60 = arith.constant 1.000000e+00 : f32
    %123 = vector.broadcast %cst_60 : f32 to vector<32x32xf32>
    %124 = arith.addf %122, %123 : vector<32x32xf32>
    %cst_61 = arith.constant 5.000000e-01 : f32
    %125 = vector.broadcast %cst_61 : f32 to vector<32x32xf32>
    %126 = arith.mulf %125, %124 : vector<32x32xf32>
    %127 = vector.extract_strided_slice %110 {offsets = [0, 64], sizes = [32, 32], strides = [1, 1]} : vector<32x96xf32> to vector<32x32xf32>
    %128 = arith.mulf %118, %12 : vector<32x32xf32>
    %c0_62 = arith.constant 0 : index
    %c0_63 = arith.constant 0 : index
    %c0_64 = arith.constant 0 : index
    %c0_65 = arith.constant 0 : index
    %129 = vector.load %arg10[%c0_62, %c0_63, %c0_64, %c0_65] : memref<3x2x32x32xf32, #tpu.memory_space<vmem>>, vector<1x1x32x32xf32>
    %130 = vector.shape_cast %129 : vector<1x1x32x32xf32> to vector<32x32xf32>
    %cst_66 = arith.constant dense<0.000000e+00> : vector<32x32xf32>
    %131 = tpu.matmul %128, %130, %cst_66 {dimension_numbers = #tpu.dot_dimension_numbers<[1], [0], [0], [1], [0, 0, 1, 1], [], []>} : vector<32x32xf32>, vector<32x32xf32>, vector<32x32xf32> -> vector<32x32xf32>
    %132 = arith.addf %127, %131 : vector<32x32xf32>
    %133 = vector.extract_strided_slice %100 {offsets = [2, 0], sizes = [1, 32], strides = [1, 1]} : vector<5x96xf32> to vector<1x32xf32>
    %134 = vector.broadcast %133 : vector<1x32xf32> to vector<32x32xf32>
    %135 = arith.addf %132, %134 : vector<32x32xf32>
    %136 = math.tanh %135 : vector<32x32xf32>
    %137 = arith.subf %136, %12 : vector<32x32xf32>
    %138 = arith.mulf %126, %137 : vector<32x32xf32>
    %139 = arith.addf %12, %138 : vector<32x32xf32>
    %cst_67 = arith.constant dense<0.000000e+00> : vector<32xf32>
    %140 = vector.multi_reduction <add>, %139, %cst_67 [1] : vector<32x32xf32> to vector<32xf32>
    %141 = vector.shape_cast %140 : vector<32xf32> to vector<32x1xf32>
    %cst_68 = arith.constant 3.200000e+01 : f32
    %142 = vector.broadcast %cst_68 : f32 to vector<32x1xf32>
    %143 = arith.divf %141, %142 : vector<32x1xf32>
    %144 = vector.broadcast %143 : vector<32x1xf32> to vector<32x32xf32>
    %145 = arith.subf %139, %144 : vector<32x32xf32>
    %146 = arith.mulf %145, %145 : vector<32x32xf32>
    %cst_69 = arith.constant dense<0.000000e+00> : vector<32xf32>
    %147 = vector.multi_reduction <add>, %146, %cst_69 [1] : vector<32x32xf32> to vector<32xf32>
    %148 = vector.shape_cast %147 : vector<32xf32> to vector<32x1xf32>
    %cst_70 = arith.constant 3.200000e+01 : f32
    %149 = vector.broadcast %cst_70 : f32 to vector<32x1xf32>
    %150 = arith.divf %148, %149 : vector<32x1xf32>
    %cst_71 = arith.constant 9.99999974E-6 : f32
    %151 = vector.broadcast %cst_71 : f32 to vector<32x1xf32>
    %152 = arith.addf %150, %151 : vector<32x1xf32>
    %153 = math.rsqrt %152 : vector<32x1xf32>
    %154 = vector.broadcast %153 : vector<32x1xf32> to vector<32x32xf32>
    %155 = arith.mulf %145, %154 : vector<32x32xf32>
    %c0_72 = arith.constant 0 : index
    %c0_73 = arith.constant 0 : index
    %c0_74 = arith.constant 0 : index
    %156 = vector.load %arg12[%c0_72, %c0_73, %c0_74] : memref<3x32x64xf32, #tpu.memory_space<vmem>>, vector<1x32x64xf32>
    %157 = vector.shape_cast %156 : vector<1x32x64xf32> to vector<32x64xf32>
    %cst_75 = arith.constant dense<0.000000e+00> : vector<32x64xf32>
    %158 = tpu.matmul %155, %157, %cst_75 {dimension_numbers = #tpu.dot_dimension_numbers<[1], [0], [0], [1], [0, 0, 1, 1], [], []>} : vector<32x32xf32>, vector<32x64xf32>, vector<32x64xf32> -> vector<32x64xf32>
    %159 = vector.extract_strided_slice %100 {offsets = [4, 0], sizes = [1, 64], strides = [1, 1]} : vector<5x96xf32> to vector<1x64xf32>
    %160 = vector.broadcast %159 : vector<1x64xf32> to vector<32x64xf32>
    %161 = arith.addf %158, %160 : vector<32x64xf32>
    %cst_76 = arith.constant 0.000000e+00 : f32
    %162 = vector.broadcast %cst_76 : f32 to vector<32x64xf32>
    %163 = arith.maximumf %161, %162 : vector<32x64xf32>
    %c0_77 = arith.constant 0 : index
    %c0_78 = arith.constant 0 : index
    %c0_79 = arith.constant 0 : index
    %164 = vector.load %arg13[%c0_77, %c0_78, %c0_79] : memref<3x64x96xf32, #tpu.memory_space<vmem>>, vector<1x64x96xf32>
    %165 = vector.shape_cast %164 : vector<1x64x96xf32> to vector<64x96xf32>
    %cst_80 = arith.constant dense<0.000000e+00> : vector<32x96xf32>
    %166 = tpu.matmul %163, %165, %cst_80 {dimension_numbers = #tpu.dot_dimension_numbers<[1], [0], [0], [1], [0, 0, 1, 1], [], []>} : vector<32x64xf32>, vector<64x96xf32>, vector<32x96xf32> -> vector<32x96xf32>
    %c0_81 = arith.constant 0 : index
    %c1_82 = arith.constant 1 : index
    %c0_83 = arith.constant 0 : index
    %c0_84 = arith.constant 0 : index
    %167 = vector.load %arg9[%c0_81, %c1_82, %c0_83, %c0_84] : memref<3x2x32x96xf32, #tpu.memory_space<vmem>>, vector<1x1x32x96xf32>
    %168 = vector.shape_cast %167 : vector<1x1x32x96xf32> to vector<32x96xf32>
    %cst_85 = arith.constant dense<0.000000e+00> : vector<32x96xf32>
    %169 = tpu.matmul %139, %168, %cst_85 {dimension_numbers = #tpu.dot_dimension_numbers<[1], [0], [0], [1], [0, 0, 1, 1], [], []>} : vector<32x32xf32>, vector<32x96xf32>, vector<32x96xf32> -> vector<32x96xf32>
    %170 = arith.addf %166, %169 : vector<32x96xf32>
    %171 = vector.extract_strided_slice %100 {offsets = [1, 0], sizes = [1, 96], strides = [1, 1]} : vector<5x96xf32> to vector<1x96xf32>
    %172 = vector.broadcast %171 : vector<1x96xf32> to vector<32x96xf32>
    %173 = arith.addf %170, %172 : vector<32x96xf32>
    %174 = vector.extract_strided_slice %173 {offsets = [0, 0], sizes = [32, 32], strides = [1, 1]} : vector<32x96xf32> to vector<32x32xf32>
    %cst_86 = arith.constant 5.000000e-01 : f32
    %175 = vector.broadcast %cst_86 : f32 to vector<32x32xf32>
    %176 = arith.mulf %175, %174 : vector<32x32xf32>
    %177 = math.tanh %176 : vector<32x32xf32>
    %cst_87 = arith.constant 1.000000e+00 : f32
    %178 = vector.broadcast %cst_87 : f32 to vector<32x32xf32>
    %179 = arith.addf %177, %178 : vector<32x32xf32>
    %cst_88 = arith.constant 5.000000e-01 : f32
    %180 = vector.broadcast %cst_88 : f32 to vector<32x32xf32>
    %181 = arith.mulf %180, %179 : vector<32x32xf32>
    %182 = vector.extract_strided_slice %173 {offsets = [0, 32], sizes = [32, 32], strides = [1, 1]} : vector<32x96xf32> to vector<32x32xf32>
    %cst_89 = arith.constant 5.000000e-01 : f32
    %183 = vector.broadcast %cst_89 : f32 to vector<32x32xf32>
    %184 = arith.mulf %183, %182 : vector<32x32xf32>
    %185 = math.tanh %184 : vector<32x32xf32>
    %cst_90 = arith.constant 1.000000e+00 : f32
    %186 = vector.broadcast %cst_90 : f32 to vector<32x32xf32>
    %187 = arith.addf %185, %186 : vector<32x32xf32>
    %cst_91 = arith.constant 5.000000e-01 : f32
    %188 = vector.broadcast %cst_91 : f32 to vector<32x32xf32>
    %189 = arith.mulf %188, %187 : vector<32x32xf32>
    %190 = vector.extract_strided_slice %173 {offsets = [0, 64], sizes = [32, 32], strides = [1, 1]} : vector<32x96xf32> to vector<32x32xf32>
    %191 = arith.mulf %181, %139 : vector<32x32xf32>
    %c0_92 = arith.constant 0 : index
    %c1_93 = arith.constant 1 : index
    %c0_94 = arith.constant 0 : index
    %c0_95 = arith.constant 0 : index
    %192 = vector.load %arg10[%c0_92, %c1_93, %c0_94, %c0_95] : memref<3x2x32x32xf32, #tpu.memory_space<vmem>>, vector<1x1x32x32xf32>
    %193 = vector.shape_cast %192 : vector<1x1x32x32xf32> to vector<32x32xf32>
    %cst_96 = arith.constant dense<0.000000e+00> : vector<32x32xf32>
    %194 = tpu.matmul %191, %193, %cst_96 {dimension_numbers = #tpu.dot_dimension_numbers<[1], [0], [0], [1], [0, 0, 1, 1], [], []>} : vector<32x32xf32>, vector<32x32xf32>, vector<32x32xf32> -> vector<32x32xf32>
    %195 = arith.addf %190, %194 : vector<32x32xf32>
    %196 = vector.extract_strided_slice %100 {offsets = [3, 0], sizes = [1, 32], strides = [1, 1]} : vector<5x96xf32> to vector<1x32xf32>
    %197 = vector.broadcast %196 : vector<1x32xf32> to vector<32x32xf32>
    %198 = arith.addf %195, %197 : vector<32x32xf32>
    %199 = math.tanh %198 : vector<32x32xf32>
    %200 = arith.subf %199, %139 : vector<32x32xf32>
    %201 = arith.mulf %189, %200 : vector<32x32xf32>
    %202 = arith.addf %139, %201 : vector<32x32xf32>
    %c1_97 = arith.constant 1 : index
    %c0_98 = arith.constant 0 : index
    %c0_99 = arith.constant 0 : index
    %203 = vector.load %arg7[%c1_97, %c0_98, %c0_99] : memref<3x33x512xf32, #tpu.memory_space<vmem>>, vector<1x33x512xf32>
    %204 = vector.shape_cast %203 : vector<1x33x512xf32> to vector<33x512xf32>
    %cst_100 = arith.constant dense<0.000000e+00> : vector<32xf32>
    %205 = vector.multi_reduction <add>, %202, %cst_100 [1] : vector<32x32xf32> to vector<32xf32>
    %206 = vector.shape_cast %205 : vector<32xf32> to vector<32x1xf32>
    %cst_101 = arith.constant 3.200000e+01 : f32
    %207 = vector.broadcast %cst_101 : f32 to vector<32x1xf32>
    %208 = arith.divf %206, %207 : vector<32x1xf32>
    %209 = vector.broadcast %208 : vector<32x1xf32> to vector<32x32xf32>
    %210 = arith.subf %202, %209 : vector<32x32xf32>
    %211 = arith.mulf %210, %210 : vector<32x32xf32>
    %cst_102 = arith.constant dense<0.000000e+00> : vector<32xf32>
    %212 = vector.multi_reduction <add>, %211, %cst_102 [1] : vector<32x32xf32> to vector<32xf32>
    %213 = vector.shape_cast %212 : vector<32xf32> to vector<32x1xf32>
    %cst_103 = arith.constant 3.200000e+01 : f32
    %214 = vector.broadcast %cst_103 : f32 to vector<32x1xf32>
    %215 = arith.divf %213, %214 : vector<32x1xf32>
    %cst_104 = arith.constant 9.99999974E-6 : f32
    %216 = vector.broadcast %cst_104 : f32 to vector<32x1xf32>
    %217 = arith.addf %215, %216 : vector<32x1xf32>
    %218 = math.rsqrt %217 : vector<32x1xf32>
    %219 = vector.broadcast %218 : vector<32x1xf32> to vector<32x32xf32>
    %220 = arith.mulf %210, %219 : vector<32x32xf32>
    %221 = vector.extract_strided_slice %204 {offsets = [0, 0], sizes = [32, 512], strides = [1, 1]} : vector<33x512xf32> to vector<32x512xf32>
    %cst_105 = arith.constant dense<0.000000e+00> : vector<32x512xf32>
    %222 = tpu.matmul %220, %221, %cst_105 {dimension_numbers = #tpu.dot_dimension_numbers<[1], [0], [0], [1], [0, 0, 1, 1], [], []>} : vector<32x32xf32>, vector<32x512xf32>, vector<32x512xf32> -> vector<32x512xf32>
    %223 = vector.extract_strided_slice %204 {offsets = [32, 0], sizes = [1, 512], strides = [1, 1]} : vector<33x512xf32> to vector<1x512xf32>
    %224 = vector.broadcast %223 : vector<1x512xf32> to vector<32x512xf32>
    %225 = arith.addf %222, %224 : vector<32x512xf32>
    %226 = vector.extract_strided_slice %225 {offsets = [0, 0], sizes = [32, 128], strides = [1, 1]} : vector<32x512xf32> to vector<32x128xf32>
    %227 = vector.extract_strided_slice %225 {offsets = [0, 128], sizes = [32, 128], strides = [1, 1]} : vector<32x512xf32> to vector<32x128xf32>
    %228 = vector.extract_strided_slice %225 {offsets = [0, 256], sizes = [32, 128], strides = [1, 1]} : vector<32x512xf32> to vector<32x128xf32>
    %229 = vector.extract_strided_slice %225 {offsets = [0, 384], sizes = [32, 128], strides = [1, 1]} : vector<32x512xf32> to vector<32x128xf32>
    %230 = vector.extract_strided_slice %229 {offsets = [0, 0], sizes = [32, 64], strides = [1, 1]} : vector<32x128xf32> to vector<32x64xf32>
    %231 = vector.extract_strided_slice %229 {offsets = [0, 64], sizes = [32, 64], strides = [1, 1]} : vector<32x128xf32> to vector<32x64xf32>
    %c0_106 = arith.constant 0 : index
    %c0_107 = arith.constant 0 : index
    %c0_108 = arith.constant 0 : index
    %232 = vector.load %arg2[%c0_106, %c0_107, %c0_108] : memref<2x32x64xf32, #tpu.memory_space<vmem>>, vector<1x32x64xf32>
    %233 = vector.shape_cast %232 : vector<1x32x64xf32> to vector<32x64xf32>
    %c1_109 = arith.constant 1 : index
    %c0_110 = arith.constant 0 : index
    %c0_111 = arith.constant 0 : index
    %234 = vector.load %arg2[%c1_109, %c0_110, %c0_111] : memref<2x32x64xf32, #tpu.memory_space<vmem>>, vector<1x32x64xf32>
    %235 = vector.shape_cast %234 : vector<1x32x64xf32> to vector<32x64xf32>
    %236 = arith.mulf %230, %233 : vector<32x64xf32>
    %237 = arith.mulf %231, %235 : vector<32x64xf32>
    %238 = arith.addf %236, %237 : vector<32x64xf32>
    %239 = arith.mulf %231, %233 : vector<32x64xf32>
    %240 = arith.mulf %230, %235 : vector<32x64xf32>
    %241 = arith.subf %239, %240 : vector<32x64xf32>
    %c0_112 = arith.constant 0 : index
    %c0_113 = arith.constant 0 : index
    %c0_114 = arith.constant 0 : index
    %242 = vector.load %arg3[%c0_112, %c0_113, %c0_114] : memref<2x64x128xf32, #tpu.memory_space<vmem>>, vector<1x64x128xf32>
    %243 = vector.shape_cast %242 : vector<1x64x128xf32> to vector<64x128xf32>
    %cst_115 = arith.constant dense<0.000000e+00> : vector<32x128xf32>
    %244 = tpu.matmul %238, %243, %cst_115 {dimension_numbers = #tpu.dot_dimension_numbers<[1], [0], [0], [1], [0, 0, 1, 1], [], []>} : vector<32x64xf32>, vector<64x128xf32>, vector<32x128xf32> -> vector<32x128xf32>
    %c1_116 = arith.constant 1 : index
    %c0_117 = arith.constant 0 : index
    %c0_118 = arith.constant 0 : index
    %245 = vector.load %arg3[%c1_116, %c0_117, %c0_118] : memref<2x64x128xf32, #tpu.memory_space<vmem>>, vector<1x64x128xf32>
    %246 = vector.shape_cast %245 : vector<1x64x128xf32> to vector<64x128xf32>
    %cst_119 = arith.constant dense<0.000000e+00> : vector<32x128xf32>
    %247 = tpu.matmul %241, %246, %cst_119 {dimension_numbers = #tpu.dot_dimension_numbers<[1], [0], [0], [1], [0, 0, 1, 1], [], []>} : vector<32x64xf32>, vector<64x128xf32>, vector<32x128xf32> -> vector<32x128xf32>
    %248 = arith.addf %244, %247 : vector<32x128xf32>
    %c0_120 = arith.constant 0 : index
    %c0_121 = arith.constant 0 : index
    %249 = vector.load %arg4[%c0_120, %c0_121] : memref<32x128xf32, #tpu.memory_space<vmem>>, vector<32x128xf32>
    %250 = arith.addf %248, %249 : vector<32x128xf32>
    %251 = vector.extract_strided_slice %226 {offsets = [0, 0], sizes = [32, 32], strides = [1, 1]} : vector<32x128xf32> to vector<32x32xf32>
    %252 = vector.extract_strided_slice %227 {offsets = [0, 0], sizes = [32, 32], strides = [1, 1]} : vector<32x128xf32> to vector<32x32xf32>
    %cst_122 = arith.constant dense<0.000000e+00> : vector<32x32xf32>
    %253 = tpu.matmul %251, %252, %cst_122 {dimension_numbers = #tpu.dot_dimension_numbers<[1], [1], [0], [0], [0, 0, 1, 0], [], []>} : vector<32x32xf32>, vector<32x32xf32>, vector<32x32xf32> -> vector<32x32xf32>
    %254 = vector.extract_strided_slice %226 {offsets = [0, 32], sizes = [32, 32], strides = [1, 1]} : vector<32x128xf32> to vector<32x32xf32>
    %255 = vector.extract_strided_slice %227 {offsets = [0, 32], sizes = [32, 32], strides = [1, 1]} : vector<32x128xf32> to vector<32x32xf32>
    %cst_123 = arith.constant dense<0.000000e+00> : vector<32x32xf32>
    %256 = tpu.matmul %254, %255, %cst_123 {dimension_numbers = #tpu.dot_dimension_numbers<[1], [1], [0], [0], [0, 0, 1, 0], [], []>} : vector<32x32xf32>, vector<32x32xf32>, vector<32x32xf32> -> vector<32x32xf32>
    %257 = vector.extract_strided_slice %226 {offsets = [0, 64], sizes = [32, 32], strides = [1, 1]} : vector<32x128xf32> to vector<32x32xf32>
    %258 = vector.extract_strided_slice %227 {offsets = [0, 64], sizes = [32, 32], strides = [1, 1]} : vector<32x128xf32> to vector<32x32xf32>
    %cst_124 = arith.constant dense<0.000000e+00> : vector<32x32xf32>
    %259 = tpu.matmul %257, %258, %cst_124 {dimension_numbers = #tpu.dot_dimension_numbers<[1], [1], [0], [0], [0, 0, 1, 0], [], []>} : vector<32x32xf32>, vector<32x32xf32>, vector<32x32xf32> -> vector<32x32xf32>
    %260 = vector.extract_strided_slice %226 {offsets = [0, 96], sizes = [32, 32], strides = [1, 1]} : vector<32x128xf32> to vector<32x32xf32>
    %261 = vector.extract_strided_slice %227 {offsets = [0, 96], sizes = [32, 32], strides = [1, 1]} : vector<32x128xf32> to vector<32x32xf32>
    %cst_125 = arith.constant dense<0.000000e+00> : vector<32x32xf32>
    %262 = tpu.matmul %260, %261, %cst_125 {dimension_numbers = #tpu.dot_dimension_numbers<[1], [1], [0], [0], [0, 0, 1, 0], [], []>} : vector<32x32xf32>, vector<32x32xf32>, vector<32x32xf32> -> vector<32x32xf32>
    %263 = tpu.concatenate %253, %256, %259, %262 in 1 : vector<32x32xf32>, vector<32x32xf32>, vector<32x32xf32>, vector<32x32xf32> -> vector<32x128xf32>
    %264 = arith.addf %250, %263 : vector<32x128xf32>
    %cst_126 = arith.constant dense<0xFF800000> : vector<32xf32>
    %265 = vector.multi_reduction <maximumf>, %264, %cst_126 [1] : vector<32x128xf32> to vector<32xf32>
    %266 = vector.shape_cast %265 : vector<32xf32> to vector<32x1xf32>
    %267 = vector.broadcast %266 : vector<32x1xf32> to vector<32x128xf32>
    %268 = arith.subf %264, %267 : vector<32x128xf32>
    %269 = math.exp %268 : vector<32x128xf32>
    %c0_127 = arith.constant 0 : index
    %c0_128 = arith.constant 0 : index
    %270 = vector.load %arg5[%c0_127, %c0_128] : memref<128x128xf32, #tpu.memory_space<vmem>>, vector<128x128xf32>
    %cst_129 = arith.constant dense<0.000000e+00> : vector<32x128xf32>
    %271 = tpu.matmul %269, %270, %cst_129 {dimension_numbers = #tpu.dot_dimension_numbers<[1], [0], [0], [1], [0, 0, 1, 1], [], []>} : vector<32x128xf32>, vector<128x128xf32>, vector<32x128xf32> -> vector<32x128xf32>
    %cst_130 = arith.constant 9.99999991E-38 : f32
    %272 = vector.broadcast %cst_130 : f32 to vector<32x128xf32>
    %273 = arith.addf %271, %272 : vector<32x128xf32>
    %274 = tpu.reciprocal %273 {approx = true} : vector<32x128xf32> -> vector<32x128xf32>
    %275 = arith.mulf %269, %274 : vector<32x128xf32>
    %276 = vector.extract_strided_slice %275 {offsets = [0, 0], sizes = [32, 32], strides = [1, 1]} : vector<32x128xf32> to vector<32x32xf32>
    %277 = vector.extract_strided_slice %228 {offsets = [0, 0], sizes = [32, 32], strides = [1, 1]} : vector<32x128xf32> to vector<32x32xf32>
    %cst_131 = arith.constant dense<0.000000e+00> : vector<32x32xf32>
    %278 = tpu.matmul %276, %277, %cst_131 {dimension_numbers = #tpu.dot_dimension_numbers<[1], [0], [0], [1], [0, 0, 1, 1], [], []>} : vector<32x32xf32>, vector<32x32xf32>, vector<32x32xf32> -> vector<32x32xf32>
    %279 = vector.extract_strided_slice %275 {offsets = [0, 32], sizes = [32, 32], strides = [1, 1]} : vector<32x128xf32> to vector<32x32xf32>
    %280 = vector.extract_strided_slice %228 {offsets = [0, 32], sizes = [32, 32], strides = [1, 1]} : vector<32x128xf32> to vector<32x32xf32>
    %cst_132 = arith.constant dense<0.000000e+00> : vector<32x32xf32>
    %281 = tpu.matmul %279, %280, %cst_132 {dimension_numbers = #tpu.dot_dimension_numbers<[1], [0], [0], [1], [0, 0, 1, 1], [], []>} : vector<32x32xf32>, vector<32x32xf32>, vector<32x32xf32> -> vector<32x32xf32>
    %282 = vector.extract_strided_slice %275 {offsets = [0, 64], sizes = [32, 32], strides = [1, 1]} : vector<32x128xf32> to vector<32x32xf32>
    %283 = vector.extract_strided_slice %228 {offsets = [0, 64], sizes = [32, 32], strides = [1, 1]} : vector<32x128xf32> to vector<32x32xf32>
    %cst_133 = arith.constant dense<0.000000e+00> : vector<32x32xf32>
    %284 = tpu.matmul %282, %283, %cst_133 {dimension_numbers = #tpu.dot_dimension_numbers<[1], [0], [0], [1], [0, 0, 1, 1], [], []>} : vector<32x32xf32>, vector<32x32xf32>, vector<32x32xf32> -> vector<32x32xf32>
    %285 = vector.extract_strided_slice %275 {offsets = [0, 96], sizes = [32, 32], strides = [1, 1]} : vector<32x128xf32> to vector<32x32xf32>
    %286 = vector.extract_strided_slice %228 {offsets = [0, 96], sizes = [32, 32], strides = [1, 1]} : vector<32x128xf32> to vector<32x32xf32>
    %cst_134 = arith.constant dense<0.000000e+00> : vector<32x32xf32>
    %287 = tpu.matmul %285, %286, %cst_134 {dimension_numbers = #tpu.dot_dimension_numbers<[1], [0], [0], [1], [0, 0, 1, 1], [], []>} : vector<32x32xf32>, vector<32x32xf32>, vector<32x32xf32> -> vector<32x32xf32>
    %288 = tpu.concatenate %278, %281, %284, %287 in 1 : vector<32x32xf32>, vector<32x32xf32>, vector<32x32xf32>, vector<32x32xf32> -> vector<32x128xf32>
    %c1_135 = arith.constant 1 : index
    %c0_136 = arith.constant 0 : index
    %c0_137 = arith.constant 0 : index
    %289 = vector.load %arg11[%c1_135, %c0_136, %c0_137] : memref<3x5x96xf32, #tpu.memory_space<vmem>>, vector<1x5x96xf32>
    %290 = vector.shape_cast %289 : vector<1x5x96xf32> to vector<5x96xf32>
    %c1_138 = arith.constant 1 : index
    %c0_139 = arith.constant 0 : index
    %c0_140 = arith.constant 0 : index
    %291 = vector.load %arg8[%c1_138, %c0_139, %c0_140] : memref<3x128x96xf32, #tpu.memory_space<vmem>>, vector<1x128x96xf32>
    %292 = vector.shape_cast %291 : vector<1x128x96xf32> to vector<128x96xf32>
    %cst_141 = arith.constant dense<0.000000e+00> : vector<32x96xf32>
    %293 = tpu.matmul %288, %292, %cst_141 {dimension_numbers = #tpu.dot_dimension_numbers<[1], [0], [0], [1], [0, 0, 1, 1], [], []>} : vector<32x128xf32>, vector<128x96xf32>, vector<32x96xf32> -> vector<32x96xf32>
    %c1_142 = arith.constant 1 : index
    %c0_143 = arith.constant 0 : index
    %c0_144 = arith.constant 0 : index
    %c0_145 = arith.constant 0 : index
    %294 = vector.load %arg9[%c1_142, %c0_143, %c0_144, %c0_145] : memref<3x2x32x96xf32, #tpu.memory_space<vmem>>, vector<1x1x32x96xf32>
    %295 = vector.shape_cast %294 : vector<1x1x32x96xf32> to vector<32x96xf32>
    %cst_146 = arith.constant dense<0.000000e+00> : vector<32x96xf32>
    %296 = tpu.matmul %202, %295, %cst_146 {dimension_numbers = #tpu.dot_dimension_numbers<[1], [0], [0], [1], [0, 0, 1, 1], [], []>} : vector<32x32xf32>, vector<32x96xf32>, vector<32x96xf32> -> vector<32x96xf32>
    %297 = arith.addf %293, %296 : vector<32x96xf32>
    %298 = vector.extract_strided_slice %290 {offsets = [0, 0], sizes = [1, 96], strides = [1, 1]} : vector<5x96xf32> to vector<1x96xf32>
    %299 = vector.broadcast %298 : vector<1x96xf32> to vector<32x96xf32>
    %300 = arith.addf %297, %299 : vector<32x96xf32>
    %301 = vector.extract_strided_slice %300 {offsets = [0, 0], sizes = [32, 32], strides = [1, 1]} : vector<32x96xf32> to vector<32x32xf32>
    %cst_147 = arith.constant 5.000000e-01 : f32
    %302 = vector.broadcast %cst_147 : f32 to vector<32x32xf32>
    %303 = arith.mulf %302, %301 : vector<32x32xf32>
    %304 = math.tanh %303 : vector<32x32xf32>
    %cst_148 = arith.constant 1.000000e+00 : f32
    %305 = vector.broadcast %cst_148 : f32 to vector<32x32xf32>
    %306 = arith.addf %304, %305 : vector<32x32xf32>
    %cst_149 = arith.constant 5.000000e-01 : f32
    %307 = vector.broadcast %cst_149 : f32 to vector<32x32xf32>
    %308 = arith.mulf %307, %306 : vector<32x32xf32>
    %309 = vector.extract_strided_slice %300 {offsets = [0, 32], sizes = [32, 32], strides = [1, 1]} : vector<32x96xf32> to vector<32x32xf32>
    %cst_150 = arith.constant 5.000000e-01 : f32
    %310 = vector.broadcast %cst_150 : f32 to vector<32x32xf32>
    %311 = arith.mulf %310, %309 : vector<32x32xf32>
    %312 = math.tanh %311 : vector<32x32xf32>
    %cst_151 = arith.constant 1.000000e+00 : f32
    %313 = vector.broadcast %cst_151 : f32 to vector<32x32xf32>
    %314 = arith.addf %312, %313 : vector<32x32xf32>
    %cst_152 = arith.constant 5.000000e-01 : f32
    %315 = vector.broadcast %cst_152 : f32 to vector<32x32xf32>
    %316 = arith.mulf %315, %314 : vector<32x32xf32>
    %317 = vector.extract_strided_slice %300 {offsets = [0, 64], sizes = [32, 32], strides = [1, 1]} : vector<32x96xf32> to vector<32x32xf32>
    %318 = arith.mulf %308, %202 : vector<32x32xf32>
    %c1_153 = arith.constant 1 : index
    %c0_154 = arith.constant 0 : index
    %c0_155 = arith.constant 0 : index
    %c0_156 = arith.constant 0 : index
    %319 = vector.load %arg10[%c1_153, %c0_154, %c0_155, %c0_156] : memref<3x2x32x32xf32, #tpu.memory_space<vmem>>, vector<1x1x32x32xf32>
    %320 = vector.shape_cast %319 : vector<1x1x32x32xf32> to vector<32x32xf32>
    %cst_157 = arith.constant dense<0.000000e+00> : vector<32x32xf32>
    %321 = tpu.matmul %318, %320, %cst_157 {dimension_numbers = #tpu.dot_dimension_numbers<[1], [0], [0], [1], [0, 0, 1, 1], [], []>} : vector<32x32xf32>, vector<32x32xf32>, vector<32x32xf32> -> vector<32x32xf32>
    %322 = arith.addf %317, %321 : vector<32x32xf32>
    %323 = vector.extract_strided_slice %290 {offsets = [2, 0], sizes = [1, 32], strides = [1, 1]} : vector<5x96xf32> to vector<1x32xf32>
    %324 = vector.broadcast %323 : vector<1x32xf32> to vector<32x32xf32>
    %325 = arith.addf %322, %324 : vector<32x32xf32>
    %326 = math.tanh %325 : vector<32x32xf32>
    %327 = arith.subf %326, %202 : vector<32x32xf32>
    %328 = arith.mulf %316, %327 : vector<32x32xf32>
    %329 = arith.addf %202, %328 : vector<32x32xf32>
    %cst_158 = arith.constant dense<0.000000e+00> : vector<32xf32>
    %330 = vector.multi_reduction <add>, %329, %cst_158 [1] : vector<32x32xf32> to vector<32xf32>
    %331 = vector.shape_cast %330 : vector<32xf32> to vector<32x1xf32>
    %cst_159 = arith.constant 3.200000e+01 : f32
    %332 = vector.broadcast %cst_159 : f32 to vector<32x1xf32>
    %333 = arith.divf %331, %332 : vector<32x1xf32>
    %334 = vector.broadcast %333 : vector<32x1xf32> to vector<32x32xf32>
    %335 = arith.subf %329, %334 : vector<32x32xf32>
    %336 = arith.mulf %335, %335 : vector<32x32xf32>
    %cst_160 = arith.constant dense<0.000000e+00> : vector<32xf32>
    %337 = vector.multi_reduction <add>, %336, %cst_160 [1] : vector<32x32xf32> to vector<32xf32>
    %338 = vector.shape_cast %337 : vector<32xf32> to vector<32x1xf32>
    %cst_161 = arith.constant 3.200000e+01 : f32
    %339 = vector.broadcast %cst_161 : f32 to vector<32x1xf32>
    %340 = arith.divf %338, %339 : vector<32x1xf32>
    %cst_162 = arith.constant 9.99999974E-6 : f32
    %341 = vector.broadcast %cst_162 : f32 to vector<32x1xf32>
    %342 = arith.addf %340, %341 : vector<32x1xf32>
    %343 = math.rsqrt %342 : vector<32x1xf32>
    %344 = vector.broadcast %343 : vector<32x1xf32> to vector<32x32xf32>
    %345 = arith.mulf %335, %344 : vector<32x32xf32>
    %c1_163 = arith.constant 1 : index
    %c0_164 = arith.constant 0 : index
    %c0_165 = arith.constant 0 : index
    %346 = vector.load %arg12[%c1_163, %c0_164, %c0_165] : memref<3x32x64xf32, #tpu.memory_space<vmem>>, vector<1x32x64xf32>
    %347 = vector.shape_cast %346 : vector<1x32x64xf32> to vector<32x64xf32>
    %cst_166 = arith.constant dense<0.000000e+00> : vector<32x64xf32>
    %348 = tpu.matmul %345, %347, %cst_166 {dimension_numbers = #tpu.dot_dimension_numbers<[1], [0], [0], [1], [0, 0, 1, 1], [], []>} : vector<32x32xf32>, vector<32x64xf32>, vector<32x64xf32> -> vector<32x64xf32>
    %349 = vector.extract_strided_slice %290 {offsets = [4, 0], sizes = [1, 64], strides = [1, 1]} : vector<5x96xf32> to vector<1x64xf32>
    %350 = vector.broadcast %349 : vector<1x64xf32> to vector<32x64xf32>
    %351 = arith.addf %348, %350 : vector<32x64xf32>
    %cst_167 = arith.constant 0.000000e+00 : f32
    %352 = vector.broadcast %cst_167 : f32 to vector<32x64xf32>
    %353 = arith.maximumf %351, %352 : vector<32x64xf32>
    %c1_168 = arith.constant 1 : index
    %c0_169 = arith.constant 0 : index
    %c0_170 = arith.constant 0 : index
    %354 = vector.load %arg13[%c1_168, %c0_169, %c0_170] : memref<3x64x96xf32, #tpu.memory_space<vmem>>, vector<1x64x96xf32>
    %355 = vector.shape_cast %354 : vector<1x64x96xf32> to vector<64x96xf32>
    %cst_171 = arith.constant dense<0.000000e+00> : vector<32x96xf32>
    %356 = tpu.matmul %353, %355, %cst_171 {dimension_numbers = #tpu.dot_dimension_numbers<[1], [0], [0], [1], [0, 0, 1, 1], [], []>} : vector<32x64xf32>, vector<64x96xf32>, vector<32x96xf32> -> vector<32x96xf32>
    %c1_172 = arith.constant 1 : index
    %c1_173 = arith.constant 1 : index
    %c0_174 = arith.constant 0 : index
    %c0_175 = arith.constant 0 : index
    %357 = vector.load %arg9[%c1_172, %c1_173, %c0_174, %c0_175] : memref<3x2x32x96xf32, #tpu.memory_space<vmem>>, vector<1x1x32x96xf32>
    %358 = vector.shape_cast %357 : vector<1x1x32x96xf32> to vector<32x96xf32>
    %cst_176 = arith.constant dense<0.000000e+00> : vector<32x96xf32>
    %359 = tpu.matmul %329, %358, %cst_176 {dimension_numbers = #tpu.dot_dimension_numbers<[1], [0], [0], [1], [0, 0, 1, 1], [], []>} : vector<32x32xf32>, vector<32x96xf32>, vector<32x96xf32> -> vector<32x96xf32>
    %360 = arith.addf %356, %359 : vector<32x96xf32>
    %361 = vector.extract_strided_slice %290 {offsets = [1, 0], sizes = [1, 96], strides = [1, 1]} : vector<5x96xf32> to vector<1x96xf32>
    %362 = vector.broadcast %361 : vector<1x96xf32> to vector<32x96xf32>
    %363 = arith.addf %360, %362 : vector<32x96xf32>
    %364 = vector.extract_strided_slice %363 {offsets = [0, 0], sizes = [32, 32], strides = [1, 1]} : vector<32x96xf32> to vector<32x32xf32>
    %cst_177 = arith.constant 5.000000e-01 : f32
    %365 = vector.broadcast %cst_177 : f32 to vector<32x32xf32>
    %366 = arith.mulf %365, %364 : vector<32x32xf32>
    %367 = math.tanh %366 : vector<32x32xf32>
    %cst_178 = arith.constant 1.000000e+00 : f32
    %368 = vector.broadcast %cst_178 : f32 to vector<32x32xf32>
    %369 = arith.addf %367, %368 : vector<32x32xf32>
    %cst_179 = arith.constant 5.000000e-01 : f32
    %370 = vector.broadcast %cst_179 : f32 to vector<32x32xf32>
    %371 = arith.mulf %370, %369 : vector<32x32xf32>
    %372 = vector.extract_strided_slice %363 {offsets = [0, 32], sizes = [32, 32], strides = [1, 1]} : vector<32x96xf32> to vector<32x32xf32>
    %cst_180 = arith.constant 5.000000e-01 : f32
    %373 = vector.broadcast %cst_180 : f32 to vector<32x32xf32>
    %374 = arith.mulf %373, %372 : vector<32x32xf32>
    %375 = math.tanh %374 : vector<32x32xf32>
    %cst_181 = arith.constant 1.000000e+00 : f32
    %376 = vector.broadcast %cst_181 : f32 to vector<32x32xf32>
    %377 = arith.addf %375, %376 : vector<32x32xf32>
    %cst_182 = arith.constant 5.000000e-01 : f32
    %378 = vector.broadcast %cst_182 : f32 to vector<32x32xf32>
    %379 = arith.mulf %378, %377 : vector<32x32xf32>
    %380 = vector.extract_strided_slice %363 {offsets = [0, 64], sizes = [32, 32], strides = [1, 1]} : vector<32x96xf32> to vector<32x32xf32>
    %381 = arith.mulf %371, %329 : vector<32x32xf32>
    %c1_183 = arith.constant 1 : index
    %c1_184 = arith.constant 1 : index
    %c0_185 = arith.constant 0 : index
    %c0_186 = arith.constant 0 : index
    %382 = vector.load %arg10[%c1_183, %c1_184, %c0_185, %c0_186] : memref<3x2x32x32xf32, #tpu.memory_space<vmem>>, vector<1x1x32x32xf32>
    %383 = vector.shape_cast %382 : vector<1x1x32x32xf32> to vector<32x32xf32>
    %cst_187 = arith.constant dense<0.000000e+00> : vector<32x32xf32>
    %384 = tpu.matmul %381, %383, %cst_187 {dimension_numbers = #tpu.dot_dimension_numbers<[1], [0], [0], [1], [0, 0, 1, 1], [], []>} : vector<32x32xf32>, vector<32x32xf32>, vector<32x32xf32> -> vector<32x32xf32>
    %385 = arith.addf %380, %384 : vector<32x32xf32>
    %386 = vector.extract_strided_slice %290 {offsets = [3, 0], sizes = [1, 32], strides = [1, 1]} : vector<5x96xf32> to vector<1x32xf32>
    %387 = vector.broadcast %386 : vector<1x32xf32> to vector<32x32xf32>
    %388 = arith.addf %385, %387 : vector<32x32xf32>
    %389 = math.tanh %388 : vector<32x32xf32>
    %390 = arith.subf %389, %329 : vector<32x32xf32>
    %391 = arith.mulf %379, %390 : vector<32x32xf32>
    %392 = arith.addf %329, %391 : vector<32x32xf32>
    %c2 = arith.constant 2 : index
    %c0_188 = arith.constant 0 : index
    %c0_189 = arith.constant 0 : index
    %393 = vector.load %arg7[%c2, %c0_188, %c0_189] : memref<3x33x512xf32, #tpu.memory_space<vmem>>, vector<1x33x512xf32>
    %394 = vector.shape_cast %393 : vector<1x33x512xf32> to vector<33x512xf32>
    %cst_190 = arith.constant dense<0.000000e+00> : vector<32xf32>
    %395 = vector.multi_reduction <add>, %392, %cst_190 [1] : vector<32x32xf32> to vector<32xf32>
    %396 = vector.shape_cast %395 : vector<32xf32> to vector<32x1xf32>
    %cst_191 = arith.constant 3.200000e+01 : f32
    %397 = vector.broadcast %cst_191 : f32 to vector<32x1xf32>
    %398 = arith.divf %396, %397 : vector<32x1xf32>
    %399 = vector.broadcast %398 : vector<32x1xf32> to vector<32x32xf32>
    %400 = arith.subf %392, %399 : vector<32x32xf32>
    %401 = arith.mulf %400, %400 : vector<32x32xf32>
    %cst_192 = arith.constant dense<0.000000e+00> : vector<32xf32>
    %402 = vector.multi_reduction <add>, %401, %cst_192 [1] : vector<32x32xf32> to vector<32xf32>
    %403 = vector.shape_cast %402 : vector<32xf32> to vector<32x1xf32>
    %cst_193 = arith.constant 3.200000e+01 : f32
    %404 = vector.broadcast %cst_193 : f32 to vector<32x1xf32>
    %405 = arith.divf %403, %404 : vector<32x1xf32>
    %cst_194 = arith.constant 9.99999974E-6 : f32
    %406 = vector.broadcast %cst_194 : f32 to vector<32x1xf32>
    %407 = arith.addf %405, %406 : vector<32x1xf32>
    %408 = math.rsqrt %407 : vector<32x1xf32>
    %409 = vector.broadcast %408 : vector<32x1xf32> to vector<32x32xf32>
    %410 = arith.mulf %400, %409 : vector<32x32xf32>
    %411 = vector.extract_strided_slice %394 {offsets = [0, 0], sizes = [32, 512], strides = [1, 1]} : vector<33x512xf32> to vector<32x512xf32>
    %cst_195 = arith.constant dense<0.000000e+00> : vector<32x512xf32>
    %412 = tpu.matmul %410, %411, %cst_195 {dimension_numbers = #tpu.dot_dimension_numbers<[1], [0], [0], [1], [0, 0, 1, 1], [], []>} : vector<32x32xf32>, vector<32x512xf32>, vector<32x512xf32> -> vector<32x512xf32>
    %413 = vector.extract_strided_slice %394 {offsets = [32, 0], sizes = [1, 512], strides = [1, 1]} : vector<33x512xf32> to vector<1x512xf32>
    %414 = vector.broadcast %413 : vector<1x512xf32> to vector<32x512xf32>
    %415 = arith.addf %412, %414 : vector<32x512xf32>
    %416 = vector.extract_strided_slice %415 {offsets = [0, 0], sizes = [32, 128], strides = [1, 1]} : vector<32x512xf32> to vector<32x128xf32>
    %417 = vector.extract_strided_slice %415 {offsets = [0, 128], sizes = [32, 128], strides = [1, 1]} : vector<32x512xf32> to vector<32x128xf32>
    %418 = vector.extract_strided_slice %415 {offsets = [0, 256], sizes = [32, 128], strides = [1, 1]} : vector<32x512xf32> to vector<32x128xf32>
    %419 = vector.extract_strided_slice %415 {offsets = [0, 384], sizes = [32, 128], strides = [1, 1]} : vector<32x512xf32> to vector<32x128xf32>
    %420 = vector.extract_strided_slice %419 {offsets = [0, 0], sizes = [32, 64], strides = [1, 1]} : vector<32x128xf32> to vector<32x64xf32>
    %421 = vector.extract_strided_slice %419 {offsets = [0, 64], sizes = [32, 64], strides = [1, 1]} : vector<32x128xf32> to vector<32x64xf32>
    %c0_196 = arith.constant 0 : index
    %c0_197 = arith.constant 0 : index
    %c0_198 = arith.constant 0 : index
    %422 = vector.load %arg2[%c0_196, %c0_197, %c0_198] : memref<2x32x64xf32, #tpu.memory_space<vmem>>, vector<1x32x64xf32>
    %423 = vector.shape_cast %422 : vector<1x32x64xf32> to vector<32x64xf32>
    %c1_199 = arith.constant 1 : index
    %c0_200 = arith.constant 0 : index
    %c0_201 = arith.constant 0 : index
    %424 = vector.load %arg2[%c1_199, %c0_200, %c0_201] : memref<2x32x64xf32, #tpu.memory_space<vmem>>, vector<1x32x64xf32>
    %425 = vector.shape_cast %424 : vector<1x32x64xf32> to vector<32x64xf32>
    %426 = arith.mulf %420, %423 : vector<32x64xf32>
    %427 = arith.mulf %421, %425 : vector<32x64xf32>
    %428 = arith.addf %426, %427 : vector<32x64xf32>
    %429 = arith.mulf %421, %423 : vector<32x64xf32>
    %430 = arith.mulf %420, %425 : vector<32x64xf32>
    %431 = arith.subf %429, %430 : vector<32x64xf32>
    %c0_202 = arith.constant 0 : index
    %c0_203 = arith.constant 0 : index
    %c0_204 = arith.constant 0 : index
    %432 = vector.load %arg3[%c0_202, %c0_203, %c0_204] : memref<2x64x128xf32, #tpu.memory_space<vmem>>, vector<1x64x128xf32>
    %433 = vector.shape_cast %432 : vector<1x64x128xf32> to vector<64x128xf32>
    %cst_205 = arith.constant dense<0.000000e+00> : vector<32x128xf32>
    %434 = tpu.matmul %428, %433, %cst_205 {dimension_numbers = #tpu.dot_dimension_numbers<[1], [0], [0], [1], [0, 0, 1, 1], [], []>} : vector<32x64xf32>, vector<64x128xf32>, vector<32x128xf32> -> vector<32x128xf32>
    %c1_206 = arith.constant 1 : index
    %c0_207 = arith.constant 0 : index
    %c0_208 = arith.constant 0 : index
    %435 = vector.load %arg3[%c1_206, %c0_207, %c0_208] : memref<2x64x128xf32, #tpu.memory_space<vmem>>, vector<1x64x128xf32>
    %436 = vector.shape_cast %435 : vector<1x64x128xf32> to vector<64x128xf32>
    %cst_209 = arith.constant dense<0.000000e+00> : vector<32x128xf32>
    %437 = tpu.matmul %431, %436, %cst_209 {dimension_numbers = #tpu.dot_dimension_numbers<[1], [0], [0], [1], [0, 0, 1, 1], [], []>} : vector<32x64xf32>, vector<64x128xf32>, vector<32x128xf32> -> vector<32x128xf32>
    %438 = arith.addf %434, %437 : vector<32x128xf32>
    %c0_210 = arith.constant 0 : index
    %c0_211 = arith.constant 0 : index
    %439 = vector.load %arg4[%c0_210, %c0_211] : memref<32x128xf32, #tpu.memory_space<vmem>>, vector<32x128xf32>
    %440 = arith.addf %438, %439 : vector<32x128xf32>
    %441 = vector.extract_strided_slice %416 {offsets = [0, 0], sizes = [32, 32], strides = [1, 1]} : vector<32x128xf32> to vector<32x32xf32>
    %442 = vector.extract_strided_slice %417 {offsets = [0, 0], sizes = [32, 32], strides = [1, 1]} : vector<32x128xf32> to vector<32x32xf32>
    %cst_212 = arith.constant dense<0.000000e+00> : vector<32x32xf32>
    %443 = tpu.matmul %441, %442, %cst_212 {dimension_numbers = #tpu.dot_dimension_numbers<[1], [1], [0], [0], [0, 0, 1, 0], [], []>} : vector<32x32xf32>, vector<32x32xf32>, vector<32x32xf32> -> vector<32x32xf32>
    %444 = vector.extract_strided_slice %416 {offsets = [0, 32], sizes = [32, 32], strides = [1, 1]} : vector<32x128xf32> to vector<32x32xf32>
    %445 = vector.extract_strided_slice %417 {offsets = [0, 32], sizes = [32, 32], strides = [1, 1]} : vector<32x128xf32> to vector<32x32xf32>
    %cst_213 = arith.constant dense<0.000000e+00> : vector<32x32xf32>
    %446 = tpu.matmul %444, %445, %cst_213 {dimension_numbers = #tpu.dot_dimension_numbers<[1], [1], [0], [0], [0, 0, 1, 0], [], []>} : vector<32x32xf32>, vector<32x32xf32>, vector<32x32xf32> -> vector<32x32xf32>
    %447 = vector.extract_strided_slice %416 {offsets = [0, 64], sizes = [32, 32], strides = [1, 1]} : vector<32x128xf32> to vector<32x32xf32>
    %448 = vector.extract_strided_slice %417 {offsets = [0, 64], sizes = [32, 32], strides = [1, 1]} : vector<32x128xf32> to vector<32x32xf32>
    %cst_214 = arith.constant dense<0.000000e+00> : vector<32x32xf32>
    %449 = tpu.matmul %447, %448, %cst_214 {dimension_numbers = #tpu.dot_dimension_numbers<[1], [1], [0], [0], [0, 0, 1, 0], [], []>} : vector<32x32xf32>, vector<32x32xf32>, vector<32x32xf32> -> vector<32x32xf32>
    %450 = vector.extract_strided_slice %416 {offsets = [0, 96], sizes = [32, 32], strides = [1, 1]} : vector<32x128xf32> to vector<32x32xf32>
    %451 = vector.extract_strided_slice %417 {offsets = [0, 96], sizes = [32, 32], strides = [1, 1]} : vector<32x128xf32> to vector<32x32xf32>
    %cst_215 = arith.constant dense<0.000000e+00> : vector<32x32xf32>
    %452 = tpu.matmul %450, %451, %cst_215 {dimension_numbers = #tpu.dot_dimension_numbers<[1], [1], [0], [0], [0, 0, 1, 0], [], []>} : vector<32x32xf32>, vector<32x32xf32>, vector<32x32xf32> -> vector<32x32xf32>
    %453 = tpu.concatenate %443, %446, %449, %452 in 1 : vector<32x32xf32>, vector<32x32xf32>, vector<32x32xf32>, vector<32x32xf32> -> vector<32x128xf32>
    %454 = arith.addf %440, %453 : vector<32x128xf32>
    %cst_216 = arith.constant dense<0xFF800000> : vector<32xf32>
    %455 = vector.multi_reduction <maximumf>, %454, %cst_216 [1] : vector<32x128xf32> to vector<32xf32>
    %456 = vector.shape_cast %455 : vector<32xf32> to vector<32x1xf32>
    %457 = vector.broadcast %456 : vector<32x1xf32> to vector<32x128xf32>
    %458 = arith.subf %454, %457 : vector<32x128xf32>
    %459 = math.exp %458 : vector<32x128xf32>
    %c0_217 = arith.constant 0 : index
    %c0_218 = arith.constant 0 : index
    %460 = vector.load %arg5[%c0_217, %c0_218] : memref<128x128xf32, #tpu.memory_space<vmem>>, vector<128x128xf32>
    %cst_219 = arith.constant dense<0.000000e+00> : vector<32x128xf32>
    %461 = tpu.matmul %459, %460, %cst_219 {dimension_numbers = #tpu.dot_dimension_numbers<[1], [0], [0], [1], [0, 0, 1, 1], [], []>} : vector<32x128xf32>, vector<128x128xf32>, vector<32x128xf32> -> vector<32x128xf32>
    %cst_220 = arith.constant 9.99999991E-38 : f32
    %462 = vector.broadcast %cst_220 : f32 to vector<32x128xf32>
    %463 = arith.addf %461, %462 : vector<32x128xf32>
    %464 = tpu.reciprocal %463 {approx = true} : vector<32x128xf32> -> vector<32x128xf32>
    %465 = arith.mulf %459, %464 : vector<32x128xf32>
    %466 = vector.extract_strided_slice %465 {offsets = [0, 0], sizes = [32, 32], strides = [1, 1]} : vector<32x128xf32> to vector<32x32xf32>
    %467 = vector.extract_strided_slice %418 {offsets = [0, 0], sizes = [32, 32], strides = [1, 1]} : vector<32x128xf32> to vector<32x32xf32>
    %cst_221 = arith.constant dense<0.000000e+00> : vector<32x32xf32>
    %468 = tpu.matmul %466, %467, %cst_221 {dimension_numbers = #tpu.dot_dimension_numbers<[1], [0], [0], [1], [0, 0, 1, 1], [], []>} : vector<32x32xf32>, vector<32x32xf32>, vector<32x32xf32> -> vector<32x32xf32>
    %469 = vector.extract_strided_slice %465 {offsets = [0, 32], sizes = [32, 32], strides = [1, 1]} : vector<32x128xf32> to vector<32x32xf32>
    %470 = vector.extract_strided_slice %418 {offsets = [0, 32], sizes = [32, 32], strides = [1, 1]} : vector<32x128xf32> to vector<32x32xf32>
    %cst_222 = arith.constant dense<0.000000e+00> : vector<32x32xf32>
    %471 = tpu.matmul %469, %470, %cst_222 {dimension_numbers = #tpu.dot_dimension_numbers<[1], [0], [0], [1], [0, 0, 1, 1], [], []>} : vector<32x32xf32>, vector<32x32xf32>, vector<32x32xf32> -> vector<32x32xf32>
    %472 = vector.extract_strided_slice %465 {offsets = [0, 64], sizes = [32, 32], strides = [1, 1]} : vector<32x128xf32> to vector<32x32xf32>
    %473 = vector.extract_strided_slice %418 {offsets = [0, 64], sizes = [32, 32], strides = [1, 1]} : vector<32x128xf32> to vector<32x32xf32>
    %cst_223 = arith.constant dense<0.000000e+00> : vector<32x32xf32>
    %474 = tpu.matmul %472, %473, %cst_223 {dimension_numbers = #tpu.dot_dimension_numbers<[1], [0], [0], [1], [0, 0, 1, 1], [], []>} : vector<32x32xf32>, vector<32x32xf32>, vector<32x32xf32> -> vector<32x32xf32>
    %475 = vector.extract_strided_slice %465 {offsets = [0, 96], sizes = [32, 32], strides = [1, 1]} : vector<32x128xf32> to vector<32x32xf32>
    %476 = vector.extract_strided_slice %418 {offsets = [0, 96], sizes = [32, 32], strides = [1, 1]} : vector<32x128xf32> to vector<32x32xf32>
    %cst_224 = arith.constant dense<0.000000e+00> : vector<32x32xf32>
    %477 = tpu.matmul %475, %476, %cst_224 {dimension_numbers = #tpu.dot_dimension_numbers<[1], [0], [0], [1], [0, 0, 1, 1], [], []>} : vector<32x32xf32>, vector<32x32xf32>, vector<32x32xf32> -> vector<32x32xf32>
    %478 = tpu.concatenate %468, %471, %474, %477 in 1 : vector<32x32xf32>, vector<32x32xf32>, vector<32x32xf32>, vector<32x32xf32> -> vector<32x128xf32>
    %c2_225 = arith.constant 2 : index
    %c0_226 = arith.constant 0 : index
    %c0_227 = arith.constant 0 : index
    %479 = vector.load %arg11[%c2_225, %c0_226, %c0_227] : memref<3x5x96xf32, #tpu.memory_space<vmem>>, vector<1x5x96xf32>
    %480 = vector.shape_cast %479 : vector<1x5x96xf32> to vector<5x96xf32>
    %c2_228 = arith.constant 2 : index
    %c0_229 = arith.constant 0 : index
    %c0_230 = arith.constant 0 : index
    %481 = vector.load %arg8[%c2_228, %c0_229, %c0_230] : memref<3x128x96xf32, #tpu.memory_space<vmem>>, vector<1x128x96xf32>
    %482 = vector.shape_cast %481 : vector<1x128x96xf32> to vector<128x96xf32>
    %cst_231 = arith.constant dense<0.000000e+00> : vector<32x96xf32>
    %483 = tpu.matmul %478, %482, %cst_231 {dimension_numbers = #tpu.dot_dimension_numbers<[1], [0], [0], [1], [0, 0, 1, 1], [], []>} : vector<32x128xf32>, vector<128x96xf32>, vector<32x96xf32> -> vector<32x96xf32>
    %c2_232 = arith.constant 2 : index
    %c0_233 = arith.constant 0 : index
    %c0_234 = arith.constant 0 : index
    %c0_235 = arith.constant 0 : index
    %484 = vector.load %arg9[%c2_232, %c0_233, %c0_234, %c0_235] : memref<3x2x32x96xf32, #tpu.memory_space<vmem>>, vector<1x1x32x96xf32>
    %485 = vector.shape_cast %484 : vector<1x1x32x96xf32> to vector<32x96xf32>
    %cst_236 = arith.constant dense<0.000000e+00> : vector<32x96xf32>
    %486 = tpu.matmul %392, %485, %cst_236 {dimension_numbers = #tpu.dot_dimension_numbers<[1], [0], [0], [1], [0, 0, 1, 1], [], []>} : vector<32x32xf32>, vector<32x96xf32>, vector<32x96xf32> -> vector<32x96xf32>
    %487 = arith.addf %483, %486 : vector<32x96xf32>
    %488 = vector.extract_strided_slice %480 {offsets = [0, 0], sizes = [1, 96], strides = [1, 1]} : vector<5x96xf32> to vector<1x96xf32>
    %489 = vector.broadcast %488 : vector<1x96xf32> to vector<32x96xf32>
    %490 = arith.addf %487, %489 : vector<32x96xf32>
    %491 = vector.extract_strided_slice %490 {offsets = [0, 0], sizes = [32, 32], strides = [1, 1]} : vector<32x96xf32> to vector<32x32xf32>
    %cst_237 = arith.constant 5.000000e-01 : f32
    %492 = vector.broadcast %cst_237 : f32 to vector<32x32xf32>
    %493 = arith.mulf %492, %491 : vector<32x32xf32>
    %494 = math.tanh %493 : vector<32x32xf32>
    %cst_238 = arith.constant 1.000000e+00 : f32
    %495 = vector.broadcast %cst_238 : f32 to vector<32x32xf32>
    %496 = arith.addf %494, %495 : vector<32x32xf32>
    %cst_239 = arith.constant 5.000000e-01 : f32
    %497 = vector.broadcast %cst_239 : f32 to vector<32x32xf32>
    %498 = arith.mulf %497, %496 : vector<32x32xf32>
    %499 = vector.extract_strided_slice %490 {offsets = [0, 32], sizes = [32, 32], strides = [1, 1]} : vector<32x96xf32> to vector<32x32xf32>
    %cst_240 = arith.constant 5.000000e-01 : f32
    %500 = vector.broadcast %cst_240 : f32 to vector<32x32xf32>
    %501 = arith.mulf %500, %499 : vector<32x32xf32>
    %502 = math.tanh %501 : vector<32x32xf32>
    %cst_241 = arith.constant 1.000000e+00 : f32
    %503 = vector.broadcast %cst_241 : f32 to vector<32x32xf32>
    %504 = arith.addf %502, %503 : vector<32x32xf32>
    %cst_242 = arith.constant 5.000000e-01 : f32
    %505 = vector.broadcast %cst_242 : f32 to vector<32x32xf32>
    %506 = arith.mulf %505, %504 : vector<32x32xf32>
    %507 = vector.extract_strided_slice %490 {offsets = [0, 64], sizes = [32, 32], strides = [1, 1]} : vector<32x96xf32> to vector<32x32xf32>
    %508 = arith.mulf %498, %392 : vector<32x32xf32>
    %c2_243 = arith.constant 2 : index
    %c0_244 = arith.constant 0 : index
    %c0_245 = arith.constant 0 : index
    %c0_246 = arith.constant 0 : index
    %509 = vector.load %arg10[%c2_243, %c0_244, %c0_245, %c0_246] : memref<3x2x32x32xf32, #tpu.memory_space<vmem>>, vector<1x1x32x32xf32>
    %510 = vector.shape_cast %509 : vector<1x1x32x32xf32> to vector<32x32xf32>
    %cst_247 = arith.constant dense<0.000000e+00> : vector<32x32xf32>
    %511 = tpu.matmul %508, %510, %cst_247 {dimension_numbers = #tpu.dot_dimension_numbers<[1], [0], [0], [1], [0, 0, 1, 1], [], []>} : vector<32x32xf32>, vector<32x32xf32>, vector<32x32xf32> -> vector<32x32xf32>
    %512 = arith.addf %507, %511 : vector<32x32xf32>
    %513 = vector.extract_strided_slice %480 {offsets = [2, 0], sizes = [1, 32], strides = [1, 1]} : vector<5x96xf32> to vector<1x32xf32>
    %514 = vector.broadcast %513 : vector<1x32xf32> to vector<32x32xf32>
    %515 = arith.addf %512, %514 : vector<32x32xf32>
    %516 = math.tanh %515 : vector<32x32xf32>
    %517 = arith.subf %516, %392 : vector<32x32xf32>
    %518 = arith.mulf %506, %517 : vector<32x32xf32>
    %519 = arith.addf %392, %518 : vector<32x32xf32>
    %cst_248 = arith.constant dense<0.000000e+00> : vector<32xf32>
    %520 = vector.multi_reduction <add>, %519, %cst_248 [1] : vector<32x32xf32> to vector<32xf32>
    %521 = vector.shape_cast %520 : vector<32xf32> to vector<32x1xf32>
    %cst_249 = arith.constant 3.200000e+01 : f32
    %522 = vector.broadcast %cst_249 : f32 to vector<32x1xf32>
    %523 = arith.divf %521, %522 : vector<32x1xf32>
    %524 = vector.broadcast %523 : vector<32x1xf32> to vector<32x32xf32>
    %525 = arith.subf %519, %524 : vector<32x32xf32>
    %526 = arith.mulf %525, %525 : vector<32x32xf32>
    %cst_250 = arith.constant dense<0.000000e+00> : vector<32xf32>
    %527 = vector.multi_reduction <add>, %526, %cst_250 [1] : vector<32x32xf32> to vector<32xf32>
    %528 = vector.shape_cast %527 : vector<32xf32> to vector<32x1xf32>
    %cst_251 = arith.constant 3.200000e+01 : f32
    %529 = vector.broadcast %cst_251 : f32 to vector<32x1xf32>
    %530 = arith.divf %528, %529 : vector<32x1xf32>
    %cst_252 = arith.constant 9.99999974E-6 : f32
    %531 = vector.broadcast %cst_252 : f32 to vector<32x1xf32>
    %532 = arith.addf %530, %531 : vector<32x1xf32>
    %533 = math.rsqrt %532 : vector<32x1xf32>
    %534 = vector.broadcast %533 : vector<32x1xf32> to vector<32x32xf32>
    %535 = arith.mulf %525, %534 : vector<32x32xf32>
    %c2_253 = arith.constant 2 : index
    %c0_254 = arith.constant 0 : index
    %c0_255 = arith.constant 0 : index
    %536 = vector.load %arg12[%c2_253, %c0_254, %c0_255] : memref<3x32x64xf32, #tpu.memory_space<vmem>>, vector<1x32x64xf32>
    %537 = vector.shape_cast %536 : vector<1x32x64xf32> to vector<32x64xf32>
    %cst_256 = arith.constant dense<0.000000e+00> : vector<32x64xf32>
    %538 = tpu.matmul %535, %537, %cst_256 {dimension_numbers = #tpu.dot_dimension_numbers<[1], [0], [0], [1], [0, 0, 1, 1], [], []>} : vector<32x32xf32>, vector<32x64xf32>, vector<32x64xf32> -> vector<32x64xf32>
    %539 = vector.extract_strided_slice %480 {offsets = [4, 0], sizes = [1, 64], strides = [1, 1]} : vector<5x96xf32> to vector<1x64xf32>
    %540 = vector.broadcast %539 : vector<1x64xf32> to vector<32x64xf32>
    %541 = arith.addf %538, %540 : vector<32x64xf32>
    %cst_257 = arith.constant 0.000000e+00 : f32
    %542 = vector.broadcast %cst_257 : f32 to vector<32x64xf32>
    %543 = arith.maximumf %541, %542 : vector<32x64xf32>
    %c2_258 = arith.constant 2 : index
    %c0_259 = arith.constant 0 : index
    %c0_260 = arith.constant 0 : index
    %544 = vector.load %arg13[%c2_258, %c0_259, %c0_260] : memref<3x64x96xf32, #tpu.memory_space<vmem>>, vector<1x64x96xf32>
    %545 = vector.shape_cast %544 : vector<1x64x96xf32> to vector<64x96xf32>
    %cst_261 = arith.constant dense<0.000000e+00> : vector<32x96xf32>
    %546 = tpu.matmul %543, %545, %cst_261 {dimension_numbers = #tpu.dot_dimension_numbers<[1], [0], [0], [1], [0, 0, 1, 1], [], []>} : vector<32x64xf32>, vector<64x96xf32>, vector<32x96xf32> -> vector<32x96xf32>
    %c2_262 = arith.constant 2 : index
    %c1_263 = arith.constant 1 : index
    %c0_264 = arith.constant 0 : index
    %c0_265 = arith.constant 0 : index
    %547 = vector.load %arg9[%c2_262, %c1_263, %c0_264, %c0_265] : memref<3x2x32x96xf32, #tpu.memory_space<vmem>>, vector<1x1x32x96xf32>
    %548 = vector.shape_cast %547 : vector<1x1x32x96xf32> to vector<32x96xf32>
    %cst_266 = arith.constant dense<0.000000e+00> : vector<32x96xf32>
    %549 = tpu.matmul %519, %548, %cst_266 {dimension_numbers = #tpu.dot_dimension_numbers<[1], [0], [0], [1], [0, 0, 1, 1], [], []>} : vector<32x32xf32>, vector<32x96xf32>, vector<32x96xf32> -> vector<32x96xf32>
    %550 = arith.addf %546, %549 : vector<32x96xf32>
    %551 = vector.extract_strided_slice %480 {offsets = [1, 0], sizes = [1, 96], strides = [1, 1]} : vector<5x96xf32> to vector<1x96xf32>
    %552 = vector.broadcast %551 : vector<1x96xf32> to vector<32x96xf32>
    %553 = arith.addf %550, %552 : vector<32x96xf32>
    %554 = vector.extract_strided_slice %553 {offsets = [0, 0], sizes = [32, 32], strides = [1, 1]} : vector<32x96xf32> to vector<32x32xf32>
    %cst_267 = arith.constant 5.000000e-01 : f32
    %555 = vector.broadcast %cst_267 : f32 to vector<32x32xf32>
    %556 = arith.mulf %555, %554 : vector<32x32xf32>
    %557 = math.tanh %556 : vector<32x32xf32>
    %cst_268 = arith.constant 1.000000e+00 : f32
    %558 = vector.broadcast %cst_268 : f32 to vector<32x32xf32>
    %559 = arith.addf %557, %558 : vector<32x32xf32>
    %cst_269 = arith.constant 5.000000e-01 : f32
    %560 = vector.broadcast %cst_269 : f32 to vector<32x32xf32>
    %561 = arith.mulf %560, %559 : vector<32x32xf32>
    %562 = vector.extract_strided_slice %553 {offsets = [0, 32], sizes = [32, 32], strides = [1, 1]} : vector<32x96xf32> to vector<32x32xf32>
    %cst_270 = arith.constant 5.000000e-01 : f32
    %563 = vector.broadcast %cst_270 : f32 to vector<32x32xf32>
    %564 = arith.mulf %563, %562 : vector<32x32xf32>
    %565 = math.tanh %564 : vector<32x32xf32>
    %cst_271 = arith.constant 1.000000e+00 : f32
    %566 = vector.broadcast %cst_271 : f32 to vector<32x32xf32>
    %567 = arith.addf %565, %566 : vector<32x32xf32>
    %cst_272 = arith.constant 5.000000e-01 : f32
    %568 = vector.broadcast %cst_272 : f32 to vector<32x32xf32>
    %569 = arith.mulf %568, %567 : vector<32x32xf32>
    %570 = vector.extract_strided_slice %553 {offsets = [0, 64], sizes = [32, 32], strides = [1, 1]} : vector<32x96xf32> to vector<32x32xf32>
    %571 = arith.mulf %561, %519 : vector<32x32xf32>
    %c2_273 = arith.constant 2 : index
    %c1_274 = arith.constant 1 : index
    %c0_275 = arith.constant 0 : index
    %c0_276 = arith.constant 0 : index
    %572 = vector.load %arg10[%c2_273, %c1_274, %c0_275, %c0_276] : memref<3x2x32x32xf32, #tpu.memory_space<vmem>>, vector<1x1x32x32xf32>
    %573 = vector.shape_cast %572 : vector<1x1x32x32xf32> to vector<32x32xf32>
    %cst_277 = arith.constant dense<0.000000e+00> : vector<32x32xf32>
    %574 = tpu.matmul %571, %573, %cst_277 {dimension_numbers = #tpu.dot_dimension_numbers<[1], [0], [0], [1], [0, 0, 1, 1], [], []>} : vector<32x32xf32>, vector<32x32xf32>, vector<32x32xf32> -> vector<32x32xf32>
    %575 = arith.addf %570, %574 : vector<32x32xf32>
    %576 = vector.extract_strided_slice %480 {offsets = [3, 0], sizes = [1, 32], strides = [1, 1]} : vector<5x96xf32> to vector<1x32xf32>
    %577 = vector.broadcast %576 : vector<1x32xf32> to vector<32x32xf32>
    %578 = arith.addf %575, %577 : vector<32x32xf32>
    %579 = math.tanh %578 : vector<32x32xf32>
    %580 = arith.subf %579, %519 : vector<32x32xf32>
    %581 = arith.mulf %569, %580 : vector<32x32xf32>
    %582 = arith.addf %519, %581 : vector<32x32xf32>
    %c0_278 = arith.constant 0 : index
    %c0_279 = arith.constant 0 : index
    %583 = vector.load %arg6[%c0_278, %c0_279] : memref<32x32xf32, #tpu.memory_space<vmem>>, vector<32x32xf32>
    %cst_280 = arith.constant dense<0.000000e+00> : vector<32x32xf32>
    %584 = tpu.matmul %583, %582, %cst_280 {dimension_numbers = #tpu.dot_dimension_numbers<[1], [0], [0], [1], [0, 0, 1, 1], [], []>} : vector<32x32xf32>, vector<32x32xf32>, vector<32x32xf32> -> vector<32x32xf32>
    %585 = vector.extract_strided_slice %584 {offsets = [0, 0], sizes = [4, 32], strides = [1, 1]} : vector<32x32xf32> to vector<4x32xf32>
    %c0_281 = arith.constant 0 : index
    %c0_282 = arith.constant 0 : index
    %c0_283 = arith.constant 0 : index
    %586 = vector.load %arg14[%c0_281, %c0_282, %c0_283] : memref<8x32x64xf32, #tpu.memory_space<vmem>>, vector<1x32x64xf32>
    %587 = vector.shape_cast %586 : vector<1x32x64xf32> to vector<32x64xf32>
    %cst_284 = arith.constant dense<0.000000e+00> : vector<4x64xf32>
    %588 = tpu.matmul %585, %587, %cst_284 {dimension_numbers = #tpu.dot_dimension_numbers<[1], [0], [0], [1], [0, 0, 1, 1], [], []>} : vector<4x32xf32>, vector<32x64xf32>, vector<4x64xf32> -> vector<4x64xf32>
    %589 = vector.extract_strided_slice %584 {offsets = [4, 0], sizes = [4, 32], strides = [1, 1]} : vector<32x32xf32> to vector<4x32xf32>
    %c1_285 = arith.constant 1 : index
    %c0_286 = arith.constant 0 : index
    %c0_287 = arith.constant 0 : index
    %590 = vector.load %arg14[%c1_285, %c0_286, %c0_287] : memref<8x32x64xf32, #tpu.memory_space<vmem>>, vector<1x32x64xf32>
    %591 = vector.shape_cast %590 : vector<1x32x64xf32> to vector<32x64xf32>
    %cst_288 = arith.constant dense<0.000000e+00> : vector<4x64xf32>
    %592 = tpu.matmul %589, %591, %cst_288 {dimension_numbers = #tpu.dot_dimension_numbers<[1], [0], [0], [1], [0, 0, 1, 1], [], []>} : vector<4x32xf32>, vector<32x64xf32>, vector<4x64xf32> -> vector<4x64xf32>
    %593 = arith.addf %588, %592 : vector<4x64xf32>
    %594 = vector.extract_strided_slice %584 {offsets = [8, 0], sizes = [4, 32], strides = [1, 1]} : vector<32x32xf32> to vector<4x32xf32>
    %c2_289 = arith.constant 2 : index
    %c0_290 = arith.constant 0 : index
    %c0_291 = arith.constant 0 : index
    %595 = vector.load %arg14[%c2_289, %c0_290, %c0_291] : memref<8x32x64xf32, #tpu.memory_space<vmem>>, vector<1x32x64xf32>
    %596 = vector.shape_cast %595 : vector<1x32x64xf32> to vector<32x64xf32>
    %cst_292 = arith.constant dense<0.000000e+00> : vector<4x64xf32>
    %597 = tpu.matmul %594, %596, %cst_292 {dimension_numbers = #tpu.dot_dimension_numbers<[1], [0], [0], [1], [0, 0, 1, 1], [], []>} : vector<4x32xf32>, vector<32x64xf32>, vector<4x64xf32> -> vector<4x64xf32>
    %598 = arith.addf %593, %597 : vector<4x64xf32>
    %599 = vector.extract_strided_slice %584 {offsets = [12, 0], sizes = [4, 32], strides = [1, 1]} : vector<32x32xf32> to vector<4x32xf32>
    %c3 = arith.constant 3 : index
    %c0_293 = arith.constant 0 : index
    %c0_294 = arith.constant 0 : index
    %600 = vector.load %arg14[%c3, %c0_293, %c0_294] : memref<8x32x64xf32, #tpu.memory_space<vmem>>, vector<1x32x64xf32>
    %601 = vector.shape_cast %600 : vector<1x32x64xf32> to vector<32x64xf32>
    %cst_295 = arith.constant dense<0.000000e+00> : vector<4x64xf32>
    %602 = tpu.matmul %599, %601, %cst_295 {dimension_numbers = #tpu.dot_dimension_numbers<[1], [0], [0], [1], [0, 0, 1, 1], [], []>} : vector<4x32xf32>, vector<32x64xf32>, vector<4x64xf32> -> vector<4x64xf32>
    %603 = arith.addf %598, %602 : vector<4x64xf32>
    %604 = vector.extract_strided_slice %584 {offsets = [16, 0], sizes = [4, 32], strides = [1, 1]} : vector<32x32xf32> to vector<4x32xf32>
    %c4 = arith.constant 4 : index
    %c0_296 = arith.constant 0 : index
    %c0_297 = arith.constant 0 : index
    %605 = vector.load %arg14[%c4, %c0_296, %c0_297] : memref<8x32x64xf32, #tpu.memory_space<vmem>>, vector<1x32x64xf32>
    %606 = vector.shape_cast %605 : vector<1x32x64xf32> to vector<32x64xf32>
    %cst_298 = arith.constant dense<0.000000e+00> : vector<4x64xf32>
    %607 = tpu.matmul %604, %606, %cst_298 {dimension_numbers = #tpu.dot_dimension_numbers<[1], [0], [0], [1], [0, 0, 1, 1], [], []>} : vector<4x32xf32>, vector<32x64xf32>, vector<4x64xf32> -> vector<4x64xf32>
    %608 = arith.addf %603, %607 : vector<4x64xf32>
    %609 = vector.extract_strided_slice %584 {offsets = [20, 0], sizes = [4, 32], strides = [1, 1]} : vector<32x32xf32> to vector<4x32xf32>
    %c5 = arith.constant 5 : index
    %c0_299 = arith.constant 0 : index
    %c0_300 = arith.constant 0 : index
    %610 = vector.load %arg14[%c5, %c0_299, %c0_300] : memref<8x32x64xf32, #tpu.memory_space<vmem>>, vector<1x32x64xf32>
    %611 = vector.shape_cast %610 : vector<1x32x64xf32> to vector<32x64xf32>
    %cst_301 = arith.constant dense<0.000000e+00> : vector<4x64xf32>
    %612 = tpu.matmul %609, %611, %cst_301 {dimension_numbers = #tpu.dot_dimension_numbers<[1], [0], [0], [1], [0, 0, 1, 1], [], []>} : vector<4x32xf32>, vector<32x64xf32>, vector<4x64xf32> -> vector<4x64xf32>
    %613 = arith.addf %608, %612 : vector<4x64xf32>
    %614 = vector.extract_strided_slice %584 {offsets = [24, 0], sizes = [4, 32], strides = [1, 1]} : vector<32x32xf32> to vector<4x32xf32>
    %c6 = arith.constant 6 : index
    %c0_302 = arith.constant 0 : index
    %c0_303 = arith.constant 0 : index
    %615 = vector.load %arg14[%c6, %c0_302, %c0_303] : memref<8x32x64xf32, #tpu.memory_space<vmem>>, vector<1x32x64xf32>
    %616 = vector.shape_cast %615 : vector<1x32x64xf32> to vector<32x64xf32>
    %cst_304 = arith.constant dense<0.000000e+00> : vector<4x64xf32>
    %617 = tpu.matmul %614, %616, %cst_304 {dimension_numbers = #tpu.dot_dimension_numbers<[1], [0], [0], [1], [0, 0, 1, 1], [], []>} : vector<4x32xf32>, vector<32x64xf32>, vector<4x64xf32> -> vector<4x64xf32>
    %618 = arith.addf %613, %617 : vector<4x64xf32>
    %619 = vector.extract_strided_slice %584 {offsets = [28, 0], sizes = [4, 32], strides = [1, 1]} : vector<32x32xf32> to vector<4x32xf32>
    %c7 = arith.constant 7 : index
    %c0_305 = arith.constant 0 : index
    %c0_306 = arith.constant 0 : index
    %620 = vector.load %arg14[%c7, %c0_305, %c0_306] : memref<8x32x64xf32, #tpu.memory_space<vmem>>, vector<1x32x64xf32>
    %621 = vector.shape_cast %620 : vector<1x32x64xf32> to vector<32x64xf32>
    %cst_307 = arith.constant dense<0.000000e+00> : vector<4x64xf32>
    %622 = tpu.matmul %619, %621, %cst_307 {dimension_numbers = #tpu.dot_dimension_numbers<[1], [0], [0], [1], [0, 0, 1, 1], [], []>} : vector<4x32xf32>, vector<32x64xf32>, vector<4x64xf32> -> vector<4x64xf32>
    %623 = arith.addf %618, %622 : vector<4x64xf32>
    %c64 = arith.constant 64 : index
    %c0_308 = arith.constant 0 : index
    %624 = vector.load %arg15[%c64, %c0_308] : memref<66x64xf32, #tpu.memory_space<vmem>>, vector<1x64xf32>
    %625 = vector.broadcast %624 : vector<1x64xf32> to vector<4x64xf32>
    %626 = arith.addf %623, %625 : vector<4x64xf32>
    %627 = math.tanh %626 : vector<4x64xf32>
    %c0_309 = arith.constant 0 : index
    %c0_310 = arith.constant 0 : index
    %628 = vector.load %arg15[%c0_309, %c0_310] : memref<66x64xf32, #tpu.memory_space<vmem>>, vector<64x64xf32>
    %cst_311 = arith.constant dense<0.000000e+00> : vector<4x64xf32>
    %629 = tpu.matmul %627, %628, %cst_311 {dimension_numbers = #tpu.dot_dimension_numbers<[1], [0], [0], [1], [0, 0, 1, 1], [], []>} : vector<4x64xf32>, vector<64x64xf32>, vector<4x64xf32> -> vector<4x64xf32>
    %c65 = arith.constant 65 : index
    %c0_312 = arith.constant 0 : index
    %630 = vector.load %arg15[%c65, %c0_312] : memref<66x64xf32, #tpu.memory_space<vmem>>, vector<1x64xf32>
    %631 = vector.broadcast %630 : vector<1x64xf32> to vector<4x64xf32>
    %632 = arith.addf %629, %631 : vector<4x64xf32>
    %633 = math.tanh %632 : vector<4x64xf32>
    %634 = vector.extract_strided_slice %633 {offsets = [0, 0], sizes = [4, 32], strides = [1, 1]} : vector<4x64xf32> to vector<4x32xf32>
    %c0_313 = arith.constant 0 : index
    %c0_314 = arith.constant 0 : index
    %635 = vector.load %arg16[%c0_313, %c0_314] : memref<33x1xf32, #tpu.memory_space<vmem>>, vector<32x1xf32>
    %cst_315 = arith.constant dense<0.000000e+00> : vector<4x1xf32>
    %636 = tpu.matmul %634, %635, %cst_315 {dimension_numbers = #tpu.dot_dimension_numbers<[1], [0], [0], [1], [0, 0, 1, 1], [], []>} : vector<4x32xf32>, vector<32x1xf32>, vector<4x1xf32> -> vector<4x1xf32>
    %c32 = arith.constant 32 : index
    %c0_316 = arith.constant 0 : index
    %637 = vector.load %arg16[%c32, %c0_316] : memref<33x1xf32, #tpu.memory_space<vmem>>, vector<1x1xf32>
    %638 = vector.broadcast %637 : vector<1x1xf32> to vector<4x1xf32>
    %639 = arith.addf %636, %638 : vector<4x1xf32>
    %c0_317 = arith.constant 0 : index
    %c0_318 = arith.constant 0 : index
    %640 = vector.load %arg17[%c0_317, %c0_318] : memref<4x1xf32, #tpu.memory_space<vmem>>, vector<4x1xf32>
    tpu.vector_store %arg17[%c0_317, %c0_318], %639 {strides = array<i32>} : memref<4x1xf32, #tpu.memory_space<vmem>>, vector<4x1xf32>,
    %641 = vector.extract_strided_slice %633 {offsets = [0, 32], sizes = [4, 32], strides = [1, 1]} : vector<4x64xf32> to vector<4x32xf32>
    %c0_319 = arith.constant 0 : index
    %c0_320 = arith.constant 0 : index
    %642 = vector.load %arg18[%c0_319, %c0_320] : memref<4x32xf32, #tpu.memory_space<vmem>>, vector<4x32xf32>
    tpu.vector_store %arg18[%c0_319, %c0_320], %641 {strides = array<i32>} : memref<4x32xf32, #tpu.memory_space<vmem>>, vector<4x32xf32>,
    return
  }
}

</mosaic_0001>

<bundles_post_ra>
// kernel: mlp_base_forward.1
= control target key start
LH: loop header
LB: loop body
LE: loop exit
PB: predicated region body
PF: predicated region fallthrough
CT: control target
= control target key end

     0   :  { %s9142_s0 = inlined_call_operand.vmem [shape: f32[32,16], index: 0, kind: input, shape index: {}]   ;;  %s9143_s1 = inlined_call_operand.vmem [shape: f32[50,32], index: 1, kind: input, shape index: {}]   ;;  %s9144_s2 = inlined_call_operand.hbm [shape: f32[2,32,64], index: 2, kind: input, shape index: {}]   ;;  %s9145_s3 = inlined_call_operand.hbm [shape: f32[2,64,128], index: 3, kind: input, shape index: {}]   ;;  %s9146_s4 = inlined_call_operand.hbm [shape: f32[32,128], index: 4, kind: input, shape index: {}]   ;;  %s9147_s5 = inlined_call_operand.hbm [shape: f32[128,128], index: 5, kind: input, shape index: {}]   ;;  %s9148_s6 = inlined_call_operand.hbm [shape: f32[32,32], index: 6, kind: input, shape index: {}]   ;;  %s9149_s7 = inlined_call_operand.vmem [shape: f32[3,33,512], index: 7, kind: input, shape index: {}]   ;;  %s9150_s8 = inlined_call_operand.vmem [shape: f32[3,128,96], index: 8, kind: input, shape index: {}]   ;;  %s9151_s9 = inlined_call_operand.hbm [shape: f32[3,2,32,96], index: 9, kind: input, shape index: {}]   ;;  %s9152_s10 = inlined_call_operand.hbm [shape: f32[3,2,32,32], index: 10, kind: input, shape index: {}]   ;;  %s9153_s11 = inlined_call_operand.vmem [shape: f32[3,5,96], index: 11, kind: input, shape index: {}]   ;;  %s9154_s12 = inlined_call_operand.hbm [shape: f32[3,32,64], index: 12, kind: input, shape index: {}]   ;;  %s9155_s13 = inlined_call_operand.hbm [shape: f32[3,64,96], index: 13, kind: input, shape index: {}]   ;;  %s9156_s14 = inlined_call_operand.vmem [shape: f32[8,32,64], index: 14, kind: input, shape index: {}]   ;;  %s9157_s15 = inlined_call_operand.vmem [shape: f32[66,64], index: 15, kind: input, shape index: {}]   ;;  %s9158_s16 = inlined_call_operand.vmem [shape: f32[33,1], index: 16, kind: input, shape index: {}]   ;;  %s9159_s17 = inlined_call_operand.vmem [shape: f32[4,1], index: 17, kind: output, shape index: {0}]   ;;  %s9160_s18 = inlined_call_operand.hbm [shape: f32[4,32], index: 18, kind: output, shape index: {1}]  }
   0x1   :  { %9163 = sst [smem:[#allocation24_spill]] %s9142_s0 }
   0x2   :  { %9164 = sst [smem:[#allocation25_spill]] %s9143_s1 }
   0x3   :  { %9165 = sst [smem:[#allocation26_spill]] %s9144_s2 }
   0x4   :  { %24 = vsyncpa [#allocation3], 0 }
   0x5   :  { %25 = vsyncpa [#allocation6], 0 }
   0x6   :  { %26 = vsyncpa [#allocation9], 0 }
   0x7   :  { %27 = vsyncpa [#allocation12], 0 }
   0x8   :  { %28 = vsyncpa [#allocation15], 0 }
   0x9   :  { %29 = vsyncpa [#allocation4], 0  ;;  %s51_s29 = sshll.u32 %s9145_s3, 4  ;;  %s6881_s30 = smov [#allocation5]   ;;  %s52_s29 = int_to_ptr.hbm [resolvable:$true] %s51_s29 }
   0xa   :  { %s53_s0 = sshll.u32 %s6881_s30, 4  ;;  %s77_s20 = sshll.u32 %s9147_s5, 4  ;;  %s54_s0 = int_to_ptr.vmem [resolvable:$true] %s53_s0  ;;  %s78_s20 = int_to_ptr.hbm [resolvable:$true] %s77_s20 }
   0xb   :  { %s6882_s21 = smov 128   ;;  %s6883_s22 = smov 8  }
   0xc   :  { %59 = dma.hbm_to_vmem [thread:$0]  %s52_s29, 2048, %s54_s0, [#allocation6], %s6882_s21, %s6882_s21, %s6883_s22  }
   0xd   :  { %s6884_s2 = smov [#allocation8]   ;;  %s107_s3 = sshll.u32 %s9151_s9, 4  ;;  %s108_s3 = int_to_ptr.hbm [resolvable:$true] %s107_s3 }
   0xe   :  { %s79_s23 = sshll.u32 %s6884_s2, 4  ;;  %s135_s27 = sshll.u32 %s9154_s12, 4  ;;  %s80_s23 = int_to_ptr.vmem [resolvable:$true] %s79_s23  ;;  %s136_s27 = int_to_ptr.hbm [resolvable:$true] %s135_s27 }
   0xf   :  { %85 = dma.hbm_to_vmem [thread:$0]  %s78_s20, 2048, %s80_s23, [#allocation9], %s6882_s21, %s6882_s21, %s6883_s22  }
  0x10   :  { %s6885_s28 = smov [#allocation11]   ;;  %s6886_s29 = smov [#allocation14]  }
  0x11   :  { %s109_s30 = sshll.u32 %s6885_s28, 4  ;;  %s137_s9 = sshll.u32 %s6886_s29, 4  ;;  %s110_s30 = int_to_ptr.vmem [resolvable:$true] %s109_s30  ;;  %s138_s9 = int_to_ptr.vmem [resolvable:$true] %s137_s9 }
  0x12   :  { %115 = dma.hbm_to_vmem [thread:$0]  %s108_s3, 3072, %s110_s30, [#allocation12], %s6882_s21, %s6882_s21, %s6883_s22  }
  0x13   :  { %s9166_s1 = sld [smem:[#allocation26_spill]]  ;;  %s64_s23 = sshll.u32 %s9146_s4, 4  ;;  %s65_s23 = int_to_ptr.hbm [resolvable:$true] %s64_s23 }
  0x14   :  { %143 = dma.hbm_to_vmem [thread:$0]  %s136_s27, 1536, %s138_s9, [#allocation15], %s6882_s21, %s6882_s21, %s6883_s22  }
  0x15   :  { %s6887_s24 = smov [#allocation2]   ;;  %s6888_s3 = smov [#allocation7]  }
  0x16   :  { %s40_s25 = sshll.u32 %s6887_s24, 4  ;;  %s66_s5 = sshll.u32 %s6888_s3, 4  ;;  %s41_s25 = int_to_ptr.vmem [resolvable:$true] %s40_s25  ;;  %s67_s5 = int_to_ptr.vmem [resolvable:$true] %s66_s5 }
  0x17   :  { %s90_s30 = sshll.u32 %s9148_s6, 4  ;;  %s120_s29 = sshll.u32 %s9152_s10, 4  ;;  %s91_s30 = int_to_ptr.hbm [resolvable:$true] %s90_s30  ;;  %s121_s29 = int_to_ptr.hbm [resolvable:$true] %s120_s29 }
  0x18   :  { %72 = dma.hbm_to_vmem [thread:$0]  %s65_s23, 512, %s67_s5, [#allocation6], %s6882_s21, %s6882_s21, %s6883_s22  }
  0x19   :  { %s38_s2 = sshll.u32 %s9166_s1, 4  ;;  %s6889_s9 = smov [#allocation10]   ;;  %s39_s2 = int_to_ptr.hbm [resolvable:$true] %s38_s2 }
  0x1a   :  { %46 = dma.hbm_to_vmem [thread:$0]  %s39_s2, 1024, %s41_s25, [#allocation3], %s6882_s21, %s6882_s21, %s6883_s22  }
  0x1b   :  { %s92_s0 = sshll.u32 %s6889_s9, 4  ;;  %s6890_s19 = smov [#allocation13]   ;;  %s93_s0 = int_to_ptr.vmem [resolvable:$true] %s92_s0 }
  0x1c   :  { %98 = dma.hbm_to_vmem [thread:$0]  %s91_s30, 512, %s93_s0, [#allocation9], %s6882_s21, %s6882_s21, %s6883_s22  }
  0x1d   :  { %s122_s6 = sshll.u32 %s6890_s19, 4  ;;  %s148_s12 = sshll.u32 %s9155_s13, 4  ;;  %s123_s6 = int_to_ptr.vmem [resolvable:$true] %s122_s6  ;;  %s149_s12 = int_to_ptr.hbm [resolvable:$true] %s148_s12 }
  0x1e   :  { %128 = dma.hbm_to_vmem [thread:$0]  %s121_s29, 3072, %s123_s6, [#allocation12], %s6882_s21, %s6882_s21, %s6883_s22  }
  0x1f   :  { %s6891_s10 = smov [#allocation16]  }
  0x20   :  { %s150_s20 = sshll.u32 %s6891_s10, 4  ;;  %s151_s20 = int_to_ptr.vmem [resolvable:$true] %s150_s20 }
  0x21   :  { %156 = dma.hbm_to_vmem [thread:$0]  %s149_s12, 3072, %s151_s20, [#allocation15], %s6882_s21, %s6882_s21, %s6883_s22  }
  0x22   :  { %6869 = dma.done.wait [#allocation3], 1024  }
  0x23   :  { %6870 = vsyncadd [#allocation3], 4294966272 }
  0x24   :  { %6871 = dma.done.wait [#allocation6], 2560  }
  0x25   :  { %6872 = vsyncadd [#allocation6], 4294964736 }
  0x26   :  { %6873 = dma.done.wait [#allocation9], 2560  }
  0x27   :  { %6874 = vsyncadd [#allocation9], 4294964736 }
  0x28   :  { %6875 = dma.done.wait [#allocation12], 6144  }
  0x29   :  { %6876 = vsyncadd [#allocation12], 4294961152 }
  0x2a   :  { %6877 = dma.done.wait [#allocation15], 4608  }
  0x2b   :  { %6878 = vsyncadd [#allocation15], 4294962688  ;;  %s9167_s24 = sld [smem:[#allocation25_spill]]  ;;  %vm207_vm0 = vcmask 130048   ;;  %vm259_vm1 = vcmask 261120   ;;  %v6892_v40 = vmov 32.0  }
  0x2c   :  { %s9168_s5 = sld [smem:[#allocation24_spill]]  ;;  %s6893_s27 = smov 64   ;;  %vm678_vm15 = vcmask 523264  }
  0x2d   :  { %s6894_s6 = smov 32   ;;  %s6895_s12 = smov 96  }
  0x2e   :  { %s6896_s28 = smov [#allocation17]   ;;  %s5761_s9 = sshll.u32 %s9160_s18, 4  ;;  %s5762_s9 = int_to_ptr.hbm [resolvable:$true] %s5761_s9 }
  0x2f   :  { %s5759_s30 = sshll.u32 %s6896_s28, 4  ;;  %s5760_s30 = int_to_ptr.vmem [resolvable:$true] %s5759_s30 }
  0x31   :  { %v204_v0 = vld [vmem:[%s9167_s24 + $0x8] sm:$0xff]  ;;  %v203_v1 = vld [vmem:[%s9167_s24] sm:$0xff]  ;;  %v254_v8 = vld [vmem:[%s9167_s24 + $0x18] sm:$0xff] }
  0x32   :  { %234 = vmatpush.msra.mxu0 %v204_v0  ;;  %v199_v2 = vld [vmem:[%s9168_s5] sm:$0xff]  ;;  %v200_v3 = vld [vmem:[%s9168_s5 + $0x8] sm:$0xff]  ;;  %v201_v4 = vld [vmem:[%s9168_s5 + $0x10] sm:$0xff] }
  0x33   :  { %v202_v5 = vld [vmem:[%s9168_s5 + $0x18] sm:$0xff]  ;;  %v256_v6 = vld [vmem:[%s9167_s24 + $0x28] sm:$0xff]  ;;  %v255_v7 = vld [vmem:[%s9167_s24 + $0x20] sm:$0xff] }
  0x34   :  { %235 = vmatpush.msra.mxu0 %v203_v1  ;;  %284 = vmatpush.msra.mxu1 %v256_v6  ;;  %v253_v9 = vld [vmem:[%s9167_s24 + $0x10] sm:$0xff] }
  0x35   :  { %5777 = vmatmul.msk.f32.vlgmr.msra.gmra.mxu0 %vm207_vm0, %v199_v2  ;;  %v6310_v10 = vld [vmem:[%s9167_s24 + $0x30] ss:$0 sm:$0xff]  ;;  %v6311_v23 = vld [vmem:[%s9167_s24 + $0x31] ss:$0 sm:$0xff] }
  0x36   :  { %285 = vmatpush.msra.mxu1 %v255_v7  ;;  %v319_v6 = vld [vmem:[%s9149_s7 + $0x70] sm:$0xff]  ;;  %v316_v7 = vld [vmem:[%s9149_s7 + $0x58] sm:$0xff] }
  0x37   :  { %506 = vmatpush.msrb.mxu0 %v319_v6 }
  0x38   :  { %286 = vmatpush.msra.mxu1 %v254_v8  ;;  %v313_v8 = vld [vmem:[%s9149_s7 + $0x40] sm:$0xff] }
  0x3a   :  { %287 = vmatpush.msra.mxu1 %v253_v9  ;;  %v314_v9 = vld [vmem:[%s9149_s7 + $0x48] sm:$0xff] }
  0x3d   :  { %5778 = vmatmul.msk.f32.gmra.mxu0 %vm207_vm0, %v200_v3  ;;  %v320_v3 = vld [vmem:[%s9149_s7 + $0x78] sm:$0xff] }
  0x3e   :  { %535 = vmatpush.msrb.mxu1 %v320_v3 }
  0x40   :  { %536 = vmatpush.msrb.mxu1 %v316_v7 }
  0x45   :  { %5779 = vmatmul.msk.f32.gmra.mxu0 %vm207_vm0, %v201_v4  ;;  %v317_v4 = vld [vmem:[%s9149_s7 + $0x60] sm:$0xff] }
  0x46   :  { %448 = vmatpush.msra.mxu2 %v317_v4 }
  0x48   :  { %449 = vmatpush.msra.mxu2 %v313_v8 }
  0x4d   :  { %5780 = vmatmul.msk.f32.gmra.mxu0 %vm207_vm0, %v202_v5  ;;  %v318_v5 = vld [vmem:[%s9149_s7 + $0x68] sm:$0xff]  ;;  %vm1057_vm0 = vcmask 785408  }
  0x4e   :  { %477 = vmatpush.msra.mxu3 %v318_v5 }
  0x50   :  { %478 = vmatpush.msra.mxu3 %v314_v9 }
  0xb2   :  { %v237_v11 = vpop.f32.mrf.mxu0 }
  0xb3   :  { %v238_v12 = vadd.f32 %v6310_v10, %v237_v11  ;;  %v309_v11 = vld [vmem:[%s9149_s7 + $0x20] sm:$0xff] }
  0xb4   :  { %450 = vmatpush.msra.mxu2 %v309_v11 }
  0xb5   :  { %6327 = vtanh.f32 %v238_v12  ;;  %v310_v12 = vld [vmem:[%s9149_s7 + $0x28] sm:$0xff] }
  0xb6   :  { %479 = vmatpush.msra.mxu3 %v310_v12  ;;  %v6313_v12 = vld [vmem:[%s9149_s7 + $0x98] ss:$0 sm:$0xff] }
  0xba   :  { %v240_v13 = vpop.f32.mrf.mxu0 }
  0xbb   :  { %v6328_v14 = vpop.eup %6327  ;;  %v241_v15 = vadd.f32 %v6310_v10, %v240_v13  ;;  %v311_v13 = vld [vmem:[%s9149_s7 + $0x30] sm:$0xff] }
  0xbc   :  { %5781 = vmatmul.msk.f32.vlgmr.msra.gmra.mxu1 %vm259_vm1, %v6328_v14  ;;  %v312_v14 = vld [vmem:[%s9149_s7 + $0x38] sm:$0xff] }
  0xbd   :  { %6329 = vtanh.f32 %v241_v15  ;;  %v305_v15 = vld [vmem:[%s9149_s7] sm:$0xff]  ;;  %537 = vmatpush.msrb.mxu1 %v312_v14 }
  0xbe   :  { %451 = vmatpush.msra.mxu2 %v305_v15 }
  0xc2   :  { %v243_v16 = vpop.f32.mrf.mxu0 }
  0xc3   :  { %v6330_v17 = vpop.eup %6329  ;;  %v244_v18 = vadd.f32 %v6310_v10, %v243_v16  ;;  %v306_v16 = vld [vmem:[%s9149_s7 + $0x8] sm:$0xff] }
  0xc4   :  { %5782 = vmatmul.msk.f32.gmra.mxu1 %vm259_vm1, %v6330_v17  ;;  %v307_v17 = vld [vmem:[%s9149_s7 + $0x10] sm:$0xff]  ;;  %480 = vmatpush.msra.mxu3 %v306_v16 }
  0xc5   :  { %6331 = vtanh.f32 %v244_v18  ;;  %v308_v18 = vld [vmem:[%s9149_s7 + $0x18] sm:$0xff] }
  0xc6   :  { %538 = vmatpush.msrb.mxu1 %v308_v18 }
  0xca   :  { %v246_v19 = vpop.f32.mrf.mxu0 }
  0xcb   :  { %v6332_v20 = vpop.eup %6331  ;;  %v247_v21 = vadd.f32 %v6310_v10, %v246_v19  ;;  %v315_v10 = vld [vmem:[%s9149_s7 + $0x50] sm:$0xff] }
  0xcc   :  { %5783 = vmatmul.msk.f32.gmra.mxu1 %vm259_vm1, %v6332_v20  ;;  %507 = vmatpush.msrb.mxu0 %v315_v10 }
  0xcd   :  { %6333 = vtanh.f32 %v247_v21 }
  0xce   :  { %508 = vmatpush.msrb.mxu0 %v311_v13 }
  0xd0   :  { %509 = vmatpush.msrb.mxu0 %v307_v17 }
  0xd3   :  { %v6334_v22 = vpop.eup %6333 }
  0xd4   :  { %5784 = vmatmul.msk.f32.gmra.mxu1 %vm259_vm1, %v6334_v22  ;;  %v7181_v22 = vld [vmem:[#allocation2 + $0x20] sm:$0xff] }
 0x139   :  { %v289_v24 = vpop.f32.mrf.mxu1 }
 0x13a   :  { %v290_v25 = vadd.f32 %v6311_v23, %v289_v24 }
 0x13c   :  { %6335 = vtanh.f32 %v290_v25 }
 0x141   :  { %v292_v26 = vpop.f32.mrf.mxu1 }
 0x142   :  { %v7086_v27 = vpop.eup %6335  ;;  %v293_v28 = vadd.f32 %v6311_v23, %v292_v26 }
 0x143   :  { %v325_v29 = vsel %vm259_vm1, %v7086_v27, 0.0 }
 0x144   :  { %6337 = vtanh.f32 %v293_v28  ;;  %326 = vadd.xlane.f32.xlu0 %v325_v29  ;;  %v7186_v29 = vld [vmem:[#allocation2 + $0x28] sm:$0xff] }
 0x149   :  { %v295_v30 = vpop.f32.mrf.mxu1 }
 0x14a   :  { %v7090_v31 = vpop.eup %6337  ;;  %v296_v32 = vadd.f32 %v6311_v23, %v295_v30 }
 0x14b   :  { %v328_v33 = vsel %vm259_vm1, %v7090_v31, 0.0 }
 0x14c   :  { %6339 = vtanh.f32 %v296_v32  ;;  %329 = vadd.xlane.f32.xlu0 %v328_v33 }
 0x151   :  { %v298_v34 = vpop.f32.mrf.mxu1 }
 0x152   :  { %v7094_v35 = vpop.eup %6339  ;;  %v299_v36 = vadd.f32 %v6311_v23, %v298_v34 }
 0x153   :  { %v331_v37 = vsel %vm259_vm1, %v7094_v35, 0.0 }
 0x154   :  { %6341 = vtanh.f32 %v299_v36  ;;  %332 = vadd.xlane.f32.xlu1 %v331_v37  ;;  %v7191_v37 = vld [vmem:[#allocation2] sm:$0xff] }
 0x155   :  { %6343 = vrcp.f32 %v6892_v40 }
 0x15a   :  { %v7098_v38 = vpop.eup %6341 }
 0x15b   :  { %v334_v39 = vsel %vm259_vm1, %v7098_v38, 0.0  ;;  %v6344_v41 = vpop.eup %6343 }
 0x15c   :  { %335 = vadd.xlane.f32.xlu1 %v334_v39  ;;  %v338_v42 = vmul.f32 32.0, %v6344_v41  ;;  %vm342_vm2 = vweird.f32 %v6344_v41 }
 0x15e   :  { %v339_v43 = vsub.f32 1.0, %v338_v42 }
 0x160   :  { %v340_v44 = vmul.f32 %v6344_v41, %v339_v43  ;;  %v7195_v43 = vld [vmem:[#allocation2 + $0x30] sm:$0xff] }
 0x162   :  { %v341_v45 = vadd.f32 %v6344_v41, %v340_v44 }
 0x164   :  { %v7102_v46 = vsel %vm342_vm2, %v6344_v41, %v341_v45 }
 0x1b7   :  { %v327_v47 = vpop.xlane.xlu0 %326 }
 0x1b8   :  { %v344_v48 = vmul.f32 %v7102_v46, %v327_v47 }
 0x1ba   :  { %v7106_v49 = vsub.f32 %v7086_v27, %v344_v48 }
 0x1bc   :  { %v352_v50 = vmul.f32 %v7106_v49, %v7106_v49 }
 0x1be   :  { %v356_v51 = vsel %vm259_vm1, %v352_v50, 0.0 }
 0x1bf   :  { %357 = vadd.xlane.f32.xlu2 %v356_v51  ;;  %v330_v52 = vpop.xlane.xlu0 %329  ;;  %v7200_v51 = vld [vmem:[#allocation2 + $0x8] sm:$0xff] }
 0x1c0   :  { %v345_v53 = vmul.f32 %v7102_v46, %v330_v52 }
 0x1c2   :  { %v7113_v54 = vsub.f32 %v7090_v31, %v345_v53 }
 0x1c4   :  { %v353_v55 = vmul.f32 %v7113_v54, %v7113_v54 }
 0x1c6   :  { %v359_v56 = vsel %vm259_vm1, %v353_v55, 0.0 }
 0x1c7   :  { %v333_v57 = vpop.xlane.xlu1 %332  ;;  %360 = vadd.xlane.f32.xlu2 %v359_v56 }
 0x1c8   :  { %v346_v58 = vmul.f32 %v7102_v46, %v333_v57 }
 0x1ca   :  { %v7120_v59 = vsub.f32 %v7094_v35, %v346_v58  ;;  %v7209_v58 = vld [vmem:[#allocation2 + $0x38] sm:$0xff] }
 0x1cc   :  { %v354_v60 = vmul.f32 %v7120_v59, %v7120_v59 }
 0x1ce   :  { %v362_v61 = vsel %vm259_vm1, %v354_v60, 0.0 }
 0x1cf   :  { %v336_v62 = vpop.xlane.xlu1 %335  ;;  %363 = vadd.xlane.f32.xlu0 %v362_v61 }
 0x1d0   :  { %v347_v63 = vmul.f32 %v7102_v46, %v336_v62 }
 0x1d2   :  { %v7127_v0 = vsub.f32 %v7098_v38, %v347_v63 }
 0x1d4   :  { %v355_v1 = vmul.f32 %v7127_v0, %v7127_v0 }
 0x1d6   :  { %v365_v2 = vsel %vm259_vm1, %v355_v1, 0.0 }
 0x1d7   :  { %366 = vadd.xlane.f32.xlu1 %v365_v2 }
 0x1df   :  { %609 = vrot.lane.b32.xlu2 %v7191_v37, %s6893_s27 }
 0x1e3   :  { %569 = vrot.lane.b32.xlu0 %v7181_v22, %s6893_s27 }
 0x1e7   :  { %611 = vrot.lane.b32.xlu2 %v7200_v51, %s6893_s27 }
 0x1eb   :  { %571 = vrot.lane.b32.xlu0 %v7186_v29, %s6893_s27 }
 0x1f3   :  { %573 = vrot.lane.b32.xlu0 %v7195_v43, %s6893_s27 }
 0x1fb   :  { %575 = vrot.lane.b32.xlu0 %v7209_v58, %s6893_s27 }
 0x232   :  { %v358_v19 = vpop.xlane.xlu2 %357 }
 0x233   :  { %v368_v20 = vmul.f32 %v358_v19, %v7102_v46  ;;  %v7242_v19 = vld [vmem:[#allocation2 + $0x10] sm:$0xff] }
 0x235   :  { %v372_v21 = vadd.f32 1e-05, %v368_v20 }
 0x237   :  { %6345 = vrsqrt.f32 %v372_v21  ;;  %vm382_vm4 = vweird.f32 %v372_v21 }
 0x23a   :  { %v361_v23 = vpop.xlane.xlu2 %360 }
 0x23b   :  { %v369_v24 = vmul.f32 %v361_v23, %v7102_v46 }
 0x23d   :  { %v6346_v25 = vpop.eup %6345  ;;  %v373_v26 = vadd.f32 1e-05, %v369_v24 }
 0x23e   :  { %v377_v28 = vmul.f32 %v6346_v25, %v372_v21  ;;  %vm383_vm3 = vweird.f32 %v6346_v25 }
 0x23f   :  { %6347 = vrsqrt.f32 %v373_v26  ;;  %vm384_vm5 = vmor %vm382_vm4, %vm383_vm3  ;;  %vm392_vm7 = vweird.f32 %v373_v26 }
 0x240   :  { %v378_v30 = vmul.f32 %v6346_v25, %v377_v28 }
 0x242   :  { %v379_v32 = vmul.f32 0.5, %v378_v30  ;;  %v364_v33 = vpop.xlane.xlu0 %363 }
 0x243   :  { %v370_v34 = vmul.f32 %v364_v33, %v7102_v46 }
 0x244   :  { %v380_v36 = vsub.f32 1.5, %v379_v32 }
 0x245   :  { %v6348_v39 = vpop.eup %6347  ;;  %v374_v40 = vadd.f32 1e-05, %v370_v34 }
 0x246   :  { %v381_v41 = vmul.f32 %v6346_v25, %v380_v36  ;;  %v387_v42 = vmul.f32 %v6348_v39, %v373_v26  ;;  %vm393_vm6 = vweird.f32 %v6348_v39  ;;  %v6315_v36 = vld [vmem:[%s9149_s7 + $0x88] ss:$0 sm:$0xff] }
 0x247   :  { %6349 = vrsqrt.f32 %v374_v40  ;;  %vm394_vm8 = vmor %vm392_vm7, %vm393_vm6  ;;  %vm402_vm10 = vweird.f32 %v374_v40 }
 0x248   :  { %v388_v44 = vmul.f32 %v6348_v39, %v387_v42  ;;  %v385_v45 = vsel %vm384_vm5, %v6346_v25, %v381_v41  ;;  %v7253_v25 = vld [vmem:[#allocation2 + $0x18] sm:$0xff] }
 0x249   :  { %v416_v47 = vmul.f32 %v385_v45, %v7106_v49  ;;  %v6314_v45 = vld [vmem:[%s9149_s7 + $0x80] ss:$0 sm:$0xff] }
 0x24a   :  { %v389_v48 = vmul.f32 0.5, %v388_v44  ;;  %v367_v50 = vpop.xlane.xlu1 %366 }
 0x24b   :  { %v371_v52 = vmul.f32 %v367_v50, %v7102_v46  ;;  %5785 = vmatmul.msk.f32.vlgmr.msra.gmra.mxu2 %vm259_vm1, %v416_v47  ;;  %5789 = vmatmul.msk.f32.vlgmr.msra.gmra.mxu3 %vm259_vm1, %v416_v47 }
 0x24c   :  { %v390_v53 = vsub.f32 1.5, %v389_v48  ;;  %5793 = vmatmul.msk.f32.vlgmr.msrb.gmra.mxu0 %vm259_vm1, %v416_v47  ;;  %5797 = vmatmul.msk.f32.vlgmr.msrb.gmra.mxu1 %vm259_vm1, %v416_v47 }
 0x24d   :  { %v6350_v49 = vpop.eup %6349  ;;  %v375_v55 = vadd.f32 1e-05, %v371_v52 }
 0x24e   :  { %v391_v56 = vmul.f32 %v6348_v39, %v390_v53  ;;  %v397_v57 = vmul.f32 %v6350_v49, %v374_v40  ;;  %vm403_vm9 = vweird.f32 %v6350_v49 }
 0x24f   :  { %6351 = vrsqrt.f32 %v375_v55  ;;  %vm404_vm11 = vmor %vm402_vm10, %vm403_vm9  ;;  %vm412_vm13 = vweird.f32 %v375_v55 }
 0x250   :  { %v398_v60 = vmul.f32 %v6350_v49, %v397_v57  ;;  %v395_v61 = vsel %vm394_vm8, %v6348_v39, %v391_v56 }
 0x251   :  { %v417_v62 = vmul.f32 %v395_v61, %v7113_v54 }
 0x252   :  { %v399_v63 = vmul.f32 0.5, %v398_v60  ;;  %v7321_v60 = vpop.permute.xlu2 %609 }
 0x253   :  { %5786 = vmatmul.msk.f32.gmra.mxu2 %vm259_vm1, %v417_v62  ;;  %5790 = vmatmul.msk.f32.gmra.mxu3 %vm259_vm1, %v417_v62 }
 0x254   :  { %v400_v1 = vsub.f32 1.5, %v399_v63  ;;  %5794 = vmatmul.msk.f32.gmra.mxu0 %vm259_vm1, %v417_v62  ;;  %5798 = vmatmul.msk.f32.gmra.mxu1 %vm259_vm1, %v417_v62  ;;  %v656_v62 = vld [vmem:[#allocation5 + $0x38] sm:$0xff]  ;;  %v655_v63 = vld [vmem:[#allocation5 + $0x30] sm:$0xff] }
 0x255   :  { %v6352_v2 = vpop.eup %6351  ;;  %736 = vmatpush.msrb.mxu3 %v656_v62 }
 0x256   :  { %v401_v3 = vmul.f32 %v6350_v49, %v400_v1  ;;  %v407_v4 = vmul.f32 %v6352_v2, %v375_v55  ;;  %vm413_vm12 = vweird.f32 %v6352_v2  ;;  %v654_v1 = vld [vmem:[#allocation5 + $0x28] sm:$0xff] }
 0x257   :  { %vm414_vm14 = vmor %vm412_vm13, %vm413_vm12  ;;  %737 = vmatpush.msrb.mxu3 %v655_v63 }
 0x258   :  { %v408_v54 = vmul.f32 %v6352_v2, %v407_v4  ;;  %v405_v5 = vsel %vm404_vm11, %v6350_v49, %v401_v3 }
 0x259   :  { %v418_v6 = vmul.f32 %v405_v5, %v7120_v59  ;;  %v7228_v59 = vpop.permute.xlu0 %569  ;;  %738 = vmatpush.msrb.mxu3 %v654_v1  ;;  %v653_v5 = vld [vmem:[#allocation5 + $0x20] sm:$0xff] }
 0x25a   :  { %v409_v7 = vmul.f32 0.5, %v408_v54  ;;  %v7323_v61 = vpop.permute.xlu2 %611  ;;  %v665_v54 = vld [vmem:[#allocation5 + $0x78] sm:$0xff] }
 0x25b   :  { %5787 = vmatmul.msk.f32.gmra.mxu2 %vm259_vm1, %v418_v6  ;;  %5791 = vmatmul.msk.f32.gmra.mxu3 %vm259_vm1, %v418_v6 }
 0x25c   :  { %v410_v8 = vsub.f32 1.5, %v409_v7  ;;  %5795 = vmatmul.msk.f32.gmra.mxu0 %vm259_vm1, %v418_v6  ;;  %5799 = vmatmul.msk.f32.gmra.mxu1 %vm259_vm1, %v418_v6  ;;  %v664_v6 = vld [vmem:[#allocation5 + $0x70] sm:$0xff]  ;;  %v652_v7 = vld [vmem:[#allocation5 + $0x18] sm:$0xff] }
 0x25d   :  { %695 = vmatpush.msrb.mxu2 %v665_v54  ;;  %739 = vmatpush.msrb.mxu3 %v653_v5 }
 0x25e   :  { %v411_v9 = vmul.f32 %v6352_v2, %v410_v8  ;;  %v663_v8 = vld [vmem:[#allocation5 + $0x68] sm:$0xff] }
 0x25f   :  { %696 = vmatpush.msrb.mxu2 %v664_v6  ;;  %740 = vmatpush.msrb.mxu3 %v652_v7  ;;  %v6312_v7 = vld [vmem:[%s9149_s7 + $0x90] ss:$0 sm:$0xff] }
 0x260   :  { %v415_v10 = vsel %vm414_vm14, %v6352_v2, %v411_v9  ;;  %v651_v9 = vld [vmem:[#allocation5 + $0x10] sm:$0xff] }
 0x261   :  { %v419_v11 = vmul.f32 %v415_v10, %v7127_v0  ;;  %v7238_v16 = vpop.permute.xlu0 %571  ;;  %v662_v10 = vld [vmem:[#allocation5 + $0x60] sm:$0xff]  ;;  %697 = vmatpush.msrb.mxu2 %v663_v8  ;;  %741 = vmatpush.msrb.mxu3 %v651_v9 }
 0x263   :  { %5788 = vmatmul.msk.f32.gmra.mxu2 %vm259_vm1, %v419_v11  ;;  %5792 = vmatmul.msk.f32.gmra.mxu3 %vm259_vm1, %v419_v11 }
 0x264   :  { %5796 = vmatmul.msk.f32.gmra.mxu0 %vm259_vm1, %v419_v11  ;;  %5800 = vmatmul.msk.f32.gmra.mxu1 %vm259_vm1, %v419_v11  ;;  %v650_v11 = vld [vmem:[#allocation5 + $0x8] sm:$0xff] }
 0x265   :  { %698 = vmatpush.msrb.mxu2 %v662_v10  ;;  %742 = vmatpush.msrb.mxu3 %v650_v11 }
 0x269   :  { %v7249_v23 = vpop.permute.xlu0 %573 }
 0x271   :  { %v7302_v52 = vpop.permute.xlu0 %575 }
 0x2c9   :  { %v540_v13 = vpop.f32.mrf.mxu1 }
 0x2ca   :  { %v7233_v14 = vadd.f32 %v6313_v12, %v540_v13  ;;  %v649_v13 = vld [vmem:[#allocation5] sm:$0xff] }
 0x2cb   :  { %743 = vmatpush.msrb.mxu3 %v649_v13 }
 0x2cc   :  { %v625_v0 = vmul.f32 %v7181_v22, %v7233_v14  ;;  %v581_v34 = vmul.f32 %v7228_v59, %v7233_v14 }
 0x2ce   :  { %633 = vrot.lane.b32.xlu1 %v625_v0, %s6893_s27  ;;  %v482_v15 = vpop.f32.mrf.mxu3 }
 0x2cf   :  { %v7291_v47 = vadd.f32 %v6315_v36, %v482_v15  ;;  %v660_v15 = vld [vmem:[#allocation5 + $0x50] sm:$0xff] }
 0x2d1   :  { %v543_v17 = vpop.f32.mrf.mxu1 }
 0x2d2   :  { %v7240_v18 = vadd.f32 %v6313_v12, %v543_v17  ;;  %v659_v17 = vld [vmem:[#allocation5 + $0x48] sm:$0xff] }
 0x2d4   :  { %v626_v20 = vmul.f32 %v7186_v29, %v7240_v18  ;;  %v582_v42 = vmul.f32 %v7238_v16, %v7240_v18  ;;  %v622_v2 = vmul.f32 %v7323_v61, %v7240_v18 }
 0x2d6   :  { %613 = vrot.lane.b32.xlu1 %v7242_v19, %s6893_s27  ;;  %635 = vrot.lane.b32.xlu2 %v626_v20, %s6893_s27  ;;  %v485_v21 = vpop.f32.mrf.mxu3  ;;  %v658_v20 = vld [vmem:[#allocation5 + $0x40] sm:$0xff] }
 0x2d7   :  { %v7284_v44 = vadd.f32 %v6315_v36, %v485_v21  ;;  %v621_v21 = vmul.f32 %v7321_v60, %v7233_v14 }
 0x2d9   :  { %v546_v22 = vpop.f32.mrf.mxu1 }
 0x2da   :  { %v7251_v24 = vadd.f32 %v6313_v12, %v546_v22 }
 0x2dc   :  { %v627_v26 = vmul.f32 %v7195_v43, %v7251_v24  ;;  %v583_v28 = vmul.f32 %v7249_v23, %v7251_v24  ;;  %v453_v43 = vpop.f32.mrf.mxu2 }
 0x2dd   :  { %v7295_v48 = vadd.f32 %v6314_v45, %v453_v43 }
 0x2de   :  { %615 = vrot.lane.b32.xlu1 %v7253_v25, %s6893_s27  ;;  %637 = vrot.lane.b32.xlu2 %v627_v26, %s6893_s27  ;;  %v488_v29 = vpop.f32.mrf.mxu3 }
 0x2df   :  { %593 = vrot.lane.b32.xlu0 %v583_v28, %s6893_s27  ;;  %v7276_v41 = vadd.f32 %v6315_v36, %v488_v29 }
 0x2e1   :  { %v549_v30 = vpop.f32.mrf.mxu1 }
 0x2e2   :  { %v7263_v32 = vadd.f32 %v6313_v12, %v549_v30  ;;  %v661_v12 = vld [vmem:[#allocation5 + $0x58] sm:$0xff] }
 0x2e3   :  { %699 = vmatpush.msrb.mxu2 %v661_v12 }
 0x2e4   :  { %v628_v33 = vmul.f32 %v7209_v58, %v7263_v32  ;;  %v456_v50 = vpop.f32.mrf.mxu2  ;;  %v584_v53 = vmul.f32 %v7302_v52, %v7263_v32 }
 0x2e5   :  { %v7306_v49 = vadd.f32 %v6314_v45, %v456_v50  ;;  %700 = vmatpush.msrb.mxu2 %v660_v15 }
 0x2e6   :  { %639 = vrot.lane.b32.xlu2 %v628_v33, %s6893_s27  ;;  %589 = vrot.lane.b32.xlu1 %v581_v34, %s6893_s27  ;;  %v491_v39 = vpop.f32.mrf.mxu3 }
 0x2e7   :  { %v492_v40 = vadd.f32 %v6315_v36, %v491_v39  ;;  %701 = vmatpush.msrb.mxu2 %v659_v17 }
 0x2e9   :  { %5809 = vmatpush.xpose.msk.msra.mxu0 %vm259_vm1, %v492_v40  ;;  %954 = vrot.lane.b32.xlu0 %v492_v40, %s6894_s6 }
 0x2ea   :  { %702 = vmatpush.msrb.mxu2 %v658_v20 }
 0x2ec   :  { %v459_v55 = vpop.f32.mrf.mxu2 }
 0x2ed   :  { %5810 = vmatpush.xpose.msk.msra.mxu0 %vm259_vm1, %v7276_v41  ;;  %v7311_v56 = vadd.f32 %v6314_v45, %v459_v55 }
 0x2ee   :  { %893 = vrot.lane.b32.xlu1 %v492_v40, %s6893_s27  ;;  %591 = vrot.lane.b32.xlu2 %v582_v42, %s6893_s27 }
 0x2f1   :  { %5811 = vmatpush.xpose.msk.msra.mxu0 %vm259_vm1, %v7284_v44 }
 0x2f4   :  { %v462_v57 = vpop.f32.mrf.mxu2 }
 0x2f5   :  { %5812 = vmatpush.xpose.msk.msra.mxu0 %vm259_vm1, %v7291_v47  ;;  %v7317_v58 = vadd.f32 %v6314_v45, %v462_v57 }
 0x2f6   :  { %832 = vrot.lane.b32.xlu1 %v492_v40, %s6895_s12  ;;  %891 = vrot.lane.b32.xlu2 %v7276_v41, %s6893_s27 }
 0x2f8   :  { %5813 = vmatmul.msk.f32.vlgmr.msra.gmra.mxu0 %vm259_vm1, %v7295_v48 }
 0x2fe   :  { %595 = vrot.lane.b32.xlu2 %v584_v53, %s6893_s27 }
 0x300   :  { %5814 = vmatmul.msk.f32.gmra.mxu0 %vm259_vm1, %v7306_v49 }
 0x306   :  { %830 = vrot.lane.b32.xlu2 %v7276_v41, %s6895_s12 }
 0x308   :  { %5815 = vmatmul.msk.f32.gmra.mxu0 %vm259_vm1, %v7311_v56 }
 0x310   :  { %5816 = vmatmul.msk.f32.gmra.mxu0 %vm259_vm1, %v7317_v58 }
 0x330   :  { %v636_v3 = vpop.permute.xlu2 %635 }
 0x331   :  { %v646_v4 = vsub.f32 %v622_v2, %v636_v3 }
 0x333   :  { %672 = vrot.lane.b32.xlu1 %v646_v4, %s6893_s27 }
 0x338   :  { %v638_v0 = vpop.permute.xlu2 %637 }
 0x33b   :  { %950 = vrot.lane.b32.xlu1 %v7284_v44, %s6894_s6 }
 0x340   :  { %v634_v22 = vpop.permute.xlu1 %633  ;;  %v640_v28 = vpop.permute.xlu2 %639 }
 0x341   :  { %v645_v26 = vsub.f32 %v621_v21, %v634_v22 }
 0x343   :  { %670 = vrot.lane.b32.xlu0 %v645_v26, %s6893_s27 }
 0x348   :  { %v7333_v29 = vpop.permute.xlu1 %613  ;;  %v592_v34 = vpop.permute.xlu2 %591 }
 0x349   :  { %v623_v30 = vmul.f32 %v7333_v29, %v7251_v24 }
 0x34b   :  { %952 = vrot.lane.b32.xlu0 %v7276_v41, %s6894_s6  ;;  %v647_v33 = vsub.f32 %v623_v30, %v638_v0  ;;  %v561_v41 = vmul.f32 %v7191_v37, %v7233_v14  ;;  %v562_v37 = vmul.f32 %v7200_v51, %v7240_v18  ;;  %v563_v51 = vmul.f32 %v7242_v19, %v7251_v24 }
 0x34c   :  { %v564_v19 = vmul.f32 %v7253_v25, %v7263_v32 }
 0x34d   :  { %674 = vrot.lane.b32.xlu2 %v647_v33, %s6893_s27 }
 0x350   :  { %v7340_v36 = vpop.permute.xlu1 %615  ;;  %v892_v43 = vpop.permute.xlu2 %891 }
 0x351   :  { %v624_v39 = vmul.f32 %v7340_v36, %v7263_v32  ;;  %v594_v40 = vpop.permute.xlu0 %593 }
 0x352   :  { %v603_v57 = vadd.f32 %v594_v40, %v563_v51 }
 0x353   :  { %889 = vrot.lane.b32.xlu0 %v7284_v44, %s6893_s27  ;;  %v648_v42 = vsub.f32 %v624_v39, %v640_v28 }
 0x355   :  { %676 = vrot.lane.b32.xlu1 %v648_v42, %s6893_s27  ;;  %828 = vrot.lane.b32.xlu2 %v7284_v44, %s6895_s12  ;;  %v602_v44 = vadd.f32 %v592_v34, %v562_v37 }
 0x358   :  { %v590_v45 = vpop.permute.xlu1 %589  ;;  %v596_v55 = vpop.permute.xlu2 %595 }
 0x359   :  { %v601_v50 = vadd.f32 %v590_v45, %v561_v41  ;;  %v604_v24 = vadd.f32 %v596_v55, %v564_v19 }
 0x35b   :  { %5805 = vmatmul.msk.f32.vlgmr.msrb.gmra.mxu3 %vm678_vm15, %v601_v50  ;;  %887 = vrot.lane.b32.xlu0 %v7291_v47, %s6893_s27  ;;  %v955_v53 = vpop.permute.xlu0 %954 }
 0x35c   :  { %5833 = vmatpush.xpose.msk.msra.mxu3 %vm259_vm1, %v955_v53 }
 0x35d   :  { %948 = vrot.lane.b32.xlu1 %v7291_v47, %s6894_s6  ;;  %940 = vrot.lane.b32.xlu2 %v7295_v48, %s6894_s6 }
 0x360   :  { %v894_v14 = vpop.permute.xlu1 %893  ;;  %v831_v62 = vpop.permute.xlu2 %830 }
 0x361   :  { %5825 = vmatpush.xpose.msk.msra.mxu2 %vm259_vm1, %v894_v14 }
 0x363   :  { %5806 = vmatmul.msk.f32.gmra.mxu3 %vm678_vm15, %v602_v44  ;;  %879 = vrot.lane.b32.xlu0 %v7295_v48, %s6893_s27 }
 0x365   :  { %826 = vrot.lane.b32.xlu1 %v7291_v47, %s6895_s12  ;;  %5826 = vmatpush.xpose.msk.msra.mxu2 %vm259_vm1, %v892_v43 }
 0x366   :  { %881 = vrot.lane.b32.xlu2 %v7306_v49, %s6893_s27 }
 0x368   :  { %v833_v18 = vpop.permute.xlu1 %832 }
 0x369   :  { %5817 = vmatpush.xpose.msk.msra.mxu1 %vm259_vm1, %v833_v18 }
 0x36b   :  { %818 = vrot.lane.b32.xlu0 %v7295_v48, %s6895_s12  ;;  %5807 = vmatmul.msk.f32.gmra.mxu3 %vm678_vm15, %v603_v57 }
 0x36d   :  { %942 = vrot.lane.b32.xlu1 %v7306_v49, %s6894_s6  ;;  %5818 = vmatpush.xpose.msk.msra.mxu1 %vm259_vm1, %v831_v62 }
 0x36e   :  { %883 = vrot.lane.b32.xlu2 %v7311_v56, %s6893_s27 }
 0x373   :  { %820 = vrot.lane.b32.xlu0 %v7306_v49, %s6895_s12  ;;  %5808 = vmatmul.msk.f32.gmra.mxu3 %vm678_vm15, %v604_v24  ;;  %v511_v49 = vpop.f32.mrf.mxu0 }
 0x374   :  { %v7420_v0 = vadd.f32 %v6312_v7, %v511_v49  ;;  %v757_v49 = vld [vmem:[#allocation7] sm:$0xff] }
 0x375   :  { %944 = vrot.lane.b32.xlu1 %v7311_v56, %s6894_s6 }
 0x376   :  { %885 = vrot.lane.b32.xlu2 %v7317_v58, %s6893_s27 }
 0x37b   :  { %822 = vrot.lane.b32.xlu0 %v7311_v56, %s6895_s12  ;;  %v514_v1 = vpop.f32.mrf.mxu0 }
 0x37c   :  { %v7417_v13 = vadd.f32 %v6312_v7, %v514_v1 }
 0x37d   :  { %946 = vrot.lane.b32.xlu1 %v7317_v58, %s6894_s6 }
 0x383   :  { %824 = vrot.lane.b32.xlu0 %v7317_v58, %s6895_s12  ;;  %v517_v3 = vpop.f32.mrf.mxu0 }
 0x384   :  { %v7414_v11 = vadd.f32 %v6312_v7, %v517_v3 }
 0x38b   :  { %v520_v6 = vpop.f32.mrf.mxu0 }
 0x38c   :  { %v7411_v9 = vadd.f32 %v6312_v7, %v520_v6  ;;  %v758_v7 = vld [vmem:[#allocation7 + $0x8] sm:$0xff] }
 0x3a5   :  { %v673_v47 = vpop.permute.xlu1 %672 }
 0x3a7   :  { %v675_v25 = vpop.permute.xlu2 %674 }
 0x3ad   :  { %v951_v56 = vpop.permute.xlu1 %950 }
 0x3af   :  { %v829_v32 = vpop.permute.xlu2 %828 }
 0x3b0   :  { %5819 = vmatpush.xpose.msk.msra.mxu1 %vm259_vm1, %v829_v32 }
 0x3b5   :  { %v671_v48 = vpop.permute.xlu0 %670 }
 0x3b6   :  { %5801 = vmatmul.msk.f32.vlgmr.msrb.gmra.mxu2 %vm678_vm15, %v671_v48 }
 0x3b7   :  { %v941_v54 = vpop.permute.xlu2 %940 }
 0x3bd   :  { %v953_v63 = vpop.permute.xlu0 %952 }
 0x3be   :  { %5802 = vmatmul.msk.f32.gmra.mxu2 %vm678_vm15, %v673_v47  ;;  %5834 = vmatpush.xpose.msk.msra.mxu3 %vm259_vm1, %v953_v63  ;;  %v806_v47 = vpop.f32.mrf.mxu0 }
 0x3c0   :  { %v882_v12 = vpop.permute.xlu2 %881 }
 0x3c2   :  { %5835 = vmatpush.xpose.msk.msra.mxu3 %vm259_vm1, %v951_v56 }
 0x3c5   :  { %v890_v2 = vpop.permute.xlu0 %889 }
 0x3c6   :  { %5803 = vmatmul.msk.f32.gmra.mxu2 %vm678_vm15, %v675_v25 }
 0x3c7   :  { %5827 = vmatpush.xpose.msk.msra.mxu2 %vm259_vm1, %v890_v2  ;;  %v677_v58 = vpop.permute.xlu1 %676 }
 0x3c8   :  { %v884_v20 = vpop.permute.xlu2 %883 }
 0x3cd   :  { %v888_v4 = vpop.permute.xlu0 %887 }
 0x3ce   :  { %5804 = vmatmul.msk.f32.gmra.mxu2 %vm678_vm15, %v677_v58 }
 0x3cf   :  { %5828 = vmatpush.xpose.msk.msra.mxu2 %vm259_vm1, %v888_v4  ;;  %v949_v5 = vpop.permute.xlu1 %948 }
 0x3d0   :  { %5836 = vmatpush.xpose.msk.msra.mxu3 %vm259_vm1, %v949_v5  ;;  %v886_v26 = vpop.permute.xlu2 %885 }
 0x3d3   :  { %5837 = vmatmul.msk.f32.vlgmr.msra.gmra.mxu3 %vm259_vm1, %v941_v54  ;;  %v809_v54 = vpop.f32.mrf.mxu0 }
 0x3d5   :  { %v880_v8 = vpop.permute.xlu0 %879 }
 0x3d6   :  { %5829 = vmatmul.msk.f32.vlgmr.msra.gmra.mxu2 %vm259_vm1, %v880_v8 }
 0x3d7   :  { %v827_v10 = vpop.permute.xlu1 %826 }
 0x3d8   :  { %5820 = vmatpush.xpose.msk.msra.mxu1 %vm259_vm1, %v827_v10 }
 0x3dc   :  { %1163 = vmatpush.msrb.mxu1 %v7411_v9 }
 0x3dd   :  { %v819_v15 = vpop.permute.xlu0 %818 }
 0x3de   :  { %1164 = vmatpush.msrb.mxu1 %v7414_v11  ;;  %5830 = vmatmul.msk.f32.gmra.mxu2 %vm259_vm1, %v882_v12  ;;  %v745_v34 = vpop.f32.mrf.mxu3 }
 0x3df   :  { %5821 = vmatmul.msk.f32.vlgmr.msra.gmra.mxu1 %vm259_vm1, %v819_v15  ;;  %v943_v17 = vpop.permute.xlu1 %942 }
 0x3e0   :  { %1165 = vmatpush.msrb.mxu1 %v7417_v13  ;;  %5838 = vmatmul.msk.f32.gmra.mxu3 %vm259_vm1, %v943_v17 }
 0x3e2   :  { %1166 = vmatpush.msrb.mxu1 %v7420_v0 }
 0x3e5   :  { %v821_v21 = vpop.permute.xlu0 %820 }
 0x3e6   :  { %5831 = vmatmul.msk.f32.gmra.mxu2 %vm259_vm1, %v884_v20  ;;  %v748_v40 = vpop.f32.mrf.mxu3 }
 0x3e7   :  { %5822 = vmatmul.msk.f32.gmra.mxu1 %vm259_vm1, %v821_v21  ;;  %v945_v22 = vpop.permute.xlu1 %944 }
 0x3e8   :  { %5839 = vmatmul.msk.f32.gmra.mxu3 %vm259_vm1, %v945_v22 }
 0x3ed   :  { %v823_v28 = vpop.permute.xlu0 %822 }
 0x3ee   :  { %5832 = vmatmul.msk.f32.gmra.mxu2 %vm259_vm1, %v886_v26  ;;  %v751_v41 = vpop.f32.mrf.mxu3  ;;  %v812_v26 = vpop.f32.mrf.mxu0 }
 0x3ef   :  { %5823 = vmatmul.msk.f32.gmra.mxu1 %vm259_vm1, %v823_v28  ;;  %v947_v30 = vpop.permute.xlu1 %946 }
 0x3f0   :  { %5840 = vmatmul.msk.f32.gmra.mxu3 %vm259_vm1, %v947_v30  ;;  %v759_v30 = vld [vmem:[#allocation7 + $0x10] sm:$0xff] }
 0x3f5   :  { %v825_v33 = vpop.permute.xlu0 %824 }
 0x3f6   :  { %v7434_v45 = vpop.f32.mrf.mxu3 }
 0x3f7   :  { %5824 = vmatmul.msk.f32.gmra.mxu1 %vm259_vm1, %v825_v33 }
 0x439   :  { %v704_v39 = vpop.f32.mrf.mxu2 }
 0x43a   :  { %v746_v48 = vadd.f32 %v745_v34, %v704_v39 }
 0x43c   :  { %v761_v3 = vadd.f32 %v757_v49, %v746_v48  ;;  %v1096_v48 = vld [vmem:[#allocation8 + $0x50] sm:$0xff]  ;;  %v1095_v49 = vld [vmem:[#allocation8 + $0x48] sm:$0xff] }
 0x441   :  { %v707_v42 = vpop.f32.mrf.mxu2 }
 0x442   :  { %v749_v6 = vadd.f32 %v748_v40, %v707_v42 }
 0x444   :  { %v762_v17 = vadd.f32 %v758_v7, %v749_v6 }
 0x449   :  { %v710_v43 = vpop.f32.mrf.mxu2 }
 0x44a   :  { %v752_v28 = vadd.f32 %v751_v41, %v710_v43  ;;  %v815_v41 = vpop.f32.mrf.mxu0  ;;  %v760_v43 = vld [vmem:[#allocation7 + $0x18] sm:$0xff] }
 0x44c   :  { %v763_v42 = vadd.f32 %v759_v30, %v752_v28 }
 0x451   :  { %v713_v50 = vpop.f32.mrf.mxu2 }
 0x456   :  { %v989_v53 = vpop.f32.mrf.mxu3 }
 0x457   :  { %1037 = vrot.lane.b32.xlu0 %v989_v53, %s6895_s12 }
 0x459   :  { %v928_v37 = vpop.f32.mrf.mxu2 }
 0x45a   :  { %1021 = vrot.lane.b32.xlu1 %v928_v37, %s6893_s27 }
 0x45c   :  { %v867_v14 = vpop.f32.mrf.mxu1 }
 0x45d   :  { %1005 = vrot.lane.b32.xlu2 %v867_v14, %s6894_s6 }
 0x461   :  { %v931_v44 = vpop.f32.mrf.mxu2 }
 0x462   :  { %1023 = vrot.lane.b32.xlu1 %v931_v44, %s6893_s27  ;;  %v755_v44 = vadd.f32 %v7434_v45, %v713_v50  ;;  %v1098_v45 = vld [vmem:[#allocation8 + $0x60] sm:$0xff]  ;;  %v1097_v50 = vld [vmem:[#allocation8 + $0x58] sm:$0xff] }
 0x463   :  { %v992_v51 = vpop.f32.mrf.mxu3 }
 0x464   :  { %v870_v55 = vpop.f32.mrf.mxu1  ;;  %1039 = vrot.lane.b32.xlu0 %v992_v51, %s6895_s12 }
 0x465   :  { %1007 = vrot.lane.b32.xlu2 %v870_v55, %s6894_s6 }
 0x469   :  { %v934_v18 = vpop.f32.mrf.mxu2 }
 0x46a   :  { %1025 = vrot.lane.b32.xlu1 %v934_v18, %s6893_s27 }
 0x46b   :  { %v995_v62 = vpop.f32.mrf.mxu3 }
 0x46c   :  { %v873_v57 = vpop.f32.mrf.mxu1  ;;  %1041 = vrot.lane.b32.xlu0 %v995_v62, %s6895_s12  ;;  %v764_v62 = vadd.f32 %v760_v43, %v755_v44 }
 0x46d   :  { %1009 = vrot.lane.b32.xlu2 %v873_v57, %s6894_s6 }
 0x471   :  { %v937_v19 = vpop.f32.mrf.mxu2 }
 0x472   :  { %1027 = vrot.lane.b32.xlu1 %v937_v19, %s6893_s27  ;;  %v1101_v19 = vld [vmem:[#allocation8 + $0x78] sm:$0xff] }
 0x473   :  { %v998_v25 = vpop.f32.mrf.mxu3  ;;  %1102 = vmatpush.msrb.mxu0 %v1101_v19 }
 0x474   :  { %v876_v24 = vpop.f32.mrf.mxu1  ;;  %1043 = vrot.lane.b32.xlu0 %v998_v25, %s6895_s12 }
 0x475   :  { %1011 = vrot.lane.b32.xlu2 %v876_v24, %s6894_s6  ;;  %v1100_v24 = vld [vmem:[#allocation8 + $0x70] sm:$0xff] }
 0x476   :  { %1103 = vmatpush.msrb.mxu0 %v1100_v24 }
 0x4b7   :  { %v1006_v32 = vpop.permute.xlu2 %1005 }
 0x4b8   :  { %v1049_v63 = vsel %vm259_vm1, %v806_v47, %v1006_v32  ;;  %v1099_v47 = vld [vmem:[#allocation8 + $0x68] sm:$0xff] }
 0x4b9   :  { %1104 = vmatpush.msrb.mxu0 %v1099_v47  ;;  %v1433_v47 = vld [vmem:[#allocation11 + $0x8] sm:$0xff] }
 0x4bb   :  { %1105 = vmatpush.msrb.mxu0 %v1098_v45 }
 0x4bd   :  { %1106 = vmatpush.msrb.mxu0 %v1097_v50 }
 0x4bf   :  { %v1008_v1 = vpop.permute.xlu2 %1007  ;;  %1107 = vmatpush.msrb.mxu0 %v1096_v48 }
 0x4c0   :  { %v1050_v8 = vsel %vm259_vm1, %v809_v54, %v1008_v1  ;;  %v1093_v1 = vld [vmem:[#allocation8 + $0x38] sm:$0xff]  ;;  %v1087_v54 = vld [vmem:[#allocation8 + $0x8] sm:$0xff] }
 0x4c1   :  { %1108 = vmatpush.msrb.mxu0 %v1095_v49 }
 0x4c7   :  { %v1010_v20 = vpop.permute.xlu2 %1009 }
 0x4c8   :  { %v1051_v33 = vsel %vm259_vm1, %v812_v26, %v1010_v20 }
 0x4c9   :  { %v1038_v2 = vpop.permute.xlu0 %1037 }
 0x4cc   :  { %v1022_v56 = vpop.permute.xlu1 %1021 }
 0x4cd   :  { %v1053_v58 = vsel %vm678_vm15, %v1049_v63, %v1022_v56  ;;  %v6205_v63 = vpack.i.bf16 %v7414_v11, %v7411_v9  ;;  %v1094_v56 = vld [vmem:[#allocation8 + $0x40] sm:$0xff]  ;;  %v1091_v9 = vld [vmem:[#allocation8 + $0x28] sm:$0xff] }
 0x4ce   :  { %v1058_v4 = vsel %vm1057_vm0, %v1053_v58, %v1038_v2  ;;  %1109 = vmatpush.msrb.mxu0 %v1094_v56  ;;  %v1092_v2 = vld [vmem:[#allocation8 + $0x30] sm:$0xff]  ;;  %v7476_v58 = vpack.i.bf16 %v7420_v0, %v7417_v13  ;;  %v1090_v11 = vld [vmem:[#allocation8 + $0x20] sm:$0xff] }
 0x4cf   :  { %v7451_v5 = vadd.f32 %v1058_v4, %v761_v3  ;;  %v1012_v14 = vpop.permute.xlu2 %1011  ;;  %v1089_v3 = vld [vmem:[#allocation8 + $0x18] sm:$0xff]  ;;  %v1088_v4 = vld [vmem:[#allocation8 + $0x10] sm:$0xff]  ;;  %v1086_v13 = vld [vmem:[#allocation8] sm:$0xff] }
 0x4d0   :  { %v1052_v55 = vsel %vm259_vm1, %v815_v41, %v1012_v14  ;;  %1110 = vmatpush.msrb.mxu0 %v1093_v1 }
 0x4d1   :  { %1066 = vmax.xlane.f32.xlu2 %v7451_v5 }
 0x4d2   :  { %1111 = vmatpush.msrb.mxu0 %v1092_v2 }
 0x4d4   :  { %v1024_v10 = vpop.permute.xlu1 %1023  ;;  %1112 = vmatpush.msrb.mxu0 %v1091_v9 }
 0x4d5   :  { %v1054_v12 = vsel %vm678_vm15, %v1050_v8, %v1024_v10 }
 0x4d6   :  { %v1040_v15 = vpop.permute.xlu0 %1039  ;;  %1113 = vmatpush.msrb.mxu0 %v1090_v11 }
 0x4d7   :  { %v1059_v21 = vsel %vm1057_vm0, %v1054_v12, %v1040_v15 }
 0x4d8   :  { %v7457_v22 = vadd.f32 %v1059_v21, %v762_v17  ;;  %1114 = vmatpush.msrb.mxu0 %v1089_v3 }
 0x4da   :  { %1068 = vmax.xlane.f32.xlu1 %v7457_v22  ;;  %1115 = vmatpush.msrb.mxu0 %v1088_v4 }
 0x4dc   :  { %v1026_v34 = vpop.permute.xlu1 %1025  ;;  %1116 = vmatpush.msrb.mxu0 %v1087_v54 }
 0x4dd   :  { %v1055_v39 = vsel %vm678_vm15, %v1051_v33, %v1026_v34 }
 0x4de   :  { %v1042_v40 = vpop.permute.xlu0 %1041  ;;  %1117 = vmatpush.msrb.mxu0 %v1086_v13 }
 0x4df   :  { %v1060_v53 = vsel %vm1057_vm0, %v1055_v39, %v1042_v40 }
 0x4e0   :  { %v7463_v37 = vadd.f32 %v1060_v53, %v763_v42 }
 0x4e2   :  { %1070 = vmax.xlane.f32.xlu0 %v7463_v37 }
 0x4e4   :  { %v1028_v51 = vpop.permute.xlu1 %1027 }
 0x4e5   :  { %v1056_v18 = vsel %vm678_vm15, %v1052_v55, %v1028_v51 }
 0x4e6   :  { %v1044_v57 = vpop.permute.xlu0 %1043 }
 0x4e7   :  { %v1061_v25 = vsel %vm1057_vm0, %v1056_v18, %v1044_v57 }
 0x4e8   :  { %v1065_v32 = vadd.f32 %v1061_v25, %v764_v62  ;;  %v1435_v25 = vld [vmem:[#allocation11 + $0x18] sm:$0xff] }
 0x4e9   :  { %1460 = vmatpush.msra.mxu1 %v1435_v25  ;;  %v1426_v25 = vld [vmem:[%s9150_s8 + $0x50] sm:$0xff] }
 0x4ea   :  { %1072 = vmax.xlane.f32.xlu2 %v1065_v32 }
 0x4f3   :  { %6206 = vrot.lane.b32.xlu1 %v6205_v63, %s6895_s12 }
 0x4f6   :  { %6211 = vrot.lane.b32.xlu0 %v6205_v63, %s6893_s27 }
 0x4fe   :  { %6221 = vrot.lane.b32.xlu0 %v7476_v58, %s6893_s27 }
 0x502   :  { %6216 = vrot.lane.b32.xlu2 %v7476_v58, %s6895_s12 }
 0x506   :  { %6226 = vrot.lane.b32.xlu0 %v6205_v63, %s6894_s6  ;;  %v1432_v63 = vld [vmem:[#allocation11] sm:$0xff] }
 0x544   :  { %v1067_v0 = vpop.xlane.xlu2 %1066 }
 0x545   :  { %v1074_v6 = vsub.f32 %v7451_v5, %v1067_v0 }
 0x547   :  { %v1078_v7 = vmul.f32 1.442695, %v1074_v6 }
 0x549   :  { %6353 = vpow2.f32 %v1078_v7 }
 0x54d   :  { %v1069_v8 = vpop.xlane.xlu1 %1068 }
 0x54e   :  { %v1075_v10 = vsub.f32 %v7457_v22, %v1069_v8 }
 0x54f   :  { %v6354_v12 = vpop.eup %6353 }
 0x550   :  { %v1080_v15 = vmul.f32 1.442695, %v1075_v10  ;;  %1118 = vmatmul.f32.vlgmr.msrb.gmra.mxu0 %v6354_v12 }
 0x552   :  { %6355 = vpow2.f32 %v1080_v15 }
 0x555   :  { %v1071_v17 = vpop.xlane.xlu0 %1070 }
 0x556   :  { %v1076_v20 = vsub.f32 %v7463_v37, %v1071_v17 }
 0x558   :  { %v6356_v21 = vpop.eup %6355  ;;  %v1082_v26 = vmul.f32 1.442695, %v1076_v20 }
 0x559   :  { %1121 = vmatmul.f32.gmra.mxu0 %v6356_v21 }
 0x55a   :  { %6357 = vpow2.f32 %v1082_v26 }
 0x55d   :  { %v1073_v28 = vpop.xlane.xlu2 %1072 }
 0x55e   :  { %v1077_v30 = vsub.f32 %v1065_v32, %v1073_v28  ;;  %v1434_v32 = vld [vmem:[#allocation11 + $0x10] sm:$0xff] }
 0x55f   :  { %1461 = vmatpush.msra.mxu1 %v1434_v32  ;;  %v1425_v32 = vld [vmem:[%s9150_s8 + $0x48] sm:$0xff] }
 0x560   :  { %v7486_v33 = vpop.eup %6357  ;;  %v1084_v5 = vmul.f32 1.442695, %v1077_v30 }
 0x561   :  { %1124 = vmatmul.f32.gmra.mxu0 %v7486_v33  ;;  %1462 = vmatpush.msra.mxu1 %v1433_v47  ;;  %v1424_v47 = vld [vmem:[%s9150_s8 + $0x40] sm:$0xff] }
 0x562   :  { %6359 = vpow2.f32 %v1084_v5 }
 0x563   :  { %1463 = vmatpush.msra.mxu1 %v1432_v63  ;;  %v1419_v63 = vld [vmem:[%s9150_s8 + $0x18] sm:$0xff] }
 0x565   :  { %v6207_v22 = vpop.permute.xlu1 %6206  ;;  %v6217_v39 = vpop.permute.xlu2 %6216 }
 0x566   :  { %v6208_v34 = vunpack.i.l.bf16 %v6207_v22  ;;  %v6209_v42 = vunpack.i.h.bf16 %v6207_v22  ;;  %v6218_v14 = vunpack.i.l.bf16 %v6217_v39  ;;  %v6219_v41 = vunpack.i.h.bf16 %v6217_v39 }
 0x568   :  { %v7489_v40 = vpop.eup %6359  ;;  %1224 = vmatpush.msrb.mxu2 %v6208_v34  ;;  %v6212_v53 = vpop.permute.xlu0 %6211 }
 0x569   :  { %v6213_v37 = vunpack.i.l.bf16 %v6212_v53  ;;  %1127 = vmatmul.f32.gmra.mxu0 %v7489_v40  ;;  %v6214_v44 = vunpack.i.h.bf16 %v6212_v53 }
 0x56a   :  { %1225 = vmatpush.msrb.mxu2 %v6209_v42 }
 0x56b   :  { %1281 = vmatpush.msrb.mxu3 %v6213_v37 }
 0x56c   :  { %1226 = vmatpush.msrb.mxu2 %v6218_v14 }
 0x56d   :  { %1282 = vmatpush.msrb.mxu3 %v6214_v44 }
 0x56e   :  { %1227 = vmatpush.msrb.mxu2 %v6219_v41 }
 0x570   :  { %v6222_v43 = vpop.permute.xlu0 %6221 }
 0x571   :  { %v6223_v55 = vunpack.i.l.bf16 %v6222_v43  ;;  %v6224_v51 = vunpack.i.h.bf16 %v6222_v43 }
 0x573   :  { %1283 = vmatpush.msrb.mxu3 %v6223_v55 }
 0x575   :  { %1284 = vmatpush.msrb.mxu3 %v6224_v51 }
 0x578   :  { %v6227_v18 = vpop.permute.xlu0 %6226 }
 0x579   :  { %v6228_v57 = vunpack.i.l.bf16 %v6227_v18  ;;  %v6229_v62 = vunpack.i.h.bf16 %v6227_v18  ;;  %v1431_v18 = vld [vmem:[%s9150_s8 + $0x78] sm:$0xff] }
 0x57a   :  { %1477 = vmatpush.msra.mxu2 %v1431_v18 }
 0x57b   :  { %1338 = vmatpush.msra.mxu0 %v6228_v57  ;;  %v1430_v57 = vld [vmem:[%s9150_s8 + $0x70] sm:$0xff] }
 0x57c   :  { %1478 = vmatpush.msra.mxu2 %v1430_v57 }
 0x57d   :  { %1339 = vmatpush.msra.mxu0 %v6229_v62  ;;  %v1429_v62 = vld [vmem:[%s9150_s8 + $0x68] sm:$0xff] }
 0x57e   :  { %1479 = vmatpush.msra.mxu2 %v1429_v62 }
 0x5cd   :  { %v1119_v19 = vpop.f32.mrf.mxu0 }
 0x5ce   :  { %v1120_v24 = vadd.f32 1e-37, %v1119_v19  ;;  %v1428_v19 = vld [vmem:[%s9150_s8 + $0x60] sm:$0xff] }
 0x5cf   :  { %1480 = vmatpush.msra.mxu2 %v1428_v19 }
 0x5d0   :  { %6361 = vrcp.f32 %v1120_v24  ;;  %v1427_v24 = vld [vmem:[%s9150_s8 + $0x58] sm:$0xff] }
 0x5d1   :  { %1481 = vmatpush.msra.mxu2 %v1427_v24 }
 0x5d3   :  { %1482 = vmatpush.msra.mxu2 %v1426_v25 }
 0x5d5   :  { %1483 = vmatpush.msra.mxu2 %v1425_v32 }
 0x5d6   :  { %v6362_v45 = vpop.eup %6361  ;;  %v1122_v50 = vpop.f32.mrf.mxu0 }
 0x5d7   :  { %v1135_v48 = vmul.f32 %v6362_v45, %v6354_v12  ;;  %v1123_v49 = vadd.f32 1e-37, %v1122_v50  ;;  %1484 = vmatpush.msra.mxu2 %v1424_v47  ;;  %v1423_v45 = vld [vmem:[%s9150_s8 + $0x38] sm:$0xff]  ;;  %v1422_v50 = vld [vmem:[%s9150_s8 + $0x30] sm:$0xff] }
 0x5d9   :  { %6363 = vrcp.f32 %v1123_v49  ;;  %5841 = vmatmul.msk.f32.vlgmr.msrb.gmra.mxu1 %vm259_vm1, %v1135_v48  ;;  %1180 = vrot.lane.b32.xlu1 %v1135_v48, %s6895_s12  ;;  %v1420_v49 = vld [vmem:[%s9150_s8 + $0x20] sm:$0xff] }
 0x5da   :  { %1298 = vrot.lane.b32.xlu0 %v1135_v48, %s6894_s6  ;;  %1241 = vrot.lane.b32.xlu2 %v1135_v48, %s6893_s27  ;;  %v1421_v48 = vld [vmem:[%s9150_s8 + $0x28] sm:$0xff] }
 0x5db   :  { %1485 = vmatpush.msra.mxu2 %v1423_v45 }
 0x5dd   :  { %1486 = vmatpush.msra.mxu2 %v1422_v50 }
 0x5de   :  { %v1125_v56 = vpop.f32.mrf.mxu0 }
 0x5df   :  { %v6364_v1 = vpop.eup %6363  ;;  %v1126_v2 = vadd.f32 1e-37, %v1125_v56  ;;  %1487 = vmatpush.msra.mxu2 %v1421_v48  ;;  %v1418_v56 = vld [vmem:[%s9150_s8 + $0x10] sm:$0xff] }
 0x5e0   :  { %v1136_v9 = vmul.f32 %v6364_v1, %v6356_v21  ;;  %v1417_v1 = vld [vmem:[%s9150_s8 + $0x8] sm:$0xff] }
 0x5e1   :  { %6365 = vrcp.f32 %v1126_v2  ;;  %6231 = vrot.lane.b32.xlu1 %v7476_v58, %s6894_s6  ;;  %1488 = vmatpush.msra.mxu2 %v1420_v49  ;;  %v1416_v2 = vld [vmem:[%s9150_s8] sm:$0xff] }
 0x5e2   :  { %5842 = vmatmul.msk.f32.gmra.mxu1 %vm259_vm1, %v1136_v9  ;;  %1300 = vrot.lane.b32.xlu0 %v1136_v9, %s6894_s6 }
 0x5e3   :  { %1182 = vrot.lane.b32.xlu2 %v1136_v9, %s6895_s12  ;;  %1489 = vmatpush.msra.mxu2 %v1419_v63 }
 0x5e5   :  { %1490 = vmatpush.msra.mxu2 %v1418_v56 }
 0x5e6   :  { %v1128_v11 = vpop.f32.mrf.mxu0 }
 0x5e7   :  { %v6366_v3 = vpop.eup %6365  ;;  %v1129_v4 = vadd.f32 1e-37, %v1128_v11  ;;  %1491 = vmatpush.msra.mxu2 %v1417_v1 }
 0x5e8   :  { %v1137_v54 = vmul.f32 %v6366_v3, %v7486_v33 }
 0x5e9   :  { %6367 = vrcp.f32 %v1129_v4  ;;  %1243 = vrot.lane.b32.xlu1 %v1136_v9, %s6893_s27  ;;  %1492 = vmatpush.msra.mxu2 %v1416_v2 }
 0x5ea   :  { %1302 = vrot.lane.b32.xlu0 %v1137_v54, %s6894_s6  ;;  %5843 = vmatmul.msk.f32.gmra.mxu1 %vm259_vm1, %v1137_v54 }
 0x5eb   :  { %1184 = vrot.lane.b32.xlu2 %v1137_v54, %s6895_s12 }
 0x5ef   :  { %v6368_v58 = vpop.eup %6367 }
 0x5f0   :  { %v1138_v13 = vmul.f32 %v6368_v58, %v7489_v40 }
 0x5f1   :  { %1245 = vrot.lane.b32.xlu1 %v1137_v54, %s6893_s27 }
 0x5f2   :  { %5844 = vmatmul.msk.f32.gmra.mxu1 %vm259_vm1, %v1138_v13 }
 0x5f3   :  { %1186 = vrot.lane.b32.xlu2 %v1138_v13, %s6895_s12 }
 0x5f9   :  { %1247 = vrot.lane.b32.xlu1 %v1138_v13, %s6893_s27 }
 0x5fa   :  { %5857 = vmatmul.msk.f32.vlgmr.msra.gmra.mxu1 %vm259_vm1, %v7086_v27 }
 0x5fb   :  { %1304 = vrot.lane.b32.xlu2 %v1138_v13, %s6894_s6 }
 0x602   :  { %5858 = vmatmul.msk.f32.gmra.mxu1 %vm259_vm1, %v7090_v31 }
 0x60a   :  { %5859 = vmatmul.msk.f32.gmra.mxu1 %vm259_vm1, %v7094_v35 }
 0x612   :  { %5860 = vmatmul.msk.f32.gmra.mxu1 %vm259_vm1, %v7098_v38 }
 0x634   :  { %v1242_v0 = vpop.permute.xlu2 %1241 }
 0x635   :  { %5849 = vmatmul.msk.f32.vlgmr.msrb.gmra.mxu3 %vm259_vm1, %v1242_v0 }
 0x63d   :  { %v1183_v7 = vpop.permute.xlu2 %1182 }
 0x645   :  { %v1185_v17 = vpop.permute.xlu2 %1184 }
 0x64b   :  { %v1181_v6 = vpop.permute.xlu1 %1180 }
 0x64c   :  { %5845 = vmatmul.msk.f32.vlgmr.msrb.gmra.mxu2 %vm259_vm1, %v1181_v6  ;;  %v1299_v10 = vpop.permute.xlu0 %1298 }
 0x64d   :  { %v1187_v26 = vpop.permute.xlu2 %1186 }
 0x653   :  { %v6232_v8 = vpop.permute.xlu1 %6231 }
 0x654   :  { %v6233_v12 = vunpack.i.l.bf16 %v6232_v8  ;;  %5846 = vmatmul.msk.f32.gmra.mxu2 %vm259_vm1, %v1183_v7  ;;  %v6234_v15 = vunpack.i.h.bf16 %v6232_v8  ;;  %v1301_v21 = vpop.permute.xlu0 %1300 }
 0x655   :  { %v1305_v5 = vpop.permute.xlu2 %1304 }
 0x656   :  { %1340 = vmatpush.msra.mxu0 %v6233_v12  ;;  %v1168_v9 = vpop.f32.mrf.mxu1 }
 0x658   :  { %1341 = vmatpush.msra.mxu0 %v6234_v15 }
 0x659   :  { %5853 = vmatmul.msk.f32.vlgmr.msra.gmra.mxu0 %vm259_vm1, %v1299_v10 }
 0x65b   :  { %v1244_v20 = vpop.permute.xlu1 %1243 }
 0x65c   :  { %5847 = vmatmul.msk.f32.gmra.mxu2 %vm259_vm1, %v1185_v17  ;;  %5850 = vmatmul.msk.f32.gmra.mxu3 %vm259_vm1, %v1244_v20  ;;  %v1303_v30 = vpop.permute.xlu0 %1302 }
 0x65f   :  { %v1171_v13 = vpop.f32.mrf.mxu1 }
 0x661   :  { %5854 = vmatmul.msk.f32.gmra.mxu0 %vm259_vm1, %v1301_v21 }
 0x663   :  { %v1246_v28 = vpop.permute.xlu1 %1245 }
 0x664   :  { %5848 = vmatmul.msk.f32.gmra.mxu2 %vm259_vm1, %v1187_v26  ;;  %5851 = vmatmul.msk.f32.gmra.mxu3 %vm259_vm1, %v1246_v28 }
 0x667   :  { %v1174_v21 = vpop.f32.mrf.mxu1 }
 0x669   :  { %5855 = vmatmul.msk.f32.gmra.mxu0 %vm259_vm1, %v1303_v30 }
 0x66b   :  { %v1248_v33 = vpop.permute.xlu1 %1247 }
 0x66c   :  { %5852 = vmatmul.msk.f32.gmra.mxu3 %vm259_vm1, %v1248_v33 }
 0x671   :  { %5856 = vmatmul.msk.f32.gmra.mxu0 %vm259_vm1, %v1305_v5 }
 0x6b8   :  { %v1286_v22 = vpop.f32.mrf.mxu3 }
 0x6b9   :  { %1375 = vrot.lane.b32.xlu1 %v1286_v22, %s6893_s27 }
 0x6cf   :  { %v1229_v34 = vpop.f32.mrf.mxu2 }
 0x6d6   :  { %v1343_v39 = vpop.f32.mrf.mxu0 }
 0x6d7   :  { %v1232_v40 = vpop.f32.mrf.mxu2  ;;  %1391 = vrot.lane.b32.xlu2 %v1343_v39, %s6895_s12 }
 0x6d8   :  { %v6235_v42 = vpack.i.bf16 %v1232_v40, %v1229_v34  ;;  %v1177_v34 = vpop.f32.mrf.mxu1 }
 0x6da   :  { %6236 = vrot.lane.b32.xlu0 %v6235_v42, %s6894_s6 }
 0x6de   :  { %v1346_v53 = vpop.f32.mrf.mxu0 }
 0x6df   :  { %v1235_v37 = vpop.f32.mrf.mxu2  ;;  %1393 = vrot.lane.b32.xlu1 %v1346_v53, %s6895_s12  ;;  %v1289_v14 = vpop.f32.mrf.mxu3 }
 0x6e0   :  { %1363 = vrot.lane.b32.xlu2 %v1235_v37, %s6894_s6 }
 0x6e2   :  { %1377 = vrot.lane.b32.xlu0 %v1289_v14, %s6893_s27  ;;  %v1534_v14 = vld [vmem:[#allocation13 + $0x18] sm:$0xff] }
 0x6e3   :  { %1559 = vmatpush.msra.mxu3 %v1534_v14 }
 0x6e6   :  { %v1349_v44 = vpop.f32.mrf.mxu0 }
 0x6e7   :  { %v1238_v41 = vpop.f32.mrf.mxu2  ;;  %1395 = vrot.lane.b32.xlu1 %v1349_v44, %s6895_s12  ;;  %v1292_v43 = vpop.f32.mrf.mxu3  ;;  %v1533_v44 = vld [vmem:[#allocation13 + $0x10] sm:$0xff] }
 0x6e8   :  { %1365 = vrot.lane.b32.xlu2 %v1238_v41, %s6894_s6  ;;  %1560 = vmatpush.msra.mxu3 %v1533_v44  ;;  %v1532_v41 = vld [vmem:[#allocation13 + $0x8] sm:$0xff] }
 0x6ea   :  { %1379 = vrot.lane.b32.xlu0 %v1292_v43, %s6893_s27  ;;  %1561 = vmatpush.msra.mxu3 %v1532_v41  ;;  %v1531_v43 = vld [vmem:[#allocation13] sm:$0xff] }
 0x6ec   :  { %1562 = vmatpush.msra.mxu3 %v1531_v43 }
 0x6ee   :  { %v1352_v55 = vpop.f32.mrf.mxu0 }
 0x6ef   :  { %1397 = vrot.lane.b32.xlu1 %v1352_v55, %s6895_s12  ;;  %v1295_v51 = vpop.f32.mrf.mxu3  ;;  %v1465_v55 = vpop.f32.mrf.mxu1 }
 0x6f2   :  { %1381 = vrot.lane.b32.xlu0 %v1295_v51, %s6893_s27  ;;  %v7606_v51 = vld [vmem:[%s9153_s11] sm:$0x1f] }
 0x6f3   :  { %v1506_v18 = vperm.slane %v7606_v51, 0  ;;  %v1596_v50 = vperm.slane %v7606_v51, 2 }
 0x6f7   :  { %v1468_v24 = vpop.f32.mrf.mxu1 }
 0x6fa   :  { %1598 = vrot.lane.b32.xlu0 %v1596_v50, %s6893_s27 }
 0x6ff   :  { %v1471_v63 = vpop.f32.mrf.mxu1 }
 0x72b   :  { %v1376_v11 = vpop.permute.xlu1 %1375 }
 0x731   :  { %v1392_v54 = vpop.permute.xlu2 %1391 }
 0x73a   :  { %v1364_v17 = vpop.permute.xlu2 %1363 }
 0x73b   :  { %v1405_v28 = vsel %vm259_vm1, %v1174_v21, %v1364_v17 }
 0x742   :  { %v1366_v22 = vpop.permute.xlu2 %1365 }
 0x743   :  { %v1406_v40 = vsel %vm259_vm1, %v1177_v34, %v1366_v22 }
 0x74c   :  { %v6237_v3 = vpop.permute.xlu0 %6236 }
 0x74d   :  { %v6238_v4 = vunpack.i.l.bf16 %v6237_v3  ;;  %v6239_v6 = vunpack.i.h.bf16 %v6237_v3 }
 0x74f   :  { %v1403_v58 = vsel %vm259_vm1, %v1168_v9, %v6238_v4  ;;  %v1404_v12 = vsel %vm259_vm1, %v1171_v13, %v6239_v6  ;;  %v1474_v13 = vpop.f32.mrf.mxu1 }
 0x750   :  { %v1407_v0 = vsel %vm678_vm15, %v1403_v58, %v1376_v11 }
 0x751   :  { %v1411_v7 = vsel %vm1057_vm0, %v1407_v0, %v1392_v54  ;;  %v1394_v8 = vpop.permute.xlu1 %1393 }
 0x752   :  { %1493 = vmatmul.f32.vlgmr.msra.gmra.mxu2 %v1411_v7 }
 0x754   :  { %v1378_v10 = vpop.permute.xlu0 %1377 }
 0x755   :  { %v1408_v15 = vsel %vm678_vm15, %v1404_v12, %v1378_v10 }
 0x756   :  { %v1412_v20 = vsel %vm1057_vm0, %v1408_v15, %v1394_v8 }
 0x759   :  { %v1396_v30 = vpop.permute.xlu1 %1395 }
 0x75a   :  { %1496 = vmatmul.f32.gmra.mxu2 %v1412_v20 }
 0x75c   :  { %v1380_v26 = vpop.permute.xlu0 %1379 }
 0x75d   :  { %v1409_v33 = vsel %vm678_vm15, %v1405_v28, %v1380_v26 }
 0x75e   :  { %v1413_v5 = vsel %vm1057_vm0, %v1409_v33, %v1396_v30 }
 0x761   :  { %v1398_v53 = vpop.permute.xlu1 %1397 }
 0x762   :  { %1499 = vmatmul.f32.gmra.mxu2 %v1413_v5 }
 0x764   :  { %v1382_v39 = vpop.permute.xlu0 %1381 }
 0x765   :  { %v1410_v42 = vsel %vm678_vm15, %v1406_v40, %v1382_v39 }
 0x766   :  { %v1414_v37 = vsel %vm1057_vm0, %v1410_v42, %v1398_v53 }
 0x76a   :  { %1502 = vmatmul.f32.gmra.mxu2 %v1414_v37 }
 0x76c   :  { %v1599_v42 = vpop.permute.xlu0 %1598 }
 0x7d5   :  { %v1494_v57 = vpop.f32.mrf.mxu2 }
 0x7d6   :  { %v1495_v62 = vadd.f32 %v1494_v57, %v1465_v55 }
 0x7d8   :  { %v1507_v19 = vadd.f32 %v1506_v18, %v1495_v62 }
 0x7da   :  { %v1511_v25 = vmul.f32 0.5, %v1507_v19 }
 0x7dc   :  { %6369 = vtanh.f32 %v1511_v25 }
 0x7dd   :  { %v1497_v32 = vpop.f32.mrf.mxu2 }
 0x7de   :  { %v1498_v47 = vadd.f32 %v1497_v32, %v1468_v24 }
 0x7e0   :  { %v1508_v45 = vadd.f32 %v1506_v18, %v1498_v47 }
 0x7e2   :  { %v6370_v48 = vpop.eup %6369  ;;  %v1512_v49 = vmul.f32 0.5, %v1508_v45 }
 0x7e3   :  { %v1519_v56 = vadd.f32 1.0, %v6370_v48 }
 0x7e4   :  { %6371 = vtanh.f32 %v1512_v49 }
 0x7e5   :  { %v7611_v1 = vmul.f32 0.5, %v1519_v56  ;;  %v1500_v2 = vpop.f32.mrf.mxu2 }
 0x7e6   :  { %v1501_v9 = vadd.f32 %v1500_v2, %v1471_v63 }
 0x7e7   :  { %v1527_v11 = vmul.f32 %v7086_v27, %v7611_v1 }
 0x7e8   :  { %v1509_v3 = vadd.f32 %v1506_v18, %v1501_v9 }
 0x7e9   :  { %5861 = vmatmul.msk.f32.vlgmr.msra.gmra.mxu3 %vm259_vm1, %v1527_v11 }
 0x7ea   :  { %v6372_v4 = vpop.eup %6371  ;;  %v1513_v54 = vmul.f32 0.5, %v1509_v3 }
 0x7eb   :  { %v1520_v58 = vadd.f32 1.0, %v6372_v4  ;;  %v1815_v4 = vld [vmem:[#allocation11 + $0x38] sm:$0xff] }
 0x7ec   :  { %6373 = vtanh.f32 %v1513_v54  ;;  %v1814_v54 = vld [vmem:[#allocation11 + $0x30] sm:$0xff]  ;;  %1840 = vmatpush.msrb.mxu1 %v1815_v4 }
 0x7ed   :  { %v1503_v0 = vpop.f32.mrf.mxu2  ;;  %v7616_v6 = vmul.f32 0.5, %v1520_v58 }
 0x7ee   :  { %v1504_v7 = vadd.f32 %v1503_v0, %v1474_v13  ;;  %v1813_v13 = vld [vmem:[#allocation11 + $0x28] sm:$0xff]  ;;  %1841 = vmatpush.msrb.mxu1 %v1814_v54 }
 0x7ef   :  { %v1528_v8 = vmul.f32 %v7090_v31, %v7616_v6 }
 0x7f0   :  { %v1510_v10 = vadd.f32 %v1506_v18, %v1504_v7  ;;  %1842 = vmatpush.msrb.mxu1 %v1813_v13 }
 0x7f1   :  { %5862 = vmatmul.msk.f32.gmra.mxu3 %vm259_vm1, %v1528_v8 }
 0x7f2   :  { %v6374_v12 = vpop.eup %6373  ;;  %v1514_v15 = vmul.f32 0.5, %v1510_v10 }
 0x7f3   :  { %v1521_v17 = vadd.f32 1.0, %v6374_v12  ;;  %v1812_v12 = vld [vmem:[#allocation11 + $0x20] sm:$0xff] }
 0x7f4   :  { %6375 = vtanh.f32 %v1514_v15  ;;  %1843 = vmatpush.msrb.mxu1 %v1812_v12 }
 0x7f5   :  { %v7621_v20 = vmul.f32 0.5, %v1521_v17 }
 0x7f7   :  { %v1529_v21 = vmul.f32 %v7094_v35, %v7621_v20 }
 0x7f9   :  { %5863 = vmatmul.msk.f32.gmra.mxu3 %vm259_vm1, %v1529_v21 }
 0x7fa   :  { %v6376_v26 = vpop.eup %6375 }
 0x7fb   :  { %v1522_v28 = vadd.f32 1.0, %v6376_v26 }
 0x7fd   :  { %v1526_v30 = vmul.f32 0.5, %v1522_v28 }
 0x7ff   :  { %v1530_v33 = vmul.f32 %v7098_v38, %v1526_v30 }
 0x801   :  { %5864 = vmatmul.msk.f32.gmra.mxu3 %vm259_vm1, %v1530_v33 }
 0x86c   :  { %v1564_v5 = vpop.f32.mrf.mxu3 }
 0x86d   :  { %1580 = vrot.lane.b32.xlu2 %v1564_v5, %s6893_s27 }
 0x874   :  { %v1567_v22 = vpop.f32.mrf.mxu3 }
 0x875   :  { %1609 = vrot.lane.b32.xlu2 %v7086_v27, %s6893_s27  ;;  %1582 = vrot.lane.b32.xlu1 %v1567_v22, %s6893_s27 }
 0x87c   :  { %v1570_v34 = vpop.f32.mrf.mxu3 }
 0x87d   :  { %1611 = vrot.lane.b32.xlu1 %v7090_v31, %s6893_s27  ;;  %1584 = vrot.lane.b32.xlu0 %v1570_v34, %s6893_s27 }
 0x884   :  { %v1573_v39 = vpop.f32.mrf.mxu3 }
 0x885   :  { %1615 = vrot.lane.b32.xlu1 %v7098_v38, %s6893_s27  ;;  %1613 = vrot.lane.b32.xlu0 %v7094_v35, %s6893_s27 }
 0x886   :  { %1586 = vrot.lane.b32.xlu2 %v1573_v39, %s6893_s27 }
 0x8c7   :  { %v1581_v40 = vpop.permute.xlu2 %1580 }
 0x8c8   :  { %v1592_v53 = vadd.f32 %v1581_v40, %v1507_v19 }
 0x8ca   :  { %v1601_v37 = vadd.f32 %v1599_v42, %v1592_v53 }
 0x8cc   :  { %6377 = vtanh.f32 %v1601_v37 }
 0x8cf   :  { %v1610_v44 = vpop.permute.xlu2 %1609 }
 0x8d2   :  { %v6378_v14 = vpop.eup %6377 }
 0x8d3   :  { %v1621_v41 = vsub.f32 %v6378_v14, %v1610_v44 }
 0x8d5   :  { %1629 = vrot.lane.b32.xlu2 %v1621_v41, %s6895_s12 }
 0x8e0   :  { %v1587_v43 = vpop.permute.xlu2 %1586 }
 0x8e1   :  { %v1595_v57 = vadd.f32 %v1587_v43, %v1510_v10 }
 0x8e3   :  { %v1604_v24 = vadd.f32 %v1599_v42, %v1595_v57 }
 0x8e7   :  { %v1583_v55 = vpop.permute.xlu1 %1582 }
 0x8e8   :  { %v1593_v18 = vadd.f32 %v1583_v55, %v1508_v45 }
 0x8ea   :  { %v1602_v62 = vadd.f32 %v1599_v42, %v1593_v18 }
 0x8ec   :  { %6379 = vtanh.f32 %v1602_v62 }
 0x8ed   :  { %6381 = vtanh.f32 %v1604_v24 }
 0x8ef   :  { %v1612_v25 = vpop.permute.xlu1 %1611  ;;  %v1585_v32 = vpop.permute.xlu0 %1584 }
 0x8f0   :  { %v1594_v47 = vadd.f32 %v1585_v32, %v1509_v3 }
 0x8f2   :  { %v6380_v50 = vpop.eup %6379  ;;  %v1603_v19 = vadd.f32 %v1599_v42, %v1594_v47  ;;  %v1756_v47 = vld [vmem:[#allocation14 + $0x18] sm:$0xff] }
 0x8f3   :  { %v1622_v48 = vsub.f32 %v6380_v50, %v1612_v25  ;;  %v6382_v49 = vpop.eup %6381  ;;  %1782 = vmatpush.msrb.mxu0 %v1756_v47  ;;  %v1755_v50 = vld [vmem:[#allocation14 + $0x10] sm:$0xff] }
 0x8f4   :  { %6383 = vtanh.f32 %v1603_v19  ;;  %v1754_v19 = vld [vmem:[#allocation14 + $0x8] sm:$0xff] }
 0x8f5   :  { %1631 = vrot.lane.b32.xlu0 %v1622_v48, %s6895_s12  ;;  %1783 = vmatpush.msrb.mxu0 %v1755_v50  ;;  %v1753_v48 = vld [vmem:[#allocation14] sm:$0xff] }
 0x8f7   :  { %v1616_v63 = vpop.permute.xlu1 %1615  ;;  %v1614_v9 = vpop.permute.xlu0 %1613  ;;  %1784 = vmatpush.msrb.mxu0 %v1754_v19 }
 0x8f8   :  { %v1624_v56 = vsub.f32 %v6382_v49, %v1616_v63 }
 0x8f9   :  { %1785 = vmatpush.msrb.mxu0 %v1753_v48 }
 0x8fa   :  { %v6384_v2 = vpop.eup %6383  ;;  %1635 = vrot.lane.b32.xlu2 %v1624_v56, %s6895_s12 }
 0x8fb   :  { %v1623_v45 = vsub.f32 %v6384_v2, %v1614_v9 }
 0x8fd   :  { %1633 = vrot.lane.b32.xlu1 %v1623_v45, %s6895_s12 }
 0x92f   :  { %v1630_v11 = vpop.permute.xlu2 %1629 }
 0x930   :  { %v1641_v3 = vmul.f32 %v1630_v11, %v7611_v1 }
 0x932   :  { %1649 = vrot.lane.b32.xlu0 %v1641_v3, %s6895_s12 }
 0x954   :  { %v1636_v58 = vpop.permute.xlu2 %1635 }
 0x955   :  { %v1644_v0 = vmul.f32 %v1636_v58, %v1526_v30 }
 0x957   :  { %1655 = vrot.lane.b32.xlu0 %v1644_v0, %s6895_s12 }
 0x967   :  { %v1632_v7 = vpop.permute.xlu0 %1631 }
 0x968   :  { %v1642_v8 = vmul.f32 %v1632_v7, %v7616_v6 }
 0x96a   :  { %1651 = vrot.lane.b32.xlu1 %v1642_v8, %s6895_s12 }
 0x96f   :  { %v1634_v10 = vpop.permute.xlu1 %1633 }
 0x970   :  { %v1643_v1 = vmul.f32 %v1634_v10, %v7621_v20 }
 0x972   :  { %1653 = vrot.lane.b32.xlu2 %v1643_v1, %s6895_s12 }
 0x9a4   :  { %v1650_v15 = vpop.permute.xlu0 %1649 }
 0x9a5   :  { %v7652_v17 = vadd.f32 %v7086_v27, %v1650_v15 }
 0x9a7   :  { %5869 = vmatmul.msk.f32.vlgmr.msrb.gmra.mxu1 %vm259_vm1, %v7652_v17  ;;  %v1665_v21 = vsel %vm259_vm1, %v7652_v17, 0.0 }
 0x9a8   :  { %1666 = vadd.xlane.f32.xlu1 %v1665_v21 }
 0x9c9   :  { %v1656_v6 = vpop.permute.xlu0 %1655 }
 0x9ca   :  { %v7659_v26 = vadd.f32 %v7098_v38, %v1656_v6 }
 0x9cc   :  { %v1654_v20 = vpop.permute.xlu2 %1653  ;;  %v1674_v28 = vsel %vm259_vm1, %v7659_v26, 0.0 }
 0x9cd   :  { %v7664_v30 = vadd.f32 %v7094_v35, %v1654_v20  ;;  %1675 = vadd.xlane.f32.xlu1 %v1674_v28  ;;  %v1810_v28 = vld [vmem:[#allocation16 + $0x38] sm:$0xff] }
 0x9ce   :  { %1877 = vmatpush.msrb.mxu2 %v1810_v28 }
 0x9cf   :  { %v1671_v27 = vsel %vm259_vm1, %v7664_v30, 0.0 }
 0x9d0   :  { %1672 = vadd.xlane.f32.xlu0 %v1671_v27  ;;  %v1809_v27 = vld [vmem:[#allocation16 + $0x30] sm:$0xff] }
 0x9d1   :  { %1878 = vmatpush.msrb.mxu2 %v1809_v27 }
 0x9dc   :  { %v1652_v33 = vpop.permute.xlu1 %1651 }
 0x9dd   :  { %v7669_v5 = vadd.f32 %v7090_v31, %v1652_v33 }
 0x9df   :  { %5870 = vmatmul.msk.f32.gmra.mxu1 %vm259_vm1, %v7669_v5  ;;  %v1668_v38 = vsel %vm259_vm1, %v7669_v5, 0.0 }
 0x9e0   :  { %1669 = vadd.xlane.f32.xlu2 %v1668_v38  ;;  %v1808_v38 = vld [vmem:[#allocation16 + $0x28] sm:$0xff] }
 0x9e1   :  { %1879 = vmatpush.msrb.mxu2 %v1808_v38 }
 0x9e7   :  { %5871 = vmatmul.msk.f32.gmra.mxu1 %vm259_vm1, %v7664_v30 }
 0x9ef   :  { %5872 = vmatmul.msk.f32.gmra.mxu1 %vm259_vm1, %v7659_v26 }
 0xa1b   :  { %v1667_v35 = vpop.xlane.xlu1 %1666 }
 0xa1c   :  { %v1677_v22 = vmul.f32 %v1667_v35, %v7102_v46 }
 0xa1e   :  { %v1681_v34 = vsub.f32 %v7652_v17, %v1677_v22 }
 0xa20   :  { %v1685_v31 = vmul.f32 %v1681_v34, %v1681_v34 }
 0xa22   :  { %v1689_v39 = vsel %vm259_vm1, %v1685_v31, 0.0  ;;  %v1807_v31 = vld [vmem:[#allocation16 + $0x20] sm:$0xff] }
 0xa23   :  { %1690 = vadd.xlane.f32.xlu2 %v1689_v39  ;;  %1880 = vmatpush.msrb.mxu2 %v1807_v31 }
 0xa40   :  { %v1676_v40 = vpop.xlane.xlu1 %1675 }
 0xa41   :  { %v1680_v42 = vmul.f32 %v1676_v40, %v7102_v46  ;;  %v1806_v40 = vld [vmem:[#allocation16 + $0x18] sm:$0xff] }
 0xa42   :  { %1881 = vmatpush.msrb.mxu2 %v1806_v40 }
 0xa43   :  { %v7684_v53 = vsub.f32 %v7659_v26, %v1680_v42  ;;  %v1673_v37 = vpop.xlane.xlu0 %1672 }
 0xa44   :  { %v1679_v14 = vmul.f32 %v1673_v37, %v7102_v46 }
 0xa45   :  { %v1688_v44 = vmul.f32 %v7684_v53, %v7684_v53 }
 0xa46   :  { %v7690_v41 = vsub.f32 %v7664_v30, %v1679_v14 }
 0xa47   :  { %v1698_v43 = vsel %vm259_vm1, %v1688_v44, 0.0 }
 0xa48   :  { %1699 = vadd.xlane.f32.xlu2 %v1698_v43  ;;  %v1687_v55 = vmul.f32 %v7690_v41, %v7690_v41 }
 0xa4a   :  { %v1695_v18 = vsel %vm259_vm1, %v1687_v55, 0.0 }
 0xa4b   :  { %1696 = vadd.xlane.f32.xlu1 %v1695_v18 }
 0xa53   :  { %v1670_v57 = vpop.xlane.xlu2 %1669 }
 0xa54   :  { %v1678_v62 = vmul.f32 %v1670_v57, %v7102_v46 }
 0xa56   :  { %v7698_v24 = vsub.f32 %v7669_v5, %v1678_v62 }
 0xa58   :  { %v1686_v25 = vmul.f32 %v7698_v24, %v7698_v24 }
 0xa5a   :  { %v1692_v32 = vsel %vm259_vm1, %v1686_v25, 0.0 }
 0xa5b   :  { %1693 = vadd.xlane.f32.xlu0 %v1692_v32 }
 0xa96   :  { %v1691_v49 = vpop.xlane.xlu2 %1690 }
 0xa97   :  { %v1701_v63 = vmul.f32 %v1691_v49, %v7102_v46 }
 0xa99   :  { %v1705_v56 = vadd.f32 1e-05, %v1701_v63  ;;  %v1805_v63 = vld [vmem:[#allocation16 + $0x10] sm:$0xff] }
 0xa9a   :  { %1882 = vmatpush.msrb.mxu2 %v1805_v63 }
 0xa9b   :  { %6385 = vrsqrt.f32 %v1705_v56  ;;  %vm1715_vm3 = vweird.f32 %v1705_v56 }
 0xaa1   :  { %v6386_v2 = vpop.eup %6385 }
 0xaa2   :  { %v1710_v9 = vmul.f32 %v6386_v2, %v1705_v56  ;;  %vm1716_vm2 = vweird.f32 %v6386_v2  ;;  %v1804_v56 = vld [vmem:[#allocation16 + $0x8] sm:$0xff] }
 0xaa3   :  { %vm1717_vm4 = vmor %vm1715_vm3, %vm1716_vm2  ;;  %1883 = vmatpush.msrb.mxu2 %v1804_v56 }
 0xaa4   :  { %v1711_v45 = vmul.f32 %v6386_v2, %v1710_v9  ;;  %v1757_v9 = vperm.slane %v7606_v51, 4 }
 0xaa6   :  { %v1712_v11 = vmul.f32 0.5, %v1711_v45 }
 0xaa8   :  { %v1713_v3 = vsub.f32 1.5, %v1712_v11 }
 0xaaa   :  { %v1714_v4 = vmul.f32 %v6386_v2, %v1713_v3 }
 0xaac   :  { %v1718_v54 = vsel %vm1717_vm4, %v6386_v2, %v1714_v4  ;;  %v1803_v2 = vld [vmem:[#allocation16] sm:$0xff] }
 0xaad   :  { %v1749_v58 = vmul.f32 %v1718_v54, %v1681_v34  ;;  %1884 = vmatpush.msrb.mxu2 %v1803_v2 }
 0xaaf   :  { %5865 = vmatmul.msk.f32.vlgmr.msrb.gmra.mxu0 %vm259_vm1, %v1749_v58 }
 0xabb   :  { %v1700_v8 = vpop.xlane.xlu2 %1699 }
 0xabc   :  { %v1704_v10 = vmul.f32 %v1700_v8, %v7102_v46 }
 0xabe   :  { %v1697_v13 = vpop.xlane.xlu1 %1696  ;;  %v1708_v15 = vadd.f32 1e-05, %v1704_v10  ;;  %v1927_v10 = vld [vmem:[#allocation13 + $0x38] sm:$0xff] }
 0xabf   :  { %v1703_v0 = vmul.f32 %v1697_v13, %v7102_v46  ;;  %1952 = vmatpush.msrb.mxu3 %v1927_v10 }
 0xac0   :  { %vm1745_vm12 = vweird.f32 %v1708_v15 }
 0xac1   :  { %v1707_v7 = vadd.f32 1e-05, %v1703_v0 }
 0xac3   :  { %6387 = vrsqrt.f32 %v1707_v7  ;;  %vm1735_vm9 = vweird.f32 %v1707_v7 }
 0xac9   :  { %v6388_v6 = vpop.eup %6387 }
 0xaca   :  { %v1730_v20 = vmul.f32 %v6388_v6, %v1707_v7  ;;  %vm1736_vm8 = vweird.f32 %v6388_v6 }
 0xacb   :  { %vm1737_vm10 = vmor %vm1735_vm9, %vm1736_vm8 }
 0xacc   :  { %v1731_v35 = vmul.f32 %v6388_v6, %v1730_v20 }
 0xace   :  { %v1694_v1 = vpop.xlane.xlu0 %1693  ;;  %v1732_v37 = vmul.f32 0.5, %v1731_v35 }
 0xacf   :  { %v1702_v12 = vmul.f32 %v1694_v1, %v7102_v46  ;;  %v1926_v1 = vld [vmem:[#allocation13 + $0x30] sm:$0xff] }
 0xad0   :  { %v1733_v55 = vsub.f32 1.5, %v1732_v37  ;;  %1953 = vmatpush.msrb.mxu3 %v1926_v1 }
 0xad1   :  { %v1706_v21 = vadd.f32 1e-05, %v1702_v12  ;;  %v1925_v12 = vld [vmem:[#allocation13 + $0x28] sm:$0xff] }
 0xad2   :  { %v1734_v32 = vmul.f32 %v6388_v6, %v1733_v55  ;;  %1954 = vmatpush.msrb.mxu3 %v1925_v12 }
 0xad3   :  { %6389 = vrsqrt.f32 %v1706_v21  ;;  %vm1725_vm6 = vweird.f32 %v1706_v21 }
 0xad4   :  { %6391 = vrsqrt.f32 %v1708_v15  ;;  %v1738_v50 = vsel %vm1737_vm10, %v6388_v6, %v1734_v32  ;;  %v1845_v6 = vpop.f32.mrf.mxu1 }
 0xad5   :  { %v1751_v19 = vmul.f32 %v1738_v50, %v7690_v41 }
 0xad9   :  { %v6390_v33 = vpop.eup %6389 }
 0xada   :  { %v1720_v22 = vmul.f32 %v6390_v33, %v1706_v21  ;;  %v6392_v34 = vpop.eup %6391  ;;  %vm1726_vm5 = vweird.f32 %v6390_v33  ;;  %v1898_v21 = vperm.slane %v7606_v51, 1 }
 0xadb   :  { %v1740_v42 = vmul.f32 %v6392_v34, %v1708_v15  ;;  %vm1727_vm7 = vmor %vm1725_vm6, %vm1726_vm5  ;;  %vm1746_vm11 = vweird.f32 %v6392_v34  ;;  %v1924_v15 = vld [vmem:[#allocation13 + $0x20] sm:$0xff] }
 0xadc   :  { %v1721_v39 = vmul.f32 %v6390_v33, %v1720_v22  ;;  %vm1747_vm13 = vmor %vm1745_vm12, %vm1746_vm11  ;;  %1955 = vmatpush.msrb.mxu3 %v1924_v15  ;;  %v1848_v31 = vpop.f32.mrf.mxu1 }
 0xadd   :  { %v1741_v43 = vmul.f32 %v6392_v34, %v1740_v42 }
 0xade   :  { %v1722_v14 = vmul.f32 0.5, %v1721_v39 }
 0xadf   :  { %v1742_v25 = vmul.f32 0.5, %v1741_v43 }
 0xae0   :  { %v1723_v44 = vsub.f32 1.5, %v1722_v14 }
 0xae1   :  { %v1743_v47 = vsub.f32 1.5, %v1742_v25 }
 0xae2   :  { %v1724_v18 = vmul.f32 %v6390_v33, %v1723_v44 }
 0xae3   :  { %v1744_v48 = vmul.f32 %v6392_v34, %v1743_v47 }
 0xae4   :  { %v1728_v57 = vsel %vm1727_vm7, %v6390_v33, %v1724_v18  ;;  %v1851_v14 = vpop.f32.mrf.mxu1 }
 0xae5   :  { %v1750_v62 = vmul.f32 %v1728_v57, %v7698_v24  ;;  %v1748_v49 = vsel %vm1747_vm13, %v6392_v34, %v1744_v48 }
 0xae6   :  { %v1752_v24 = vmul.f32 %v1748_v49, %v7684_v53 }
 0xae7   :  { %5866 = vmatmul.msk.f32.gmra.mxu0 %vm259_vm1, %v1750_v62 }
 0xaec   :  { %v1854_v25 = vpop.f32.mrf.mxu1 }
 0xaef   :  { %5867 = vmatmul.msk.f32.gmra.mxu0 %vm259_vm1, %v1751_v19 }
 0xaf7   :  { %5868 = vmatmul.msk.f32.gmra.mxu0 %vm259_vm1, %v1752_v24 }
 0xb2c   :  { %v1787_v41 = vpop.f32.mrf.mxu0 }
 0xb2d   :  { %v1788_v45 = vadd.f32 %v1787_v41, %v1757_v9 }
 0xb2f   :  { %v1799_v11 = vmax.f32 %v1788_v45, 0.0 }
 0xb31   :  { %5873 = vmatmul.msk.f32.vlgmr.msrb.gmra.mxu2 %vm678_vm15, %v1799_v11 }
 0xb64   :  { %v1790_v3 = vpop.f32.mrf.mxu0 }
 0xb65   :  { %v1791_v4 = vadd.f32 %v1790_v3, %v1757_v9  ;;  %v1989_v3 = vperm.slane %v7606_v51, 3 }
 0xb67   :  { %v1800_v54 = vmax.f32 %v1791_v4, 0.0  ;;  %1991 = vrot.lane.b32.xlu1 %v1989_v3, %s6893_s27 }
 0xb69   :  { %5874 = vmatmul.msk.f32.gmra.mxu2 %vm678_vm15, %v1800_v54 }
 0xb6c   :  { %v1793_v53 = vpop.f32.mrf.mxu0 }
 0xb6d   :  { %v1794_v58 = vadd.f32 %v1793_v53, %v1757_v9 }
 0xb6f   :  { %v1801_v13 = vmax.f32 %v1794_v58, 0.0 }
 0xb71   :  { %5875 = vmatmul.msk.f32.gmra.mxu2 %vm678_vm15, %v1801_v13 }
 0xb74   :  { %v1796_v0 = vpop.f32.mrf.mxu0 }
 0xb75   :  { %v1797_v7 = vadd.f32 %v1796_v0, %v1757_v9 }
 0xb77   :  { %v1802_v8 = vmax.f32 %v1797_v7, 0.0 }
 0xb79   :  { %5876 = vmatmul.msk.f32.gmra.mxu2 %vm678_vm15, %v1802_v8 }
 0xbb4   :  { %v1886_v20 = vpop.f32.mrf.mxu2 }
 0xbb5   :  { %v1887_v28 = vadd.f32 %v1886_v20, %v1845_v6 }
 0xbb7   :  { %v1899_v27 = vadd.f32 %v1898_v21, %v1887_v28 }
 0xbb9   :  { %v1903_v33 = vmul.f32 0.5, %v1899_v27 }
 0xbbb   :  { %6393 = vtanh.f32 %v1903_v33 }
 0xbc1   :  { %v6394_v38 = vpop.eup %6393 }
 0xbc2   :  { %v1911_v35 = vadd.f32 1.0, %v6394_v38 }
 0xbc4   :  { %v7720_v22 = vmul.f32 0.5, %v1911_v35 }
 0xbc6   :  { %v1919_v34 = vmul.f32 %v7720_v22, %v7652_v17 }
 0xbc8   :  { %5877 = vmatmul.msk.f32.vlgmr.msrb.gmra.mxu3 %vm259_vm1, %v1919_v34 }
 0xbd9   :  { %v1992_v13 = vpop.permute.xlu1 %1991 }
 0xbec   :  { %v1889_v39 = vpop.f32.mrf.mxu2 }
 0xbed   :  { %v1890_v40 = vadd.f32 %v1889_v39, %v1848_v31 }
 0xbef   :  { %v1900_v42 = vadd.f32 %v1898_v21, %v1890_v40 }
 0xbf1   :  { %v1904_v37 = vmul.f32 0.5, %v1900_v42 }
 0xbf3   :  { %6395 = vtanh.f32 %v1904_v37 }
 0xbf4   :  { %v1892_v44 = vpop.f32.mrf.mxu2 }
 0xbf5   :  { %v1893_v43 = vadd.f32 %v1892_v44, %v1851_v14 }
 0xbf7   :  { %v7725_v55 = vadd.f32 %v1898_v21, %v1893_v43 }
 0xbf9   :  { %v6396_v18 = vpop.eup %6395  ;;  %v1905_v57 = vmul.f32 0.5, %v7725_v55 }
 0xbfa   :  { %v1912_v62 = vadd.f32 1.0, %v6396_v18 }
 0xbfb   :  { %6397 = vtanh.f32 %v1905_v57 }
 0xbfc   :  { %v1895_v32 = vpop.f32.mrf.mxu2  ;;  %v7728_v47 = vmul.f32 0.5, %v1912_v62 }
 0xbfd   :  { %v1896_v50 = vadd.f32 %v1895_v32, %v1854_v25 }
 0xbfe   :  { %v1920_v19 = vmul.f32 %v7728_v47, %v7669_v5 }
 0xbff   :  { %v1902_v48 = vadd.f32 %v1898_v21, %v1896_v50 }
 0xc00   :  { %5878 = vmatmul.msk.f32.gmra.mxu3 %vm259_vm1, %v1920_v19 }
 0xc01   :  { %v6398_v49 = vpop.eup %6397  ;;  %v1906_v24 = vmul.f32 0.5, %v1902_v48 }
 0xc02   :  { %v1913_v63 = vadd.f32 1.0, %v6398_v49 }
 0xc03   :  { %6399 = vtanh.f32 %v1906_v24 }
 0xc04   :  { %v7733_v56 = vmul.f32 0.5, %v1913_v63 }
 0xc06   :  { %v1921_v2 = vmul.f32 %v7733_v56, %v7664_v30 }
 0xc08   :  { %5879 = vmatmul.msk.f32.gmra.mxu3 %vm259_vm1, %v1921_v2 }
 0xc09   :  { %v6400_v9 = vpop.eup %6399 }
 0xc0a   :  { %v1914_v41 = vadd.f32 1.0, %v6400_v9 }
 0xc0c   :  { %v1918_v45 = vmul.f32 0.5, %v1914_v41 }
 0xc0e   :  { %v1922_v11 = vmul.f32 %v1918_v45, %v7659_v26 }
 0xc10   :  { %5880 = vmatmul.msk.f32.gmra.mxu3 %vm259_vm1, %v1922_v11 }
 0xc4b   :  { %v1957_v4 = vpop.f32.mrf.mxu3 }
 0xc4c   :  { %1973 = vrot.lane.b32.xlu0 %v1957_v4, %s6893_s27 }
 0xc54   :  { %2002 = vrot.lane.b32.xlu0 %v7652_v17, %s6893_s27 }
 0xc5c   :  { %2004 = vrot.lane.b32.xlu0 %v7669_v5, %s6893_s27 }
 0xc64   :  { %2008 = vrot.lane.b32.xlu0 %v7659_v26, %s6893_s27 }
 0xc83   :  { %v1960_v54 = vpop.f32.mrf.mxu3 }
 0xc84   :  { %1975 = vrot.lane.b32.xlu2 %v1960_v54, %s6893_s27 }
 0xc8b   :  { %v1963_v53 = vpop.f32.mrf.mxu3 }
 0xc8c   :  { %1977 = vrot.lane.b32.xlu1 %v1963_v53, %s6893_s27 }
 0xc93   :  { %v1966_v51 = vpop.f32.mrf.mxu3 }
 0xc94   :  { %2006 = vrot.lane.b32.xlu1 %v7664_v30, %s6893_s27  ;;  %1979 = vrot.lane.b32.xlu2 %v1966_v51, %s6893_s27 }
 0xcbe   :  { %v1974_v58 = vpop.permute.xlu0 %1973 }
 0xcbf   :  { %v1985_v0 = vadd.f32 %v1974_v58, %v1899_v27 }
 0xcc1   :  { %v1994_v7 = vadd.f32 %v1992_v13, %v1985_v0 }
 0xcc3   :  { %6401 = vtanh.f32 %v1994_v7 }
 0xcc6   :  { %v2003_v10 = vpop.permute.xlu0 %2002 }
 0xcc9   :  { %v6402_v8 = vpop.eup %6401 }
 0xcca   :  { %v2014_v1 = vsub.f32 %v6402_v8, %v2003_v10 }
 0xccc   :  { %2022 = vrot.lane.b32.xlu2 %v2014_v1, %s6895_s12 }
 0xcce   :  { %v2005_v20 = vpop.permute.xlu0 %2004 }
 0xcd6   :  { %v2009_v34 = vpop.permute.xlu0 %2008 }
 0xcde   :  { %v1976_v12 = vpop.permute.xlu2 %1975 }
 0xcdf   :  { %v1986_v15 = vadd.f32 %v1976_v12, %v1900_v42 }
 0xce1   :  { %v1995_v21 = vadd.f32 %v1992_v13, %v1986_v15 }
 0xce3   :  { %6403 = vtanh.f32 %v1995_v21 }
 0xce9   :  { %v6404_v6 = vpop.eup %6403 }
 0xcea   :  { %v2015_v28 = vsub.f32 %v6404_v6, %v2005_v20  ;;  %v5893_v6 = vld [vmem:[%s9149_s7 + $0x100] sm:$0xff]  ;;  %v5894_v20 = vld [vmem:[%s9149_s7 + $0x108] sm:$0xff] }
 0xceb   :  { %2195 = vmatpush.msra.mxu0 %v5893_v6  ;;  %2224 = vmatpush.msra.mxu1 %v5894_v20 }
 0xcec   :  { %2024 = vrot.lane.b32.xlu1 %v2015_v28, %s6895_s12  ;;  %v5895_v28 = vld [vmem:[%s9149_s7 + $0x110] sm:$0xff] }
 0xced   :  { %2253 = vmatpush.msra.mxu2 %v5895_v28 }
 0xcee   :  { %v1980_v33 = vpop.permute.xlu2 %1979 }
 0xcef   :  { %v1988_v38 = vadd.f32 %v1980_v33, %v1902_v48  ;;  %v5896_v33 = vld [vmem:[%s9149_s7 + $0x118] sm:$0xff] }
 0xcf0   :  { %2282 = vmatpush.msra.mxu3 %v5896_v33 }
 0xcf1   :  { %v1997_v35 = vadd.f32 %v1992_v13, %v1988_v38  ;;  %v5889_v38 = vld [vmem:[%s9149_s7 + $0xe0] sm:$0xff] }
 0xcf2   :  { %2196 = vmatpush.msra.mxu0 %v5889_v38 }
 0xcf3   :  { %6405 = vtanh.f32 %v1997_v35  ;;  %v5890_v35 = vld [vmem:[%s9149_s7 + $0xe8] sm:$0xff] }
 0xcf4   :  { %2225 = vmatpush.msra.mxu1 %v5890_v35 }
 0xcf9   :  { %v6406_v27 = vpop.eup %6405 }
 0xcfa   :  { %v2017_v31 = vsub.f32 %v6406_v27, %v2009_v34  ;;  %v5891_v27 = vld [vmem:[%s9149_s7 + $0xf0] sm:$0xff]  ;;  %v5892_v34 = vld [vmem:[%s9149_s7 + $0xf8] sm:$0xff] }
 0xcfb   :  { %2254 = vmatpush.msra.mxu2 %v5891_v27  ;;  %2283 = vmatpush.msra.mxu3 %v5892_v34 }
 0xcfc   :  { %2028 = vrot.lane.b32.xlu2 %v2017_v31, %s6895_s12  ;;  %v5885_v31 = vld [vmem:[%s9149_s7 + $0xc0] sm:$0xff] }
 0xcfd   :  { %2197 = vmatpush.msra.mxu0 %v5885_v31 }
 0xcfe   :  { %v1978_v39 = vpop.permute.xlu1 %1977 }
 0xcff   :  { %v1987_v40 = vadd.f32 %v1978_v39, %v7725_v55  ;;  %v5886_v39 = vld [vmem:[%s9149_s7 + $0xc8] sm:$0xff] }
 0xd00   :  { %2226 = vmatpush.msra.mxu1 %v5886_v39 }
 0xd01   :  { %v1996_v42 = vadd.f32 %v1992_v13, %v1987_v40  ;;  %v5887_v40 = vld [vmem:[%s9149_s7 + $0xd0] sm:$0xff] }
 0xd02   :  { %2255 = vmatpush.msra.mxu2 %v5887_v40 }
 0xd03   :  { %6407 = vtanh.f32 %v1996_v42  ;;  %v5888_v42 = vld [vmem:[%s9149_s7 + $0xd8] sm:$0xff] }
 0xd04   :  { %2284 = vmatpush.msra.mxu3 %v5888_v42 }
 0xd06   :  { %v2007_v14 = vpop.permute.xlu1 %2006 }
 0xd09   :  { %v6408_v37 = vpop.eup %6407 }
 0xd0a   :  { %v2016_v44 = vsub.f32 %v6408_v37, %v2007_v14  ;;  %v5881_v37 = vld [vmem:[%s9149_s7 + $0xa0] sm:$0xff]  ;;  %v5882_v14 = vld [vmem:[%s9149_s7 + $0xa8] sm:$0xff] }
 0xd0b   :  { %2198 = vmatpush.msra.mxu0 %v5881_v37  ;;  %2227 = vmatpush.msra.mxu1 %v5882_v14 }
 0xd0c   :  { %2026 = vrot.lane.b32.xlu0 %v2016_v44, %s6895_s12  ;;  %v5883_v44 = vld [vmem:[%s9149_s7 + $0xb0] sm:$0xff] }
 0xd0d   :  { %2256 = vmatpush.msra.mxu2 %v5883_v44 }
 0xd26   :  { %v2023_v43 = vpop.permute.xlu2 %2022 }
 0xd27   :  { %v2034_v18 = vmul.f32 %v2023_v43, %v7720_v22  ;;  %v5884_v43 = vld [vmem:[%s9149_s7 + $0xb8] sm:$0xff] }
 0xd28   :  { %2285 = vmatpush.msra.mxu3 %v5884_v43 }
 0xd29   :  { %2042 = vrot.lane.b32.xlu1 %v2034_v18, %s6895_s12  ;;  %v6541_v18 = vld [vmem:[#allocation5 + $0x38] sm:$0xff] }
 0xd2a   :  { %2424 = vmatpush.msrb.mxu1 %v6541_v18 }
 0xd56   :  { %v2029_v57 = vpop.permute.xlu2 %2028 }
 0xd57   :  { %v2037_v62 = vmul.f32 %v2029_v57, %v1918_v45  ;;  %v6542_v57 = vld [vmem:[#allocation5 + $0x78] sm:$0xff] }
 0xd58   :  { %2383 = vmatpush.msrb.mxu0 %v6542_v57 }
 0xd59   :  { %2048 = vrot.lane.b32.xlu1 %v2037_v62, %s6895_s12  ;;  %v6543_v62 = vld [vmem:[#allocation5 + $0x30] sm:$0xff] }
 0xd5a   :  { %2425 = vmatpush.msrb.mxu1 %v6543_v62 }
 0xd5e   :  { %v2025_v25 = vpop.permute.xlu1 %2024 }
 0xd5f   :  { %v2035_v32 = vmul.f32 %v2025_v25, %v7728_v47  ;;  %v6544_v25 = vld [vmem:[#allocation5 + $0x70] sm:$0xff] }
 0xd60   :  { %2384 = vmatpush.msrb.mxu0 %v6544_v25 }
 0xd61   :  { %2044 = vrot.lane.b32.xlu0 %v2035_v32, %s6895_s12  ;;  %v6545_v32 = vld [vmem:[#allocation5 + $0x28] sm:$0xff] }
 0xd62   :  { %2426 = vmatpush.msrb.mxu1 %v6545_v32 }
 0xd7e   :  { %v2027_v55 = vpop.permute.xlu0 %2026 }
 0xd7f   :  { %v2036_v50 = vmul.f32 %v2027_v55, %v7733_v56  ;;  %v6546_v55 = vld [vmem:[#allocation5 + $0x68] sm:$0xff] }
 0xd80   :  { %2385 = vmatpush.msrb.mxu0 %v6546_v55 }
 0xd81   :  { %2046 = vrot.lane.b32.xlu2 %v2036_v50, %s6895_s12 }
 0xd9b   :  { %v2043_v19 = vpop.permute.xlu1 %2042 }
 0xd9c   :  { %v7767_v48 = vadd.f32 %v2043_v19, %v7652_v17 }
 0xd9e   :  { %v2079_v22 = vsel %vm259_vm1, %v7767_v48, 0.0 }
 0xd9f   :  { %2080 = vadd.xlane.f32.xlu0 %v2079_v22  ;;  %v6547_v22 = vld [vmem:[#allocation5 + $0x20] sm:$0xff] }
 0xda0   :  { %2427 = vmatpush.msrb.mxu1 %v6547_v22 }
 0xdcb   :  { %v2049_v49 = vpop.permute.xlu1 %2048 }
 0xdcc   :  { %v7772_v24 = vadd.f32 %v2049_v49, %v7659_v26  ;;  %v6548_v49 = vld [vmem:[#allocation5 + $0x60] sm:$0xff] }
 0xdcd   :  { %2386 = vmatpush.msrb.mxu0 %v6548_v49 }
 0xdce   :  { %v2088_v47 = vsel %vm259_vm1, %v7772_v24, 0.0 }
 0xdcf   :  { %2089 = vadd.xlane.f32.xlu0 %v2088_v47 }
 0xdd3   :  { %v2045_v63 = vpop.permute.xlu0 %2044 }
 0xdd4   :  { %v7777_v56 = vadd.f32 %v2045_v63, %v7669_v5  ;;  %v6549_v63 = vld [vmem:[#allocation5 + $0x18] sm:$0xff] }
 0xdd5   :  { %2428 = vmatpush.msrb.mxu1 %v6549_v63 }
 0xdd6   :  { %v2082_v17 = vsel %vm259_vm1, %v7777_v56, 0.0 }
 0xdd7   :  { %2083 = vadd.xlane.f32.xlu2 %v2082_v17  ;;  %v6550_v17 = vld [vmem:[#allocation5 + $0x58] sm:$0xff] }
 0xdd8   :  { %2387 = vmatpush.msrb.mxu0 %v6550_v17 }
 0xddb   :  { %v2047_v2 = vpop.permute.xlu2 %2046 }
 0xddc   :  { %v7782_v9 = vadd.f32 %v2047_v2, %v7664_v30  ;;  %v6551_v2 = vld [vmem:[#allocation5 + $0x10] sm:$0xff] }
 0xddd   :  { %2429 = vmatpush.msrb.mxu1 %v6551_v2  ;;  %v6557_v2 = vld [vmem:[#allocation2 + $0x20] sm:$0xff] }
 0xdde   :  { %v2085_v26 = vsel %vm259_vm1, %v7782_v9, 0.0 }
 0xddf   :  { %2086 = vadd.xlane.f32.xlu1 %v2085_v26  ;;  %v6552_v26 = vld [vmem:[#allocation5 + $0x50] sm:$0xff] }
 0xde0   :  { %2388 = vmatpush.msrb.mxu0 %v6552_v26 }
 0xe12   :  { %v2081_v41 = vpop.xlane.xlu0 %2080 }
 0xe13   :  { %v2091_v45 = vmul.f32 %v2081_v41, %v7102_v46  ;;  %v6553_v41 = vld [vmem:[#allocation5 + $0x8] sm:$0xff] }
 0xe14   :  { %2430 = vmatpush.msrb.mxu1 %v6553_v41 }
 0xe15   :  { %v7788_v11 = vsub.f32 %v7767_v48, %v2091_v45  ;;  %v6554_v45 = vld [vmem:[#allocation5 + $0x48] sm:$0xff] }
 0xe16   :  { %2389 = vmatpush.msrb.mxu0 %v6554_v45 }
 0xe17   :  { %v2099_v5 = vmul.f32 %v7788_v11, %v7788_v11 }
 0xe19   :  { %v2103_v3 = vsel %vm259_vm1, %v2099_v5, 0.0  ;;  %v6555_v5 = vld [vmem:[#allocation5] sm:$0xff] }
 0xe1a   :  { %2104 = vadd.xlane.f32.xlu2 %v2103_v3  ;;  %2431 = vmatpush.msrb.mxu1 %v6555_v5  ;;  %v6556_v3 = vld [vmem:[#allocation5 + $0x40] sm:$0xff] }
 0xe1b   :  { %2390 = vmatpush.msrb.mxu0 %v6556_v3 }
 0xe42   :  { %v2090_v4 = vpop.xlane.xlu0 %2089 }
 0xe43   :  { %v2094_v30 = vmul.f32 %v2090_v4, %v7102_v46 }
 0xe45   :  { %v7795_v54 = vsub.f32 %v7772_v24, %v2094_v30 }
 0xe47   :  { %v2102_v53 = vmul.f32 %v7795_v54, %v7795_v54 }
 0xe49   :  { %v2112_v51 = vsel %vm259_vm1, %v2102_v53, 0.0 }
 0xe4a   :  { %2113 = vadd.xlane.f32.xlu2 %v2112_v51  ;;  %v2084_v58 = vpop.xlane.xlu2 %2083 }
 0xe4b   :  { %v2092_v13 = vmul.f32 %v2084_v58, %v7102_v46 }
 0xe4d   :  { %v7802_v0 = vsub.f32 %v7777_v56, %v2092_v13 }
 0xe4f   :  { %v2100_v7 = vmul.f32 %v7802_v0, %v7802_v0 }
 0xe51   :  { %v2106_v8 = vsel %vm259_vm1, %v2100_v7, 0.0 }
 0xe52   :  { %v2087_v10 = vpop.xlane.xlu1 %2086  ;;  %2107 = vadd.xlane.f32.xlu1 %v2106_v8 }
 0xe53   :  { %v2093_v1 = vmul.f32 %v2087_v10, %v7102_v46 }
 0xe55   :  { %v7809_v12 = vsub.f32 %v7782_v9, %v2093_v1 }
 0xe57   :  { %v2101_v15 = vmul.f32 %v7809_v12, %v7809_v12 }
 0xe59   :  { %v2109_v21 = vsel %vm259_vm1, %v2101_v15, 0.0 }
 0xe5a   :  { %2110 = vadd.xlane.f32.xlu0 %v2109_v21 }
 0xe8d   :  { %v2105_v50 = vpop.xlane.xlu2 %2104 }
 0xe8e   :  { %v2115_v19 = vmul.f32 %v2105_v50, %v7102_v46 }
 0xe90   :  { %v2119_v47 = vadd.f32 1e-05, %v2115_v19 }
 0xe92   :  { %6409 = vrsqrt.f32 %v2119_v47  ;;  %vm2129_vm2 = vweird.f32 %v2119_v47 }
 0xe98   :  { %v6410_v4 = vpop.eup %6409 }
 0xe99   :  { %v2124_v30 = vmul.f32 %v6410_v4, %v2119_v47  ;;  %vm2130_vm14 = vweird.f32 %v6410_v4 }
 0xe9a   :  { %vm2131_vm3 = vmor %vm2129_vm2, %vm2130_vm14 }
 0xe9b   :  { %v2125_v53 = vmul.f32 %v6410_v4, %v2124_v30  ;;  %v6558_v30 = vld [vmem:[#allocation2 + $0x28] sm:$0xff] }
 0xe9d   :  { %v2126_v51 = vmul.f32 0.5, %v2125_v53 }
 0xe9f   :  { %v2127_v58 = vsub.f32 1.5, %v2126_v51  ;;  %v6317_v51 = vld [vmem:[%s9149_s7 + $0x128] ss:$0 sm:$0xff] }
 0xea1   :  { %v2128_v13 = vmul.f32 %v6410_v4, %v2127_v58 }
 0xea3   :  { %v2132_v7 = vsel %vm2131_vm3, %v6410_v4, %v2128_v13 }
 0xea4   :  { %v2163_v8 = vmul.f32 %v2132_v7, %v7788_v11 }
 0xea6   :  { %5901 = vmatmul.msk.f32.vlgmr.msra.gmra.mxu0 %vm259_vm1, %v2163_v8  ;;  %5905 = vmatmul.msk.f32.vlgmr.msra.gmra.mxu1 %vm259_vm1, %v2163_v8 }
 0xea7   :  { %5909 = vmatmul.msk.f32.vlgmr.msra.gmra.mxu2 %vm259_vm1, %v2163_v8  ;;  %5913 = vmatmul.msk.f32.vlgmr.msra.gmra.mxu3 %vm259_vm1, %v2163_v8 }
 0xebd   :  { %v2114_v10 = vpop.xlane.xlu2 %2113 }
 0xebe   :  { %v2118_v1 = vmul.f32 %v2114_v10, %v7102_v46  ;;  %v6559_v10 = vld [vmem:[#allocation2 + $0x30] sm:$0xff] }
 0xec0   :  { %v2122_v6 = vadd.f32 1e-05, %v2118_v1 }
 0xec2   :  { %vm2159_vm11 = vweird.f32 %v2122_v6 }
 0xec5   :  { %v2108_v15 = vpop.xlane.xlu1 %2107 }
 0xec6   :  { %v2116_v21 = vmul.f32 %v2108_v15, %v7102_v46 }
 0xec8   :  { %v2120_v20 = vadd.f32 1e-05, %v2116_v21 }
 0xeca   :  { %6411 = vrsqrt.f32 %v2120_v20  ;;  %vm2139_vm5 = vweird.f32 %v2120_v20 }
 0xecb   :  { %6413 = vrsqrt.f32 %v2122_v6 }
 0xecd   :  { %v2111_v28 = vpop.xlane.xlu0 %2110 }
 0xece   :  { %v2117_v11 = vmul.f32 %v2111_v28, %v7102_v46 }
 0xed0   :  { %v6412_v33 = vpop.eup %6411  ;;  %v2121_v38 = vadd.f32 1e-05, %v2117_v11 }
 0xed1   :  { %v2134_v35 = vmul.f32 %v6412_v33, %v2120_v20  ;;  %v6414_v27 = vpop.eup %6413  ;;  %vm2140_vm4 = vweird.f32 %v6412_v33 }
 0xed2   :  { %6415 = vrsqrt.f32 %v2121_v38  ;;  %v2154_v31 = vmul.f32 %v6414_v27, %v2122_v6  ;;  %vm2141_vm6 = vmor %vm2139_vm5, %vm2140_vm4  ;;  %vm2149_vm8 = vweird.f32 %v2121_v38  ;;  %vm2160_vm10 = vweird.f32 %v6414_v27 }
 0xed3   :  { %v2135_v34 = vmul.f32 %v6412_v33, %v2134_v35  ;;  %vm2161_vm12 = vmor %vm2159_vm11, %vm2160_vm10 }
 0xed4   :  { %v2155_v37 = vmul.f32 %v6414_v27, %v2154_v31 }
 0xed5   :  { %v2136_v39 = vmul.f32 0.5, %v2135_v34 }
 0xed6   :  { %v2156_v62 = vmul.f32 0.5, %v2155_v37  ;;  %v6563_v37 = vld [vmem:[#allocation8 + $0x68] sm:$0xff] }
 0xed7   :  { %v2137_v40 = vsub.f32 1.5, %v2136_v39  ;;  %v6561_v39 = vld [vmem:[#allocation8 + $0x78] sm:$0xff] }
 0xed8   :  { %v6416_v42 = vpop.eup %6415  ;;  %v2157_v55 = vsub.f32 1.5, %v2156_v62  ;;  %v6567_v62 = vld [vmem:[#allocation8 + $0x48] sm:$0xff] }
 0xed9   :  { %v2138_v14 = vmul.f32 %v6412_v33, %v2137_v40  ;;  %v2144_v44 = vmul.f32 %v6416_v42, %v2121_v38  ;;  %vm2150_vm7 = vweird.f32 %v6416_v42  ;;  %v6560_v38 = vld [vmem:[#allocation2 + $0x38] sm:$0xff] }
 0xeda   :  { %vm2151_vm9 = vmor %vm2149_vm8, %vm2150_vm7 }
 0xedb   :  { %v2145_v43 = vmul.f32 %v6416_v42, %v2144_v44  ;;  %v2142_v18 = vsel %vm2141_vm6, %v6412_v33, %v2138_v14  ;;  %v6564_v14 = vld [vmem:[#allocation8 + $0x60] sm:$0xff] }
 0xedc   :  { %v2164_v57 = vmul.f32 %v2142_v18, %v7802_v0  ;;  %v2158_v0 = vmul.f32 %v6414_v27, %v2157_v55  ;;  %v6569_v55 = vld [vmem:[#allocation8 + $0x38] sm:$0xff] }
 0xedd   :  { %v2146_v25 = vmul.f32 0.5, %v2145_v43  ;;  %v6565_v43 = vld [vmem:[#allocation8 + $0x58] sm:$0xff] }
 0xede   :  { %5902 = vmatmul.msk.f32.gmra.mxu0 %vm259_vm1, %v2164_v57  ;;  %5906 = vmatmul.msk.f32.gmra.mxu1 %vm259_vm1, %v2164_v57  ;;  %v2162_v49 = vsel %vm2161_vm12, %v6414_v27, %v2158_v0  ;;  %v6316_v27 = vld [vmem:[%s9149_s7 + $0x120] ss:$0 sm:$0xff] }
 0xedf   :  { %v2147_v32 = vsub.f32 1.5, %v2146_v25  ;;  %5910 = vmatmul.msk.f32.gmra.mxu2 %vm259_vm1, %v2164_v57  ;;  %5914 = vmatmul.msk.f32.gmra.mxu3 %vm259_vm1, %v2164_v57  ;;  %v2166_v47 = vmul.f32 %v2162_v49, %v7795_v54  ;;  %v6566_v57 = vld [vmem:[#allocation8 + $0x50] sm:$0xff]  ;;  %v6568_v25 = vld [vmem:[#allocation8 + $0x40] sm:$0xff] }
 0xee0   :  { %v6572_v0 = vld [vmem:[#allocation8 + $0x20] sm:$0xff] }
 0xee1   :  { %v2148_v50 = vmul.f32 %v6416_v42, %v2147_v32 }
 0xee3   :  { %v2152_v19 = vsel %vm2151_vm9, %v6416_v42, %v2148_v50  ;;  %v6562_v42 = vld [vmem:[#allocation8 + $0x70] sm:$0xff] }
 0xee4   :  { %v2165_v22 = vmul.f32 %v2152_v19, %v7809_v12  ;;  %v6319_v12 = vld [vmem:[%s9149_s7 + $0x138] ss:$0 sm:$0xff]  ;;  %v6570_v50 = vld [vmem:[#allocation8 + $0x30] sm:$0xff] }
 0xee6   :  { %5903 = vmatmul.msk.f32.gmra.mxu0 %vm259_vm1, %v2165_v22  ;;  %5907 = vmatmul.msk.f32.gmra.mxu1 %vm259_vm1, %v2165_v22 }
 0xee7   :  { %5911 = vmatmul.msk.f32.gmra.mxu2 %vm259_vm1, %v2165_v22  ;;  %5915 = vmatmul.msk.f32.gmra.mxu3 %vm259_vm1, %v2165_v22  ;;  %v6571_v22 = vld [vmem:[#allocation8 + $0x28] sm:$0xff] }
 0xeee   :  { %5904 = vmatmul.msk.f32.gmra.mxu0 %vm259_vm1, %v2166_v47  ;;  %5908 = vmatmul.msk.f32.gmra.mxu1 %vm259_vm1, %v2166_v47 }
 0xeef   :  { %5912 = vmatmul.msk.f32.gmra.mxu2 %vm259_vm1, %v2166_v47  ;;  %5916 = vmatmul.msk.f32.gmra.mxu3 %vm259_vm1, %v2166_v47  ;;  %v6573_v47 = vld [vmem:[#allocation8 + $0x18] sm:$0xff] }
 0xf23   :  { %v2229_v41 = vpop.f32.mrf.mxu1  ;;  %v2200_v11 = vpop.f32.mrf.mxu0 }
 0xf24   :  { %v7930_v34 = vadd.f32 %v6317_v51, %v2229_v41  ;;  %v7936_v31 = vadd.f32 %v6316_v27, %v2200_v11 }
 0xf2a   :  { %v2287_v63 = vpop.f32.mrf.mxu3 }
 0xf2b   :  { %v7889_v17 = vadd.f32 %v6319_v12, %v2287_v63  ;;  %v6574_v63 = vld [vmem:[#allocation8 + $0x10] sm:$0xff] }
 0xf2d   :  { %v2331_v26 = vmul.f32 %v6557_v2, %v7889_v17  ;;  %v2303_v54 = vmul.f32 %v7889_v17, %v7228_v59  ;;  %v6575_v2 = vld [vmem:[#allocation8 + $0x8] sm:$0xff] }
 0xf2f   :  { %2339 = vrot.lane.b32.xlu1 %v2331_v26, %s6893_s27  ;;  %v6576_v26 = vld [vmem:[#allocation8] sm:$0xff] }
 0xf37   :  { %2311 = vrot.lane.b32.xlu1 %v2303_v54, %s6893_s27  ;;  %v2327_v54 = vmul.f32 %v7889_v17, %v7321_v60 }
 0xf5b   :  { %v2232_v45 = vpop.f32.mrf.mxu1  ;;  %v2203_v40 = vpop.f32.mrf.mxu0 }
 0xf5c   :  { %v7920_v33 = vadd.f32 %v6317_v51, %v2232_v45  ;;  %v7945_v44 = vadd.f32 %v6316_v27, %v2203_v40 }
 0xf62   :  { %v2290_v5 = vpop.f32.mrf.mxu3 }
 0xf63   :  { %v7896_v3 = vadd.f32 %v6319_v12, %v2290_v5  ;;  %v2235_v4 = vpop.f32.mrf.mxu1  ;;  %v2206_v18 = vpop.f32.mrf.mxu0  ;;  %v6577_v5 = vld [vmem:[#allocation2] sm:$0xff] }
 0xf64   :  { %v7913_v6 = vadd.f32 %v6317_v51, %v2235_v4  ;;  %v7950_v32 = vadd.f32 %v6316_v27, %v2206_v18  ;;  %v2299_v4 = vmul.f32 %v6577_v5, %v7889_v17  ;;  %v6318_v18 = vld [vmem:[%s9149_s7 + $0x130] ss:$0 sm:$0xff] }
 0xf65   :  { %v2332_v53 = vmul.f32 %v6558_v30, %v7896_v3  ;;  %v2304_v15 = vmul.f32 %v7896_v3, %v7238_v16 }
 0xf67   :  { %2341 = vrot.lane.b32.xlu0 %v2332_v53, %s6893_s27 }
 0xf6a   :  { %v2293_v58 = vpop.f32.mrf.mxu3 }
 0xf6b   :  { %v7903_v13 = vadd.f32 %v6319_v12, %v2293_v58  ;;  %v2238_v7 = vpop.f32.mrf.mxu1  ;;  %v2209_v19 = vpop.f32.mrf.mxu0 }
 0xf6c   :  { %v2239_v8 = vadd.f32 %v6317_v51, %v2238_v7  ;;  %v7956_v49 = vadd.f32 %v6316_v27, %v2209_v19 }
 0xf6d   :  { %v2333_v1 = vmul.f32 %v6559_v10, %v7903_v13  ;;  %v2305_v21 = vmul.f32 %v7903_v13, %v7249_v23  ;;  %v2329_v51 = vmul.f32 %v7903_v13, %v7333_v29 }
 0xf6e   :  { %5925 = vmatpush.xpose.msk.msrb.mxu2 %vm259_vm1, %v2239_v8 }
 0xf6f   :  { %2343 = vrot.lane.b32.xlu2 %v2333_v1, %s6893_s27  ;;  %2313 = vrot.lane.b32.xlu0 %v2304_v15, %s6893_s27  ;;  %v2258_v15 = vpop.f32.mrf.mxu2 }
 0xf70   :  { %2315 = vrot.lane.b32.xlu1 %v2305_v21, %s6893_s27  ;;  %v8028_v19 = vadd.f32 %v6318_v18, %v2258_v15 }
 0xf72   :  { %v2296_v20 = vpop.f32.mrf.mxu3  ;;  %5926 = vmatpush.xpose.msk.msrb.mxu2 %vm259_vm1, %v7913_v6 }
 0xf73   :  { %v7918_v28 = vadd.f32 %v6319_v12, %v2296_v20 }
 0xf75   :  { %v2334_v35 = vmul.f32 %v6560_v38, %v7918_v28  ;;  %v2306_v12 = vmul.f32 %v7918_v28, %v7302_v52 }
 0xf76   :  { %5927 = vmatpush.xpose.msk.msrb.mxu2 %vm259_vm1, %v7920_v33 }
 0xf77   :  { %2345 = vrot.lane.b32.xlu0 %v2334_v35, %s6893_s27  ;;  %2516 = vrot.lane.b32.xlu2 %v2239_v8, %s6895_s12  ;;  %v2261_v38 = vpop.f32.mrf.mxu2 }
 0xf78   :  { %2512 = vrot.lane.b32.xlu1 %v7920_v33, %s6895_s12 }
 0xf7a   :  { %5928 = vmatpush.xpose.msk.msrb.mxu2 %vm259_vm1, %v7930_v34 }
 0xf7d   :  { %5929 = vmatmul.msk.f32.vlgmr.msrb.gmra.mxu2 %vm259_vm1, %v7936_v31 }
 0xf7e   :  { %2769 = vmatpush.msra.mxu2 %v6561_v39  ;;  %v6579_v39 = vld [vmem:[#allocation2 + $0x10] sm:$0xff] }
 0xf7f   :  { %2514 = vrot.lane.b32.xlu0 %v7913_v6, %s6895_s12  ;;  %2638 = vrot.lane.b32.xlu2 %v2239_v8, %s6894_s6  ;;  %v2301_v40 = vmul.f32 %v6579_v39, %v7903_v13 }
 0xf80   :  { %2770 = vmatpush.msra.mxu2 %v6562_v42  ;;  %2510 = vrot.lane.b32.xlu1 %v7930_v34, %s6895_s12 }
 0xf82   :  { %2771 = vmatpush.msra.mxu2 %v6563_v37 }
 0xf84   :  { %2772 = vmatpush.msra.mxu2 %v6564_v14  ;;  %v2264_v14 = vpop.f32.mrf.mxu2 }
 0xf85   :  { %5930 = vmatmul.msk.f32.gmra.mxu2 %vm259_vm1, %v7945_v44 }
 0xf86   :  { %2773 = vmatpush.msra.mxu2 %v6565_v43 }
 0xf87   :  { %2577 = vrot.lane.b32.xlu0 %v2239_v8, %s6893_s27  ;;  %v2328_v8 = vmul.f32 %v7896_v3, %v7323_v61 }
 0xf88   :  { %2774 = vmatpush.msra.mxu2 %v6566_v57 }
 0xf8a   :  { %2775 = vmatpush.msra.mxu2 %v6567_v62 }
 0xf8c   :  { %2776 = vmatpush.msra.mxu2 %v6568_v25  ;;  %v2267_v13 = vpop.f32.mrf.mxu2 }
 0xf8d   :  { %5931 = vmatmul.msk.f32.gmra.mxu2 %vm259_vm1, %v7950_v32  ;;  %v8014_v57 = vadd.f32 %v6318_v18, %v2267_v13 }
 0xf8e   :  { %2777 = vmatpush.msra.mxu2 %v6569_v55  ;;  %v8018_v55 = vadd.f32 %v6318_v18, %v2264_v14 }
 0xf8f   :  { %2575 = vrot.lane.b32.xlu0 %v7913_v6, %s6893_s27 }
 0xf90   :  { %2778 = vmatpush.msra.mxu2 %v6570_v50 }
 0xf92   :  { %2779 = vmatpush.msra.mxu2 %v6571_v22 }
 0xf94   :  { %2780 = vmatpush.msra.mxu2 %v6572_v0  ;;  %v6580_v0 = vld [vmem:[#allocation2 + $0x18] sm:$0xff] }
 0xf95   :  { %5932 = vmatmul.msk.f32.gmra.mxu2 %vm259_vm1, %v7956_v49 }
 0xf96   :  { %2781 = vmatpush.msra.mxu2 %v6573_v47  ;;  %v2302_v47 = vmul.f32 %v6580_v0, %v7918_v28 }
 0xf97   :  { %2317 = vrot.lane.b32.xlu0 %v2306_v12, %s6893_s27 }
 0xf98   :  { %2782 = vmatpush.msra.mxu2 %v6574_v63 }
 0xf9a   :  { %2783 = vmatpush.msra.mxu2 %v6575_v2 }
 0xf9c   :  { %2784 = vmatpush.msra.mxu2 %v6576_v26 }
 0xf9f   :  { %2573 = vrot.lane.b32.xlu0 %v7920_v33, %s6893_s27 }
 0xfa1   :  { %v2340_v41 = vpop.permute.xlu1 %2339 }
 0xfa2   :  { %v2351_v45 = vsub.f32 %v2327_v54, %v2340_v41 }
 0xfa4   :  { %2359 = vrot.lane.b32.xlu2 %v2351_v45, %s6893_s27 }
 0xfa7   :  { %2632 = vrot.lane.b32.xlu0 %v7930_v34, %s6894_s6 }
 0xfa9   :  { %v2312_v30 = vpop.permute.xlu1 %2311 }
 0xfaa   :  { %v2323_v53 = vadd.f32 %v2312_v30, %v2299_v4 }
 0xfac   :  { %5921 = vmatmul.msk.f32.vlgmr.msrb.gmra.mxu1 %vm678_vm15, %v2323_v53  ;;  %2636 = vrot.lane.b32.xlu2 %v7913_v6, %s6894_s6  ;;  %v6578_v6 = vld [vmem:[#allocation2 + $0x8] sm:$0xff] }
 0xfad   :  { %v2300_v20 = vmul.f32 %v6578_v6, %v7896_v3 }
 0xfaf   :  { %2624 = vrot.lane.b32.xlu0 %v7936_v31, %s6894_s6 }
 0xfb7   :  { %2626 = vrot.lane.b32.xlu0 %v7945_v44, %s6894_s6 }
 0xfbf   :  { %2628 = vrot.lane.b32.xlu0 %v7950_v32, %s6894_s6 }
 0xfc9   :  { %v2344_v17 = vpop.permute.xlu2 %2343 }
 0xfca   :  { %v2353_v58 = vsub.f32 %v2329_v51, %v2344_v17 }
 0xfcc   :  { %2363 = vrot.lane.b32.xlu2 %v2353_v58, %s6893_s27 }
 0xfd1   :  { %v2517_v7 = vpop.permute.xlu2 %2516 }
 0xfd2   :  { %5933 = vmatpush.xpose.msk.msrb.mxu3 %vm259_vm1, %v2517_v7 }
 0xfd4   :  { %2502 = vrot.lane.b32.xlu2 %v7936_v31, %s6895_s12 }
 0xfd9   :  { %v2342_v10 = vpop.permute.xlu0 %2341  ;;  %v2639_v1 = vpop.permute.xlu2 %2638 }
 0xfda   :  { %v2352_v21 = vsub.f32 %v2328_v8, %v2342_v10  ;;  %5949 = vmatpush.xpose.msk.msra.mxu1 %vm259_vm1, %v2639_v1 }
 0xfdc   :  { %2361 = vrot.lane.b32.xlu1 %v2352_v21, %s6893_s27  ;;  %2571 = vrot.lane.b32.xlu2 %v7930_v34, %s6893_s27  ;;  %v2330_v34 = vmul.f32 %v7918_v28, %v7340_v36 }
 0xfe1   :  { %v2314_v11 = vpop.permute.xlu0 %2313 }
 0xfe2   :  { %v2324_v35 = vadd.f32 %v2314_v11, %v2300_v20  ;;  %v2316_v27 = vpop.permute.xlu1 %2315 }
 0xfe3   :  { %v2325_v3 = vadd.f32 %v2316_v27, %v2301_v40 }
 0xfe4   :  { %2634 = vrot.lane.b32.xlu1 %v7920_v33, %s6894_s6  ;;  %5922 = vmatmul.msk.f32.gmra.mxu1 %vm678_vm15, %v2324_v35 }
 0xfe5   :  { %2504 = vrot.lane.b32.xlu2 %v7945_v44, %s6895_s12 }
 0xfe9   :  { %v2346_v42 = vpop.permute.xlu0 %2345 }
 0xfea   :  { %v2354_v37 = vsub.f32 %v2330_v34, %v2346_v42  ;;  %v2513_v33 = vpop.permute.xlu1 %2512 }
 0xfec   :  { %2365 = vrot.lane.b32.xlu1 %v2354_v37, %s6893_s27  ;;  %5923 = vmatmul.msk.f32.gmra.mxu1 %vm678_vm15, %v2325_v3 }
 0xfed   :  { %2506 = vrot.lane.b32.xlu2 %v7950_v32, %s6895_s12 }
 0xff1   :  { %v2515_v43 = vpop.permute.xlu0 %2514 }
 0xff2   :  { %5934 = vmatpush.xpose.msk.msrb.mxu3 %vm259_vm1, %v2515_v43  ;;  %v2511_v62 = vpop.permute.xlu1 %2510 }
 0xff4   :  { %2563 = vrot.lane.b32.xlu1 %v7936_v31, %s6893_s27  ;;  %v8023_v31 = vadd.f32 %v6318_v18, %v2261_v38 }
 0xff5   :  { %2508 = vrot.lane.b32.xlu2 %v7956_v49, %s6895_s12 }
 0xff6   :  { %5935 = vmatpush.xpose.msk.msrb.mxu3 %vm259_vm1, %v2513_v33 }
 0xff9   :  { %v2578_v25 = vpop.permute.xlu0 %2577 }
 0xffa   :  { %5936 = vmatpush.xpose.msk.msrb.mxu3 %vm259_vm1, %v2511_v62  ;;  %5941 = vmatpush.xpose.msk.msra.mxu0 %vm259_vm1, %v2578_v25 }
 0xffc   :  { %2565 = vrot.lane.b32.xlu1 %v7945_v44, %s6893_s27 }
 0xffd   :  { %2630 = vrot.lane.b32.xlu2 %v7956_v49, %s6894_s6 }
 0xffe   :  { %2830 = vmatpush.msra.mxu3 %v8014_v57  ;;  %v2360_v50 = vpop.permute.xlu2 %2359 }
 0xfff   :  { %5917 = vmatmul.msk.f32.vlgmr.msrb.gmra.mxu0 %vm678_vm15, %v2360_v50 }
0x1000   :  { %2831 = vmatpush.msra.mxu3 %v8018_v55  ;;  %v2490_v25 = vpop.f32.mrf.mxu2 }
0x1001   :  { %v2576_v22 = vpop.permute.xlu0 %2575 }
0x1002   :  { %2832 = vmatpush.msra.mxu3 %v8023_v31  ;;  %5942 = vmatpush.xpose.msk.msra.mxu0 %vm259_vm1, %v2576_v22 }
0x1004   :  { %2833 = vmatpush.msra.mxu3 %v8028_v19  ;;  %2567 = vrot.lane.b32.xlu1 %v7950_v32, %s6893_s27 }
0x1006   :  { %v2637_v44 = vpop.permute.xlu2 %2636 }
0x1007   :  { %5950 = vmatpush.xpose.msk.msra.mxu1 %vm259_vm1, %v2637_v44 }
0x1009   :  { %v2318_v12 = vpop.permute.xlu0 %2317 }
0x100a   :  { %v2326_v63 = vadd.f32 %v2318_v12, %v2302_v47  ;;  %v6581_v12 = vld [vmem:[#allocation7] sm:$0xff] }
0x100c   :  { %5924 = vmatmul.msk.f32.gmra.mxu1 %vm678_vm15, %v2326_v63  ;;  %2569 = vrot.lane.b32.xlu1 %v7956_v49, %s6893_s27 }
0x1011   :  { %v2574_v2 = vpop.permute.xlu0 %2573 }
0x1012   :  { %5943 = vmatpush.xpose.msk.msra.mxu0 %vm259_vm1, %v2574_v2 }
0x1019   :  { %v2633_v5 = vpop.permute.xlu0 %2632 }
0x1021   :  { %v2625_v30 = vpop.permute.xlu0 %2624 }
0x1026   :  { %v2364_v26 = vpop.permute.xlu2 %2363 }
0x1029   :  { %v2627_v51 = vpop.permute.xlu0 %2626  ;;  %v2433_v21 = vpop.f32.mrf.mxu1 }
0x102e   :  { %v2503_v54 = vpop.permute.xlu2 %2502 }
0x102f   :  { %5937 = vmatmul.msk.f32.vlgmr.msrb.gmra.mxu3 %vm259_vm1, %v2503_v54 }
0x1031   :  { %v2629_v58 = vpop.permute.xlu0 %2628 }
0x1036   :  { %v2572_v32 = vpop.permute.xlu2 %2571 }
0x1037   :  { %5944 = vmatpush.xpose.msk.msra.mxu0 %vm259_vm1, %v2572_v32  ;;  %v2493_v32 = vpop.f32.mrf.mxu2 }
0x103f   :  { %v2505_v41 = vpop.permute.xlu2 %2504 }
0x1040   :  { %5938 = vmatmul.msk.f32.gmra.mxu3 %vm259_vm1, %v2505_v41 }
0x1047   :  { %v2507_v28 = vpop.permute.xlu2 %2506 }
0x1048   :  { %5939 = vmatmul.msk.f32.gmra.mxu3 %vm259_vm1, %v2507_v28 }
0x104e   :  { %v2362_v45 = vpop.permute.xlu1 %2361 }
0x104f   :  { %v2509_v4 = vpop.permute.xlu2 %2508  ;;  %5918 = vmatmul.msk.f32.gmra.mxu0 %vm678_vm15, %v2362_v45 }
0x1050   :  { %5940 = vmatmul.msk.f32.gmra.mxu3 %vm259_vm1, %v2509_v4 }
0x1056   :  { %v2635_v49 = vpop.permute.xlu1 %2634 }
0x1057   :  { %5919 = vmatmul.msk.f32.gmra.mxu0 %vm678_vm15, %v2364_v26  ;;  %5951 = vmatpush.xpose.msk.msra.mxu1 %vm259_vm1, %v2635_v49  ;;  %v2631_v8 = vpop.permute.xlu2 %2630  ;;  %v6582_v49 = vld [vmem:[#allocation7 + $0x8] sm:$0xff] }
0x105b   :  { %5952 = vmatpush.xpose.msk.msra.mxu1 %vm259_vm1, %v2633_v5 }
0x105e   :  { %v2366_v53 = vpop.permute.xlu1 %2365  ;;  %5953 = vmatmul.msk.f32.vlgmr.msra.gmra.mxu1 %vm259_vm1, %v2625_v30 }
0x105f   :  { %5920 = vmatmul.msk.f32.gmra.mxu0 %vm678_vm15, %v2366_v53 }
0x1061   :  { %v2436_v6 = vpop.f32.mrf.mxu1 }
0x1066   :  { %v2564_v17 = vpop.permute.xlu1 %2563  ;;  %5954 = vmatmul.msk.f32.gmra.mxu1 %vm259_vm1, %v2627_v51 }
0x1067   :  { %5945 = vmatmul.msk.f32.vlgmr.msra.gmra.mxu0 %vm259_vm1, %v2564_v17 }
0x1069   :  { %v2439_v38 = vpop.f32.mrf.mxu1 }
0x106e   :  { %v2566_v7 = vpop.permute.xlu1 %2565  ;;  %5955 = vmatmul.msk.f32.gmra.mxu1 %vm259_vm1, %v2629_v58 }
0x106f   :  { %5946 = vmatmul.msk.f32.gmra.mxu0 %vm259_vm1, %v2566_v7  ;;  %v2496_v7 = vpop.f32.mrf.mxu2 }
0x1076   :  { %v2568_v10 = vpop.permute.xlu1 %2567  ;;  %5956 = vmatmul.msk.f32.gmra.mxu1 %vm259_vm1, %v2631_v8 }
0x1077   :  { %5947 = vmatmul.msk.f32.gmra.mxu0 %vm259_vm1, %v2568_v10 }
0x107c   :  { %v2392_v11 = vpop.f32.mrf.mxu0 }
0x107d   :  { %v2434_v44 = vadd.f32 %v2433_v21, %v2392_v11  ;;  %v6583_v21 = vld [vmem:[#allocation7 + $0x10] sm:$0xff] }
0x107e   :  { %v2570_v1 = vpop.permute.xlu1 %2569 }
0x107f   :  { %5948 = vmatmul.msk.f32.gmra.mxu0 %vm259_vm1, %v2570_v1  ;;  %v2445_v63 = vadd.f32 %v6581_v12, %v2434_v44 }
0x1089   :  { %v2442_v39 = vpop.f32.mrf.mxu1 }
0x10b2   :  { %v2551_v15 = vpop.f32.mrf.mxu3 }
0x10b3   :  { %2689 = vrot.lane.b32.xlu0 %v2551_v15, %s6894_s6 }
0x10c3   :  { %v2554_v20 = vpop.f32.mrf.mxu3 }
0x10c4   :  { %2691 = vrot.lane.b32.xlu0 %v2554_v20, %s6894_s6 }
0x10cb   :  { %v2557_v35 = vpop.f32.mrf.mxu3 }
0x10cc   :  { %2693 = vrot.lane.b32.xlu0 %v2557_v35, %s6894_s6  ;;  %v2395_v27 = vpop.f32.mrf.mxu0 }
0x10cd   :  { %v2437_v28 = vadd.f32 %v2436_v6, %v2395_v27 }
0x10cf   :  { %v2446_v30 = vadd.f32 %v6582_v49, %v2437_v28 }
0x10d3   :  { %v2560_v40 = vpop.f32.mrf.mxu3 }
0x10d4   :  { %2695 = vrot.lane.b32.xlu0 %v2560_v40, %s6894_s6  ;;  %v2398_v34 = vpop.f32.mrf.mxu0 }
0x10d5   :  { %v2440_v8 = vadd.f32 %v2439_v38, %v2398_v34  ;;  %v6584_v38 = vld [vmem:[#allocation7 + $0x18] sm:$0xff] }
0x10d7   :  { %v2447_v6 = vadd.f32 %v6583_v21, %v2440_v8 }
0x10db   :  { %v2673_v42 = vpop.f32.mrf.mxu1 }
0x10dc   :  { %2721 = vrot.lane.b32.xlu2 %v2673_v42, %s6895_s12  ;;  %v2401_v3 = vpop.f32.mrf.mxu0  ;;  %v2499_v42 = vpop.f32.mrf.mxu2 }
0x10dd   :  { %v2443_v27 = vadd.f32 %v2442_v39, %v2401_v3  ;;  %v6260_v39 = vpack.i.bf16 %v8028_v19, %v8023_v31 }
0x10df   :  { %v2448_v34 = vadd.f32 %v6584_v38, %v2443_v27  ;;  %v3103_v27 = vld [vmem:[#allocation11 + $0x48] sm:$0xff]  ;;  %v3102_v38 = vld [vmem:[#allocation11 + $0x40] sm:$0xff] }
0x10e3   :  { %v2676_v37 = vpop.f32.mrf.mxu1 }
0x10e4   :  { %2723 = vrot.lane.b32.xlu2 %v2676_v37, %s6895_s12  ;;  %v2612_v14 = vpop.f32.mrf.mxu0 }
0x10e5   :  { %2705 = vrot.lane.b32.xlu1 %v2612_v14, %s6893_s27 }
0x10eb   :  { %v2679_v33 = vpop.f32.mrf.mxu1 }
0x10ec   :  { %2725 = vrot.lane.b32.xlu2 %v2679_v33, %s6895_s12  ;;  %v2615_v43 = vpop.f32.mrf.mxu0 }
0x10ed   :  { %2707 = vrot.lane.b32.xlu1 %v2615_v43, %s6893_s27 }
0x10f3   :  { %v2682_v13 = vpop.f32.mrf.mxu1 }
0x10f4   :  { %v2618_v18 = vpop.f32.mrf.mxu0  ;;  %2727 = vrot.lane.b32.xlu2 %v2682_v13, %s6895_s12 }
0x10f5   :  { %2709 = vrot.lane.b32.xlu1 %v2618_v18, %s6893_s27 }
0x10fc   :  { %v2621_v62 = vpop.f32.mrf.mxu0 }
0x10fd   :  { %2711 = vrot.lane.b32.xlu1 %v2621_v62, %s6893_s27  ;;  %v6240_v62 = vpack.i.bf16 %v8018_v55, %v8014_v57 }
0x1125   :  { %v2690_v50 = vpop.permute.xlu0 %2689 }
0x1126   :  { %v2733_v0 = vsel %vm259_vm1, %v2490_v25, %v2690_v50 }
0x1136   :  { %v2722_v22 = vpop.permute.xlu2 %2721  ;;  %v2692_v2 = vpop.permute.xlu0 %2691 }
0x1137   :  { %v2734_v5 = vsel %vm259_vm1, %v2493_v32, %v2692_v2 }
0x113e   :  { %v2724_v45 = vpop.permute.xlu2 %2723  ;;  %v2694_v17 = vpop.permute.xlu0 %2693 }
0x113f   :  { %v2735_v1 = vsel %vm259_vm1, %v2496_v7, %v2694_v17 }
0x1146   :  { %v2726_v10 = vpop.permute.xlu2 %2725  ;;  %v2696_v40 = vpop.permute.xlu0 %2695 }
0x1147   :  { %v2736_v37 = vsel %vm259_vm1, %v2499_v42, %v2696_v40 }
0x114e   :  { %v2728_v33 = vpop.permute.xlu2 %2727 }
0x1157   :  { %v2706_v47 = vpop.permute.xlu1 %2705 }
0x1158   :  { %v2737_v26 = vsel %vm678_vm15, %v2733_v0, %v2706_v47 }
0x1159   :  { %v2741_v54 = vsel %vm1057_vm0, %v2737_v26, %v2722_v22 }
0x115a   :  { %v2745_v41 = vadd.f32 %v2741_v54, %v2445_v63 }
0x115c   :  { %2749 = vmax.xlane.f32.xlu0 %v2745_v41 }
0x115f   :  { %v2708_v4 = vpop.permute.xlu1 %2707 }
0x1160   :  { %v2738_v53 = vsel %vm678_vm15, %v2734_v5, %v2708_v4 }
0x1161   :  { %v2742_v51 = vsel %vm1057_vm0, %v2738_v53, %v2724_v45 }
0x1162   :  { %v2746_v58 = vadd.f32 %v2742_v51, %v2446_v30 }
0x1164   :  { %2751 = vmax.xlane.f32.xlu1 %v2746_v58 }
0x1167   :  { %v2710_v15 = vpop.permute.xlu1 %2709 }
0x1168   :  { %v2739_v20 = vsel %vm678_vm15, %v2735_v1, %v2710_v15 }
0x1169   :  { %v2743_v11 = vsel %vm1057_vm0, %v2739_v20, %v2726_v10 }
0x116a   :  { %v2747_v35 = vadd.f32 %v2743_v11, %v2447_v6  ;;  %v3105_v11 = vld [vmem:[#allocation11 + $0x58] sm:$0xff] }
0x116b   :  { %3130 = vmatpush.msrb.mxu3 %v3105_v11  ;;  %v5981_v11 = vld [vmem:[%s9150_s8 + $0xb8] sm:$0xff] }
0x116c   :  { %2753 = vmax.xlane.f32.xlu2 %v2747_v35 }
0x116f   :  { %v2712_v14 = vpop.permute.xlu1 %2711 }
0x1170   :  { %v2740_v43 = vsel %vm678_vm15, %v2736_v37, %v2712_v14 }
0x1171   :  { %v2744_v13 = vsel %vm1057_vm0, %v2740_v43, %v2728_v33 }
0x1172   :  { %v2748_v18 = vadd.f32 %v2744_v13, %v2448_v34 }
0x1174   :  { %2755 = vmax.xlane.f32.xlu0 %v2748_v18 }
0x117d   :  { %6241 = vrot.lane.b32.xlu1 %v6240_v62, %s6894_s6 }
0x1184   :  { %6246 = vrot.lane.b32.xlu2 %v6240_v62, %s6895_s12 }
0x1185   :  { %6261 = vrot.lane.b32.xlu1 %v6260_v39, %s6895_s12 }
0x1188   :  { %6251 = vrot.lane.b32.xlu0 %v6260_v39, %s6894_s6 }
0x1190   :  { %6256 = vrot.lane.b32.xlu0 %v6240_v62, %s6893_s27 }
0x1198   :  { %6266 = vrot.lane.b32.xlu0 %v6260_v39, %s6893_s27 }
0x11cf   :  { %v2750_v3 = vpop.xlane.xlu0 %2749 }
0x11d0   :  { %v2757_v25 = vsub.f32 %v2745_v41, %v2750_v3 }
0x11d2   :  { %v2761_v50 = vmul.f32 1.442695, %v2757_v25 }
0x11d4   :  { %6417 = vpow2.f32 %v2761_v50 }
0x11d7   :  { %v2752_v57 = vpop.xlane.xlu1 %2751 }
0x11d8   :  { %v2758_v55 = vsub.f32 %v2746_v58, %v2752_v57 }
0x11da   :  { %v6418_v22 = vpop.eup %6417  ;;  %v2763_v44 = vmul.f32 1.442695, %v2758_v55 }
0x11db   :  { %2785 = vmatmul.f32.vlgmr.msra.gmra.mxu2 %v6418_v22 }
0x11dc   :  { %6419 = vpow2.f32 %v2763_v44 }
0x11df   :  { %v2754_v31 = vpop.xlane.xlu2 %2753 }
0x11e0   :  { %v2759_v19 = vsub.f32 %v2747_v35, %v2754_v31  ;;  %v3104_v35 = vld [vmem:[#allocation11 + $0x50] sm:$0xff] }
0x11e1   :  { %3131 = vmatpush.msrb.mxu3 %v3104_v35  ;;  %v5980_v35 = vld [vmem:[%s9150_s8 + $0xb0] sm:$0xff] }
0x11e2   :  { %v8094_v0 = vpop.eup %6419  ;;  %v2765_v47 = vmul.f32 1.442695, %v2759_v19 }
0x11e3   :  { %2788 = vmatmul.f32.gmra.mxu2 %v8094_v0  ;;  %3132 = vmatpush.msrb.mxu3 %v3103_v27  ;;  %v5979_v27 = vld [vmem:[%s9150_s8 + $0xa8] sm:$0xff] }
0x11e4   :  { %6421 = vpow2.f32 %v2765_v47 }
0x11e5   :  { %3133 = vmatpush.msrb.mxu3 %v3102_v38  ;;  %v5974_v38 = vld [vmem:[%s9150_s8 + $0x80] sm:$0xff] }
0x11e7   :  { %v2756_v12 = vpop.xlane.xlu0 %2755  ;;  %v6247_v63 = vpop.permute.xlu2 %6246 }
0x11e8   :  { %v2760_v2 = vsub.f32 %v2748_v18, %v2756_v12  ;;  %v6248_v26 = vunpack.i.l.bf16 %v6247_v63  ;;  %v6249_v41 = vunpack.i.h.bf16 %v6247_v63 }
0x11ea   :  { %v8097_v54 = vpop.eup %6421  ;;  %v2767_v32 = vmul.f32 1.442695, %v2760_v2  ;;  %2891 = vmatpush.msrb.mxu0 %v6248_v26 }
0x11eb   :  { %2791 = vmatmul.f32.gmra.mxu2 %v8097_v54 }
0x11ec   :  { %6423 = vpow2.f32 %v2767_v32  ;;  %2892 = vmatpush.msrb.mxu0 %v6249_v41 }
0x11ef   :  { %v6242_v28 = vpop.permute.xlu1 %6241 }
0x11f0   :  { %v6243_v45 = vunpack.i.l.bf16 %v6242_v28  ;;  %v6244_v4 = vunpack.i.h.bf16 %v6242_v28 }
0x11f2   :  { %v8100_v5 = vpop.eup %6423  ;;  %3005 = vmatpush.msrb.mxu2 %v6243_v45 }
0x11f3   :  { %2794 = vmatmul.f32.gmra.mxu2 %v8100_v5 }
0x11f4   :  { %3006 = vmatpush.msrb.mxu2 %v6244_v4  ;;  %v5988_v4 = vld [vmem:[%s9150_s8 + $0xf0] sm:$0xff] }
0x11f7   :  { %v6262_v49 = vpop.permute.xlu1 %6261 }
0x11f8   :  { %v6263_v30 = vunpack.i.l.bf16 %v6262_v49  ;;  %v6264_v53 = vunpack.i.h.bf16 %v6262_v49 }
0x11fa   :  { %v6252_v51 = vpop.permute.xlu0 %6251  ;;  %2893 = vmatpush.msrb.mxu0 %v6263_v30  ;;  %v5987_v30 = vld [vmem:[%s9150_s8 + $0xe8] sm:$0xff] }
0x11fb   :  { %v6253_v17 = vunpack.i.l.bf16 %v6252_v51  ;;  %v6254_v58 = vunpack.i.h.bf16 %v6252_v51 }
0x11fc   :  { %2894 = vmatpush.msrb.mxu0 %v6264_v53  ;;  %v5986_v53 = vld [vmem:[%s9150_s8 + $0xe0] sm:$0xff] }
0x11fd   :  { %3007 = vmatpush.msrb.mxu2 %v6253_v17 }
0x11ff   :  { %3008 = vmatpush.msrb.mxu2 %v6254_v58 }
0x1202   :  { %v6257_v7 = vpop.permute.xlu0 %6256 }
0x1203   :  { %v6258_v8 = vunpack.i.l.bf16 %v6257_v7  ;;  %v6259_v10 = vunpack.i.h.bf16 %v6257_v7 }
0x1205   :  { %2948 = vmatpush.msrb.mxu1 %v6258_v8 }
0x1207   :  { %2949 = vmatpush.msrb.mxu1 %v6259_v10 }
0x120a   :  { %v6267_v1 = vpop.permute.xlu0 %6266 }
0x120b   :  { %v6268_v15 = vunpack.i.l.bf16 %v6267_v1  ;;  %v6269_v21 = vunpack.i.h.bf16 %v6267_v1 }
0x120d   :  { %2950 = vmatpush.msrb.mxu1 %v6268_v15  ;;  %v5985_v15 = vld [vmem:[%s9150_s8 + $0xd8] sm:$0xff] }
0x120f   :  { %2951 = vmatpush.msrb.mxu1 %v6269_v21  ;;  %v5984_v21 = vld [vmem:[%s9150_s8 + $0xd0] sm:$0xff] }
0x125e   :  { %v2786_v6 = vpop.f32.mrf.mxu2 }
0x125f   :  { %v2787_v20 = vadd.f32 1e-37, %v2786_v6  ;;  %v5983_v6 = vld [vmem:[%s9150_s8 + $0xc8] sm:$0xff] }
0x1261   :  { %6425 = vrcp.f32 %v2787_v20  ;;  %v5982_v20 = vld [vmem:[%s9150_s8 + $0xc0] sm:$0xff] }
0x1266   :  { %v2789_v40 = vpop.f32.mrf.mxu2 }
0x1267   :  { %v6426_v42 = vpop.eup %6425  ;;  %v2790_v37 = vadd.f32 1e-37, %v2789_v40  ;;  %v5978_v40 = vld [vmem:[%s9150_s8 + $0xa0] sm:$0xff] }
0x1268   :  { %v2802_v14 = vmul.f32 %v6426_v42, %v6418_v22  ;;  %v5977_v42 = vld [vmem:[%s9150_s8 + $0x98] sm:$0xff] }
0x1269   :  { %6427 = vrcp.f32 %v2790_v37  ;;  %v5976_v37 = vld [vmem:[%s9150_s8 + $0x90] sm:$0xff] }
0x126a   :  { %5957 = vmatmul.msk.f32.vlgmr.msra.gmra.mxu3 %vm259_vm1, %v2802_v14  ;;  %2908 = vrot.lane.b32.xlu1 %v2802_v14, %s6893_s27 }
0x126b   :  { %2965 = vrot.lane.b32.xlu2 %v2802_v14, %s6894_s6 }
0x126e   :  { %v2792_v34 = vpop.f32.mrf.mxu2 }
0x126f   :  { %v6428_v33 = vpop.eup %6427  ;;  %v2793_v43 = vadd.f32 1e-37, %v2792_v34 }
0x1270   :  { %v2803_v13 = vmul.f32 %v6428_v33, %v8094_v0 }
0x1271   :  { %6429 = vrcp.f32 %v2793_v43 }
0x1272   :  { %2910 = vrot.lane.b32.xlu1 %v2803_v13, %s6893_s27  ;;  %5958 = vmatmul.msk.f32.gmra.mxu3 %vm259_vm1, %v2803_v13 }
0x1273   :  { %2847 = vrot.lane.b32.xlu2 %v2802_v14, %s6895_s12  ;;  %2967 = vrot.lane.b32.xlu0 %v2803_v13, %s6894_s6  ;;  %v5975_v14 = vld [vmem:[%s9150_s8 + $0x88] sm:$0xff] }
0x1276   :  { %v2795_v18 = vpop.f32.mrf.mxu2 }
0x1277   :  { %v6430_v62 = vpop.eup %6429  ;;  %v2796_v39 = vadd.f32 1e-37, %v2795_v18 }
0x1278   :  { %v2804_v3 = vmul.f32 %v6430_v62, %v8097_v54 }
0x1279   :  { %6431 = vrcp.f32 %v2796_v39 }
0x127a   :  { %2912 = vrot.lane.b32.xlu1 %v2804_v3, %s6893_s27  ;;  %5959 = vmatmul.msk.f32.gmra.mxu3 %vm259_vm1, %v2804_v3 }
0x127b   :  { %2849 = vrot.lane.b32.xlu2 %v2803_v13, %s6895_s12  ;;  %2969 = vrot.lane.b32.xlu0 %v2804_v3, %s6894_s6 }
0x127f   :  { %v6432_v25 = vpop.eup %6431 }
0x1280   :  { %v2805_v50 = vmul.f32 %v6432_v25, %v8100_v5  ;;  %v5989_v5 = vld [vmem:[%s9150_s8 + $0xf8] sm:$0xff] }
0x1281   :  { %3147 = vmatpush.msra.mxu0 %v5989_v5 }
0x1282   :  { %2914 = vrot.lane.b32.xlu1 %v2805_v50, %s6893_s27  ;;  %5960 = vmatmul.msk.f32.gmra.mxu3 %vm259_vm1, %v2805_v50 }
0x1283   :  { %2851 = vrot.lane.b32.xlu2 %v2804_v3, %s6895_s12  ;;  %2971 = vrot.lane.b32.xlu0 %v2805_v50, %s6894_s6 }
0x1284   :  { %3148 = vmatpush.msra.mxu0 %v5988_v4 }
0x1286   :  { %3149 = vmatpush.msra.mxu0 %v5987_v30  ;;  %v3204_v30 = vld [vmem:[#allocation13 + $0x50] sm:$0xff] }
0x1288   :  { %3150 = vmatpush.msra.mxu0 %v5986_v53  ;;  %v3203_v53 = vld [vmem:[#allocation13 + $0x48] sm:$0xff] }
0x128a   :  { %5990 = vmatmul.msk.f32.vlgmr.msrb.gmra.mxu3 %vm259_vm1, %v7767_v48  ;;  %3151 = vmatpush.msra.mxu0 %v5985_v15 }
0x128b   :  { %2853 = vrot.lane.b32.xlu2 %v2805_v50, %s6895_s12 }
0x128c   :  { %3152 = vmatpush.msra.mxu0 %v5984_v21 }
0x128e   :  { %3153 = vmatpush.msra.mxu0 %v5983_v6 }
0x1290   :  { %3154 = vmatpush.msra.mxu0 %v5982_v20 }
0x1292   :  { %5991 = vmatmul.msk.f32.gmra.mxu3 %vm259_vm1, %v7777_v56  ;;  %3155 = vmatpush.msra.mxu0 %v5981_v11 }
0x1294   :  { %3156 = vmatpush.msra.mxu0 %v5980_v35 }
0x1296   :  { %3157 = vmatpush.msra.mxu0 %v5979_v27 }
0x1298   :  { %3158 = vmatpush.msra.mxu0 %v5978_v40 }
0x129a   :  { %5992 = vmatmul.msk.f32.gmra.mxu3 %vm259_vm1, %v7782_v9  ;;  %3159 = vmatpush.msra.mxu0 %v5977_v42 }
0x129c   :  { %3160 = vmatpush.msra.mxu0 %v5976_v37 }
0x129e   :  { %3161 = vmatpush.msra.mxu0 %v5975_v14 }
0x12a0   :  { %3162 = vmatpush.msra.mxu0 %v5974_v38 }
0x12a2   :  { %5993 = vmatmul.msk.f32.gmra.mxu3 %vm259_vm1, %v7772_v24 }
0x12c5   :  { %v2966_v57 = vpop.permute.xlu2 %2965 }
0x12c6   :  { %5969 = vmatmul.msk.f32.vlgmr.msrb.gmra.mxu2 %vm259_vm1, %v2966_v57 }
0x12cd   :  { %v2848_v55 = vpop.permute.xlu2 %2847 }
0x12ce   :  { %5961 = vmatmul.msk.f32.vlgmr.msrb.gmra.mxu0 %vm259_vm1, %v2848_v55 }
0x12d5   :  { %v2850_v22 = vpop.permute.xlu2 %2849 }
0x12d6   :  { %5962 = vmatmul.msk.f32.gmra.mxu0 %vm259_vm1, %v2850_v22 }
0x12dc   :  { %v2909_v44 = vpop.permute.xlu1 %2908 }
0x12dd   :  { %v2852_v31 = vpop.permute.xlu2 %2851  ;;  %5965 = vmatmul.msk.f32.vlgmr.msrb.gmra.mxu1 %vm259_vm1, %v2909_v44 }
0x12de   :  { %5963 = vmatmul.msk.f32.gmra.mxu0 %vm259_vm1, %v2852_v31 }
0x12e4   :  { %v2911_v19 = vpop.permute.xlu1 %2910 }
0x12e5   :  { %v2968_v0 = vpop.permute.xlu0 %2967  ;;  %v2854_v47 = vpop.permute.xlu2 %2853  ;;  %5966 = vmatmul.msk.f32.gmra.mxu1 %vm259_vm1, %v2911_v19 }
0x12e6   :  { %5964 = vmatmul.msk.f32.gmra.mxu0 %vm259_vm1, %v2854_v47  ;;  %5970 = vmatmul.msk.f32.gmra.mxu2 %vm259_vm1, %v2968_v0 }
0x12ec   :  { %v2913_v12 = vpop.permute.xlu1 %2912 }
0x12ed   :  { %v2970_v63 = vpop.permute.xlu0 %2969  ;;  %5967 = vmatmul.msk.f32.gmra.mxu1 %vm259_vm1, %v2913_v12  ;;  %v2835_v34 = vpop.f32.mrf.mxu3 }
0x12ee   :  { %5971 = vmatmul.msk.f32.gmra.mxu2 %vm259_vm1, %v2970_v63 }
0x12f4   :  { %v2915_v2 = vpop.permute.xlu1 %2914 }
0x12f5   :  { %v2972_v26 = vpop.permute.xlu0 %2971  ;;  %5968 = vmatmul.msk.f32.gmra.mxu1 %vm259_vm1, %v2915_v2  ;;  %v2838_v25 = vpop.f32.mrf.mxu3 }
0x12f6   :  { %5972 = vmatmul.msk.f32.gmra.mxu2 %vm259_vm1, %v2972_v26 }
0x12fd   :  { %v2841_v0 = vpop.f32.mrf.mxu3 }
0x1349   :  { %v3010_v54 = vpop.f32.mrf.mxu2 }
0x134a   :  { %3058 = vrot.lane.b32.xlu1 %v3010_v54, %s6895_s12 }
0x134b   :  { %v2896_v32 = vpop.f32.mrf.mxu0 }
0x1353   :  { %v2899_v41 = vpop.f32.mrf.mxu0 }
0x1354   :  { %v6270_v28 = vpack.i.bf16 %v2899_v41, %v2896_v32  ;;  %v2844_v32 = vpop.f32.mrf.mxu3 }
0x1356   :  { %6271 = vrot.lane.b32.xlu0 %v6270_v28, %s6894_s6 }
0x135a   :  { %v2953_v45 = vpop.f32.mrf.mxu1 }
0x135b   :  { %v2902_v49 = vpop.f32.mrf.mxu0  ;;  %3042 = vrot.lane.b32.xlu2 %v2953_v45, %s6893_s27 }
0x135c   :  { %3030 = vrot.lane.b32.xlu1 %v2902_v49, %s6894_s6  ;;  %v3205_v49 = vld [vmem:[#allocation13 + $0x58] sm:$0xff] }
0x135d   :  { %3230 = vmatpush.msra.mxu1 %v3205_v49 }
0x135f   :  { %3231 = vmatpush.msra.mxu1 %v3204_v30 }
0x1361   :  { %3232 = vmatpush.msra.mxu1 %v3203_v53 }
0x1362   :  { %v2956_v51 = vpop.f32.mrf.mxu1 }
0x1363   :  { %v2905_v17 = vpop.f32.mrf.mxu0  ;;  %3044 = vrot.lane.b32.xlu0 %v2956_v51, %s6893_s27  ;;  %v3202_v51 = vld [vmem:[#allocation13 + $0x40] sm:$0xff] }
0x1364   :  { %3032 = vrot.lane.b32.xlu1 %v2905_v17, %s6894_s6  ;;  %3233 = vmatpush.msra.mxu1 %v3202_v51  ;;  %v3135_v17 = vpop.f32.mrf.mxu3 }
0x1369   :  { %v3013_v58 = vpop.f32.mrf.mxu2 }
0x136a   :  { %3060 = vrot.lane.b32.xlu2 %v3013_v58, %s6895_s12  ;;  %v2959_v7 = vpop.f32.mrf.mxu1  ;;  %v8216_v58 = vld [vmem:[%s9153_s11 + $0x8] sm:$0x1f] }
0x136b   :  { %3046 = vrot.lane.b32.xlu0 %v2959_v7, %s6893_s27  ;;  %v3176_v7 = vperm.slane %v8216_v58, 0  ;;  %v3267_v40 = vperm.slane %v8216_v58, 2 }
0x136c   :  { %v3138_v21 = vpop.f32.mrf.mxu3 }
0x1371   :  { %v3016_v8 = vpop.f32.mrf.mxu2 }
0x1372   :  { %3062 = vrot.lane.b32.xlu2 %v3016_v8, %s6895_s12  ;;  %v2962_v10 = vpop.f32.mrf.mxu1 }
0x1373   :  { %3048 = vrot.lane.b32.xlu0 %v2962_v10, %s6893_s27 }
0x1374   :  { %v3141_v37 = vpop.f32.mrf.mxu3 }
0x1379   :  { %v3019_v1 = vpop.f32.mrf.mxu2 }
0x137a   :  { %3064 = vrot.lane.b32.xlu2 %v3019_v1, %s6895_s12 }
0x137b   :  { %3269 = vrot.lane.b32.xlu0 %v3267_v40, %s6893_s27 }
0x13b5   :  { %v3043_v13 = vpop.permute.xlu2 %3042 }
0x13bc   :  { %v3059_v62 = vpop.permute.xlu1 %3058 }
0x13c4   :  { %v3061_v57 = vpop.permute.xlu2 %3060 }
0x13c8   :  { %v6272_v33 = vpop.permute.xlu0 %6271 }
0x13c9   :  { %v6273_v43 = vunpack.i.l.bf16 %v6272_v33  ;;  %v6274_v50 = vunpack.i.h.bf16 %v6272_v33 }
0x13cb   :  { %v3070_v18 = vsel %vm259_vm1, %v2835_v34, %v6273_v43  ;;  %v3071_v22 = vsel %vm259_vm1, %v2838_v25, %v6274_v50 }
0x13cc   :  { %v3074_v39 = vsel %vm678_vm15, %v3070_v18, %v3043_v13  ;;  %v3063_v47 = vpop.permute.xlu2 %3062 }
0x13cd   :  { %v3078_v3 = vsel %vm1057_vm0, %v3074_v39, %v3059_v62  ;;  %v3144_v39 = vpop.f32.mrf.mxu3 }
0x13ce   :  { %3163 = vmatmul.f32.vlgmr.msra.gmra.mxu0 %v3078_v3  ;;  %v3031_v19 = vpop.permute.xlu1 %3030 }
0x13cf   :  { %v3072_v12 = vsel %vm259_vm1, %v2841_v0, %v3031_v19 }
0x13d4   :  { %v3065_v45 = vpop.permute.xlu2 %3064 }
0x13d5   :  { %v3045_v55 = vpop.permute.xlu0 %3044 }
0x13d6   :  { %v3075_v44 = vsel %vm678_vm15, %v3071_v22, %v3045_v55  ;;  %v3033_v54 = vpop.permute.xlu1 %3032 }
0x13d7   :  { %v3079_v31 = vsel %vm1057_vm0, %v3075_v44, %v3061_v57  ;;  %v3073_v41 = vsel %vm259_vm1, %v2844_v32, %v3033_v54 }
0x13d8   :  { %3166 = vmatmul.f32.gmra.mxu0 %v3079_v31 }
0x13dd   :  { %v3047_v63 = vpop.permute.xlu0 %3046 }
0x13de   :  { %v3076_v2 = vsel %vm678_vm15, %v3072_v12, %v3047_v63 }
0x13df   :  { %v3080_v26 = vsel %vm1057_vm0, %v3076_v2, %v3063_v47 }
0x13e0   :  { %3169 = vmatmul.f32.gmra.mxu0 %v3080_v26 }
0x13e5   :  { %v3049_v28 = vpop.permute.xlu0 %3048 }
0x13e6   :  { %v3077_v5 = vsel %vm678_vm15, %v3073_v41, %v3049_v28 }
0x13e7   :  { %v3081_v4 = vsel %vm1057_vm0, %v3077_v5, %v3065_v45 }
0x13e8   :  { %3172 = vmatmul.f32.gmra.mxu0 %v3081_v4 }
0x13ed   :  { %v3270_v45 = vpop.permute.xlu0 %3269 }
0x144b   :  { %v3164_v8 = vpop.f32.mrf.mxu0 }
0x144c   :  { %v3165_v10 = vadd.f32 %v3164_v8, %v3135_v17 }
0x144e   :  { %v8219_v1 = vadd.f32 %v3176_v7, %v3165_v10 }
0x1450   :  { %v3181_v15 = vmul.f32 0.5, %v8219_v1 }
0x1452   :  { %6433 = vtanh.f32 %v3181_v15 }
0x1455   :  { %v3167_v6 = vpop.f32.mrf.mxu0 }
0x1456   :  { %v3168_v20 = vadd.f32 %v3167_v6, %v3138_v21 }
0x1458   :  { %v6434_v11 = vpop.eup %6433  ;;  %v3178_v35 = vadd.f32 %v3176_v7, %v3168_v20 }
0x1459   :  { %v3189_v27 = vadd.f32 1.0, %v6434_v11 }
0x145a   :  { %v3182_v42 = vmul.f32 0.5, %v3178_v35 }
0x145b   :  { %v8223_v14 = vmul.f32 0.5, %v3189_v27 }
0x145c   :  { %6435 = vtanh.f32 %v3182_v42 }
0x145d   :  { %v3197_v38 = vmul.f32 %v8223_v14, %v7767_v48  ;;  %v3170_v34 = vpop.f32.mrf.mxu0 }
0x145e   :  { %v3171_v33 = vadd.f32 %v3170_v34, %v3141_v37 }
0x145f   :  { %5994 = vmatmul.msk.f32.vlgmr.msra.gmra.mxu1 %vm259_vm1, %v3197_v38 }
0x1460   :  { %v3179_v43 = vadd.f32 %v3176_v7, %v3171_v33 }
0x1462   :  { %v6436_v13 = vpop.eup %6435  ;;  %v3183_v18 = vmul.f32 0.5, %v3179_v43 }
0x1463   :  { %v3190_v62 = vadd.f32 1.0, %v6436_v13 }
0x1464   :  { %6437 = vtanh.f32 %v3183_v18 }
0x1465   :  { %v8229_v3 = vmul.f32 0.5, %v3190_v62  ;;  %v3173_v25 = vpop.f32.mrf.mxu0 }
0x1466   :  { %v3174_v50 = vadd.f32 %v3173_v25, %v3144_v39 }
0x1467   :  { %v3198_v57 = vmul.f32 %v8229_v3, %v7777_v56 }
0x1468   :  { %v3180_v55 = vadd.f32 %v3176_v7, %v3174_v50 }
0x1469   :  { %5995 = vmatmul.msk.f32.gmra.mxu1 %vm259_vm1, %v3198_v57 }
0x146a   :  { %v6438_v22 = vpop.eup %6437  ;;  %v3184_v44 = vmul.f32 0.5, %v3180_v55 }
0x146b   :  { %v3191_v31 = vadd.f32 1.0, %v6438_v22  ;;  %v3487_v22 = vld [vmem:[#allocation11 + $0x70] sm:$0xff] }
0x146c   :  { %6439 = vtanh.f32 %v3184_v44 }
0x146d   :  { %v3195_v19 = vmul.f32 0.5, %v3191_v31  ;;  %v3486_v31 = vld [vmem:[#allocation11 + $0x68] sm:$0xff] }
0x146f   :  { %v3199_v0 = vmul.f32 %v3195_v19, %v7782_v9 }
0x1471   :  { %5996 = vmatmul.msk.f32.gmra.mxu1 %vm259_vm1, %v3199_v0 }
0x1472   :  { %v6440_v47 = vpop.eup %6439 }
0x1473   :  { %v3192_v12 = vadd.f32 1.0, %v6440_v47 }
0x1475   :  { %v3196_v63 = vmul.f32 0.5, %v3192_v12 }
0x1477   :  { %v3200_v2 = vmul.f32 %v3196_v63, %v7772_v24 }
0x1479   :  { %5997 = vmatmul.msk.f32.gmra.mxu1 %vm259_vm1, %v3200_v2 }
0x14dc   :  { %v3235_v26 = vpop.f32.mrf.mxu1 }
0x14dd   :  { %3251 = vrot.lane.b32.xlu1 %v3235_v26, %s6893_s27 }
0x14e5   :  { %3280 = vrot.lane.b32.xlu1 %v7767_v48, %s6893_s27 }
0x14e6   :  { %v3238_v54 = vpop.f32.mrf.mxu1 }
0x14e7   :  { %3253 = vrot.lane.b32.xlu2 %v3238_v54, %s6893_s27 }
0x14ee   :  { %v3241_v32 = vpop.f32.mrf.mxu1 }
0x14ef   :  { %3282 = vrot.lane.b32.xlu2 %v7777_v56, %s6893_s27  ;;  %3255 = vrot.lane.b32.xlu0 %v3241_v32, %s6893_s27 }
0x14f6   :  { %v3244_v41 = vpop.f32.mrf.mxu1 }
0x14f7   :  { %3286 = vrot.lane.b32.xlu2 %v7772_v24, %s6893_s27  ;;  %3284 = vrot.lane.b32.xlu0 %v7782_v9, %s6893_s27 }
0x14f8   :  { %3257 = vrot.lane.b32.xlu1 %v3244_v41, %s6893_s27 }
0x1541   :  { %v3254_v28 = vpop.permute.xlu2 %3253 }
0x1542   :  { %v3264_v5 = vadd.f32 %v3254_v28, %v3178_v35 }
0x1544   :  { %v3273_v4 = vadd.f32 %v3270_v45, %v3264_v5 }
0x1546   :  { %6441 = vtanh.f32 %v3273_v4 }
0x1549   :  { %v3283_v30 = vpop.permute.xlu2 %3282 }
0x154c   :  { %v6442_v49 = vpop.eup %6441 }
0x154d   :  { %v3293_v53 = vsub.f32 %v6442_v49, %v3283_v30 }
0x154f   :  { %v3252_v51 = vpop.permute.xlu1 %3251  ;;  %3302 = vrot.lane.b32.xlu0 %v3293_v53, %s6895_s12 }
0x1550   :  { %v3263_v17 = vadd.f32 %v3252_v51, %v8219_v1 }
0x1551   :  { %v3287_v38 = vpop.permute.xlu2 %3286 }
0x1552   :  { %v3272_v7 = vadd.f32 %v3270_v45, %v3263_v17 }
0x1554   :  { %6443 = vtanh.f32 %v3272_v7 }
0x1557   :  { %v3281_v10 = vpop.permute.xlu1 %3280 }
0x155a   :  { %v6444_v8 = vpop.eup %6443 }
0x155b   :  { %v3292_v15 = vsub.f32 %v6444_v8, %v3281_v10  ;;  %v3662_v8 = vperm.slane %v8216_v58, 3 }
0x155d   :  { %3300 = vrot.lane.b32.xlu1 %v3292_v15, %s6895_s12 }
0x1561   :  { %v3256_v21 = vpop.permute.xlu0 %3255 }
0x1562   :  { %v3265_v6 = vadd.f32 %v3256_v21, %v3179_v43 }
0x1564   :  { %v3274_v20 = vadd.f32 %v3270_v45, %v3265_v6 }
0x1566   :  { %6445 = vtanh.f32 %v3274_v20 }
0x1569   :  { %v3285_v40 = vpop.permute.xlu0 %3284 }
0x156a   :  { %v3258_v11 = vpop.permute.xlu1 %3257 }
0x156b   :  { %v3266_v35 = vadd.f32 %v3258_v11, %v3180_v55  ;;  %v3428_v11 = vld [vmem:[#allocation14 + $0x38] sm:$0xff] }
0x156c   :  { %v6446_v27 = vpop.eup %6445  ;;  %3454 = vmatpush.msra.mxu2 %v3428_v11 }
0x156d   :  { %v3294_v42 = vsub.f32 %v6446_v27, %v3285_v40  ;;  %v3275_v37 = vadd.f32 %v3270_v45, %v3266_v35  ;;  %v3427_v35 = vld [vmem:[#allocation14 + $0x30] sm:$0xff]  ;;  %v3426_v40 = vld [vmem:[#allocation14 + $0x28] sm:$0xff] }
0x156e   :  { %3455 = vmatpush.msra.mxu2 %v3427_v35 }
0x156f   :  { %6447 = vtanh.f32 %v3275_v37  ;;  %3304 = vrot.lane.b32.xlu2 %v3294_v42, %s6895_s12  ;;  %v3425_v37 = vld [vmem:[#allocation14 + $0x20] sm:$0xff] }
0x1570   :  { %3456 = vmatpush.msra.mxu2 %v3426_v40 }
0x1572   :  { %3457 = vmatpush.msra.mxu2 %v3425_v37  ;;  %v3478_v37 = vld [vmem:[#allocation16 + $0x50] sm:$0xff] }
0x1575   :  { %v6448_v1 = vpop.eup %6447 }
0x1576   :  { %v3295_v34 = vsub.f32 %v6448_v1, %v3287_v38 }
0x1578   :  { %3306 = vrot.lane.b32.xlu1 %v3295_v34, %s6895_s12 }
0x15c1   :  { %v3303_v33 = vpop.permute.xlu0 %3302 }
0x15c2   :  { %v3313_v13 = vmul.f32 %v3303_v33, %v8229_v3  ;;  %v3488_v3 = vld [vmem:[#allocation11 + $0x78] sm:$0xff] }
0x15c3   :  { %3513 = vmatpush.msra.mxu3 %v3488_v3 }
0x15c4   :  { %3322 = vrot.lane.b32.xlu2 %v3313_v13, %s6895_s12 }
0x15c5   :  { %3514 = vmatpush.msra.mxu3 %v3487_v22 }
0x15c7   :  { %3515 = vmatpush.msra.mxu3 %v3486_v31 }
0x15c9   :  { %v3305_v43 = vpop.permute.xlu2 %3304 }
0x15ca   :  { %v3314_v18 = vmul.f32 %v3305_v43, %v3195_v19 }
0x15cc   :  { %3324 = vrot.lane.b32.xlu1 %v3314_v18, %s6895_s12 }
0x15cf   :  { %v3301_v62 = vpop.permute.xlu1 %3300 }
0x15d0   :  { %v3312_v39 = vmul.f32 %v3301_v62, %v8223_v14  ;;  %v3485_v14 = vld [vmem:[#allocation11 + $0x60] sm:$0xff] }
0x15d1   :  { %3516 = vmatpush.msra.mxu3 %v3485_v14 }
0x15d2   :  { %3320 = vrot.lane.b32.xlu0 %v3312_v39, %s6895_s12 }
0x15ea   :  { %v3307_v25 = vpop.permute.xlu1 %3306 }
0x15eb   :  { %v3315_v50 = vmul.f32 %v3307_v25, %v3196_v63 }
0x15ed   :  { %3326 = vrot.lane.b32.xlu0 %v3315_v50, %s6895_s12 }
0x161e   :  { %v3323_v57 = vpop.permute.xlu2 %3322 }
0x161f   :  { %v8262_v55 = vadd.f32 %v3323_v57, %v7777_v56 }
0x1621   :  { %v3339_v44 = vsel %vm259_vm1, %v8262_v55, 0.0 }
0x1622   :  { %3340 = vadd.xlane.f32.xlu1 %v3339_v44 }
0x163e   :  { %v3325_v19 = vpop.permute.xlu1 %3324 }
0x163f   :  { %v8267_v0 = vadd.f32 %v3325_v19, %v7782_v9 }
0x1641   :  { %v3342_v56 = vsel %vm259_vm1, %v8267_v0, 0.0 }
0x1642   :  { %3343 = vadd.xlane.f32.xlu0 %v3342_v56 }
0x1644   :  { %v3321_v47 = vpop.permute.xlu0 %3320 }
0x1645   :  { %v8272_v12 = vadd.f32 %v3321_v47, %v7767_v48 }
0x1647   :  { %6002 = vmatmul.msk.f32.vlgmr.msra.gmra.mxu3 %vm259_vm1, %v8272_v12  ;;  %v3336_v63 = vsel %vm259_vm1, %v8272_v12, 0.0 }
0x1648   :  { %3337 = vadd.xlane.f32.xlu2 %v3336_v63 }
0x164f   :  { %6003 = vmatmul.msk.f32.gmra.mxu3 %vm259_vm1, %v8262_v55 }
0x1657   :  { %6004 = vmatmul.msk.f32.gmra.mxu3 %vm259_vm1, %v8267_v0 }
0x165f   :  { %v3327_v9 = vpop.permute.xlu0 %3326 }
0x1660   :  { %v8283_v2 = vadd.f32 %v3327_v9, %v7772_v24  ;;  %v3483_v9 = vld [vmem:[#allocation16 + $0x78] sm:$0xff] }
0x1661   :  { %3550 = vmatpush.msrb.mxu0 %v3483_v9 }
0x1662   :  { %6005 = vmatmul.msk.f32.gmra.mxu3 %vm259_vm1, %v8283_v2  ;;  %v3345_v48 = vsel %vm259_vm1, %v8283_v2, 0.0 }
0x1663   :  { %3346 = vadd.xlane.f32.xlu2 %v3345_v48  ;;  %v3482_v48 = vld [vmem:[#allocation16 + $0x70] sm:$0xff] }
0x1664   :  { %3551 = vmatpush.msrb.mxu0 %v3482_v48 }
0x1695   :  { %v3341_v26 = vpop.xlane.xlu1 %3340 }
0x1696   :  { %v3349_v54 = vmul.f32 %v3341_v26, %v7102_v46 }
0x1698   :  { %v8291_v32 = vsub.f32 %v8262_v55, %v3349_v54  ;;  %v3481_v54 = vld [vmem:[#allocation16 + $0x68] sm:$0xff] }
0x1699   :  { %3552 = vmatpush.msrb.mxu0 %v3481_v54 }
0x169a   :  { %v3357_v41 = vmul.f32 %v8291_v32, %v8291_v32 }
0x169c   :  { %v3363_v28 = vsel %vm259_vm1, %v3357_v41, 0.0 }
0x169d   :  { %3364 = vadd.xlane.f32.xlu2 %v3363_v28 }
0x16b5   :  { %v3344_v24 = vpop.xlane.xlu0 %3343 }
0x16b6   :  { %v3350_v45 = vmul.f32 %v3344_v24, %v7102_v46 }
0x16b8   :  { %v8298_v5 = vsub.f32 %v8267_v0, %v3350_v45  ;;  %v3480_v45 = vld [vmem:[#allocation16 + $0x60] sm:$0xff] }
0x16b9   :  { %3553 = vmatpush.msrb.mxu0 %v3480_v45 }
0x16ba   :  { %v3358_v4 = vmul.f32 %v8298_v5, %v8298_v5 }
0x16bb   :  { %v3338_v49 = vpop.xlane.xlu2 %3337 }
0x16bc   :  { %v3348_v30 = vmul.f32 %v3338_v49, %v7102_v46  ;;  %v3366_v53 = vsel %vm259_vm1, %v3358_v4, 0.0  ;;  %v3479_v4 = vld [vmem:[#allocation16 + $0x58] sm:$0xff] }
0x16bd   :  { %3367 = vadd.xlane.f32.xlu0 %v3366_v53  ;;  %3554 = vmatpush.msrb.mxu0 %v3479_v4 }
0x16be   :  { %v3352_v51 = vsub.f32 %v8272_v12, %v3348_v30 }
0x16bf   :  { %3555 = vmatpush.msrb.mxu0 %v3478_v37 }
0x16c0   :  { %v3356_v17 = vmul.f32 %v3352_v51, %v3352_v51 }
0x16c2   :  { %v3360_v7 = vsel %vm259_vm1, %v3356_v17, 0.0 }
0x16c3   :  { %3361 = vadd.xlane.f32.xlu1 %v3360_v7 }
0x16d1   :  { %3664 = vrot.lane.b32.xlu0 %v3662_v8, %s6893_s27 }
0x16d6   :  { %v3347_v10 = vpop.xlane.xlu2 %3346 }
0x16d7   :  { %v3351_v15 = vmul.f32 %v3347_v10, %v7102_v46 }
0x16d9   :  { %v8310_v21 = vsub.f32 %v8283_v2, %v3351_v15  ;;  %3675 = vrot.lane.b32.xlu0 %v8272_v12, %s6893_s27 }
0x16db   :  { %v3359_v6 = vmul.f32 %v8310_v21, %v8310_v21 }
0x16dd   :  { %v3369_v20 = vsel %vm259_vm1, %v3359_v6, 0.0 }
0x16de   :  { %3370 = vadd.xlane.f32.xlu1 %v3369_v20 }
0x1710   :  { %v3365_v27 = vpop.xlane.xlu2 %3364 }
0x1711   :  { %v3373_v42 = vmul.f32 %v3365_v27, %v7102_v46 }
0x1713   :  { %v3377_v1 = vadd.f32 1e-05, %v3373_v42 }
0x1715   :  { %6449 = vrsqrt.f32 %v3377_v1  ;;  %vm3396_vm4 = vweird.f32 %v3377_v1 }
0x171b   :  { %v6450_v62 = vpop.eup %6449 }
0x171c   :  { %v3391_v39 = vmul.f32 %v6450_v62, %v3377_v1  ;;  %vm3397_vm3 = vweird.f32 %v6450_v62  ;;  %v3477_v1 = vld [vmem:[#allocation16 + $0x48] sm:$0xff] }
0x171d   :  { %vm3398_vm5 = vmor %vm3396_vm4, %vm3397_vm3  ;;  %3556 = vmatpush.msrb.mxu0 %v3477_v1 }
0x171e   :  { %v3392_v50 = vmul.f32 %v6450_v62, %v3391_v39 }
0x1720   :  { %v3393_v44 = vmul.f32 0.5, %v3392_v50 }
0x1722   :  { %v3394_v56 = vsub.f32 1.5, %v3393_v44  ;;  %v3599_v44 = vld [vmem:[#allocation13 + $0x70] sm:$0xff] }
0x1724   :  { %v3395_v28 = vmul.f32 %v6450_v62, %v3394_v56  ;;  %v3571_v56 = vperm.slane %v8216_v58, 1 }
0x1726   :  { %v3399_v17 = vsel %vm3398_vm5, %v6450_v62, %v3395_v28 }
0x1730   :  { %v3368_v38 = vpop.xlane.xlu0 %3367 }
0x1731   :  { %v3374_v34 = vmul.f32 %v3368_v38, %v7102_v46  ;;  %v3476_v38 = vld [vmem:[#allocation16 + $0x40] sm:$0xff] }
0x1732   :  { %3557 = vmatpush.msrb.mxu0 %v3476_v38 }
0x1733   :  { %v3378_v43 = vadd.f32 1e-05, %v3374_v34 }
0x1735   :  { %vm3406_vm7 = vweird.f32 %v3378_v43 }
0x1736   :  { %v3362_v33 = vpop.xlane.xlu1 %3361 }
0x1737   :  { %v3372_v13 = vmul.f32 %v3362_v33, %v7102_v46 }
0x1739   :  { %v3376_v18 = vadd.f32 1e-05, %v3372_v13 }
0x173b   :  { %6451 = vrsqrt.f32 %v3376_v18  ;;  %vm3386_vm14 = vweird.f32 %v3376_v18 }
0x173c   :  { %6453 = vrsqrt.f32 %v3378_v43 }
0x1741   :  { %v6452_v25 = vpop.eup %6451 }
0x1742   :  { %v3381_v57 = vmul.f32 %v6452_v25, %v3376_v18  ;;  %v6454_v3 = vpop.eup %6453  ;;  %vm3387_vm13 = vweird.f32 %v6452_v25 }
0x1743   :  { %v3401_v31 = vmul.f32 %v6454_v3, %v3378_v43  ;;  %vm3388_vm2 = vmor %vm3386_vm14, %vm3387_vm13  ;;  %vm3407_vm6 = vweird.f32 %v6454_v3 }
0x1744   :  { %v3382_v22 = vmul.f32 %v6452_v25, %v3381_v57  ;;  %vm3408_vm8 = vmor %vm3406_vm7, %vm3407_vm6 }
0x1745   :  { %v3402_v47 = vmul.f32 %v6454_v3, %v3401_v31  ;;  %v3598_v31 = vld [vmem:[#allocation13 + $0x68] sm:$0xff] }
0x1746   :  { %v3383_v14 = vmul.f32 0.5, %v3382_v22  ;;  %v3600_v22 = vld [vmem:[#allocation13 + $0x78] sm:$0xff] }
0x1747   :  { %v3403_v24 = vmul.f32 0.5, %v3402_v47  ;;  %3625 = vmatpush.msrb.mxu1 %v3600_v22 }
0x1748   :  { %v3384_v19 = vsub.f32 1.5, %v3383_v14  ;;  %v3597_v14 = vld [vmem:[#allocation13 + $0x60] sm:$0xff] }
0x1749   :  { %v3404_v30 = vsub.f32 1.5, %v3403_v24  ;;  %3626 = vmatpush.msrb.mxu1 %v3599_v44 }
0x174a   :  { %v3385_v63 = vmul.f32 %v6452_v25, %v3384_v19  ;;  %v3518_v19 = vpop.f32.mrf.mxu3 }
0x174b   :  { %v3405_v8 = vmul.f32 %v6454_v3, %v3404_v30  ;;  %3627 = vmatpush.msrb.mxu1 %v3598_v31 }
0x174c   :  { %v3389_v26 = vsel %vm3388_vm2, %v6452_v25, %v3385_v63 }
0x174d   :  { %v3420_v41 = vmul.f32 %v3389_v26, %v3352_v51  ;;  %v3421_v51 = vmul.f32 %v3399_v17, %v8291_v32  ;;  %v3409_v10 = vsel %vm3408_vm8, %v6454_v3, %v3405_v8  ;;  %3628 = vmatpush.msrb.mxu1 %v3597_v14 }
0x174e   :  { %v3422_v20 = vmul.f32 %v3409_v10, %v8298_v5  ;;  %v3429_v5 = vperm.slane %v8216_v58, 4 }
0x174f   :  { %5998 = vmatmul.msk.f32.vlgmr.msra.gmra.mxu2 %vm259_vm1, %v3420_v41 }
0x1751   :  { %v3371_v49 = vpop.xlane.xlu1 %3370 }
0x1752   :  { %v3375_v53 = vmul.f32 %v3371_v49, %v7102_v46  ;;  %v3521_v26 = vpop.f32.mrf.mxu3 }
0x1754   :  { %v3379_v7 = vadd.f32 1e-05, %v3375_v53 }
0x1756   :  { %6455 = vrsqrt.f32 %v3379_v7  ;;  %vm3416_vm10 = vweird.f32 %v3379_v7 }
0x1757   :  { %5999 = vmatmul.msk.f32.gmra.mxu2 %vm259_vm1, %v3421_v51 }
0x175a   :  { %v3524_v49 = vpop.f32.mrf.mxu3 }
0x175c   :  { %v6456_v15 = vpop.eup %6455 }
0x175d   :  { %v3411_v6 = vmul.f32 %v6456_v15, %v3379_v7  ;;  %vm3417_vm9 = vweird.f32 %v6456_v15 }
0x175e   :  { %vm3418_vm11 = vmor %vm3416_vm10, %vm3417_vm9 }
0x175f   :  { %v3412_v11 = vmul.f32 %v6456_v15, %v3411_v6  ;;  %6000 = vmatmul.msk.f32.gmra.mxu2 %vm259_vm1, %v3422_v20 }
0x1761   :  { %v3413_v35 = vmul.f32 0.5, %v3412_v11 }
0x1762   :  { %v3527_v20 = vpop.f32.mrf.mxu3 }
0x1763   :  { %v3414_v27 = vsub.f32 1.5, %v3413_v35 }
0x1765   :  { %v3415_v40 = vmul.f32 %v6456_v15, %v3414_v27 }
0x1767   :  { %v3419_v32 = vsel %vm3418_vm11, %v6456_v15, %v3415_v40 }
0x1768   :  { %v3423_v42 = vmul.f32 %v3419_v32, %v8310_v21 }
0x176a   :  { %6001 = vmatmul.msk.f32.gmra.mxu2 %vm259_vm1, %v3423_v42 }
0x17d2   :  { %v3459_v34 = vpop.f32.mrf.mxu2 }
0x17d3   :  { %v3460_v33 = vadd.f32 %v3459_v34, %v3429_v5 }
0x17d5   :  { %v3471_v13 = vmax.f32 %v3460_v33, 0.0 }
0x17d7   :  { %6006 = vmatmul.msk.f32.vlgmr.msrb.gmra.mxu0 %vm678_vm15, %v3471_v13 }
0x17da   :  { %v3462_v43 = vpop.f32.mrf.mxu2 }
0x17db   :  { %v3463_v18 = vadd.f32 %v3462_v43, %v3429_v5 }
0x17dd   :  { %v3472_v62 = vmax.f32 %v3463_v18, 0.0 }
0x17df   :  { %6007 = vmatmul.msk.f32.gmra.mxu0 %vm678_vm15, %v3472_v62 }
0x17e2   :  { %v3465_v21 = vpop.f32.mrf.mxu2 }
0x17e3   :  { %v3466_v39 = vadd.f32 %v3465_v21, %v3429_v5 }
0x17e5   :  { %v3473_v25 = vmax.f32 %v3466_v39, 0.0  ;;  %v3665_v39 = vpop.permute.xlu0 %3664 }
0x17e7   :  { %6008 = vmatmul.msk.f32.gmra.mxu0 %vm678_vm15, %v3473_v25 }
0x17ed   :  { %v3468_v50 = vpop.f32.mrf.mxu2 }
0x17ee   :  { %v3469_v57 = vadd.f32 %v3468_v50, %v3429_v5 }
0x17f0   :  { %v3474_v3 = vmax.f32 %v3469_v57, 0.0 }
0x17f2   :  { %6009 = vmatmul.msk.f32.gmra.mxu0 %vm678_vm15, %v3474_v3  ;;  %v3676_v3 = vpop.permute.xlu0 %3675 }
0x1854   :  { %v3559_v47 = vpop.f32.mrf.mxu0 }
0x1855   :  { %v3560_v63 = vadd.f32 %v3559_v47, %v3518_v19 }
0x1857   :  { %v3572_v9 = vadd.f32 %v3571_v56, %v3560_v63 }
0x1859   :  { %v3576_v48 = vmul.f32 0.5, %v3572_v9 }
0x185b   :  { %6457 = vtanh.f32 %v3576_v48 }
0x185c   :  { %v3562_v54 = vpop.f32.mrf.mxu0 }
0x185d   :  { %v3563_v41 = vadd.f32 %v3562_v54, %v3521_v26 }
0x185f   :  { %v8334_v28 = vadd.f32 %v3571_v56, %v3563_v41 }
0x1861   :  { %v6458_v24 = vpop.eup %6457  ;;  %v3577_v45 = vmul.f32 0.5, %v8334_v28 }
0x1862   :  { %v3584_v4 = vadd.f32 1.0, %v6458_v24 }
0x1863   :  { %6459 = vtanh.f32 %v3577_v45 }
0x1864   :  { %v8337_v30 = vmul.f32 0.5, %v3584_v4  ;;  %v3565_v53 = vpop.f32.mrf.mxu0 }
0x1865   :  { %v3566_v58 = vadd.f32 %v3565_v53, %v3524_v49 }
0x1866   :  { %v3592_v17 = vmul.f32 %v8337_v30, %v8272_v12 }
0x1867   :  { %v3574_v7 = vadd.f32 %v3571_v56, %v3566_v58 }
0x1868   :  { %6010 = vmatmul.msk.f32.vlgmr.msrb.gmra.mxu1 %vm259_vm1, %v3592_v17 }
0x1869   :  { %v6460_v51 = vpop.eup %6459  ;;  %v3578_v8 = vmul.f32 0.5, %v3574_v7 }
0x186a   :  { %v3585_v10 = vadd.f32 1.0, %v6460_v51 }
0x186b   :  { %6461 = vtanh.f32 %v3578_v8 }
0x186c   :  { %v8342_v15 = vmul.f32 0.5, %v3585_v10 }
0x186e   :  { %v3593_v6 = vmul.f32 %v8342_v15, %v8262_v55 }
0x186f   :  { %v3568_v11 = vpop.f32.mrf.mxu0 }
0x1870   :  { %v3569_v35 = vadd.f32 %v3568_v11, %v3527_v20  ;;  %6011 = vmatmul.msk.f32.gmra.mxu1 %vm259_vm1, %v3593_v6 }
0x1871   :  { %v6462_v27 = vpop.eup %6461 }
0x1872   :  { %v3586_v40 = vadd.f32 1.0, %v6462_v27  ;;  %v3575_v32 = vadd.f32 %v3571_v56, %v3569_v35 }
0x1874   :  { %v3590_v42 = vmul.f32 0.5, %v3586_v40  ;;  %v3579_v37 = vmul.f32 0.5, %v3575_v32 }
0x1876   :  { %6463 = vtanh.f32 %v3579_v37  ;;  %v3594_v1 = vmul.f32 %v3590_v42, %v8267_v0 }
0x1878   :  { %6012 = vmatmul.msk.f32.gmra.mxu1 %vm259_vm1, %v3594_v1 }
0x187c   :  { %v6464_v38 = vpop.eup %6463 }
0x187d   :  { %v3587_v5 = vadd.f32 1.0, %v6464_v38 }
0x187f   :  { %v3591_v34 = vmul.f32 0.5, %v3587_v5 }
0x1881   :  { %v3595_v33 = vmul.f32 %v3591_v34, %v8283_v2 }
0x1883   :  { %6013 = vmatmul.msk.f32.gmra.mxu1 %vm259_vm1, %v3595_v33 }
0x18e5   :  { %v3630_v13 = vpop.f32.mrf.mxu1 }
0x18e6   :  { %3646 = vrot.lane.b32.xlu2 %v3630_v13, %s6893_s27 }
0x18ed   :  { %v3633_v43 = vpop.f32.mrf.mxu1 }
0x18ee   :  { %3648 = vrot.lane.b32.xlu1 %v3633_v43, %s6893_s27 }
0x18f5   :  { %v3636_v18 = vpop.f32.mrf.mxu1 }
0x18f6   :  { %3677 = vrot.lane.b32.xlu1 %v8262_v55, %s6893_s27  ;;  %3650 = vrot.lane.b32.xlu2 %v3636_v18, %s6893_s27 }
0x18fe   :  { %3681 = vrot.lane.b32.xlu1 %v8283_v2, %s6893_s27  ;;  %3679 = vrot.lane.b32.xlu2 %v8267_v0, %s6893_s27 }
0x1900   :  { %v3639_v62 = vpop.f32.mrf.mxu1 }
0x1901   :  { %3652 = vrot.lane.b32.xlu0 %v3639_v62, %s6893_s27 }
0x1940   :  { %v3647_v21 = vpop.permute.xlu2 %3646 }
0x1941   :  { %v3658_v25 = vadd.f32 %v3647_v21, %v3572_v9 }
0x1943   :  { %v3667_v50 = vadd.f32 %v3665_v39, %v3658_v25 }
0x1945   :  { %6465 = vtanh.f32 %v3667_v50 }
0x194b   :  { %v6466_v57 = vpop.eup %6465 }
0x194c   :  { %v3687_v22 = vsub.f32 %v6466_v57, %v3676_v3 }
0x194e   :  { %3695 = vrot.lane.b32.xlu0 %v3687_v22, %s6895_s12 }
0x1950   :  { %v3651_v44 = vpop.permute.xlu2 %3650 }
0x1951   :  { %v3660_v31 = vadd.f32 %v3651_v44, %v3574_v7 }
0x1953   :  { %v3669_v14 = vadd.f32 %v3665_v39, %v3660_v31 }
0x1955   :  { %6467 = vtanh.f32 %v3669_v14 }
0x1958   :  { %v3680_v56 = vpop.permute.xlu2 %3679 }
0x195b   :  { %v6468_v19 = vpop.eup %6467 }
0x195c   :  { %v3689_v47 = vsub.f32 %v6468_v19, %v3680_v56  ;;  %v6026_v19 = vld [vmem:[%s9149_s7 + $0x1a0] sm:$0xff]  ;;  %v6027_v56 = vld [vmem:[%s9149_s7 + $0x1a8] sm:$0xff] }
0x195d   :  { %3868 = vmatpush.msrb.mxu2 %v6026_v19  ;;  %3897 = vmatpush.msrb.mxu3 %v6027_v56 }
0x195e   :  { %3699 = vrot.lane.b32.xlu1 %v3689_v47, %s6895_s12  ;;  %v6028_v47 = vld [vmem:[%s9149_s7 + $0x1b0] sm:$0xff] }
0x195f   :  { %3926 = vmatpush.msra.mxu0 %v6028_v47 }
0x1960   :  { %v3649_v63 = vpop.permute.xlu1 %3648 }
0x1961   :  { %v3659_v48 = vadd.f32 %v3649_v63, %v8334_v28  ;;  %v6029_v63 = vld [vmem:[%s9149_s7 + $0x1b8] sm:$0xff] }
0x1962   :  { %3955 = vmatpush.msra.mxu1 %v6029_v63 }
0x1963   :  { %v3668_v9 = vadd.f32 %v3665_v39, %v3659_v48  ;;  %v6022_v48 = vld [vmem:[%s9149_s7 + $0x180] sm:$0xff] }
0x1964   :  { %3869 = vmatpush.msrb.mxu2 %v6022_v48 }
0x1965   :  { %6469 = vtanh.f32 %v3668_v9  ;;  %v6023_v9 = vld [vmem:[%s9149_s7 + $0x188] sm:$0xff] }
0x1966   :  { %3898 = vmatpush.msrb.mxu3 %v6023_v9 }
0x1968   :  { %v3678_v54 = vpop.permute.xlu1 %3677 }
0x196b   :  { %v6470_v26 = vpop.eup %6469 }
0x196c   :  { %v3688_v41 = vsub.f32 %v6470_v26, %v3678_v54  ;;  %v6024_v26 = vld [vmem:[%s9149_s7 + $0x190] sm:$0xff]  ;;  %v6025_v54 = vld [vmem:[%s9149_s7 + $0x198] sm:$0xff] }
0x196d   :  { %3927 = vmatpush.msra.mxu0 %v6024_v26  ;;  %3956 = vmatpush.msra.mxu1 %v6025_v54 }
0x196e   :  { %3697 = vrot.lane.b32.xlu2 %v3688_v41, %s6895_s12  ;;  %v6018_v41 = vld [vmem:[%s9149_s7 + $0x160] sm:$0xff] }
0x196f   :  { %3870 = vmatpush.msrb.mxu2 %v6018_v41 }
0x1970   :  { %v3682_v53 = vpop.permute.xlu1 %3681 }
0x1973   :  { %v3653_v24 = vpop.permute.xlu0 %3652 }
0x1974   :  { %v3661_v45 = vadd.f32 %v3653_v24, %v3575_v32  ;;  %v6019_v24 = vld [vmem:[%s9149_s7 + $0x168] sm:$0xff] }
0x1975   :  { %3899 = vmatpush.msrb.mxu3 %v6019_v24 }
0x1976   :  { %v3670_v4 = vadd.f32 %v3665_v39, %v3661_v45  ;;  %v6020_v45 = vld [vmem:[%s9149_s7 + $0x170] sm:$0xff] }
0x1977   :  { %3928 = vmatpush.msra.mxu0 %v6020_v45 }
0x1978   :  { %6471 = vtanh.f32 %v3670_v4  ;;  %v6021_v4 = vld [vmem:[%s9149_s7 + $0x178] sm:$0xff] }
0x1979   :  { %3957 = vmatpush.msra.mxu1 %v6021_v4 }
0x197e   :  { %v6472_v49 = vpop.eup %6471 }
0x197f   :  { %v3690_v58 = vsub.f32 %v6472_v49, %v3682_v53  ;;  %v6014_v49 = vld [vmem:[%s9149_s7 + $0x140] sm:$0xff]  ;;  %v6015_v53 = vld [vmem:[%s9149_s7 + $0x148] sm:$0xff] }
0x1980   :  { %3871 = vmatpush.msrb.mxu2 %v6014_v49  ;;  %3900 = vmatpush.msrb.mxu3 %v6015_v53 }
0x1981   :  { %3701 = vrot.lane.b32.xlu0 %v3690_v58, %s6895_s12  ;;  %v6016_v58 = vld [vmem:[%s9149_s7 + $0x150] sm:$0xff] }
0x1982   :  { %3929 = vmatpush.msra.mxu0 %v6016_v58 }
0x19c0   :  { %v3696_v17 = vpop.permute.xlu0 %3695 }
0x19c1   :  { %v3707_v7 = vmul.f32 %v3696_v17, %v8337_v30  ;;  %v6017_v17 = vld [vmem:[%s9149_s7 + $0x158] sm:$0xff] }
0x19c2   :  { %3958 = vmatpush.msra.mxu1 %v6017_v17 }
0x19c3   :  { %3715 = vrot.lane.b32.xlu2 %v3707_v7, %s6895_s12  ;;  %v6585_v7 = vld [vmem:[#allocation5 + $0x38] sm:$0xff] }
0x19c4   :  { %4097 = vmatpush.msra.mxu3 %v6585_v7 }
0x19c8   :  { %v3698_v28 = vpop.permute.xlu2 %3697 }
0x19c9   :  { %v3708_v51 = vmul.f32 %v3698_v28, %v8342_v15  ;;  %v6586_v28 = vld [vmem:[#allocation5 + $0x78] sm:$0xff] }
0x19ca   :  { %4056 = vmatpush.msra.mxu2 %v6586_v28 }
0x19cb   :  { %3717 = vrot.lane.b32.xlu1 %v3708_v51, %s6895_s12  ;;  %v6587_v51 = vld [vmem:[#allocation5 + $0x30] sm:$0xff] }
0x19cc   :  { %4098 = vmatpush.msra.mxu3 %v6587_v51 }
0x19d0   :  { %v3700_v8 = vpop.permute.xlu1 %3699 }
0x19d1   :  { %v3709_v10 = vmul.f32 %v3700_v8, %v3590_v42  ;;  %v6588_v8 = vld [vmem:[#allocation5 + $0x70] sm:$0xff] }
0x19d2   :  { %4057 = vmatpush.msra.mxu2 %v6588_v8 }
0x19d3   :  { %3719 = vrot.lane.b32.xlu0 %v3709_v10, %s6895_s12  ;;  %v6589_v10 = vld [vmem:[#allocation5 + $0x28] sm:$0xff] }
0x19d4   :  { %4099 = vmatpush.msra.mxu3 %v6589_v10 }
0x19f3   :  { %v3702_v6 = vpop.permute.xlu0 %3701 }
0x19f4   :  { %v3710_v20 = vmul.f32 %v3702_v6, %v3591_v34  ;;  %v6590_v6 = vld [vmem:[#allocation5 + $0x68] sm:$0xff] }
0x19f5   :  { %4058 = vmatpush.msra.mxu2 %v6590_v6 }
0x19f6   :  { %3721 = vrot.lane.b32.xlu2 %v3710_v20, %s6895_s12 }
0x1a1d   :  { %v3716_v11 = vpop.permute.xlu2 %3715 }
0x1a1e   :  { %v8373_v35 = vadd.f32 %v3716_v11, %v8272_v12  ;;  %v6591_v11 = vld [vmem:[#allocation5 + $0x20] sm:$0xff] }
0x1a1f   :  { %4100 = vmatpush.msra.mxu3 %v6591_v11 }
0x1a20   :  { %v3752_v30 = vsel %vm259_vm1, %v8373_v35, 0.0 }
0x1a21   :  { %3753 = vadd.xlane.f32.xlu1 %v3752_v30  ;;  %v6592_v30 = vld [vmem:[#allocation5 + $0x60] sm:$0xff] }
0x1a22   :  { %4059 = vmatpush.msra.mxu2 %v6592_v30 }
0x1a3d   :  { %v3718_v27 = vpop.permute.xlu1 %3717 }
0x1a3e   :  { %v8378_v15 = vadd.f32 %v3718_v27, %v8262_v55 }
0x1a40   :  { %v3755_v40 = vsel %vm259_vm1, %v8378_v15, 0.0 }
0x1a41   :  { %3756 = vadd.xlane.f32.xlu0 %v3755_v40  ;;  %v6593_v40 = vld [vmem:[#allocation5 + $0x18] sm:$0xff] }
0x1a42   :  { %4101 = vmatpush.msra.mxu3 %v6593_v40 }
0x1a45   :  { %v3720_v32 = vpop.permute.xlu0 %3719 }
0x1a46   :  { %v8383_v42 = vadd.f32 %v3720_v32, %v8267_v0  ;;  %v6594_v32 = vld [vmem:[#allocation5 + $0x58] sm:$0xff] }
0x1a47   :  { %4060 = vmatpush.msra.mxu2 %v6594_v32 }
0x1a48   :  { %v3758_v12 = vsel %vm259_vm1, %v8383_v42, 0.0 }
0x1a49   :  { %3759 = vadd.xlane.f32.xlu2 %v3758_v12 }
0x1a50   :  { %v3722_v37 = vpop.permute.xlu2 %3721 }
0x1a51   :  { %v8388_v1 = vadd.f32 %v3722_v37, %v8283_v2  ;;  %v6595_v37 = vld [vmem:[#allocation5 + $0x10] sm:$0xff] }
0x1a52   :  { %4102 = vmatpush.msra.mxu3 %v6595_v37  ;;  %v6601_v37 = vld [vmem:[#allocation2 + $0x20] sm:$0xff] }
0x1a53   :  { %v3761_v55 = vsel %vm259_vm1, %v8388_v1, 0.0 }
0x1a54   :  { %3762 = vadd.xlane.f32.xlu1 %v3761_v55  ;;  %v6596_v55 = vld [vmem:[#allocation5 + $0x50] sm:$0xff] }
0x1a55   :  { %4061 = vmatpush.msra.mxu2 %v6596_v55 }
0x1a94   :  { %v3754_v38 = vpop.xlane.xlu1 %3753 }
0x1a95   :  { %v3764_v5 = vmul.f32 %v3754_v38, %v7102_v46  ;;  %v6597_v38 = vld [vmem:[#allocation5 + $0x8] sm:$0xff] }
0x1a96   :  { %4103 = vmatpush.msra.mxu3 %v6597_v38 }
0x1a97   :  { %v8394_v34 = vsub.f32 %v8373_v35, %v3764_v5  ;;  %v6598_v5 = vld [vmem:[#allocation5 + $0x48] sm:$0xff] }
0x1a98   :  { %4062 = vmatpush.msra.mxu2 %v6598_v5 }
0x1a99   :  { %v3772_v0 = vmul.f32 %v8394_v34, %v8394_v34 }
0x1a9b   :  { %v3776_v33 = vsel %vm259_vm1, %v3772_v0, 0.0  ;;  %v6599_v0 = vld [vmem:[#allocation5] sm:$0xff] }
0x1a9c   :  { %3777 = vadd.xlane.f32.xlu0 %v3776_v33  ;;  %4104 = vmatpush.msra.mxu3 %v6599_v0  ;;  %v6600_v33 = vld [vmem:[#allocation5 + $0x40] sm:$0xff]  ;;  %v6602_v0 = vld [vmem:[#allocation2 + $0x28] sm:$0xff] }
0x1a9d   :  { %4063 = vmatpush.msra.mxu2 %v6600_v33 }
0x1ab4   :  { %v3757_v13 = vpop.xlane.xlu0 %3756 }
0x1ab5   :  { %v3765_v2 = vmul.f32 %v3757_v13, %v7102_v46 }
0x1ab7   :  { %v8401_v43 = vsub.f32 %v8378_v15, %v3765_v2 }
0x1ab9   :  { %v3773_v18 = vmul.f32 %v8401_v43, %v8401_v43 }
0x1abb   :  { %v3779_v62 = vsel %vm259_vm1, %v3773_v18, 0.0 }
0x1abc   :  { %v3760_v21 = vpop.xlane.xlu2 %3759  ;;  %3780 = vadd.xlane.f32.xlu2 %v3779_v62 }
0x1abd   :  { %v3766_v39 = vmul.f32 %v3760_v21, %v7102_v46 }
0x1abf   :  { %v8408_v25 = vsub.f32 %v8383_v42, %v3766_v39 }
0x1ac1   :  { %v3774_v50 = vmul.f32 %v8408_v25, %v8408_v25 }
0x1ac3   :  { %v3782_v57 = vsel %vm259_vm1, %v3774_v50, 0.0 }
0x1ac4   :  { %3783 = vadd.xlane.f32.xlu1 %v3782_v57 }
0x1ac7   :  { %v3763_v3 = vpop.xlane.xlu1 %3762 }
0x1ac8   :  { %v3767_v22 = vmul.f32 %v3763_v3, %v7102_v46 }
0x1aca   :  { %v8415_v44 = vsub.f32 %v8388_v1, %v3767_v22 }
0x1acc   :  { %v3775_v31 = vmul.f32 %v8415_v44, %v8415_v44 }
0x1ace   :  { %v3785_v14 = vsel %vm259_vm1, %v3775_v31, 0.0 }
0x1acf   :  { %3786 = vadd.xlane.f32.xlu0 %v3785_v14 }
0x1b0f   :  { %v3778_v20 = vpop.xlane.xlu0 %3777 }
0x1b10   :  { %v3788_v27 = vmul.f32 %v3778_v20, %v7102_v46 }
0x1b12   :  { %v3792_v12 = vadd.f32 1e-05, %v3788_v27 }
0x1b14   :  { %6473 = vrsqrt.f32 %v3792_v12  ;;  %vm3802_vm13 = vweird.f32 %v3792_v12 }
0x1b1a   :  { %v6474_v13 = vpop.eup %6473 }
0x1b1b   :  { %v3797_v2 = vmul.f32 %v6474_v13, %v3792_v12  ;;  %vm3803_vm12 = vweird.f32 %v6474_v13 }
0x1b1c   :  { %vm3804_vm14 = vmor %vm3802_vm13, %vm3803_vm12 }
0x1b1d   :  { %v3798_v18 = vmul.f32 %v6474_v13, %v3797_v2 }
0x1b1f   :  { %v3799_v62 = vmul.f32 0.5, %v3798_v18 }
0x1b21   :  { %v3800_v21 = vsub.f32 1.5, %v3799_v62  ;;  %v6603_v62 = vld [vmem:[#allocation2 + $0x30] sm:$0xff] }
0x1b23   :  { %v3801_v39 = vmul.f32 %v6474_v13, %v3800_v21 }
0x1b25   :  { %v3805_v50 = vsel %vm3804_vm14, %v6474_v13, %v3801_v39 }
0x1b26   :  { %v3836_v57 = vmul.f32 %v3805_v50, %v8394_v34 }
0x1b28   :  { %6034 = vmatmul.msk.f32.vlgmr.msrb.gmra.mxu2 %vm259_vm1, %v3836_v57  ;;  %6038 = vmatmul.msk.f32.vlgmr.msrb.gmra.mxu3 %vm259_vm1, %v3836_v57 }
0x1b29   :  { %6042 = vmatmul.msk.f32.vlgmr.msra.gmra.mxu0 %vm259_vm1, %v3836_v57  ;;  %6046 = vmatmul.msk.f32.vlgmr.msra.gmra.mxu1 %vm259_vm1, %v3836_v57 }
0x1b2f   :  { %v3781_v3 = vpop.xlane.xlu2 %3780 }
0x1b30   :  { %v3789_v22 = vmul.f32 %v3781_v3, %v7102_v46 }
0x1b32   :  { %v3793_v31 = vadd.f32 1e-05, %v3789_v22 }
0x1b34   :  { %6475 = vrsqrt.f32 %v3793_v31  ;;  %vm3812_vm3 = vweird.f32 %v3793_v31 }
0x1b37   :  { %v3784_v14 = vpop.xlane.xlu1 %3783 }
0x1b38   :  { %v3790_v19 = vmul.f32 %v3784_v14, %v7102_v46 }
0x1b3a   :  { %v6476_v56 = vpop.eup %6475  ;;  %v3794_v47 = vadd.f32 1e-05, %v3790_v19 }
0x1b3b   :  { %v3807_v63 = vmul.f32 %v6476_v56, %v3793_v31  ;;  %vm3813_vm2 = vweird.f32 %v6476_v56  ;;  %v6604_v31 = vld [vmem:[#allocation2 + $0x38] sm:$0xff] }
0x1b3c   :  { %6477 = vrsqrt.f32 %v3794_v47  ;;  %vm3814_vm4 = vmor %vm3812_vm3, %vm3813_vm2  ;;  %vm3822_vm6 = vweird.f32 %v3794_v47 }
0x1b3d   :  { %v3808_v34 = vmul.f32 %v6476_v56, %v3807_v63 }
0x1b3f   :  { %v3809_v48 = vmul.f32 0.5, %v3808_v34 }
0x1b41   :  { %v3810_v9 = vsub.f32 1.5, %v3809_v48  ;;  %v6322_v48 = vld [vmem:[%s9149_s7 + $0x1c0] ss:$0 sm:$0xff] }
0x1b42   :  { %v6478_v26 = vpop.eup %6477  ;;  %v3787_v54 = vpop.xlane.xlu0 %3786 }
0x1b43   :  { %v3811_v41 = vmul.f32 %v6476_v56, %v3810_v9  ;;  %v3817_v24 = vmul.f32 %v6478_v26, %v3794_v47  ;;  %v3791_v45 = vmul.f32 %v3787_v54, %v7102_v46  ;;  %vm3823_vm5 = vweird.f32 %v6478_v26 }
0x1b44   :  { %vm3824_vm7 = vmor %vm3822_vm6, %vm3823_vm5 }
0x1b45   :  { %v3818_v4 = vmul.f32 %v6478_v26, %v3817_v24  ;;  %v3795_v49 = vadd.f32 1e-05, %v3791_v45  ;;  %v3815_v53 = vsel %vm3814_vm4, %v6476_v56, %v3811_v41  ;;  %v6606_v41 = vld [vmem:[#allocation8 + $0x70] sm:$0xff]  ;;  %v6607_v24 = vld [vmem:[#allocation8 + $0x68] sm:$0xff] }
0x1b46   :  { %v3837_v58 = vmul.f32 %v3815_v53, %v8401_v43  ;;  %v6609_v53 = vld [vmem:[#allocation8 + $0x58] sm:$0xff] }
0x1b47   :  { %v3819_v17 = vmul.f32 0.5, %v3818_v4  ;;  %6479 = vrsqrt.f32 %v3795_v49  ;;  %vm3832_vm9 = vweird.f32 %v3795_v49  ;;  %v6608_v4 = vld [vmem:[#allocation8 + $0x60] sm:$0xff] }
0x1b48   :  { %6035 = vmatmul.msk.f32.gmra.mxu2 %vm259_vm1, %v3837_v58  ;;  %6039 = vmatmul.msk.f32.gmra.mxu3 %vm259_vm1, %v3837_v58 }
0x1b49   :  { %v3820_v7 = vsub.f32 1.5, %v3819_v17  ;;  %6043 = vmatmul.msk.f32.gmra.mxu0 %vm259_vm1, %v3837_v58  ;;  %6047 = vmatmul.msk.f32.gmra.mxu1 %vm259_vm1, %v3837_v58  ;;  %v6610_v58 = vld [vmem:[#allocation8 + $0x50] sm:$0xff] }
0x1b4b   :  { %v3821_v28 = vmul.f32 %v6478_v26, %v3820_v7  ;;  %v6611_v7 = vld [vmem:[#allocation8 + $0x48] sm:$0xff] }
0x1b4d   :  { %v6480_v51 = vpop.eup %6479  ;;  %v3825_v8 = vsel %vm3824_vm7, %v6478_v26, %v3821_v28  ;;  %v6605_v26 = vld [vmem:[#allocation8 + $0x78] sm:$0xff]  ;;  %v6612_v28 = vld [vmem:[#allocation8 + $0x40] sm:$0xff] }
0x1b4e   :  { %v3827_v10 = vmul.f32 %v6480_v51, %v3795_v49  ;;  %v3838_v43 = vmul.f32 %v3825_v8, %v8408_v25  ;;  %vm3833_vm8 = vweird.f32 %v6480_v51  ;;  %v6321_v25 = vld [vmem:[%s9149_s7 + $0x1d8] ss:$0 sm:$0xff]  ;;  %v6614_v8 = vld [vmem:[#allocation8 + $0x30] sm:$0xff] }
0x1b4f   :  { %vm3834_vm10 = vmor %vm3832_vm9, %vm3833_vm8  ;;  %vm5745_vm9 = vcmask 3072  }
0x1b50   :  { %v3828_v6 = vmul.f32 %v6480_v51, %v3827_v10  ;;  %6036 = vmatmul.msk.f32.gmra.mxu2 %vm259_vm1, %v3838_v43  ;;  %6040 = vmatmul.msk.f32.gmra.mxu3 %vm259_vm1, %v3838_v43 }
0x1b51   :  { %6044 = vmatmul.msk.f32.gmra.mxu0 %vm259_vm1, %v3838_v43  ;;  %6048 = vmatmul.msk.f32.gmra.mxu1 %vm259_vm1, %v3838_v43  ;;  %v6615_v43 = vld [vmem:[#allocation8 + $0x28] sm:$0xff] }
0x1b52   :  { %v3829_v20 = vmul.f32 0.5, %v3828_v6 }
0x1b54   :  { %v3830_v11 = vsub.f32 1.5, %v3829_v20 }
0x1b56   :  { %v3831_v30 = vmul.f32 %v6480_v51, %v3830_v11  ;;  %v6616_v11 = vld [vmem:[#allocation8 + $0x20] sm:$0xff] }
0x1b58   :  { %v3835_v27 = vsel %vm3834_vm10, %v6480_v51, %v3831_v30 }
0x1b59   :  { %v3839_v40 = vmul.f32 %v3835_v27, %v8415_v44 }
0x1b5b   :  { %6037 = vmatmul.msk.f32.gmra.mxu2 %vm259_vm1, %v3839_v40  ;;  %6041 = vmatmul.msk.f32.gmra.mxu3 %vm259_vm1, %v3839_v40 }
0x1b5c   :  { %6045 = vmatmul.msk.f32.gmra.mxu0 %vm259_vm1, %v3839_v40  ;;  %6049 = vmatmul.msk.f32.gmra.mxu1 %vm259_vm1, %v3839_v40  ;;  %v6617_v40 = vld [vmem:[#allocation8 + $0x18] sm:$0xff] }
0x1ba6   :  { %v3960_v32 = vpop.f32.mrf.mxu1 }
0x1ba7   :  { %v8495_v12 = vadd.f32 %v6321_v25, %v3960_v32  ;;  %v6619_v32 = vld [vmem:[#allocation8 + $0x8] sm:$0xff] }
0x1ba9   :  { %v4004_v55 = vmul.f32 %v6601_v37, %v8495_v12  ;;  %v3976_v3 = vmul.f32 %v8495_v12, %v7228_v59  ;;  %v4000_v6 = vmul.f32 %v8495_v12, %v7321_v60  ;;  %v6620_v37 = vld [vmem:[#allocation8] sm:$0xff] }
0x1bab   :  { %4012 = vrot.lane.b32.xlu2 %v4004_v55, %s6893_s27  ;;  %v3902_v44 = vpop.f32.mrf.mxu3  ;;  %v3873_v34 = vpop.f32.mrf.mxu2 }
0x1bc6   :  { %v3963_v38 = vpop.f32.mrf.mxu1 }
0x1bc7   :  { %v8499_v5 = vadd.f32 %v6321_v25, %v3963_v38 }
0x1bc9   :  { %v4005_v33 = vmul.f32 %v6602_v0, %v8499_v5  ;;  %v3977_v47 = vmul.f32 %v8499_v5, %v7238_v16  ;;  %v8539_v16 = vadd.f32 %v6322_v48, %v3873_v34  ;;  %v4001_v55 = vmul.f32 %v8499_v5, %v7323_v61  ;;  %v6624_v34 = vld [vmem:[#allocation2 + $0x18] sm:$0xff] }
0x1bcb   :  { %4014 = vrot.lane.b32.xlu1 %v4005_v33, %s6893_s27  ;;  %v3905_v13 = vpop.f32.mrf.mxu3  ;;  %v3876_v54 = vpop.f32.mrf.mxu2 }
0x1bcc   :  { %v8546_v49 = vadd.f32 %v6322_v48, %v3876_v54 }
0x1bce   :  { %v3966_v2 = vpop.f32.mrf.mxu1 }
0x1bcf   :  { %v8503_v18 = vadd.f32 %v6321_v25, %v3966_v2 }
0x1bd1   :  { %v4006_v21 = vmul.f32 %v6603_v62, %v8503_v18  ;;  %v3978_v39 = vmul.f32 %v8503_v18, %v7249_v23  ;;  %v6323_v23 = vld [vmem:[%s9149_s7 + $0x1c8] ss:$0 sm:$0xff]  ;;  %v4002_v33 = vmul.f32 %v8503_v18, %v7333_v29  ;;  %v6621_v62 = vld [vmem:[#allocation2] sm:$0xff] }
0x1bd2   :  { %v8527_v63 = vadd.f32 %v6323_v23, %v3905_v13  ;;  %v8534_v9 = vadd.f32 %v6323_v23, %v3902_v44 }
0x1bd3   :  { %4016 = vrot.lane.b32.xlu0 %v4006_v21, %s6893_s27  ;;  %3988 = vrot.lane.b32.xlu1 %v3978_v39, %s6893_s27  ;;  %v3908_v50 = vpop.f32.mrf.mxu3  ;;  %v3879_v17 = vpop.f32.mrf.mxu2  ;;  %v3972_v21 = vmul.f32 %v6621_v62, %v8495_v12 }
0x1bd4   :  { %v3909_v59 = vadd.f32 %v6323_v23, %v3908_v50  ;;  %v8551_v51 = vadd.f32 %v6322_v48, %v3879_v17 }
0x1bd9   :  { %v3969_v57 = vpop.f32.mrf.mxu1 }
0x1bda   :  { %v8512_v22 = vadd.f32 %v6321_v25, %v3969_v57  ;;  %v6618_v25 = vld [vmem:[#allocation8 + $0x10] sm:$0xff] }
0x1bdb   :  { %3984 = vrot.lane.b32.xlu0 %v3976_v3, %s6893_s27 }
0x1bdc   :  { %v4007_v14 = vmul.f32 %v6604_v31, %v8512_v22  ;;  %v3979_v45 = vmul.f32 %v8512_v22, %v7302_v52  ;;  %v6613_v52 = vld [vmem:[#allocation8 + $0x38] sm:$0xff]  ;;  %v4003_v39 = vmul.f32 %v8512_v22, %v7340_v36 }
0x1bde   :  { %4018 = vrot.lane.b32.xlu2 %v4007_v14, %s6893_s27  ;;  %v3911_v19 = vpop.f32.mrf.mxu3  ;;  %v3882_v10 = vpop.f32.mrf.mxu2  ;;  %v6622_v14 = vld [vmem:[#allocation2 + $0x8] sm:$0xff] }
0x1bdf   :  { %v3912_v56 = vadd.f32 %v6323_v23, %v3911_v19  ;;  %v8558_v30 = vadd.f32 %v6322_v48, %v3882_v10  ;;  %v3973_v23 = vmul.f32 %v6622_v14, %v8499_v5  ;;  %v3975_v48 = vmul.f32 %v6624_v34, %v8512_v22  ;;  %v6320_v10 = vld [vmem:[%s9149_s7 + $0x1d0] ss:$0 sm:$0xff] }
0x1be1   :  { %4311 = vrot.lane.b32.xlu1 %v3912_v56, %s6894_s6  ;;  %6058 = vmatpush.xpose.msk.msrb.mxu0 %vm259_vm1, %v3912_v56 }
0x1be3   :  { %4250 = vrot.lane.b32.xlu0 %v3912_v56, %s6893_s27 }
0x1be5   :  { %6059 = vmatpush.xpose.msk.msrb.mxu0 %vm259_vm1, %v3909_v59 }
0x1be6   :  { %3986 = vrot.lane.b32.xlu2 %v3977_v47, %s6893_s27 }
0x1be9   :  { %6060 = vmatpush.xpose.msk.msrb.mxu0 %vm259_vm1, %v8527_v63 }
0x1beb   :  { %4189 = vrot.lane.b32.xlu0 %v3912_v56, %s6895_s12  ;;  %v6623_v56 = vld [vmem:[#allocation2 + $0x10] sm:$0xff] }
0x1bec   :  { %v3974_v5 = vmul.f32 %v6623_v56, %v8503_v18 }
0x1bed   :  { %6061 = vmatpush.xpose.msk.msrb.mxu0 %vm259_vm1, %v8534_v9 }
0x1bee   :  { %4248 = vrot.lane.b32.xlu2 %v3909_v59, %s6893_s27 }
0x1bf0   :  { %6062 = vmatmul.msk.f32.vlgmr.msrb.gmra.mxu0 %vm259_vm1, %v8539_v16 }
0x1bf1   :  { %4442 = vmatpush.msra.mxu0 %v6605_v26 }
0x1bf3   :  { %4443 = vmatpush.msra.mxu0 %v6606_v41 }
0x1bf5   :  { %4444 = vmatpush.msra.mxu0 %v6607_v24 }
0x1bf6   :  { %3990 = vrot.lane.b32.xlu2 %v3979_v45, %s6893_s27  ;;  %v3931_v45 = vpop.f32.mrf.mxu0 }
0x1bf7   :  { %4445 = vmatpush.msra.mxu0 %v6608_v4 }
0x1bf8   :  { %6063 = vmatmul.msk.f32.gmra.mxu0 %vm259_vm1, %v8546_v49 }
0x1bf9   :  { %4446 = vmatpush.msra.mxu0 %v6609_v53 }
0x1bfb   :  { %4447 = vmatpush.msra.mxu0 %v6610_v58 }
0x1bfd   :  { %4448 = vmatpush.msra.mxu0 %v6611_v7 }
0x1bfe   :  { %4187 = vrot.lane.b32.xlu2 %v3909_v59, %s6895_s12 }
0x1bff   :  { %4449 = vmatpush.msra.mxu0 %v6612_v28 }
0x1c00   :  { %6064 = vmatmul.msk.f32.gmra.mxu0 %vm259_vm1, %v8551_v51 }
0x1c01   :  { %4450 = vmatpush.msra.mxu0 %v6613_v52 }
0x1c03   :  { %4451 = vmatpush.msra.mxu0 %v6614_v8 }
0x1c05   :  { %4452 = vmatpush.msra.mxu0 %v6615_v43  ;;  %v4013_v20 = vpop.permute.xlu2 %4012 }
0x1c06   :  { %v4024_v27 = vsub.f32 %v4000_v6, %v4013_v20 }
0x1c07   :  { %4453 = vmatpush.msra.mxu0 %v6616_v11 }
0x1c08   :  { %4032 = vrot.lane.b32.xlu1 %v4024_v27, %s6893_s27  ;;  %6065 = vmatmul.msk.f32.gmra.mxu0 %vm259_vm1, %v8558_v30  ;;  %v8648_v27 = vadd.f32 %v6320_v10, %v3931_v45 }
0x1c09   :  { %4454 = vmatpush.msra.mxu0 %v6617_v40 }
0x1c0b   :  { %4455 = vmatpush.msra.mxu0 %v6618_v25 }
0x1c0d   :  { %4456 = vmatpush.msra.mxu0 %v6619_v32 }
0x1c0f   :  { %4457 = vmatpush.msra.mxu0 %v6620_v37 }
0x1c10   :  { %4309 = vrot.lane.b32.xlu1 %v3909_v59, %s6894_s6 }
0x1c18   :  { %4246 = vrot.lane.b32.xlu1 %v8527_v63, %s6893_s27 }
0x1c20   :  { %4244 = vrot.lane.b32.xlu1 %v8534_v9, %s6893_s27 }
0x1c28   :  { %4236 = vrot.lane.b32.xlu1 %v8539_v16, %s6893_s27 }
0x1c30   :  { %4175 = vrot.lane.b32.xlu1 %v8539_v16, %s6895_s12 }
0x1c38   :  { %4177 = vrot.lane.b32.xlu1 %v8546_v49, %s6895_s12  ;;  %v4019_v60 = vpop.permute.xlu2 %4018 }
0x1c39   :  { %v4027_v3 = vsub.f32 %v4003_v39, %v4019_v60 }
0x1c3d   :  { %v4015_v44 = vpop.permute.xlu1 %4014 }
0x1c3e   :  { %v4025_v38 = vsub.f32 %v4001_v55, %v4015_v44 }
0x1c40   :  { %4179 = vrot.lane.b32.xlu1 %v8551_v51, %s6895_s12  ;;  %4034 = vrot.lane.b32.xlu0 %v4025_v38, %s6893_s27  ;;  %v3987_v0 = vpop.permute.xlu2 %3986 }
0x1c41   :  { %v3997_v19 = vadd.f32 %v3987_v0, %v3973_v23 }
0x1c45   :  { %v4017_v13 = vpop.permute.xlu0 %4016  ;;  %v3989_v61 = vpop.permute.xlu1 %3988 }
0x1c46   :  { %v4026_v2 = vsub.f32 %v4002_v33, %v4017_v13  ;;  %v3998_v47 = vadd.f32 %v3989_v61, %v3974_v5 }
0x1c48   :  { %4036 = vrot.lane.b32.xlu2 %v4026_v2, %s6893_s27  ;;  %4181 = vrot.lane.b32.xlu1 %v8558_v30, %s6895_s12  ;;  %v4249_v50 = vpop.permute.xlu2 %4248 }
0x1c49   :  { %4307 = vrot.lane.b32.xlu0 %v8527_v63, %s6894_s6 }
0x1c4d   :  { %v3985_v57 = vpop.permute.xlu0 %3984 }
0x1c4e   :  { %v3996_v29 = vadd.f32 %v3985_v57, %v3972_v21 }
0x1c50   :  { %6054 = vmatmul.msk.f32.vlgmr.msra.gmra.mxu3 %vm678_vm15, %v3996_v29  ;;  %4185 = vrot.lane.b32.xlu2 %v8527_v63, %s6895_s12  ;;  %v3991_v36 = vpop.permute.xlu2 %3990 }
0x1c51   :  { %4038 = vrot.lane.b32.xlu0 %v4027_v3, %s6893_s27 }
0x1c53   :  { %v4312_v31 = vpop.permute.xlu1 %4311 }
0x1c54   :  { %6082 = vmatpush.xpose.msk.msrb.mxu3 %vm259_vm1, %v4312_v31 }
0x1c55   :  { %v4251_v12 = vpop.permute.xlu0 %4250 }
0x1c56   :  { %6074 = vmatpush.xpose.msk.msrb.mxu2 %vm259_vm1, %v4251_v12 }
0x1c58   :  { %6055 = vmatmul.msk.f32.gmra.mxu3 %vm678_vm15, %v3997_v19  ;;  %4297 = vrot.lane.b32.xlu2 %v8539_v16, %s6894_s6  ;;  %v4188_v63 = vpop.permute.xlu2 %4187  ;;  %v3999_v16 = vadd.f32 %v3991_v36, %v3975_v48 }
0x1c59   :  { %4305 = vrot.lane.b32.xlu0 %v8534_v9, %s6894_s6 }
0x1c5a   :  { %6075 = vmatpush.xpose.msk.msrb.mxu2 %vm259_vm1, %v4249_v50 }
0x1c5d   :  { %v4190_v59 = vpop.permute.xlu0 %4189 }
0x1c5e   :  { %6066 = vmatpush.xpose.msk.msrb.mxu1 %vm259_vm1, %v4190_v59 }
0x1c60   :  { %4238 = vrot.lane.b32.xlu2 %v8546_v49, %s6893_s27  ;;  %6056 = vmatmul.msk.f32.gmra.mxu3 %vm678_vm15, %v3998_v47 }
0x1c61   :  { %4183 = vrot.lane.b32.xlu0 %v8534_v9, %s6895_s12 }
0x1c62   :  { %6067 = vmatpush.xpose.msk.msrb.mxu1 %vm259_vm1, %v4188_v63 }
0x1c68   :  { %4240 = vrot.lane.b32.xlu2 %v8551_v51, %s6893_s27  ;;  %6057 = vmatmul.msk.f32.gmra.mxu3 %vm678_vm15, %v3999_v16  ;;  %v6625_v16 = vld [vmem:[#allocation7] sm:$0xff] }
0x1c69   :  { %4299 = vrot.lane.b32.xlu0 %v8546_v49, %s6894_s6  ;;  %v3934_v49 = vpop.f32.mrf.mxu0 }
0x1c6a   :  { %v8645_v11 = vadd.f32 %v6320_v10, %v3934_v49 }
0x1c70   :  { %4242 = vrot.lane.b32.xlu2 %v8558_v30, %s6893_s27 }
0x1c71   :  { %4301 = vrot.lane.b32.xlu0 %v8551_v51, %s6894_s6  ;;  %v3937_v7 = vpop.f32.mrf.mxu0 }
0x1c72   :  { %v8642_v20 = vadd.f32 %v6320_v10, %v3937_v7 }
0x1c79   :  { %4303 = vrot.lane.b32.xlu0 %v8558_v30, %s6894_s6  ;;  %v3940_v52 = vpop.f32.mrf.mxu0 }
0x1c7a   :  { %v4033_v18 = vpop.permute.xlu1 %4032  ;;  %v8637_v43 = vadd.f32 %v6320_v10, %v3940_v52 }
0x1c7b   :  { %6050 = vmatmul.msk.f32.vlgmr.msra.gmra.mxu2 %vm678_vm15, %v4033_v18 }
0x1c81   :  { %v4163_v34 = vpop.f32.mrf.mxu0 }
0x1c82   :  { %v4310_v22 = vpop.permute.xlu1 %4309 }
0x1c83   :  { %6083 = vmatpush.xpose.msk.msrb.mxu3 %vm259_vm1, %v4310_v22 }
0x1c89   :  { %v4166_v45 = vpop.f32.mrf.mxu0 }
0x1c8a   :  { %v4247_v9 = vpop.permute.xlu1 %4246 }
0x1c8b   :  { %6076 = vmatpush.xpose.msk.msrb.mxu2 %vm259_vm1, %v4247_v9 }
0x1c91   :  { %v4169_v10 = vpop.f32.mrf.mxu0 }
0x1c92   :  { %v4245_v26 = vpop.permute.xlu1 %4244 }
0x1c93   :  { %6077 = vmatpush.xpose.msk.msrb.mxu2 %vm259_vm1, %v4245_v26 }
0x1c9a   :  { %v4237_v17 = vpop.permute.xlu1 %4236 }
0x1ca2   :  { %v4037_v54 = vpop.permute.xlu2 %4036  ;;  %v4176_v8 = vpop.permute.xlu1 %4175 }
0x1caa   :  { %v4186_v41 = vpop.permute.xlu2 %4185  ;;  %v4178_v40 = vpop.permute.xlu1 %4177 }
0x1cab   :  { %6068 = vmatpush.xpose.msk.msrb.mxu1 %vm259_vm1, %v4186_v41 }
0x1cb2   :  { %v4035_v24 = vpop.permute.xlu0 %4034  ;;  %v4298_v58 = vpop.permute.xlu2 %4297 }
0x1cb3   :  { %6051 = vmatmul.msk.f32.gmra.mxu2 %vm678_vm15, %v4035_v24  ;;  %v4180_v60 = vpop.permute.xlu1 %4179 }
0x1cba   :  { %v4239_v51 = vpop.permute.xlu2 %4238 }
0x1cbb   :  { %v4308_v4 = vpop.permute.xlu0 %4307  ;;  %6052 = vmatmul.msk.f32.gmra.mxu2 %vm678_vm15, %v4037_v54  ;;  %v4182_v44 = vpop.permute.xlu1 %4181 }
0x1cbc   :  { %6084 = vmatpush.xpose.msk.msrb.mxu3 %vm259_vm1, %v4308_v4 }
0x1cc2   :  { %v4241_v30 = vpop.permute.xlu2 %4240 }
0x1cc3   :  { %v4039_v53 = vpop.permute.xlu0 %4038 }
0x1cc4   :  { %6053 = vmatmul.msk.f32.gmra.mxu2 %vm678_vm15, %v4039_v53  ;;  %v6626_v53 = vld [vmem:[#allocation7 + $0x8] sm:$0xff] }
0x1cca   :  { %v4243_v32 = vpop.permute.xlu2 %4242 }
0x1ccb   :  { %v4306_v28 = vpop.permute.xlu0 %4305 }
0x1ccc   :  { %6078 = vmatmul.msk.f32.vlgmr.msrb.gmra.mxu2 %vm259_vm1, %v4237_v17  ;;  %6085 = vmatpush.xpose.msk.msrb.mxu3 %vm259_vm1, %v4306_v28 }
0x1ccf   :  { %6086 = vmatmul.msk.f32.vlgmr.msrb.gmra.mxu3 %vm259_vm1, %v4298_v58 }
0x1cd3   :  { %v4184_v6 = vpop.permute.xlu0 %4183  ;;  %v4106_v38 = vpop.f32.mrf.mxu3 }
0x1cd4   :  { %6069 = vmatpush.xpose.msk.msrb.mxu1 %vm259_vm1, %v4184_v6  ;;  %6079 = vmatmul.msk.f32.gmra.mxu2 %vm259_vm1, %v4239_v51 }
0x1cd7   :  { %6070 = vmatmul.msk.f32.vlgmr.msrb.gmra.mxu1 %vm259_vm1, %v4176_v8 }
0x1cd8   :  { %4503 = vmatpush.msra.mxu1 %v8637_v43 }
0x1cda   :  { %4504 = vmatpush.msra.mxu1 %v8642_v20 }
0x1cdb   :  { %v4300_v25 = vpop.permute.xlu0 %4299  ;;  %v4109_v13 = vpop.f32.mrf.mxu3 }
0x1cdc   :  { %4505 = vmatpush.msra.mxu1 %v8645_v11  ;;  %6080 = vmatmul.msk.f32.gmra.mxu2 %vm259_vm1, %v4241_v30 }
0x1cdd   :  { %6087 = vmatmul.msk.f32.gmra.mxu3 %vm259_vm1, %v4300_v25 }
0x1cde   :  { %4506 = vmatpush.msra.mxu1 %v8648_v27 }
0x1cdf   :  { %6071 = vmatmul.msk.f32.gmra.mxu1 %vm259_vm1, %v4178_v40  ;;  %v6627_v40 = vld [vmem:[#allocation7 + $0x10] sm:$0xff] }
0x1ce3   :  { %v4302_v37 = vpop.permute.xlu0 %4301  ;;  %v4112_v61 = vpop.f32.mrf.mxu3 }
0x1ce4   :  { %6081 = vmatmul.msk.f32.gmra.mxu2 %vm259_vm1, %v4243_v32 }
0x1ce5   :  { %6088 = vmatmul.msk.f32.gmra.mxu3 %vm259_vm1, %v4302_v37 }
0x1ce7   :  { %6072 = vmatmul.msk.f32.gmra.mxu1 %vm259_vm1, %v4180_v60 }
0x1ceb   :  { %v4304_v55 = vpop.permute.xlu0 %4303  ;;  %v4115_v21 = vpop.f32.mrf.mxu3 }
0x1ced   :  { %6089 = vmatmul.msk.f32.gmra.mxu3 %vm259_vm1, %v4304_v55 }
0x1cef   :  { %6073 = vmatmul.msk.f32.gmra.mxu1 %vm259_vm1, %v4182_v44 }
0x1cfe   :  { %v4065_v0 = vpop.f32.mrf.mxu2 }
0x1cff   :  { %v4107_v33 = vadd.f32 %v4106_v38, %v4065_v0  ;;  %v4172_v0 = vpop.f32.mrf.mxu0 }
0x1d01   :  { %v4118_v18 = vadd.f32 %v6625_v16, %v4107_v33 }
0x1d36   :  { %v4068_v2 = vpop.f32.mrf.mxu2 }
0x1d37   :  { %v4110_v4 = vadd.f32 %v4109_v13, %v4068_v2  ;;  %v6628_v13 = vld [vmem:[#allocation7 + $0x18] sm:$0xff] }
0x1d39   :  { %v4119_v58 = vadd.f32 %v6626_v53, %v4110_v4 }
0x1d3e   :  { %v4071_v62 = vpop.f32.mrf.mxu2 }
0x1d3f   :  { %v4113_v6 = vadd.f32 %v4112_v61, %v4071_v62 }
0x1d41   :  { %v4120_v25 = vadd.f32 %v6627_v40, %v4113_v6 }
0x1d47   :  { %v4074_v39 = vpop.f32.mrf.mxu2 }
0x1d48   :  { %v8660_v50 = vadd.f32 %v4115_v21, %v4074_v39 }
0x1d4a   :  { %v4121_v2 = vadd.f32 %v6628_v13, %v8660_v50 }
0x1d4f   :  { %v4285_v57 = vpop.f32.mrf.mxu2 }
0x1d50   :  { %4378 = vrot.lane.b32.xlu0 %v4285_v57, %s6893_s27  ;;  %v6275_v57 = vpack.i.bf16 %v8642_v20, %v8637_v43 }
0x1d52   :  { %v4346_v29 = vpop.f32.mrf.mxu3 }
0x1d53   :  { %4394 = vrot.lane.b32.xlu1 %v4346_v29, %s6895_s12  ;;  %v8692_v29 = vpack.i.bf16 %v8648_v27, %v8645_v11 }
0x1d54   :  { %v4224_v3 = vpop.f32.mrf.mxu1 }
0x1d55   :  { %4362 = vrot.lane.b32.xlu2 %v4224_v3, %s6894_s6 }
0x1d57   :  { %v4288_v31 = vpop.f32.mrf.mxu2 }
0x1d58   :  { %4380 = vrot.lane.b32.xlu0 %v4288_v31, %s6893_s27 }
0x1d5c   :  { %v4227_v14 = vpop.f32.mrf.mxu1 }
0x1d5d   :  { %4364 = vrot.lane.b32.xlu2 %v4227_v14, %s6894_s6 }
0x1d5f   :  { %v4291_v23 = vpop.f32.mrf.mxu2 }
0x1d60   :  { %v4349_v12 = vpop.f32.mrf.mxu3  ;;  %4382 = vrot.lane.b32.xlu0 %v4291_v23, %s6893_s27 }
0x1d61   :  { %4396 = vrot.lane.b32.xlu1 %v4349_v12, %s6895_s12 }
0x1d64   :  { %v4230_v19 = vpop.f32.mrf.mxu1 }
0x1d65   :  { %4366 = vrot.lane.b32.xlu2 %v4230_v19, %s6894_s6 }
0x1d67   :  { %v4294_v36 = vpop.f32.mrf.mxu2 }
0x1d68   :  { %v4352_v56 = vpop.f32.mrf.mxu3  ;;  %4384 = vrot.lane.b32.xlu0 %v4294_v36, %s6893_s27 }
0x1d69   :  { %4398 = vrot.lane.b32.xlu1 %v4352_v56, %s6895_s12 }
0x1d6c   :  { %v4233_v5 = vpop.f32.mrf.mxu1 }
0x1d6d   :  { %4368 = vrot.lane.b32.xlu2 %v4233_v5, %s6894_s6 }
0x1d70   :  { %v4355_v59 = vpop.f32.mrf.mxu3 }
0x1d71   :  { %4400 = vrot.lane.b32.xlu1 %v4355_v59, %s6895_s12 }
0x1daf   :  { %v4363_v47 = vpop.permute.xlu2 %4362 }
0x1db0   :  { %v4406_v48 = vsel %vm259_vm1, %v4163_v34, %v4363_v47 }
0x1db7   :  { %v4365_v41 = vpop.permute.xlu2 %4364 }
0x1db8   :  { %v4407_v49 = vsel %vm259_vm1, %v4166_v45, %v4365_v41 }
0x1dbf   :  { %v4367_v51 = vpop.permute.xlu2 %4366 }
0x1dc0   :  { %v4408_v30 = vsel %vm259_vm1, %v4169_v10, %v4367_v51  ;;  %v4778_v51 = vld [vmem:[#allocation11 + $0x98] sm:$0xff] }
0x1dc1   :  { %4803 = vmatpush.msrb.mxu1 %v4778_v51  ;;  %v6107_v51 = vld [vmem:[%s9150_s8 + $0x100] sm:$0xff] }
0x1dc2   :  { %v4379_v63 = vpop.permute.xlu0 %4378 }
0x1dc3   :  { %v4410_v22 = vsel %vm678_vm15, %v4406_v48, %v4379_v63 }
0x1dc5   :  { %v4395_v9 = vpop.permute.xlu1 %4394 }
0x1dc6   :  { %v4414_v26 = vsel %vm1057_vm0, %v4410_v22, %v4395_v9 }
0x1dc7   :  { %v4418_v54 = vadd.f32 %v4414_v26, %v4118_v18  ;;  %v4369_v44 = vpop.permute.xlu2 %4368 }
0x1dc8   :  { %v4409_v33 = vsel %vm259_vm1, %v4172_v0, %v4369_v44 }
0x1dc9   :  { %4422 = vmax.xlane.f32.xlu2 %v4418_v54 }
0x1dca   :  { %v4381_v24 = vpop.permute.xlu0 %4380 }
0x1dcb   :  { %v4411_v17 = vsel %vm678_vm15, %v4407_v49, %v4381_v24 }
0x1dd2   :  { %v4383_v8 = vpop.permute.xlu0 %4382 }
0x1dd3   :  { %v4397_v7 = vpop.permute.xlu1 %4396  ;;  %v4412_v32 = vsel %vm678_vm15, %v4408_v30, %v4383_v8  ;;  %v4776_v8 = vld [vmem:[#allocation11 + $0x88] sm:$0xff]  ;;  %v4775_v30 = vld [vmem:[#allocation11 + $0x80] sm:$0xff] }
0x1dd4   :  { %v4415_v28 = vsel %vm1057_vm0, %v4411_v17, %v4397_v7 }
0x1dd5   :  { %v4419_v52 = vadd.f32 %v4415_v28, %v4119_v58 }
0x1dd7   :  { %4424 = vmax.xlane.f32.xlu0 %v4419_v52 }
0x1dda   :  { %v4385_v38 = vpop.permute.xlu0 %4384 }
0x1ddb   :  { %v4399_v37 = vpop.permute.xlu1 %4398  ;;  %v4413_v61 = vsel %vm678_vm15, %v4409_v33, %v4385_v38 }
0x1ddc   :  { %v4416_v60 = vsel %vm1057_vm0, %v4412_v32, %v4399_v37 }
0x1ddd   :  { %v4420_v55 = vadd.f32 %v4416_v60, %v4120_v25 }
0x1ddf   :  { %4426 = vmax.xlane.f32.xlu1 %v4420_v55 }
0x1de3   :  { %v4401_v62 = vpop.permute.xlu1 %4400 }
0x1de4   :  { %v4417_v21 = vsel %vm1057_vm0, %v4413_v61, %v4401_v62 }
0x1de5   :  { %v4421_v39 = vadd.f32 %v4417_v21, %v4121_v2 }
0x1de7   :  { %4428 = vmax.xlane.f32.xlu2 %v4421_v39 }
0x1deb   :  { %6276 = vrot.lane.b32.xlu0 %v6275_v57, %s6895_s12 }
0x1df3   :  { %6291 = vrot.lane.b32.xlu0 %v8692_v29, %s6893_s27 }
0x1df8   :  { %6281 = vrot.lane.b32.xlu1 %v6275_v57, %s6893_s27 }
0x1dff   :  { %6286 = vrot.lane.b32.xlu2 %v8692_v29, %s6895_s12 }
0x1e07   :  { %6296 = vrot.lane.b32.xlu2 %v6275_v57, %s6894_s6 }
0x1e3c   :  { %v4423_v50 = vpop.xlane.xlu2 %4422 }
0x1e3d   :  { %v4430_v3 = vsub.f32 %v4418_v54, %v4423_v50 }
0x1e3f   :  { %v4434_v31 = vmul.f32 1.442695, %v4430_v3 }
0x1e41   :  { %6481 = vpow2.f32 %v4434_v31 }
0x1e47   :  { %v6482_v43 = vpop.eup %6481 }
0x1e48   :  { %4458 = vmatmul.f32.vlgmr.msra.gmra.mxu0 %v6482_v43 }
0x1e4a   :  { %v4425_v20 = vpop.xlane.xlu0 %4424 }
0x1e4b   :  { %v4431_v14 = vsub.f32 %v4419_v52, %v4425_v20  ;;  %v4777_v52 = vld [vmem:[#allocation11 + $0x90] sm:$0xff] }
0x1e4c   :  { %4804 = vmatpush.msrb.mxu1 %v4777_v52 }
0x1e4d   :  { %v4436_v11 = vmul.f32 1.442695, %v4431_v14 }
0x1e4e   :  { %4805 = vmatpush.msrb.mxu1 %v4776_v8 }
0x1e4f   :  { %6483 = vpow2.f32 %v4436_v11 }
0x1e50   :  { %4806 = vmatpush.msrb.mxu1 %v4775_v30 }
0x1e52   :  { %v4427_v27 = vpop.xlane.xlu1 %4426 }
0x1e53   :  { %v4432_v23 = vsub.f32 %v4420_v55, %v4427_v27 }
0x1e55   :  { %v6484_v12 = vpop.eup %6483  ;;  %v4438_v19 = vmul.f32 1.442695, %v4432_v23 }
0x1e56   :  { %4461 = vmatmul.f32.gmra.mxu0 %v6484_v12 }
0x1e57   :  { %6485 = vpow2.f32 %v4438_v19  ;;  %v6122_v19 = vld [vmem:[%s9150_s8 + $0x178] sm:$0xff] }
0x1e5a   :  { %v4429_v36 = vpop.xlane.xlu2 %4428 }
0x1e5b   :  { %v4433_v56 = vsub.f32 %v4421_v39, %v4429_v36  ;;  %v6121_v36 = vld [vmem:[%s9150_s8 + $0x170] sm:$0xff] }
0x1e5d   :  { %v8700_v5 = vpop.eup %6485  ;;  %v4440_v59 = vmul.f32 1.442695, %v4433_v56  ;;  %v6277_v47 = vpop.permute.xlu0 %6276  ;;  %v6120_v56 = vld [vmem:[%s9150_s8 + $0x168] sm:$0xff] }
0x1e5e   :  { %v6278_v63 = vunpack.i.l.bf16 %v6277_v47  ;;  %4464 = vmatmul.f32.gmra.mxu0 %v8700_v5  ;;  %v6279_v34 = vunpack.i.h.bf16 %v6277_v47 }
0x1e5f   :  { %6487 = vpow2.f32 %v4440_v59 }
0x1e60   :  { %4564 = vmatpush.msra.mxu2 %v6278_v63 }
0x1e62   :  { %4565 = vmatpush.msra.mxu2 %v6279_v34  ;;  %v6287_v48 = vpop.permute.xlu2 %6286  ;;  %v6118_v34 = vld [vmem:[%s9150_s8 + $0x158] sm:$0xff] }
0x1e63   :  { %v6288_v16 = vunpack.i.l.bf16 %v6287_v48  ;;  %v6289_v22 = vunpack.i.h.bf16 %v6287_v48  ;;  %v6117_v48 = vld [vmem:[%s9150_s8 + $0x150] sm:$0xff] }
0x1e65   :  { %v6488_v18 = vpop.eup %6487  ;;  %4566 = vmatpush.msra.mxu2 %v6288_v16  ;;  %v6292_v24 = vpop.permute.xlu0 %6291  ;;  %v6116_v16 = vld [vmem:[%s9150_s8 + $0x148] sm:$0xff] }
0x1e66   :  { %4467 = vmatmul.f32.gmra.mxu0 %v6488_v18  ;;  %v6293_v49 = vunpack.i.l.bf16 %v6292_v24  ;;  %v6294_v53 = vunpack.i.h.bf16 %v6292_v24 }
0x1e67   :  { %4567 = vmatpush.msra.mxu2 %v6289_v22 }
0x1e69   :  { %4820 = vmatpush.msrb.mxu2 %v6122_v19 }
0x1e6a   :  { %v6297_v9 = vpop.permute.xlu2 %6296  ;;  %v6282_v26 = vpop.permute.xlu1 %6281 }
0x1e6b   :  { %v6298_v54 = vunpack.i.l.bf16 %v6297_v9  ;;  %v6283_v41 = vunpack.i.l.bf16 %v6282_v26  ;;  %v6299_v45 = vunpack.i.h.bf16 %v6297_v9  ;;  %v6284_v4 = vunpack.i.h.bf16 %v6282_v26  ;;  %4821 = vmatpush.msrb.mxu2 %v6121_v36  ;;  %v8816_v36 = vld [vmem:[%s9153_s11 + $0x10] sm:$0x1f] }
0x1e6d   :  { %4621 = vmatpush.msra.mxu3 %v6283_v41  ;;  %4678 = vmatpush.msrb.mxu0 %v6298_v54 }
0x1e6e   :  { %4822 = vmatpush.msrb.mxu2 %v6120_v56  ;;  %v4849_v56 = vperm.slane %v8816_v36, 0 }
0x1e6f   :  { %4622 = vmatpush.msra.mxu3 %v6284_v4  ;;  %4679 = vmatpush.msrb.mxu0 %v6299_v45  ;;  %v6115_v45 = vld [vmem:[%s9150_s8 + $0x140] sm:$0xff]  ;;  %v6114_v4 = vld [vmem:[%s9150_s8 + $0x138] sm:$0xff] }
0x1e71   :  { %4623 = vmatpush.msra.mxu3 %v6293_v49  ;;  %v6113_v49 = vld [vmem:[%s9150_s8 + $0x130] sm:$0xff] }
0x1e73   :  { %4624 = vmatpush.msra.mxu3 %v6294_v53  ;;  %v6112_v53 = vld [vmem:[%s9150_s8 + $0x128] sm:$0xff] }
0x1ec5   :  { %v4459_v58 = vpop.f32.mrf.mxu0 }
0x1ec6   :  { %v4460_v17 = vadd.f32 1e-37, %v4459_v58  ;;  %v6111_v58 = vld [vmem:[%s9150_s8 + $0x120] sm:$0xff] }
0x1ec8   :  { %6489 = vrcp.f32 %v4460_v17  ;;  %v6110_v17 = vld [vmem:[%s9150_s8 + $0x118] sm:$0xff] }
0x1ece   :  { %v6490_v7 = vpop.eup %6489 }
0x1ecf   :  { %v4475_v28 = vmul.f32 %v6490_v7, %v6482_v43  ;;  %v6109_v7 = vld [vmem:[%s9150_s8 + $0x110] sm:$0xff] }
0x1ed1   :  { %6090 = vmatmul.msk.f32.vlgmr.msra.gmra.mxu1 %vm259_vm1, %v4475_v28  ;;  %4520 = vrot.lane.b32.xlu0 %v4475_v28, %s6895_s12 }
0x1ed2   :  { %4581 = vrot.lane.b32.xlu1 %v4475_v28, %s6893_s27  ;;  %4638 = vrot.lane.b32.xlu2 %v4475_v28, %s6894_s6  ;;  %v6108_v28 = vld [vmem:[%s9150_s8 + $0x108] sm:$0xff] }
0x1ed3   :  { %v4462_v10 = vpop.f32.mrf.mxu0 }
0x1ed4   :  { %v4463_v6 = vadd.f32 1e-37, %v4462_v10 }
0x1ed6   :  { %6491 = vrcp.f32 %v4463_v6 }
0x1ed9   :  { %6301 = vrot.lane.b32.xlu0 %v8692_v29, %s6894_s6 }
0x1edb   :  { %v4465_v40 = vpop.f32.mrf.mxu0 }
0x1edc   :  { %v6492_v25 = vpop.eup %6491  ;;  %v4466_v32 = vadd.f32 1e-37, %v4465_v40 }
0x1edd   :  { %v4476_v37 = vmul.f32 %v6492_v25, %v6484_v12 }
0x1ede   :  { %6493 = vrcp.f32 %v4466_v32 }
0x1edf   :  { %6091 = vmatmul.msk.f32.gmra.mxu1 %vm259_vm1, %v4476_v37  ;;  %4522 = vrot.lane.b32.xlu1 %v4476_v37, %s6895_s12 }
0x1ee0   :  { %4640 = vrot.lane.b32.xlu2 %v4476_v37, %s6894_s6 }
0x1ee1   :  { %4583 = vrot.lane.b32.xlu0 %v4476_v37, %s6893_s27 }
0x1ee3   :  { %v4468_v60 = vpop.f32.mrf.mxu0 }
0x1ee4   :  { %v6494_v55 = vpop.eup %6493  ;;  %v4469_v44 = vadd.f32 1e-37, %v4468_v60 }
0x1ee5   :  { %v4477_v38 = vmul.f32 %v6494_v55, %v8700_v5  ;;  %v6119_v5 = vld [vmem:[%s9150_s8 + $0x160] sm:$0xff] }
0x1ee6   :  { %6495 = vrcp.f32 %v4469_v44  ;;  %4823 = vmatpush.msrb.mxu2 %v6119_v5 }
0x1ee7   :  { %4524 = vrot.lane.b32.xlu1 %v4477_v38, %s6895_s12  ;;  %6092 = vmatmul.msk.f32.gmra.mxu1 %vm259_vm1, %v4477_v38 }
0x1ee8   :  { %4642 = vrot.lane.b32.xlu2 %v4477_v38, %s6894_s6  ;;  %4824 = vmatpush.msrb.mxu2 %v6118_v34 }
0x1ee9   :  { %4585 = vrot.lane.b32.xlu0 %v4477_v38, %s6893_s27 }
0x1eea   :  { %4825 = vmatpush.msrb.mxu2 %v6117_v48 }
0x1eec   :  { %v6496_v0 = vpop.eup %6495  ;;  %4826 = vmatpush.msrb.mxu2 %v6116_v16 }
0x1eed   :  { %v4478_v33 = vmul.f32 %v6496_v0, %v6488_v18 }
0x1eee   :  { %4827 = vmatpush.msrb.mxu2 %v6115_v45 }
0x1eef   :  { %4526 = vrot.lane.b32.xlu1 %v4478_v33, %s6895_s12  ;;  %6093 = vmatmul.msk.f32.gmra.mxu1 %vm259_vm1, %v4478_v33 }
0x1ef0   :  { %4828 = vmatpush.msrb.mxu2 %v6114_v4 }
0x1ef1   :  { %4587 = vrot.lane.b32.xlu0 %v4478_v33, %s6893_s27 }
0x1ef2   :  { %4829 = vmatpush.msrb.mxu2 %v6113_v49 }
0x1ef4   :  { %4830 = vmatpush.msrb.mxu2 %v6112_v53 }
0x1ef6   :  { %4831 = vmatpush.msrb.mxu2 %v6111_v58 }
0x1ef7   :  { %4644 = vrot.lane.b32.xlu1 %v4478_v33, %s6894_s6  ;;  %6123 = vmatmul.msk.f32.vlgmr.msrb.gmra.mxu1 %vm259_vm1, %v8373_v35 }
0x1ef8   :  { %4832 = vmatpush.msrb.mxu2 %v6110_v17 }
0x1efa   :  { %4833 = vmatpush.msrb.mxu2 %v6109_v7 }
0x1efc   :  { %4834 = vmatpush.msrb.mxu2 %v6108_v28 }
0x1efe   :  { %4835 = vmatpush.msrb.mxu2 %v6107_v51 }
0x1eff   :  { %6124 = vmatmul.msk.f32.gmra.mxu1 %vm259_vm1, %v8378_v15 }
0x1f07   :  { %6125 = vmatmul.msk.f32.gmra.mxu1 %vm259_vm1, %v8383_v42 }
0x1f0f   :  { %6126 = vmatmul.msk.f32.gmra.mxu1 %vm259_vm1, %v8388_v1 }
0x1f2c   :  { %v4639_v21 = vpop.permute.xlu2 %4638 }
0x1f3a   :  { %v4641_v50 = vpop.permute.xlu2 %4640 }
0x1f42   :  { %v4643_v43 = vpop.permute.xlu2 %4642 }
0x1f43   :  { %v4521_v13 = vpop.permute.xlu0 %4520 }
0x1f44   :  { %v4582_v2 = vpop.permute.xlu1 %4581  ;;  %6094 = vmatmul.msk.f32.vlgmr.msra.gmra.mxu2 %vm259_vm1, %v4521_v13 }
0x1f45   :  { %6098 = vmatmul.msk.f32.vlgmr.msra.gmra.mxu3 %vm259_vm1, %v4582_v2 }
0x1f4b   :  { %v6302_v61 = vpop.permute.xlu0 %6301 }
0x1f4c   :  { %v6303_v62 = vunpack.i.l.bf16 %v6302_v61  ;;  %v6304_v39 = vunpack.i.h.bf16 %v6302_v61 }
0x1f4e   :  { %4680 = vmatpush.msrb.mxu0 %v6303_v62  ;;  %v4508_v8 = vpop.f32.mrf.mxu1 }
0x1f50   :  { %4681 = vmatpush.msrb.mxu0 %v6304_v39 }
0x1f51   :  { %v4523_v57 = vpop.permute.xlu1 %4522  ;;  %6102 = vmatmul.msk.f32.vlgmr.msrb.gmra.mxu0 %vm259_vm1, %v4639_v21 }
0x1f52   :  { %6095 = vmatmul.msk.f32.gmra.mxu2 %vm259_vm1, %v4523_v57 }
0x1f53   :  { %v4584_v29 = vpop.permute.xlu0 %4583 }
0x1f54   :  { %6099 = vmatmul.msk.f32.gmra.mxu3 %vm259_vm1, %v4584_v29 }
0x1f59   :  { %v4525_v3 = vpop.permute.xlu1 %4524  ;;  %6103 = vmatmul.msk.f32.gmra.mxu0 %vm259_vm1, %v4641_v50 }
0x1f5a   :  { %6096 = vmatmul.msk.f32.gmra.mxu2 %vm259_vm1, %v4525_v3 }
0x1f5b   :  { %v4586_v31 = vpop.permute.xlu0 %4585 }
0x1f5c   :  { %6100 = vmatmul.msk.f32.gmra.mxu3 %vm259_vm1, %v4586_v31  ;;  %v4511_v37 = vpop.f32.mrf.mxu1 }
0x1f61   :  { %v4527_v20 = vpop.permute.xlu1 %4526  ;;  %6104 = vmatmul.msk.f32.gmra.mxu0 %vm259_vm1, %v4643_v43 }
0x1f62   :  { %6097 = vmatmul.msk.f32.gmra.mxu2 %vm259_vm1, %v4527_v20 }
0x1f63   :  { %v4588_v14 = vpop.permute.xlu0 %4587 }
0x1f64   :  { %6101 = vmatmul.msk.f32.gmra.mxu3 %vm259_vm1, %v4588_v14  ;;  %v4514_v13 = vpop.f32.mrf.mxu1 }
0x1f69   :  { %v4645_v11 = vpop.permute.xlu1 %4644 }
0x1f6a   :  { %6105 = vmatmul.msk.f32.gmra.mxu0 %vm259_vm1, %v4645_v11  ;;  %v4878_v11 = vld [vmem:[#allocation13 + $0x98] sm:$0xff] }
0x1f6b   :  { %4903 = vmatpush.msrb.mxu3 %v4878_v11 }
0x1f6c   :  { %v4517_v29 = vpop.f32.mrf.mxu1 }
0x1f74   :  { %v4808_v19 = vpop.f32.mrf.mxu1 }
0x1fc7   :  { %v4569_v23 = vpop.f32.mrf.mxu2 }
0x1fc8   :  { %v4626_v27 = vpop.f32.mrf.mxu3 }
0x1fc9   :  { %4715 = vrot.lane.b32.xlu0 %v4626_v27, %s6893_s27  ;;  %v4877_v27 = vld [vmem:[#allocation13 + $0x90] sm:$0xff] }
0x1fca   :  { %4904 = vmatpush.msrb.mxu3 %v4877_v27 }
0x1fce   :  { %v4683_v12 = vpop.f32.mrf.mxu0 }
0x1fcf   :  { %4731 = vrot.lane.b32.xlu1 %v4683_v12, %s6895_s12  ;;  %v4875_v12 = vld [vmem:[#allocation13 + $0x80] sm:$0xff] }
0x1fd5   :  { %v4572_v59 = vpop.f32.mrf.mxu2 }
0x1fd6   :  { %v6305_v47 = vpack.i.bf16 %v4572_v59, %v4569_v23  ;;  %v4686_v63 = vpop.f32.mrf.mxu0  ;;  %v4876_v23 = vld [vmem:[#allocation13 + $0x88] sm:$0xff] }
0x1fd7   :  { %4733 = vrot.lane.b32.xlu0 %v4686_v63, %s6895_s12  ;;  %v4629_v18 = vpop.f32.mrf.mxu3  ;;  %4905 = vmatpush.msrb.mxu3 %v4876_v23  ;;  %v4811_v63 = vpop.f32.mrf.mxu1 }
0x1fd8   :  { %6306 = vrot.lane.b32.xlu2 %v6305_v47, %s6894_s6 }
0x1fd9   :  { %4906 = vmatpush.msrb.mxu3 %v4875_v12 }
0x1fdd   :  { %v4575_v22 = vpop.f32.mrf.mxu2 }
0x1fde   :  { %4703 = vrot.lane.b32.xlu1 %v4575_v22, %s6894_s6  ;;  %v4689_v9 = vpop.f32.mrf.mxu0 }
0x1fdf   :  { %4735 = vrot.lane.b32.xlu0 %v4689_v9, %s6895_s12  ;;  %v4632_v26 = vpop.f32.mrf.mxu3 }
0x1fe0   :  { %4717 = vrot.lane.b32.xlu2 %v4629_v18, %s6893_s27 }
0x1fe5   :  { %v4578_v54 = vpop.f32.mrf.mxu2 }
0x1fe6   :  { %4705 = vrot.lane.b32.xlu1 %v4578_v54, %s6894_s6  ;;  %v4814_v54 = vpop.f32.mrf.mxu1 }
0x1fe7   :  { %v4692_v41 = vpop.f32.mrf.mxu0  ;;  %v4635_v24 = vpop.f32.mrf.mxu3 }
0x1fe8   :  { %4737 = vrot.lane.b32.xlu0 %v4692_v41, %s6895_s12  ;;  %4719 = vrot.lane.b32.xlu2 %v4632_v26, %s6893_s27 }
0x1fee   :  { %v4817_v28 = vpop.f32.mrf.mxu1 }
0x1ff0   :  { %4721 = vrot.lane.b32.xlu2 %v4635_v24, %s6893_s27 }
0x2032   :  { %v6307_v52 = vpop.permute.xlu2 %6306 }
0x2033   :  { %v6308_v10 = vunpack.i.l.bf16 %v6307_v52  ;;  %v6309_v60 = vunpack.i.h.bf16 %v6307_v52 }
0x2035   :  { %v4743_v30 = vsel %vm259_vm1, %v4508_v8, %v6308_v10  ;;  %v4744_v44 = vsel %vm259_vm1, %v4511_v37, %v6309_v60 }
0x203a   :  { %v4718_v55 = vpop.permute.xlu2 %4717 }
0x203b   :  { %v4716_v6 = vpop.permute.xlu0 %4715  ;;  %v4748_v38 = vsel %vm678_vm15, %v4744_v44, %v4718_v55 }
0x203c   :  { %v4747_v40 = vsel %vm678_vm15, %v4743_v30, %v4716_v6 }
0x2041   :  { %v4732_v25 = vpop.permute.xlu1 %4731 }
0x2042   :  { %v4751_v32 = vsel %vm1057_vm0, %v4747_v40, %v4732_v25  ;;  %v4720_v2 = vpop.permute.xlu2 %4719 }
0x2043   :  { %4836 = vmatmul.f32.vlgmr.msrb.gmra.mxu2 %v4751_v32 }
0x2049   :  { %v4734_v0 = vpop.permute.xlu0 %4733 }
0x204a   :  { %v4752_v33 = vsel %vm1057_vm0, %v4748_v38, %v4734_v0  ;;  %v4722_v3 = vpop.permute.xlu2 %4721  ;;  %v4940_v38 = vperm.slane %v8816_v36, 2 }
0x204b   :  { %4839 = vmatmul.f32.gmra.mxu2 %v4752_v33 }
0x204c   :  { %4942 = vrot.lane.b32.xlu2 %v4940_v38, %s6893_s27 }
0x2050   :  { %v4704_v61 = vpop.permute.xlu1 %4703 }
0x2051   :  { %v4745_v62 = vsel %vm259_vm1, %v4514_v13, %v4704_v61  ;;  %v4736_v21 = vpop.permute.xlu0 %4735 }
0x2052   :  { %v4749_v39 = vsel %vm678_vm15, %v4745_v62, %v4720_v2 }
0x2053   :  { %v4753_v57 = vsel %vm1057_vm0, %v4749_v39, %v4736_v21 }
0x2054   :  { %4842 = vmatmul.f32.gmra.mxu2 %v4753_v57 }
0x2058   :  { %v4706_v50 = vpop.permute.xlu1 %4705 }
0x2059   :  { %v4746_v31 = vsel %vm259_vm1, %v4517_v29, %v4706_v50 }
0x205a   :  { %v4738_v43 = vpop.permute.xlu0 %4737  ;;  %v4750_v20 = vsel %vm678_vm15, %v4746_v31, %v4722_v3 }
0x205b   :  { %v4754_v14 = vsel %vm1057_vm0, %v4750_v20, %v4738_v43 }
0x205c   :  { %4845 = vmatmul.f32.gmra.mxu2 %v4754_v14 }
0x20a6   :  { %v4943_v61 = vpop.permute.xlu2 %4942 }
0x20c6   :  { %v4837_v5 = vpop.f32.mrf.mxu2 }
0x20c7   :  { %v4838_v59 = vadd.f32 %v4837_v5, %v4808_v19 }
0x20c9   :  { %v4850_v47 = vadd.f32 %v4849_v56, %v4838_v59 }
0x20cb   :  { %v4854_v34 = vmul.f32 0.5, %v4850_v47 }
0x20cd   :  { %6497 = vtanh.f32 %v4854_v34 }
0x20ce   :  { %v4840_v48 = vpop.f32.mrf.mxu2 }
0x20cf   :  { %v4841_v16 = vadd.f32 %v4840_v48, %v4811_v63 }
0x20d1   :  { %v8819_v18 = vadd.f32 %v4849_v56, %v4841_v16 }
0x20d3   :  { %v6498_v22 = vpop.eup %6497  ;;  %v4855_v9 = vmul.f32 0.5, %v8819_v18 }
0x20d4   :  { %v4862_v26 = vadd.f32 1.0, %v6498_v22 }
0x20d5   :  { %6499 = vtanh.f32 %v4855_v9 }
0x20d6   :  { %v8822_v41 = vmul.f32 0.5, %v4862_v26 }
0x20d7   :  { %v4843_v24 = vpop.f32.mrf.mxu2 }
0x20d8   :  { %v4870_v45 = vmul.f32 %v8822_v41, %v8373_v35  ;;  %v4844_v4 = vadd.f32 %v4843_v24, %v4814_v54  ;;  %v5161_v54 = vld [vmem:[#allocation11 + $0xb8] sm:$0xff]  ;;  %v5160_v24 = vld [vmem:[#allocation11 + $0xb0] sm:$0xff] }
0x20d9   :  { %5186 = vmatpush.msra.mxu1 %v5161_v54 }
0x20da   :  { %v4852_v49 = vadd.f32 %v4849_v56, %v4844_v4  ;;  %6127 = vmatmul.msk.f32.vlgmr.msrb.gmra.mxu3 %vm259_vm1, %v4870_v45  ;;  %v5159_v45 = vld [vmem:[#allocation11 + $0xa8] sm:$0xff] }
0x20db   :  { %v6500_v53 = vpop.eup %6499  ;;  %5187 = vmatpush.msra.mxu1 %v5160_v24 }
0x20dc   :  { %v4863_v58 = vadd.f32 1.0, %v6500_v53  ;;  %v4856_v17 = vmul.f32 0.5, %v4852_v49 }
0x20dd   :  { %5188 = vmatpush.msra.mxu1 %v5159_v45 }
0x20de   :  { %v8827_v7 = vmul.f32 0.5, %v4863_v58  ;;  %6501 = vtanh.f32 %v4856_v17  ;;  %v5158_v17 = vld [vmem:[#allocation11 + $0xa0] sm:$0xff] }
0x20df   :  { %v4846_v51 = vpop.f32.mrf.mxu2  ;;  %5189 = vmatpush.msra.mxu1 %v5158_v17 }
0x20e0   :  { %v4847_v52 = vadd.f32 %v4846_v51, %v4817_v28  ;;  %v4871_v8 = vmul.f32 %v8827_v7, %v8378_v15 }
0x20e2   :  { %v4853_v10 = vadd.f32 %v4849_v56, %v4847_v52  ;;  %6128 = vmatmul.msk.f32.gmra.mxu3 %vm259_vm1, %v4871_v8 }
0x20e4   :  { %v6502_v6 = vpop.eup %6501  ;;  %v4857_v30 = vmul.f32 0.5, %v4853_v10 }
0x20e5   :  { %v4864_v40 = vadd.f32 1.0, %v6502_v6 }
0x20e6   :  { %6503 = vtanh.f32 %v4857_v30 }
0x20e7   :  { %v4868_v25 = vmul.f32 0.5, %v4864_v40 }
0x20e9   :  { %v4872_v32 = vmul.f32 %v4868_v25, %v8383_v42 }
0x20eb   :  { %6129 = vmatmul.msk.f32.gmra.mxu3 %vm259_vm1, %v4872_v32 }
0x20ec   :  { %v6504_v37 = vpop.eup %6503 }
0x20ed   :  { %v4865_v60 = vadd.f32 1.0, %v6504_v37 }
0x20ef   :  { %v8834_v55 = vmul.f32 0.5, %v4865_v60 }
0x20f1   :  { %v4873_v44 = vmul.f32 %v8834_v55, %v8388_v1 }
0x20f3   :  { %6130 = vmatmul.msk.f32.gmra.mxu3 %vm259_vm1, %v4873_v44 }
0x215d   :  { %v4908_v0 = vpop.f32.mrf.mxu3 }
0x215e   :  { %4924 = vrot.lane.b32.xlu1 %v4908_v0, %s6893_s27 }
0x2165   :  { %v4911_v33 = vpop.f32.mrf.mxu3 }
0x2166   :  { %4953 = vrot.lane.b32.xlu1 %v8373_v35, %s6893_s27  ;;  %4926 = vrot.lane.b32.xlu0 %v4911_v33, %s6893_s27 }
0x216e   :  { %v4914_v13 = vpop.f32.mrf.mxu3  ;;  %4955 = vrot.lane.b32.xlu0 %v8378_v15, %s6893_s27 }
0x216f   :  { %4928 = vrot.lane.b32.xlu2 %v4914_v13, %s6893_s27 }
0x2176   :  { %v4917_v2 = vpop.f32.mrf.mxu3  ;;  %4959 = vrot.lane.b32.xlu0 %v8388_v1, %s6893_s27 }
0x2177   :  { %4957 = vrot.lane.b32.xlu2 %v8383_v42, %s6893_s27  ;;  %4930 = vrot.lane.b32.xlu1 %v4917_v2, %s6893_s27 }
0x21c9   :  { %v4929_v62 = vpop.permute.xlu2 %4928 }
0x21ca   :  { %v4938_v21 = vadd.f32 %v4929_v62, %v4852_v49 }
0x21cc   :  { %v4947_v39 = vadd.f32 %v4943_v61, %v4938_v21 }
0x21ce   :  { %6505 = vtanh.f32 %v4947_v39 }
0x21d0   :  { %v4925_v57 = vpop.permute.xlu1 %4924 }
0x21d1   :  { %v4936_v29 = vadd.f32 %v4925_v57, %v4850_v47  ;;  %v4958_v31 = vpop.permute.xlu2 %4957 }
0x21d3   :  { %v4945_v50 = vadd.f32 %v4943_v61, %v4936_v29 }
0x21d4   :  { %v6506_v3 = vpop.eup %6505 }
0x21d5   :  { %6507 = vtanh.f32 %v4945_v50  ;;  %v4967_v43 = vsub.f32 %v6506_v3, %v4958_v31  ;;  %v5335_v3 = vperm.slane %v8816_v36, 3  ;;  %v5101_v31 = vld [vmem:[#allocation14 + $0x58] sm:$0xff] }
0x21d6   :  { %5127 = vmatpush.msra.mxu0 %v5101_v31 }
0x21d7   :  { %4977 = vrot.lane.b32.xlu0 %v4967_v43, %s6895_s12  ;;  %v5100_v43 = vld [vmem:[#allocation14 + $0x50] sm:$0xff] }
0x21d8   :  { %v4927_v20 = vpop.permute.xlu0 %4926  ;;  %v4954_v27 = vpop.permute.xlu1 %4953  ;;  %5128 = vmatpush.msra.mxu0 %v5100_v43 }
0x21d9   :  { %v4937_v14 = vadd.f32 %v4927_v20, %v8819_v18  ;;  %v5099_v20 = vld [vmem:[#allocation14 + $0x48] sm:$0xff] }
0x21da   :  { %5129 = vmatpush.msra.mxu0 %v5099_v20 }
0x21db   :  { %v6508_v11 = vpop.eup %6507  ;;  %v4946_v23 = vadd.f32 %v4943_v61, %v4937_v14  ;;  %v5098_v14 = vld [vmem:[#allocation14 + $0x40] sm:$0xff] }
0x21dc   :  { %v4965_v12 = vsub.f32 %v6508_v11, %v4954_v27  ;;  %5130 = vmatpush.msra.mxu0 %v5098_v14 }
0x21dd   :  { %6509 = vtanh.f32 %v4946_v23 }
0x21de   :  { %4973 = vrot.lane.b32.xlu1 %v4965_v12, %s6895_s12 }
0x21e0   :  { %v4956_v56 = vpop.permute.xlu0 %4955 }
0x21e3   :  { %v6510_v19 = vpop.eup %6509 }
0x21e4   :  { %v4966_v5 = vsub.f32 %v6510_v19, %v4956_v56 }
0x21e6   :  { %4975 = vrot.lane.b32.xlu2 %v4966_v5, %s6895_s12 }
0x21e8   :  { %v4960_v48 = vpop.permute.xlu0 %4959 }
0x21e9   :  { %v4931_v59 = vpop.permute.xlu1 %4930 }
0x21ea   :  { %v4939_v47 = vadd.f32 %v4931_v59, %v4853_v10 }
0x21ec   :  { %v4948_v63 = vadd.f32 %v4943_v61, %v4939_v47 }
0x21ee   :  { %6511 = vtanh.f32 %v4948_v63 }
0x21f4   :  { %v6512_v34 = vpop.eup %6511 }
0x21f5   :  { %v4968_v16 = vsub.f32 %v6512_v34, %v4960_v48 }
0x21f7   :  { %4979 = vrot.lane.b32.xlu1 %v4968_v16, %s6895_s12 }
0x2240   :  { %v4976_v18 = vpop.permute.xlu2 %4975 }
0x2241   :  { %v4986_v22 = vmul.f32 %v4976_v18, %v8827_v7 }
0x2243   :  { %4995 = vrot.lane.b32.xlu0 %v4986_v22, %s6895_s12 }
0x2249   :  { %v4978_v9 = vpop.permute.xlu0 %4977 }
0x224a   :  { %v4987_v26 = vmul.f32 %v4978_v9, %v4868_v25 }
0x224c   :  { %4997 = vrot.lane.b32.xlu1 %v4987_v26, %s6895_s12 }
0x2250   :  { %v4974_v4 = vpop.permute.xlu1 %4973 }
0x2251   :  { %v4985_v49 = vmul.f32 %v4974_v4, %v8822_v41 }
0x2253   :  { %4993 = vrot.lane.b32.xlu2 %v4985_v49, %s6895_s12 }
0x2269   :  { %v4980_v53 = vpop.permute.xlu1 %4979 }
0x226a   :  { %v4988_v58 = vmul.f32 %v4980_v53, %v8834_v55  ;;  %v5156_v53 = vld [vmem:[#allocation16 + $0xb8] sm:$0xff] }
0x226b   :  { %5223 = vmatpush.msra.mxu2 %v5156_v53 }
0x226c   :  { %4999 = vrot.lane.b32.xlu2 %v4988_v58, %s6895_s12  ;;  %v5155_v58 = vld [vmem:[#allocation16 + $0xb0] sm:$0xff] }
0x226d   :  { %5224 = vmatpush.msra.mxu2 %v5155_v58 }
0x22ad   :  { %v4994_v7 = vpop.permute.xlu2 %4993 }
0x22ae   :  { %v8866_v28 = vadd.f32 %v4994_v7, %v8373_v35 }
0x22b0   :  { %6135 = vmatmul.msk.f32.vlgmr.msra.gmra.mxu1 %vm259_vm1, %v8866_v28  ;;  %v5009_v41 = vsel %vm259_vm1, %v8866_v28, 0.0 }
0x22b1   :  { %5010 = vadd.xlane.f32.xlu0 %v5009_v41  ;;  %v5154_v41 = vld [vmem:[#allocation16 + $0xa8] sm:$0xff] }
0x22b2   :  { %5225 = vmatpush.msra.mxu2 %v5154_v41 }
0x22b5   :  { %v4996_v51 = vpop.permute.xlu0 %4995 }
0x22b6   :  { %v8873_v52 = vadd.f32 %v4996_v51, %v8378_v15 }
0x22b8   :  { %6136 = vmatmul.msk.f32.gmra.mxu1 %vm259_vm1, %v8873_v52  ;;  %v5012_v8 = vsel %vm259_vm1, %v8873_v52, 0.0 }
0x22b9   :  { %5013 = vadd.xlane.f32.xlu1 %v5012_v8 }
0x22be   :  { %v4998_v35 = vpop.permute.xlu1 %4997 }
0x22bf   :  { %v8880_v10 = vadd.f32 %v4998_v35, %v8383_v42 }
0x22c1   :  { %6137 = vmatmul.msk.f32.gmra.mxu1 %vm259_vm1, %v8880_v10  ;;  %v5015_v6 = vsel %vm259_vm1, %v8880_v10, 0.0 }
0x22c2   :  { %5016 = vadd.xlane.f32.xlu2 %v5015_v6 }
0x22c6   :  { %v5000_v15 = vpop.permute.xlu2 %4999 }
0x22c7   :  { %v8887_v30 = vadd.f32 %v5000_v15, %v8388_v1  ;;  %v5153_v15 = vld [vmem:[#allocation16 + $0xa0] sm:$0xff] }
0x22c8   :  { %5226 = vmatpush.msra.mxu2 %v5153_v15 }
0x22c9   :  { %6138 = vmatmul.msk.f32.gmra.mxu1 %vm259_vm1, %v8887_v30  ;;  %v5018_v40 = vsel %vm259_vm1, %v8887_v30, 0.0 }
0x22ca   :  { %5019 = vadd.xlane.f32.xlu0 %v5018_v40 }
0x2324   :  { %v5011_v42 = vpop.xlane.xlu0 %5010 }
0x2325   :  { %v5021_v25 = vmul.f32 %v5011_v42, %v7102_v46 }
0x2327   :  { %v5025_v32 = vsub.f32 %v8866_v28, %v5021_v25 }
0x2329   :  { %v5029_v37 = vmul.f32 %v5025_v32, %v5025_v32 }
0x232b   :  { %v5033_v60 = vsel %vm259_vm1, %v5029_v37, 0.0 }
0x232c   :  { %5034 = vadd.xlane.f32.xlu1 %v5033_v60  ;;  %v5014_v55 = vpop.xlane.xlu1 %5013 }
0x232d   :  { %v5022_v1 = vmul.f32 %v5014_v55, %v7102_v46 }
0x232f   :  { %v8898_v44 = vsub.f32 %v8873_v52, %v5022_v1 }
0x2331   :  { %v5030_v38 = vmul.f32 %v8898_v44, %v8898_v44 }
0x2333   :  { %v5036_v0 = vsel %vm259_vm1, %v5030_v38, 0.0 }
0x2334   :  { %5037 = vadd.xlane.f32.xlu2 %v5036_v0 }
0x2335   :  { %v5017_v33 = vpop.xlane.xlu2 %5016 }
0x2336   :  { %v5023_v13 = vmul.f32 %v5017_v33, %v7102_v46 }
0x2338   :  { %v8905_v2 = vsub.f32 %v8880_v10, %v5023_v13 }
0x233a   :  { %v5031_v61 = vmul.f32 %v8905_v2, %v8905_v2 }
0x233c   :  { %v5039_v62 = vsel %vm259_vm1, %v5031_v61, 0.0 }
0x233d   :  { %v5020_v21 = vpop.xlane.xlu0 %5019  ;;  %5040 = vadd.xlane.f32.xlu0 %v5039_v62 }
0x233e   :  { %v5024_v39 = vmul.f32 %v5020_v21, %v7102_v46 }
0x2340   :  { %v8912_v57 = vsub.f32 %v8887_v30, %v5024_v39  ;;  %v5151_v39 = vld [vmem:[#allocation16 + $0x90] sm:$0xff] }
0x2342   :  { %v5032_v29 = vmul.f32 %v8912_v57, %v8912_v57 }
0x2344   :  { %v5042_v50 = vsel %vm259_vm1, %v5032_v29, 0.0  ;;  %v5150_v29 = vld [vmem:[#allocation16 + $0x88] sm:$0xff] }
0x2345   :  { %5043 = vadd.xlane.f32.xlu1 %v5042_v50  ;;  %v5149_v50 = vld [vmem:[#allocation16 + $0x80] sm:$0xff] }
0x235e   :  { %5337 = vrot.lane.b32.xlu1 %v5335_v3, %s6893_s27 }
0x2366   :  { %5352 = vrot.lane.b32.xlu1 %v8880_v10, %s6893_s27 }
0x239f   :  { %v5035_v11 = vpop.xlane.xlu1 %5034 }
0x23a0   :  { %v5045_v27 = vmul.f32 %v5035_v11, %v7102_v46 }
0x23a2   :  { %v5049_v23 = vadd.f32 1e-05, %v5045_v27 }
0x23a4   :  { %6513 = vrsqrt.f32 %v5049_v23  ;;  %vm5059_vm11 = vweird.f32 %v5049_v23 }
0x23a7   :  { %v5038_v12 = vpop.xlane.xlu2 %5037 }
0x23a8   :  { %v5046_v19 = vmul.f32 %v5038_v12, %v7102_v46 }
0x23aa   :  { %v6514_v56 = vpop.eup %6513  ;;  %v5050_v5 = vadd.f32 1e-05, %v5046_v19 }
0x23ab   :  { %v5054_v59 = vmul.f32 %v6514_v56, %v5049_v23  ;;  %vm5060_vm0 = vweird.f32 %v6514_v56 }
0x23ac   :  { %6515 = vrsqrt.f32 %v5050_v5  ;;  %vm5061_vm12 = vmor %vm5059_vm11, %vm5060_vm0  ;;  %vm5069_vm14 = vweird.f32 %v5050_v5 }
0x23ad   :  { %v5055_v47 = vmul.f32 %v6514_v56, %v5054_v59  ;;  %v5272_v59 = vld [vmem:[#allocation13 + $0xb0] sm:$0xff] }
0x23af   :  { %v5056_v63 = vmul.f32 0.5, %v5055_v47  ;;  %v5271_v47 = vld [vmem:[#allocation13 + $0xa8] sm:$0xff] }
0x23b0   :  { %v5041_v34 = vpop.xlane.xlu0 %5040 }
0x23b1   :  { %v5057_v48 = vsub.f32 1.5, %v5056_v63  ;;  %v5047_v16 = vmul.f32 %v5041_v34, %v7102_v46  ;;  %v5270_v63 = vld [vmem:[#allocation13 + $0xa0] sm:$0xff]  ;;  %v5191_v34 = vpop.f32.mrf.mxu1 }
0x23b2   :  { %v6516_v18 = vpop.eup %6515 }
0x23b3   :  { %v5058_v22 = vmul.f32 %v6514_v56, %v5057_v48  ;;  %v5064_v9 = vmul.f32 %v6516_v18, %v5050_v5  ;;  %v5051_v26 = vadd.f32 1e-05, %v5047_v16  ;;  %vm5070_vm13 = vweird.f32 %v6516_v18  ;;  %v5273_v5 = vld [vmem:[#allocation13 + $0xb8] sm:$0xff] }
0x23b4   :  { %vm5071_vm2 = vmor %vm5069_vm14, %vm5070_vm13  ;;  %5298 = vmatpush.msra.mxu3 %v5273_v5  ;;  %v5244_v48 = vperm.slane %v8816_v36, 1 }
0x23b5   :  { %v5062_v54 = vsel %vm5061_vm12, %v6514_v56, %v5058_v22  ;;  %v5065_v24 = vmul.f32 %v6516_v18, %v5064_v9  ;;  %6517 = vrsqrt.f32 %v5051_v26  ;;  %vm5079_vm4 = vweird.f32 %v5051_v26 }
0x23b6   :  { %v5093_v45 = vmul.f32 %v5062_v54, %v5025_v32  ;;  %v5152_v32 = vld [vmem:[#allocation16 + $0x98] sm:$0xff]  ;;  %5299 = vmatpush.msra.mxu3 %v5272_v59 }
0x23b7   :  { %v5066_v4 = vmul.f32 0.5, %v5065_v24  ;;  %5227 = vmatpush.msra.mxu2 %v5152_v32 }
0x23b8   :  { %v5044_v49 = vpop.xlane.xlu1 %5043  ;;  %6131 = vmatmul.msk.f32.vlgmr.msra.gmra.mxu0 %vm259_vm1, %v5093_v45  ;;  %5300 = vmatpush.msra.mxu3 %v5271_v47 }
0x23b9   :  { %v5067_v17 = vsub.f32 1.5, %v5066_v4  ;;  %v5048_v7 = vmul.f32 %v5044_v49, %v7102_v46  ;;  %5228 = vmatpush.msra.mxu2 %v5151_v39  ;;  %v5194_v9 = vpop.f32.mrf.mxu1 }
0x23ba   :  { %5301 = vmatpush.msra.mxu3 %v5270_v63 }
0x23bb   :  { %v6518_v51 = vpop.eup %6517  ;;  %v5068_v8 = vmul.f32 %v6516_v18, %v5067_v17  ;;  %v5052_v35 = vadd.f32 1e-05, %v5048_v7  ;;  %5229 = vmatpush.msra.mxu2 %v5150_v29 }
0x23bc   :  { %v5074_v6 = vmul.f32 %v6518_v51, %v5051_v26  ;;  %vm5080_vm3 = vweird.f32 %v6518_v51 }
0x23bd   :  { %6519 = vrsqrt.f32 %v5052_v35  ;;  %v5072_v40 = vsel %vm5071_vm2, %v6516_v18, %v5068_v8  ;;  %vm5081_vm5 = vmor %vm5079_vm4, %vm5080_vm3  ;;  %vm5089_vm7 = vweird.f32 %v5052_v35  ;;  %5230 = vmatpush.msra.mxu2 %v5149_v50 }
0x23be   :  { %v5075_v42 = vmul.f32 %v6518_v51, %v5074_v6  ;;  %v5094_v25 = vmul.f32 %v5072_v40, %v8898_v44 }
0x23c0   :  { %v5076_v37 = vmul.f32 0.5, %v5075_v42  ;;  %6132 = vmatmul.msk.f32.gmra.mxu0 %vm259_vm1, %v5094_v25 }
0x23c1   :  { %v5197_v58 = vpop.f32.mrf.mxu1 }
0x23c2   :  { %v5077_v46 = vsub.f32 1.5, %v5076_v37 }
0x23c3   :  { %v6520_v60 = vpop.eup %6519 }
0x23c4   :  { %v5078_v55 = vmul.f32 %v6518_v51, %v5077_v46  ;;  %v5084_v1 = vmul.f32 %v6520_v60, %v5052_v35  ;;  %vm5090_vm6 = vweird.f32 %v6520_v60 }
0x23c5   :  { %vm5091_vm8 = vmor %vm5089_vm7, %vm5090_vm6 }
0x23c6   :  { %v5085_v38 = vmul.f32 %v6520_v60, %v5084_v1  ;;  %v5082_v0 = vsel %vm5081_vm5, %v6518_v51, %v5078_v55 }
0x23c7   :  { %v5095_v33 = vmul.f32 %v5082_v0, %v8905_v2  ;;  %v5102_v2 = vperm.slane %v8816_v36, 4 }
0x23c8   :  { %v5086_v13 = vmul.f32 0.5, %v5085_v38 }
0x23c9   :  { %6133 = vmatmul.msk.f32.gmra.mxu0 %vm259_vm1, %v5095_v33  ;;  %v5200_v40 = vpop.f32.mrf.mxu1 }
0x23ca   :  { %v5087_v44 = vsub.f32 1.5, %v5086_v13 }
0x23cc   :  { %v5088_v61 = vmul.f32 %v6520_v60, %v5087_v44 }
0x23ce   :  { %v5092_v62 = vsel %vm5091_vm8, %v6520_v60, %v5088_v61 }
0x23cf   :  { %v5096_v21 = vmul.f32 %v5092_v62, %v8912_v57 }
0x23d1   :  { %6134 = vmatmul.msk.f32.gmra.mxu0 %vm259_vm1, %v5096_v21 }
0x2435   :  { %v5132_v3 = vpop.f32.mrf.mxu0 }
0x2436   :  { %v5133_v31 = vadd.f32 %v5132_v3, %v5102_v2 }
0x2438   :  { %v5144_v43 = vmax.f32 %v5133_v31, 0.0 }
0x243a   :  { %6139 = vmatmul.msk.f32.vlgmr.msra.gmra.mxu2 %vm678_vm15, %v5144_v43 }
0x243d   :  { %v5135_v20 = vpop.f32.mrf.mxu0 }
0x243e   :  { %v5136_v14 = vadd.f32 %v5135_v20, %v5102_v2 }
0x2440   :  { %v5145_v11 = vmax.f32 %v5136_v14, 0.0 }
0x2442   :  { %6140 = vmatmul.msk.f32.gmra.mxu2 %vm678_vm15, %v5145_v11 }
0x2446   :  { %v5138_v57 = vpop.f32.mrf.mxu0 }
0x2447   :  { %v5139_v27 = vadd.f32 %v5138_v57, %v5102_v2 }
0x2449   :  { %v5146_v23 = vmax.f32 %v5139_v27, 0.0 }
0x244b   :  { %6141 = vmatmul.msk.f32.gmra.mxu2 %vm678_vm15, %v5146_v23 }
0x244e   :  { %v5141_v12 = vpop.f32.mrf.mxu0 }
0x244f   :  { %v5142_v19 = vadd.f32 %v5141_v12, %v5102_v2  ;;  %v5338_v2 = vpop.permute.xlu1 %5337 }
0x2451   :  { %v5147_v56 = vmax.f32 %v5142_v19, 0.0 }
0x2453   :  { %6142 = vmatmul.msk.f32.gmra.mxu2 %vm678_vm15, %v5147_v56 }
0x2457   :  { %v5353_v59 = vpop.permute.xlu1 %5352 }
0x24bd   :  { %v5232_v16 = vpop.f32.mrf.mxu2 }
0x24be   :  { %v5233_v18 = vadd.f32 %v5232_v16, %v5191_v34 }
0x24c0   :  { %v8938_v22 = vadd.f32 %v5244_v48, %v5233_v18 }
0x24c2   :  { %v5249_v26 = vmul.f32 0.5, %v8938_v22 }
0x24c4   :  { %6521 = vtanh.f32 %v5249_v26 }
0x24c5   :  { %v5235_v54 = vpop.f32.mrf.mxu2 }
0x24c6   :  { %v5236_v24 = vadd.f32 %v5235_v54, %v5194_v9 }
0x24c8   :  { %v5246_v45 = vadd.f32 %v5244_v48, %v5236_v24 }
0x24ca   :  { %v6522_v4 = vpop.eup %6521  ;;  %v5250_v49 = vmul.f32 0.5, %v5246_v45 }
0x24cb   :  { %v5257_v53 = vadd.f32 1.0, %v6522_v4 }
0x24cc   :  { %6523 = vtanh.f32 %v5250_v49 }
0x24cd   :  { %v8941_v17 = vmul.f32 0.5, %v5257_v53 }
0x24ce   :  { %v5238_v7 = vpop.f32.mrf.mxu2 }
0x24cf   :  { %v5265_v36 = vmul.f32 %v8941_v17, %v8866_v28  ;;  %v5239_v41 = vadd.f32 %v5238_v7, %v5197_v58 }
0x24d1   :  { %v5247_v51 = vadd.f32 %v5244_v48, %v5239_v41  ;;  %6143 = vmatmul.msk.f32.vlgmr.msra.gmra.mxu3 %vm259_vm1, %v5265_v36 }
0x24d2   :  { %v6524_v8 = vpop.eup %6523 }
0x24d3   :  { %v5258_v35 = vadd.f32 1.0, %v6524_v8  ;;  %v5251_v6 = vmul.f32 0.5, %v5247_v51 }
0x24d5   :  { %v8946_v15 = vmul.f32 0.5, %v5258_v35  ;;  %6525 = vtanh.f32 %v5251_v6  ;;  %v5452_v6 = vld [vmem:[%s9156_s14 + $0x18] sm:$0xff] }
0x24d6   :  { %v5241_v42 = vpop.f32.mrf.mxu2  ;;  %5496 = vmatpush.msrb.mxu2 %v5452_v6 }
0x24d7   :  { %v5242_v25 = vadd.f32 %v5241_v42, %v5200_v40  ;;  %v5266_v32 = vmul.f32 %v8946_v15, %v8873_v52  ;;  %v5405_v40 = vld [vmem:[#allocation10 + $0x8] sm:$0xff]  ;;  %v5406_v42 = vld [vmem:[#allocation10 + $0x10] sm:$0xff] }
0x24d9   :  { %v5248_v37 = vadd.f32 %v5244_v48, %v5242_v25  ;;  %6144 = vmatmul.msk.f32.gmra.mxu3 %vm259_vm1, %v5266_v32  ;;  %v5407_v25 = vld [vmem:[#allocation10 + $0x18] sm:$0xff]  ;;  %v5451_v32 = vld [vmem:[%s9156_s14 + $0x10] sm:$0xff] }
0x24da   :  { %5497 = vmatpush.msrb.mxu2 %v5451_v32  ;;  %v5718_v32 = vld [vmem:[%s9158_s16 + $0x10] sm:$0xff] }
0x24db   :  { %v6526_v46 = vpop.eup %6525  ;;  %v5252_v60 = vmul.f32 0.5, %v5248_v37 }
0x24dc   :  { %v5259_v55 = vadd.f32 1.0, %v6526_v46  ;;  %v6152_v46 = vld [vmem:[%s9156_s14 + $0x28] sm:$0xff] }
0x24dd   :  { %6527 = vtanh.f32 %v5252_v60  ;;  %v5449_v60 = vld [vmem:[%s9156_s14] sm:$0xff] }
0x24de   :  { %v5263_v1 = vmul.f32 0.5, %v5259_v55  ;;  %v6159_v55 = vld [vmem:[%s9156_s14 + $0x50] sm:$0xff] }
0x24e0   :  { %v5267_v38 = vmul.f32 %v5263_v1, %v8880_v10 }
0x24e2   :  { %6145 = vmatmul.msk.f32.gmra.mxu3 %vm259_vm1, %v5267_v38  ;;  %v6165_v38 = vld [vmem:[%s9156_s14 + $0x78] sm:$0xff] }
0x24e3   :  { %v6528_v0 = vpop.eup %6527 }
0x24e4   :  { %v5260_v33 = vadd.f32 1.0, %v6528_v0  ;;  %v6158_v0 = vld [vmem:[%s9156_s14 + $0x48] sm:$0xff] }
0x24e6   :  { %v5264_v13 = vmul.f32 0.5, %v5260_v33  ;;  %v6164_v33 = vld [vmem:[%s9156_s14 + $0x70] sm:$0xff] }
0x24e8   :  { %v5268_v44 = vmul.f32 %v5264_v13, %v8887_v30 }
0x24ea   :  { %6146 = vmatmul.msk.f32.gmra.mxu3 %vm259_vm1, %v5268_v44  ;;  %v6163_v44 = vld [vmem:[%s9156_s14 + $0x68] sm:$0xff] }
0x2554   :  { %v5303_v61 = vpop.f32.mrf.mxu3 }
0x255c   :  { %v5306_v62 = vpop.f32.mrf.mxu3 }
0x2565   :  { %v5309_v21 = vpop.f32.mrf.mxu3 }
0x2566   :  { %5323 = vrot.lane.b32.xlu0 %v5309_v21, %s6893_s27  ;;  %v6175_v21 = vld [vmem:[%s9156_s14 + $0xb8] sm:$0xff] }
0x256d   :  { %v5312_v39 = vpop.f32.mrf.mxu3 }
0x256e   :  { %5319 = vrot.lane.b32.xlu0 %v5303_v61, %s6893_s27  ;;  %5325 = vrot.lane.b32.xlu2 %v5312_v39, %s6893_s27  ;;  %v6170_v61 = vld [vmem:[%s9156_s14 + $0x98] sm:$0xff]  ;;  %v6174_v39 = vld [vmem:[%s9156_s14 + $0xb0] sm:$0xff] }
0x2576   :  { %5350 = vrot.lane.b32.xlu0 %v8873_v52, %s6893_s27  ;;  %5321 = vrot.lane.b32.xlu2 %v5306_v62, %s6893_s27  ;;  %v6169_v62 = vld [vmem:[%s9156_s14 + $0x90] sm:$0xff] }
0x257e   :  { %5354 = vrot.lane.b32.xlu2 %v8887_v30, %s6893_s27 }
0x2586   :  { %5348 = vrot.lane.b32.xlu2 %v8866_v28, %s6893_s27 }
0x25c8   :  { %v5326_v29 = vpop.permute.xlu2 %5325 }
0x25c9   :  { %v5334_v50 = vadd.f32 %v5326_v29, %v5248_v37  ;;  %v5450_v37 = vld [vmem:[%s9156_s14 + $0x8] sm:$0xff]  ;;  %v6162_v29 = vld [vmem:[%s9156_s14 + $0x60] sm:$0xff] }
0x25ca   :  { %5498 = vmatpush.msrb.mxu2 %v5450_v37  ;;  %v5716_v37 = vld [vmem:[%s9158_s16] sm:$0xff] }
0x25cb   :  { %v5343_v3 = vadd.f32 %v5338_v2, %v5334_v50  ;;  %v6168_v50 = vld [vmem:[%s9156_s14 + $0x88] sm:$0xff] }
0x25cc   :  { %5499 = vmatpush.msrb.mxu2 %v5449_v60 }
0x25cd   :  { %6529 = vtanh.f32 %v5343_v3  ;;  %v6173_v3 = vld [vmem:[%s9156_s14 + $0xa8] sm:$0xff] }
0x25ce   :  { %5582 = vmatpush.msra.mxu2 %v6170_v61 }
0x25d0   :  { %v5322_v31 = vpop.permute.xlu2 %5321  ;;  %5583 = vmatpush.msra.mxu2 %v6169_v62 }
0x25d1   :  { %v5332_v27 = vadd.f32 %v5322_v31, %v5246_v45  ;;  %v6172_v31 = vld [vmem:[%s9156_s14 + $0xa0] sm:$0xff] }
0x25d2   :  { %5584 = vmatpush.msra.mxu2 %v6168_v50 }
0x25d3   :  { %v6530_v43 = vpop.eup %6529  ;;  %v5341_v12 = vadd.f32 %v5338_v2, %v5332_v27  ;;  %v6179_v27 = vld [vmem:[%s9156_s14 + $0xd0] sm:$0xff] }
0x25d8   :  { %v5324_v20 = vpop.permute.xlu0 %5323  ;;  %v5355_v14 = vpop.permute.xlu2 %5354 }
0x25d9   :  { %v5333_v11 = vadd.f32 %v5324_v20, %v5247_v51  ;;  %v5363_v57 = vsub.f32 %v6530_v43, %v5355_v14  ;;  %v6185_v43 = vld [vmem:[%s9156_s14 + $0xf8] sm:$0xff] }
0x25db   :  { %v5342_v23 = vadd.f32 %v5338_v2, %v5333_v11  ;;  %5374 = vrot.lane.b32.xlu1 %v5363_v57, %s6895_s12  ;;  %v6180_v11 = vld [vmem:[%s9156_s14 + $0xd8] sm:$0xff]  ;;  %v6184_v57 = vld [vmem:[%s9156_s14 + $0xf0] sm:$0xff] }
0x25dd   :  { %6531 = vtanh.f32 %v5342_v23  ;;  %v6183_v23 = vld [vmem:[%s9156_s14 + $0xe8] sm:$0xff] }
0x25de   :  { %6533 = vtanh.f32 %v5341_v12  ;;  %v6178_v12 = vld [vmem:[%s9156_s14 + $0xc8] sm:$0xff] }
0x25e0   :  { %v5320_v19 = vpop.permute.xlu0 %5319  ;;  %v5349_v9 = vpop.permute.xlu2 %5348 }
0x25e1   :  { %v5331_v56 = vadd.f32 %v5320_v19, %v8938_v22  ;;  %v6182_v19 = vld [vmem:[%s9156_s14 + $0xe0] sm:$0xff] }
0x25e3   :  { %v6532_v5 = vpop.eup %6531  ;;  %v5340_v47 = vadd.f32 %v5338_v2, %v5331_v56  ;;  %v6167_v2 = vld [vmem:[%s9156_s14 + $0x80] sm:$0xff] }
0x25e4   :  { %v5362_v63 = vsub.f32 %v6532_v5, %v5353_v59  ;;  %v6534_v34 = vpop.eup %6533  ;;  %5585 = vmatpush.msra.mxu2 %v6167_v2  ;;  %v6177_v56 = vld [vmem:[%s9156_s14 + $0xc0] sm:$0xff] }
0x25e5   :  { %6535 = vtanh.f32 %v5340_v47 }
0x25e6   :  { %5372 = vrot.lane.b32.xlu0 %v5362_v63, %s6895_s12 }
0x25e8   :  { %v5351_v48 = vpop.permute.xlu0 %5350 }
0x25e9   :  { %v5361_v16 = vsub.f32 %v6534_v34, %v5351_v48 }
0x25eb   :  { %v6536_v18 = vpop.eup %6535  ;;  %5370 = vrot.lane.b32.xlu2 %v5361_v16, %s6895_s12  ;;  %v5689_v16 = vld [vmem:[%s9157_s15 + $0x38] sm:$0xff] }
0x25ec   :  { %v5360_v26 = vsub.f32 %v6536_v18, %v5349_v9  ;;  %v5688_v18 = vld [vmem:[%s9157_s15 + $0x30] sm:$0xff]  ;;  %v5687_v9 = vld [vmem:[%s9157_s15 + $0x28] sm:$0xff] }
0x25ee   :  { %5368 = vrot.lane.b32.xlu1 %v5360_v26, %s6895_s12  ;;  %v5686_v26 = vld [vmem:[%s9157_s15 + $0x20] sm:$0xff] }
0x2645   :  { %v5371_v54 = vpop.permute.xlu2 %5370 }
0x2646   :  { %v5381_v22 = vmul.f32 %v5371_v54, %v8946_v15  ;;  %v5404_v15 = vld [vmem:[#allocation10] sm:$0xff]  ;;  %v5685_v54 = vld [vmem:[%s9157_s15 + $0x18] sm:$0xff] }
0x2648   :  { %5390 = vrot.lane.b32.xlu1 %v5381_v22, %s6895_s12  ;;  %v5684_v22 = vld [vmem:[%s9157_s15 + $0x10] sm:$0xff] }
0x264d   :  { %v5375_v24 = vpop.permute.xlu1 %5374 }
0x264e   :  { %v5383_v45 = vmul.f32 %v5375_v24, %v5264_v13  ;;  %v6157_v13 = vld [vmem:[%s9156_s14 + $0x40] sm:$0xff]  ;;  %v5683_v24 = vld [vmem:[%s9157_s15 + $0x8] sm:$0xff] }
0x2650   :  { %5394 = vrot.lane.b32.xlu0 %v5383_v45, %s6895_s12  ;;  %v5682_v45 = vld [vmem:[%s9157_s15] sm:$0xff] }
0x2658   :  { %v5373_v4 = vpop.permute.xlu0 %5372 }
0x2659   :  { %v5382_v49 = vmul.f32 %v5373_v4, %v5263_v1  ;;  %v6151_v1 = vld [vmem:[%s9156_s14 + $0x20] sm:$0xff] }
0x265b   :  { %5392 = vrot.lane.b32.xlu2 %v5382_v49, %s6895_s12 }
0x2660   :  { %v5369_v53 = vpop.permute.xlu1 %5368 }
0x2661   :  { %v5380_v58 = vmul.f32 %v5369_v53, %v8941_v17  ;;  %v6154_v17 = vld [vmem:[%s9156_s14 + $0x38] sm:$0xff] }
0x2662   :  { %5474 = vmatpush.msrb.mxu1 %v6154_v17 }
0x2663   :  { %5388 = vrot.lane.b32.xlu0 %v5380_v58, %s6895_s12 }
0x26b5   :  { %v5393_v7 = vpop.permute.xlu2 %5392 }
0x26b6   :  { %v5402_v8 = vadd.f32 %v5393_v7, %v8880_v10 }
0x26ba   :  { %v5391_v51 = vpop.permute.xlu1 %5390 }
0x26bb   :  { %v5401_v35 = vadd.f32 %v5391_v51, %v8873_v52 }
0x26c2   :  { %v5395_v36 = vpop.permute.xlu0 %5394 }
0x26c3   :  { %v5403_v41 = vadd.f32 %v5395_v36, %v8887_v30  ;;  %v6160_v30 = vld [vmem:[%s9156_s14 + $0x58] sm:$0xff] }
0x26c4   :  { %5524 = vmatpush.msrb.mxu3 %v6160_v30 }
0x26c5   :  { %5432 = vmatpush.msrb.mxu0 %v5403_v41 }
0x26c6   :  { %5525 = vmatpush.msrb.mxu3 %v6159_v55 }
0x26c7   :  { %5433 = vmatpush.msrb.mxu0 %v5402_v8 }
0x26c8   :  { %5526 = vmatpush.msrb.mxu3 %v6158_v0  ;;  %v6326_v0 = vld [vmem:[%s9158_s16 + $0x20] ss:$0 sm:$0xff] }
0x26c9   :  { %5434 = vmatpush.msrb.mxu0 %v5401_v35 }
0x26ca   :  { %5527 = vmatpush.msrb.mxu3 %v6157_v13 }
0x26cc   :  { %5611 = vmatpush.msra.mxu3 %v6175_v21 }
0x26ce   :  { %5612 = vmatpush.msra.mxu3 %v6174_v39 }
0x26d0   :  { %5613 = vmatpush.msra.mxu3 %v6173_v3 }
0x26d2   :  { %5614 = vmatpush.msra.mxu3 %v6172_v31 }
0x26d5   :  { %v5389_v10 = vpop.permute.xlu0 %5388 }
0x26d6   :  { %v5400_v52 = vadd.f32 %v5389_v10, %v8866_v28  ;;  %v6153_v28 = vld [vmem:[%s9156_s14 + $0x30] sm:$0xff]  ;;  %v6324_v10 = vld [vmem:[%s9157_s15 + $0x40] ss:$0 sm:$0xff] }
0x26d7   :  { %5475 = vmatpush.msrb.mxu1 %v6153_v28  ;;  %v5717_v28 = vld [vmem:[%s9158_s16 + $0x8] sm:$0xff] }
0x26d8   :  { %5435 = vmatpush.msrb.mxu0 %v5400_v52 }
0x26d9   :  { %6147 = vmatmul.msk.f32.vlgmr.msrb.gmra.mxu0 %vm259_vm1, %v5404_v15  ;;  %5476 = vmatpush.msrb.mxu1 %v6152_v46  ;;  %v6325_v46 = vld [vmem:[%s9157_s15 + $0x41] ss:$0 sm:$0xff] }
0x26db   :  { %5477 = vmatpush.msrb.mxu1 %v6151_v1 }
0x26dd   :  { %5553 = vmatpush.msra.mxu1 %v6165_v38 }
0x26df   :  { %5554 = vmatpush.msra.mxu1 %v6164_v33 }
0x26e1   :  { %6148 = vmatmul.msk.f32.gmra.mxu0 %vm259_vm1, %v5405_v40  ;;  %5555 = vmatpush.msra.mxu1 %v6163_v44 }
0x26e3   :  { %5556 = vmatpush.msra.mxu1 %v6162_v29 }
0x26e9   :  { %6149 = vmatmul.msk.f32.gmra.mxu0 %vm259_vm1, %v5406_v42 }
0x26f1   :  { %6150 = vmatmul.msk.f32.gmra.mxu0 %vm259_vm1, %v5407_v25  ;;  %v5719_v25 = vld [vmem:[%s9158_s16 + $0x18] sm:$0xff] }
0x2756   :  { %v5437_v20 = vpop.f32.mrf.mxu0 }
0x2757   :  { %v5459_v14 = vrot.slane %v5437_v20, 4  ;;  %6156 = vmatmul.msk.f32.vlgmr.msrb.gmra.mxu2 %vm259_vm1, %v5437_v20 }
0x2758   :  { %5669 = vmatpush.msrb.mxu2 %v6185_v43 }
0x2759   :  { %6155 = vmatmul.msk.f32.vlgmr.msrb.gmra.mxu1 %vm259_vm1, %v5459_v14 }
0x275a   :  { %5640 = vmatpush.msrb.mxu1 %v6180_v11  ;;  %5670 = vmatpush.msrb.mxu2 %v6184_v57 }
0x275c   :  { %5641 = vmatpush.msrb.mxu1 %v6179_v27  ;;  %5671 = vmatpush.msrb.mxu2 %v6183_v23 }
0x275e   :  { %v5440_v5 = vpop.f32.mrf.mxu0  ;;  %5642 = vmatpush.msrb.mxu1 %v6178_v12  ;;  %5672 = vmatpush.msrb.mxu2 %v6182_v19 }
0x275f   :  { %v5538_v59 = vrot.slane %v5440_v5, 4  ;;  %6161 = vmatmul.msk.f32.vlgmr.msrb.gmra.mxu3 %vm259_vm1, %v5440_v5 }
0x2760   :  { %5643 = vmatpush.msrb.mxu1 %v6177_v56  ;;  %5703 = vmatpush.msrb.mxu3 %v5689_v16 }
0x2761   :  { %6166 = vmatmul.msk.f32.vlgmr.msra.gmra.mxu1 %vm259_vm1, %v5538_v59 }
0x2762   :  { %5704 = vmatpush.msrb.mxu3 %v5688_v18  ;;  %5737 = vmatpush.msra.mxu1 %v5719_v25 }
0x2764   :  { %5705 = vmatpush.msrb.mxu3 %v5687_v9  ;;  %5738 = vmatpush.msra.mxu1 %v5718_v32 }
0x2766   :  { %v5443_v47 = vpop.f32.mrf.mxu0  ;;  %5706 = vmatpush.msrb.mxu3 %v5686_v26  ;;  %5739 = vmatpush.msra.mxu1 %v5717_v28 }
0x2767   :  { %v5596_v63 = vrot.slane %v5443_v47, 4  ;;  %6171 = vmatmul.msk.f32.vlgmr.msra.gmra.mxu2 %vm259_vm1, %v5443_v47 }
0x2768   :  { %5707 = vmatpush.msrb.mxu3 %v5685_v54  ;;  %5740 = vmatpush.msra.mxu1 %v5716_v37 }
0x2769   :  { %6176 = vmatmul.msk.f32.vlgmr.msra.gmra.mxu3 %vm259_vm1, %v5596_v63 }
0x276a   :  { %5708 = vmatpush.msrb.mxu3 %v5684_v22 }
0x276c   :  { %5709 = vmatpush.msrb.mxu3 %v5683_v24 }
0x276e   :  { %v5446_v34 = vpop.f32.mrf.mxu0  ;;  %5710 = vmatpush.msrb.mxu3 %v5682_v45 }
0x276f   :  { %v5654_v48 = vrot.slane %v5446_v34, 4  ;;  %6181 = vmatmul.msk.f32.vlgmr.msrb.gmra.mxu1 %vm259_vm1, %v5446_v34 }
0x2771   :  { %6186 = vmatmul.msk.f32.vlgmr.msrb.gmra.mxu2 %vm259_vm1, %v5654_v48 }
0x27d6   :  { %v5479_v4 = vpop.f32.mrf.mxu1 }
0x27da   :  { %v5501_v49 = vpop.f32.mrf.mxu2 }
0x27db   :  { %v5502_v58 = vadd.f32 %v5501_v49, %v5479_v4 }
0x27de   :  { %v5558_v36 = vpop.f32.mrf.mxu1 }
0x27e2   :  { %v5529_v53 = vpop.f32.mrf.mxu3 }
0x27e3   :  { %v5532_v7 = vadd.f32 %v5529_v53, %v5502_v58 }
0x27e5   :  { %v5561_v41 = vadd.f32 %v5558_v36, %v5532_v7 }
0x27ea   :  { %v5587_v51 = vpop.f32.mrf.mxu2 }
0x27eb   :  { %v5590_v8 = vadd.f32 %v5587_v51, %v5561_v41 }
0x27ec   :  { %v5616_v35 = vpop.f32.mrf.mxu3  ;;  %v5645_v17 = vpop.f32.mrf.mxu1 }
0x27ed   :  { %v5619_v6 = vadd.f32 %v5616_v35, %v5590_v8 }
0x27ef   :  { %v5648_v30 = vadd.f32 %v5645_v17, %v5619_v6 }
0x27f4   :  { %v5674_v52 = vpop.f32.mrf.mxu2 }
0x27f5   :  { %v5677_v15 = vadd.f32 %v5674_v52, %v5648_v30 }
0x27f7   :  { %v5680_v40 = vadd.f32 %v6324_v10, %v5677_v15 }
0x27f9   :  { %6537 = vtanh.f32 %v5680_v40 }
0x27ff   :  { %v6538_v42 = vpop.eup %6537 }
0x2800   :  { %6187 = vmatmul.msk.f32.vlgmr.msrb.gmra.mxu3 %vm678_vm15, %v6538_v42  ;;  %vm5750_vm15 = vcmask 257024  }
0x2883   :  { %v5712_v60 = vpop.f32.mrf.mxu3 }
0x2884   :  { %v5713_v55 = vadd.f32 %v6325_v46, %v5712_v60 }
0x2886   :  { %6539 = vtanh.f32 %v5713_v55 }
0x288c   :  { %v6540_v1 = vpop.eup %6539 }
0x288d   :  { %5747 = vrot.lane.b32.xlu2 %v6540_v1, %s6895_s12  ;;  %6188 = vmatmul.msk.f32.vlgmr.msra.gmra.mxu1 %vm259_vm1, %v6540_v1 }
0x28e7   :  { %v5748_v38 = vpop.permute.xlu2 %5747 }
0x28e8   :  { %5751 = vst.msk [vmem:[#allocation17] sm:$0xf] %vm5750_vm15, %v5748_v38 }
0x28e9   :  { %5764 = dma.vmem_to_hbm [thread:$0]  %s5760_s30, 64, %s5762_s9, [#allocation4]  }
0x290a   :  { %v5742_v33 = vpop.f32.mrf.mxu1 }
0x290b   :  { %v5743_v13 = vadd.f32 %v6326_v0, %v5742_v33 }
0x290d   :  { %5746 = vst.msk [vmem:[%s9159_s17] sm:$0xf] %vm5745_vm9, %v5743_v13 }
0x290e   :  { %6879 = dma.done.wait [#allocation4], 64  }
0x290f   :  { %6880 = vsyncadd [#allocation4], 4294967232 }
0x2910   :  { %5771 = vsyncpa [#allocation3], 1 }
0x2911   :  { %5772 = vsyncpa [#allocation6], 1 }
0x2912   :  { %5773 = vsyncpa [#allocation9], 1 }
0x2913   :  { %5774 = vsyncpa [#allocation12], 1 }
0x2914   :  { %5775 = vsyncpa [#allocation15], 1 }
0x2915   :  { %5776 = vsyncpa [#allocation4], 1 }

</bundles_post_ra>
